<compile_context>
chip_gen: v7x
topology: tpu7x:2x2x1
jax: 0.10.0
libtpu: 0.0.40
codegen_flags: <defaults>
</compile_context>

<pallas_src>
import jax
import jax.numpy as jnp
from jax import lax
from jax.experimental import pallas as pl
from jax.experimental.pallas import tpu as pltpu

LEAK = 0.2
EPS = 1e-5


def _sigmoid(x):
    # numerically stable sigmoid via EUP tanh (avoids exp overflow)
    return 0.5 * (jnp.tanh(0.5 * x) + 1.0)


def _leaky(x):
    return jnp.where(x > 0, x, LEAK * x)


def _bn_lrelu(v, gamma, beta):
    # training-mode BatchNorm (biased variance over the lane axis), one pass
    mean = jnp.mean(v, axis=1, keepdims=True)
    var = jnp.maximum(jnp.mean(v * v, axis=1, keepdims=True) - mean * mean, 0.0)
    return _leaky((v - mean) * lax.rsqrt(var + EPS) * gamma + beta)


def _interp_matrix(out_size, in_size):
    # 1-D bilinear interpolation matrix, align_corners=True (as in the module)
    if in_size == 1:
        return jnp.ones((out_size, 1), jnp.float32)
    src = jnp.arange(out_size, dtype=jnp.float32) * (in_size - 1) / (out_size - 1)
    i0 = jnp.clip(jnp.floor(src).astype(jnp.int32), 0, in_size - 2)
    frac = src - i0.astype(jnp.float32)
    rows = jnp.arange(out_size)
    A = jnp.zeros((out_size, in_size), jnp.float32)
    A = A.at[rows, i0].add(1.0 - frac)
    A = A.at[rows, i0 + 1].add(frac)
    return A


def _shifts_and_masks(k, pad, N, H, W):
    """Per-tap flat-index shift (python int) + validity mask (k*k, N*H*W)."""
    HW = H * W
    L = N * HW
    idx = jnp.arange(L)
    hh = (idx // W) % H
    ww = idx % W
    shifts, masks = [], []
    for ky in range(k):
        for kx in range(k):
            dy, dx = ky - pad, kx - pad
            shifts.append(dy * W + dx)
            m = ((hh + dy >= 0) & (hh + dy < H) & (ww + dx >= 0) & (ww + dx < W))
            masks.append(m.astype(jnp.float32))
    return shifts, jnp.stack(masks, axis=0)


def init_params(key, input_channels, output_channels, ratio=8, sa_kernel=7):
    cmid = input_channels // 2
    cr = max(output_channels // ratio, 1)
    keys = jax.random.split(key, 12)

    def n(k, shape, scale=0.1):
        return scale * jax.random.normal(k, shape, jnp.float32)

    return dict(
        w1=n(keys[0], (cmid, input_channels, 3, 3)), b1=n(keys[1], (cmid,)),
        g1=1.0 + n(keys[2], (cmid,)), be1=n(keys[3], (cmid,)),
        w2=n(keys[4], (output_channels, cmid, 3, 3)), b2=n(keys[5], (output_channels,)),
        g2=1.0 + n(keys[6], (output_channels,)), be2=n(keys[7], (output_channels,)),
        ca_w1=n(keys[8], (cr, output_channels)),
        ca_w2=n(keys[9], (output_channels, cr)),
        sa_w=n(keys[10], (1, 2, sa_kernel, sa_kernel)),
        g3=1.0 + n(keys[11], (output_channels,)),
        be3=jnp.zeros((output_channels,), jnp.float32),
    )


def up_cbam_forward(params, x1, x2):
    x1 = x1.astype(jnp.float32)
    x2 = x2.astype(jnp.float32)
    N, C1, H1, W1 = x1.shape
    _, C2, H, W = x2.shape
    HW, L = H * W, N * H * W
    Cin = C1 + C2
    Cmid = params["w1"].shape[0]
    Cout = params["w2"].shape[0]
    sa_k = params["sa_w"].shape[-1]
    sa_pad = sa_k // 2

    # ---- host-side constant prep (shape-only, tiny) --------------------------
    # upsample (align_corners=True) + F.pad folded into a block-diag matrix
    Ho, Wo = 2 * H1, 2 * W1
    diffY, diffX = H - Ho, W - Wo
    A_hp = jnp.zeros((H, H1), jnp.float32).at[
        diffY // 2:diffY // 2 + Ho, :].set(_interp_matrix(Ho, H1))
    A_wp = jnp.zeros((W, W1), jnp.float32).at[
        diffX // 2:diffX // 2 + Wo, :].set(_interp_matrix(Wo, W1))
    upM = jnp.kron(jnp.eye(N, dtype=jnp.float32),
                   jnp.kron(A_hp, A_wp).T)                    # (N*H1*W1, L)

    # channel-major flattening of the inputs
    x2f = jnp.transpose(x2, (1, 0, 2, 3)).reshape(C2, L)
    x1f = jnp.transpose(x1, (1, 0, 2, 3)).reshape(C1, N * H1 * W1)

    # conv weights folded: each conv becomes ONE matmul over a 9*Cin K axis
    w1f = jnp.transpose(params["w1"], (0, 2, 3, 1)).reshape(Cmid, 9 * Cin)
    w2f = jnp.transpose(params["w2"], (0, 2, 3, 1)).reshape(Cout, 9 * Cmid)
    wspf = jnp.transpose(params["sa_w"], (0, 2, 3, 1)).reshape(1, 2 * sa_k * sa_k)

    shifts3, mask3 = _shifts_and_masks(3, 1, N, H, W)
    shifts7, mask7 = _shifts_and_masks(sa_k, sa_pad, N, H, W)

    sid = jnp.arange(L) // HW
    expand = (sid[None, :] == jnp.arange(N)[:, None]).astype(jnp.float32)  # (N, L)
    pavg = expand.T / float(HW)                                            # (L, N)
    eyeN = jnp.eye(N, dtype=jnp.float32)

    max_shift = max(W + 1, sa_pad * W + sa_pad)
    PAD = ((max_shift + 127) // 128) * 128   # lane-aligned zero pad width

    b1 = params["b1"].reshape(Cmid, 1)
    g1 = params["g1"].reshape(Cmid, 1)
    be1 = params["be1"].reshape(Cmid, 1)
    b2 = params["b2"].reshape(Cout, 1)
    g2 = params["g2"].reshape(Cout, 1)
    be2 = params["be2"].reshape(Cout, 1)
    g3 = params["g3"].reshape(Cout, 1)
    be3 = params["be3"].reshape(Cout, 1)

    def kernel(x2_ref, x1_ref, up_ref,
               w1_ref, b1_ref, g1_ref, be1_ref,
               w2_ref, b2_ref, g2_ref, be2_ref,
               caw1_ref, caw2_ref, wsp_ref, g3_ref, be3_ref,
               m3_ref, m7_ref, pavg_ref, exp_ref, eye_ref,
               o_ref,
               xpad, h1pad, sppad, col1, col2, spcol):
        f32 = jnp.float32

        # 1) upsample + F.pad + channel concat, fully in VMEM
        x1u = jnp.dot(x1_ref[...], up_ref[...], preferred_element_type=f32)
        xpad[...] = jnp.zeros_like(xpad)
        xpad[0:C2, PAD:PAD + L] = x2_ref[...]
        xpad[C2:Cin, PAD:PAD + L] = x1u

        # 2) conv1 3x3 + BN + LeakyReLU: im2col from shifted slices, one matmul
        for t, s in enumerate(shifts3):
            col1[t * Cin:(t + 1) * Cin, :] = (
                xpad[:, PAD + s:PAD + s + L] * m3_ref[t:t + 1, :])
        h1 = _bn_lrelu(
            jnp.dot(w1_ref[...], col1[...], preferred_element_type=f32)
            + b1_ref[...], g1_ref[...], be1_ref[...])                 # (Cmid, L)

        # 3) conv2 3x3 + BN + LeakyReLU (h1 never leaves VMEM)
        h1pad[...] = jnp.zeros_like(h1pad)
        h1pad[:, PAD:PAD + L] = h1
        for t, s in enumerate(shifts3):
            col2[t * Cmid:(t + 1) * Cmid, :] = (
                h1pad[:, PAD + s:PAD + s + L] * m3_ref[t:t + 1, :])
        h2 = _bn_lrelu(
            jnp.dot(w2_ref[...], col2[...], preferred_element_type=f32)
            + b2_ref[...], g2_ref[...], be2_ref[...])                 # (Cout, L)

        # 4) CBAM channel attention (per-sample pools via matmul / lane slices)
        avg = jnp.dot(h2, pavg_ref[...], preferred_element_type=f32)  # (Cout, N)
        mx = jnp.max(h2[:, 0:HW], axis=1, keepdims=True) * eye_ref[0:1, :]
        for n in range(1, N):
            mx = mx + (jnp.max(h2[:, n * HW:(n + 1) * HW], axis=1, keepdims=True)
                       * eye_ref[n:n + 1, :])                         # (Cout, N)

        def mlp(v):
            hmid = jnp.maximum(
                jnp.dot(caw1_ref[...], v, preferred_element_type=f32), 0.0)
            return jnp.dot(caw2_ref[...], hmid, preferred_element_type=f32)

        scale = _sigmoid(mlp(avg) + mlp(mx))                          # (Cout, N)
        yca = h2 * jnp.dot(scale, exp_ref[...], preferred_element_type=f32)

        # 5) CBAM spatial attention: 7x7 conv on [avg_c, max_c] as ONE matmul
        sppad[...] = jnp.zeros_like(sppad)
        sppad[0:1, PAD:PAD + L] = jnp.mean(yca, axis=0, keepdims=True)
        sppad[1:2, PAD:PAD + L] = jnp.max(yca, axis=0, keepdims=True)
        for t, s in enumerate(shifts7):
            spcol[2 * t:2 * t + 2, :] = (
                sppad[:, PAD + s:PAD + s + L] * m7_ref[t:t + 1, :])
        att = _sigmoid(jnp.dot(wsp_ref[...], spcol[...],
                               preferred_element_type=f32))           # (1, L)

        # 6) final BatchNorm + LeakyReLU, lane-dense (Cout, L) output
        o_ref[...] = _bn_lrelu(yca * att, g3_ref[...], be3_ref[...])

    out = pl.pallas_call(
        kernel,
        out_shape=jax.ShapeDtypeStruct((Cout, L), jnp.float32),
        scratch_shapes=[
            pltpu.VMEM((Cin, L + 2 * PAD), jnp.float32),     # zero-padded x
            pltpu.VMEM((Cmid, L + 2 * PAD), jnp.float32),    # zero-padded h1
            pltpu.VMEM((2, L + 2 * PAD), jnp.float32),       # zero-padded [avg;max]
            pltpu.VMEM((9 * Cin, L), jnp.float32),           # conv1 im2col
            pltpu.VMEM((9 * Cmid, L), jnp.float32),          # conv2 im2col
            pltpu.VMEM((2 * sa_k * sa_k, L), jnp.float32),   # 7x7 im2col
        ],
    )(x2f, x1f, upM, w1f, b1, g1, be1, w2f, b2, g2, be2,
      params["ca_w1"], params["ca_w2"], wspf, g3, be3,
      mask3, mask7, pavg, expand, eyeN)

    # back to NCHW (layout glue only)
    return jnp.transpose(out.reshape(Cout, N, H, W), (1, 0, 2, 3))


if __name__ == "__main__":
    key = jax.random.PRNGKey(0)
    k1, k2, kp = jax.random.split(key, 3)

    # UNet-style shapes: x1 is the low-res decoder feature, x2 the skip feature.
    N, C1, H1, W1 = 2, 4, 8, 8
    C2, H2, W2 = 4, 16, 16
    input_channels = C1 + C2          # 8 (channel dim seen by DoubleConv)
    output_channels = 8

    x1 = jax.random.normal(k1, (N, C1, H1, W1), jnp.float32)
    x2 = jax.random.normal(k2, (N, C2, H2, W2), jnp.float32)
    params = init_params(kp, input_channels, output_channels)

    out = jax.jit(up_cbam_forward)(params, x1, x2)
    out = jax.block_until_ready(out)
    assert out.shape == (N, output_channels, H2, W2), out.shape
    assert jnp.all(jnp.isfinite(out))
    print("KERNEL_OK")
</pallas_src>

<mosaic_0001>
module attributes {stable_mosaic.version = 11 : i64} {
  func.func private @main(%arg0: i32) attributes {dimension_semantics = [#tpu.dimension_semantics<core_parallel>], iteration_bounds = array<i64: 2>, tpu.core_type = #tpu.core_type<sc_scalar_subcore>, window_params = []} {
    return
  }
}

module attributes {stable_mosaic.version = 11 : i64} {
  func.func private @main(%arg0: i32) attributes {dimension_semantics = [#tpu.dimension_semantics<core_parallel>], iteration_bounds = array<i64: 2>, tpu.core_type = #tpu.core_type<sc_scalar_subcore>, window_params = []} {
    return
  }
}

module attributes {stable_mosaic.version = 11 : i64} {
  func.func @kernel(%arg0: memref<4x512xf32, #tpu.memory_space<vmem>>, %arg1: memref<4x128xf32, #tpu.memory_space<vmem>>, %arg2: memref<128x512xf32, #tpu.memory_space<vmem>>, %arg3: memref<4x72xf32, #tpu.memory_space<vmem>>, %arg4: memref<4x1xf32, #tpu.memory_space<vmem>>, %arg5: memref<4x1xf32, #tpu.memory_space<vmem>>, %arg6: memref<4x1xf32, #tpu.memory_space<vmem>>, %arg7: memref<8x36xf32, #tpu.memory_space<vmem>>, %arg8: memref<8x1xf32, #tpu.memory_space<vmem>>, %arg9: memref<8x1xf32, #tpu.memory_space<vmem>>, %arg10: memref<8x1xf32, #tpu.memory_space<vmem>>, %arg11: memref<1x8xf32, #tpu.memory_space<vmem>>, %arg12: memref<8x1xf32, #tpu.memory_space<vmem>>, %arg13: memref<1x98xf32, #tpu.memory_space<vmem>>, %arg14: memref<8x1xf32, #tpu.memory_space<vmem>>, %arg15: memref<8x1xf32, #tpu.memory_space<vmem>>, %arg16: memref<9x512xf32, #tpu.memory_space<vmem>>, %arg17: memref<49x512xf32, #tpu.memory_space<vmem>>, %arg18: memref<512x2xf32, #tpu.memory_space<vmem>>, %arg19: memref<2x512xf32, #tpu.memory_space<vmem>>, %arg20: memref<2x2xf32, #tpu.memory_space<vmem>>, %arg21: memref<8x512xf32, #tpu.memory_space<vmem>>, %arg22: memref<8x768xf32, #tpu.memory_space<vmem>>, %arg23: memref<4x768xf32, #tpu.memory_space<vmem>>, %arg24: memref<2x768xf32, #tpu.memory_space<vmem>>, %arg25: memref<72x512xf32, #tpu.memory_space<vmem>>, %arg26: memref<36x512xf32, #tpu.memory_space<vmem>>, %arg27: memref<98x512xf32, #tpu.memory_space<vmem>>) attributes {dimension_semantics = [], scalar_prefetch = 0 : i64, scratch_operands = 6 : i64, tpu.core_type = #tpu.core_type<tc>} {
    %c0 = arith.constant 0 : index
    %c0_0 = arith.constant 0 : index
    %0 = vector.load %arg1[%c0, %c0_0] : memref<4x128xf32, #tpu.memory_space<vmem>>, vector<4x128xf32>
    %c0_1 = arith.constant 0 : index
    %c0_2 = arith.constant 0 : index
    %1 = vector.load %arg2[%c0_1, %c0_2] : memref<128x512xf32, #tpu.memory_space<vmem>>, vector<128x512xf32>
    %cst = arith.constant dense<0.000000e+00> : vector<4x512xf32>
    %2 = tpu.matmul %0, %1, %cst {dimension_numbers = #tpu.dot_dimension_numbers<[1], [0], [0], [1], [0, 0, 1, 1], [], []>} : vector<4x128xf32>, vector<128x512xf32>, vector<4x512xf32> -> vector<4x512xf32>
    %cst_3 = arith.constant 0.000000e+00 : f32
    %3 = vector.broadcast %cst_3 : f32 to vector<8x768xf32>
    %c0_4 = arith.constant 0 : index
    %c0_5 = arith.constant 0 : index
    %4 = vector.load %arg22[%c0_4, %c0_5] : memref<8x768xf32, #tpu.memory_space<vmem>>, vector<8x768xf32>
    tpu.vector_store %arg22[%c0_4, %c0_5], %3 {strides = array<i32>} : memref<8x768xf32, #tpu.memory_space<vmem>>, vector<8x768xf32>,
    %c0_6 = arith.constant 0 : index
    %c0_7 = arith.constant 0 : index
    %5 = vector.load %arg0[%c0_6, %c0_7] : memref<4x512xf32, #tpu.memory_space<vmem>>, vector<4x512xf32>
    %c0_8 = arith.constant 0 : index
    %c128 = arith.constant 128 : index
    %6 = vector.load %arg22[%c0_8, %c128] : memref<8x768xf32, #tpu.memory_space<vmem>>, vector<4x512xf32>
    tpu.vector_store %arg22[%c0_8, %c128], %5 {strides = array<i32>} : memref<8x768xf32, #tpu.memory_space<vmem>>, vector<4x512xf32>,
    %c4 = arith.constant 4 : index
    %c128_9 = arith.constant 128 : index
    %7 = vector.load %arg22[%c4, %c128_9] : memref<8x768xf32, #tpu.memory_space<vmem>>, vector<4x512xf32>
    tpu.vector_store %arg22[%c4, %c128_9], %2 {strides = array<i32>} : memref<8x768xf32, #tpu.memory_space<vmem>>, vector<4x512xf32>,
    %c0_10 = arith.constant 0 : index
    %c111 = arith.constant 111 : index
    %8 = vector.load %arg22[%c0_10, %c111] : memref<8x768xf32, #tpu.memory_space<vmem>>, vector<8x512xf32>
    %c0_11 = arith.constant 0 : index
    %c0_12 = arith.constant 0 : index
    %9 = vector.load %arg16[%c0_11, %c0_12] : memref<9x512xf32, #tpu.memory_space<vmem>>, vector<1x512xf32>
    %10 = vector.broadcast %9 : vector<1x512xf32> to vector<8x512xf32>
    %11 = arith.mulf %8, %10 : vector<8x512xf32>
    %c0_13 = arith.constant 0 : index
    %c0_14 = arith.constant 0 : index
    %12 = vector.load %arg25[%c0_13, %c0_14] : memref<72x512xf32, #tpu.memory_space<vmem>>, vector<8x512xf32>
    tpu.vector_store %arg25[%c0_13, %c0_14], %11 {strides = array<i32>} : memref<72x512xf32, #tpu.memory_space<vmem>>, vector<8x512xf32>,
    %c0_15 = arith.constant 0 : index
    %c112 = arith.constant 112 : index
    %13 = vector.load %arg22[%c0_15, %c112] : memref<8x768xf32, #tpu.memory_space<vmem>>, vector<8x512xf32>
    %c1 = arith.constant 1 : index
    %c0_16 = arith.constant 0 : index
    %14 = vector.load %arg16[%c1, %c0_16] : memref<9x512xf32, #tpu.memory_space<vmem>>, vector<1x512xf32>
    %15 = vector.broadcast %14 : vector<1x512xf32> to vector<8x512xf32>
    %16 = arith.mulf %13, %15 : vector<8x512xf32>
    %c8 = arith.constant 8 : index
    %c0_17 = arith.constant 0 : index
    %17 = vector.load %arg25[%c8, %c0_17] : memref<72x512xf32, #tpu.memory_space<vmem>>, vector<8x512xf32>
    tpu.vector_store %arg25[%c8, %c0_17], %16 {strides = array<i32>} : memref<72x512xf32, #tpu.memory_space<vmem>>, vector<8x512xf32>,
    %c0_18 = arith.constant 0 : index
    %c113 = arith.constant 113 : index
    %18 = vector.load %arg22[%c0_18, %c113] : memref<8x768xf32, #tpu.memory_space<vmem>>, vector<8x512xf32>
    %c2 = arith.constant 2 : index
    %c0_19 = arith.constant 0 : index
    %19 = vector.load %arg16[%c2, %c0_19] : memref<9x512xf32, #tpu.memory_space<vmem>>, vector<1x512xf32>
    %20 = vector.broadcast %19 : vector<1x512xf32> to vector<8x512xf32>
    %21 = arith.mulf %18, %20 : vector<8x512xf32>
    %c16 = arith.constant 16 : index
    %c0_20 = arith.constant 0 : index
    %22 = vector.load %arg25[%c16, %c0_20] : memref<72x512xf32, #tpu.memory_space<vmem>>, vector<8x512xf32>
    tpu.vector_store %arg25[%c16, %c0_20], %21 {strides = array<i32>} : memref<72x512xf32, #tpu.memory_space<vmem>>, vector<8x512xf32>,
    %c0_21 = arith.constant 0 : index
    %c127 = arith.constant 127 : index
    %23 = vector.load %arg22[%c0_21, %c127] : memref<8x768xf32, #tpu.memory_space<vmem>>, vector<8x512xf32>
    %c3 = arith.constant 3 : index
    %c0_22 = arith.constant 0 : index
    %24 = vector.load %arg16[%c3, %c0_22] : memref<9x512xf32, #tpu.memory_space<vmem>>, vector<1x512xf32>
    %25 = vector.broadcast %24 : vector<1x512xf32> to vector<8x512xf32>
    %26 = arith.mulf %23, %25 : vector<8x512xf32>
    %c24 = arith.constant 24 : index
    %c0_23 = arith.constant 0 : index
    %27 = vector.load %arg25[%c24, %c0_23] : memref<72x512xf32, #tpu.memory_space<vmem>>, vector<8x512xf32>
    tpu.vector_store %arg25[%c24, %c0_23], %26 {strides = array<i32>} : memref<72x512xf32, #tpu.memory_space<vmem>>, vector<8x512xf32>,
    %c0_24 = arith.constant 0 : index
    %c128_25 = arith.constant 128 : index
    %28 = vector.load %arg22[%c0_24, %c128_25] : memref<8x768xf32, #tpu.memory_space<vmem>>, vector<8x512xf32>
    %c4_26 = arith.constant 4 : index
    %c0_27 = arith.constant 0 : index
    %29 = vector.load %arg16[%c4_26, %c0_27] : memref<9x512xf32, #tpu.memory_space<vmem>>, vector<1x512xf32>
    %30 = vector.broadcast %29 : vector<1x512xf32> to vector<8x512xf32>
    %31 = arith.mulf %28, %30 : vector<8x512xf32>
    %c32 = arith.constant 32 : index
    %c0_28 = arith.constant 0 : index
    %32 = vector.load %arg25[%c32, %c0_28] : memref<72x512xf32, #tpu.memory_space<vmem>>, vector<8x512xf32>
    tpu.vector_store %arg25[%c32, %c0_28], %31 {strides = array<i32>} : memref<72x512xf32, #tpu.memory_space<vmem>>, vector<8x512xf32>,
    %c0_29 = arith.constant 0 : index
    %c129 = arith.constant 129 : index
    %33 = vector.load %arg22[%c0_29, %c129] : memref<8x768xf32, #tpu.memory_space<vmem>>, vector<8x512xf32>
    %c5 = arith.constant 5 : index
    %c0_30 = arith.constant 0 : index
    %34 = vector.load %arg16[%c5, %c0_30] : memref<9x512xf32, #tpu.memory_space<vmem>>, vector<1x512xf32>
    %35 = vector.broadcast %34 : vector<1x512xf32> to vector<8x512xf32>
    %36 = arith.mulf %33, %35 : vector<8x512xf32>
    %c40 = arith.constant 40 : index
    %c0_31 = arith.constant 0 : index
    %37 = vector.load %arg25[%c40, %c0_31] : memref<72x512xf32, #tpu.memory_space<vmem>>, vector<8x512xf32>
    tpu.vector_store %arg25[%c40, %c0_31], %36 {strides = array<i32>} : memref<72x512xf32, #tpu.memory_space<vmem>>, vector<8x512xf32>,
    %c0_32 = arith.constant 0 : index
    %c143 = arith.constant 143 : index
    %38 = vector.load %arg22[%c0_32, %c143] : memref<8x768xf32, #tpu.memory_space<vmem>>, vector<8x512xf32>
    %c6 = arith.constant 6 : index
    %c0_33 = arith.constant 0 : index
    %39 = vector.load %arg16[%c6, %c0_33] : memref<9x512xf32, #tpu.memory_space<vmem>>, vector<1x512xf32>
    %40 = vector.broadcast %39 : vector<1x512xf32> to vector<8x512xf32>
    %41 = arith.mulf %38, %40 : vector<8x512xf32>
    %c48 = arith.constant 48 : index
    %c0_34 = arith.constant 0 : index
    %42 = vector.load %arg25[%c48, %c0_34] : memref<72x512xf32, #tpu.memory_space<vmem>>, vector<8x512xf32>
    tpu.vector_store %arg25[%c48, %c0_34], %41 {strides = array<i32>} : memref<72x512xf32, #tpu.memory_space<vmem>>, vector<8x512xf32>,
    %c0_35 = arith.constant 0 : index
    %c144 = arith.constant 144 : index
    %43 = vector.load %arg22[%c0_35, %c144] : memref<8x768xf32, #tpu.memory_space<vmem>>, vector<8x512xf32>
    %c7 = arith.constant 7 : index
    %c0_36 = arith.constant 0 : index
    %44 = vector.load %arg16[%c7, %c0_36] : memref<9x512xf32, #tpu.memory_space<vmem>>, vector<1x512xf32>
    %45 = vector.broadcast %44 : vector<1x512xf32> to vector<8x512xf32>
    %46 = arith.mulf %43, %45 : vector<8x512xf32>
    %c56 = arith.constant 56 : index
    %c0_37 = arith.constant 0 : index
    %47 = vector.load %arg25[%c56, %c0_37] : memref<72x512xf32, #tpu.memory_space<vmem>>, vector<8x512xf32>
    tpu.vector_store %arg25[%c56, %c0_37], %46 {strides = array<i32>} : memref<72x512xf32, #tpu.memory_space<vmem>>, vector<8x512xf32>,
    %c0_38 = arith.constant 0 : index
    %c145 = arith.constant 145 : index
    %48 = vector.load %arg22[%c0_38, %c145] : memref<8x768xf32, #tpu.memory_space<vmem>>, vector<8x512xf32>
    %c8_39 = arith.constant 8 : index
    %c0_40 = arith.constant 0 : index
    %49 = vector.load %arg16[%c8_39, %c0_40] : memref<9x512xf32, #tpu.memory_space<vmem>>, vector<1x512xf32>
    %50 = vector.broadcast %49 : vector<1x512xf32> to vector<8x512xf32>
    %51 = arith.mulf %48, %50 : vector<8x512xf32>
    %c64 = arith.constant 64 : index
    %c0_41 = arith.constant 0 : index
    %52 = vector.load %arg25[%c64, %c0_41] : memref<72x512xf32, #tpu.memory_space<vmem>>, vector<8x512xf32>
    tpu.vector_store %arg25[%c64, %c0_41], %51 {strides = array<i32>} : memref<72x512xf32, #tpu.memory_space<vmem>>, vector<8x512xf32>,
    %c0_42 = arith.constant 0 : index
    %c0_43 = arith.constant 0 : index
    %53 = vector.load %arg3[%c0_42, %c0_43] : memref<4x72xf32, #tpu.memory_space<vmem>>, vector<4x72xf32>
    %c0_44 = arith.constant 0 : index
    %c0_45 = arith.constant 0 : index
    %54 = vector.load %arg25[%c0_44, %c0_45] : memref<72x512xf32, #tpu.memory_space<vmem>>, vector<72x512xf32>
    %cst_46 = arith.constant dense<0.000000e+00> : vector<4x512xf32>
    %55 = tpu.matmul %53, %54, %cst_46 {dimension_numbers = #tpu.dot_dimension_numbers<[1], [0], [0], [1], [0, 0, 1, 1], [], []>} : vector<4x72xf32>, vector<72x512xf32>, vector<4x512xf32> -> vector<4x512xf32>
    %c0_47 = arith.constant 0 : index
    %c0_48 = arith.constant 0 : index
    %56 = vector.load %arg4[%c0_47, %c0_48] : memref<4x1xf32, #tpu.memory_space<vmem>>, vector<4x1xf32>
    %57 = vector.broadcast %56 : vector<4x1xf32> to vector<4x512xf32>
    %58 = arith.addf %55, %57 : vector<4x512xf32>
    %c0_49 = arith.constant 0 : index
    %c0_50 = arith.constant 0 : index
    %59 = vector.load %arg5[%c0_49, %c0_50] : memref<4x1xf32, #tpu.memory_space<vmem>>, vector<4x1xf32>
    %c0_51 = arith.constant 0 : index
    %c0_52 = arith.constant 0 : index
    %60 = vector.load %arg6[%c0_51, %c0_52] : memref<4x1xf32, #tpu.memory_space<vmem>>, vector<4x1xf32>
    %cst_53 = arith.constant dense<0.000000e+00> : vector<4xf32>
    %61 = vector.multi_reduction <add>, %58, %cst_53 [1] : vector<4x512xf32> to vector<4xf32>
    %62 = vector.shape_cast %61 : vector<4xf32> to vector<4x1xf32>
    %cst_54 = arith.constant 5.120000e+02 : f32
    %63 = vector.broadcast %cst_54 : f32 to vector<4x1xf32>
    %64 = arith.divf %62, %63 : vector<4x1xf32>
    %65 = arith.mulf %58, %58 : vector<4x512xf32>
    %cst_55 = arith.constant dense<0.000000e+00> : vector<4xf32>
    %66 = vector.multi_reduction <add>, %65, %cst_55 [1] : vector<4x512xf32> to vector<4xf32>
    %67 = vector.shape_cast %66 : vector<4xf32> to vector<4x1xf32>
    %cst_56 = arith.constant 5.120000e+02 : f32
    %68 = vector.broadcast %cst_56 : f32 to vector<4x1xf32>
    %69 = arith.divf %67, %68 : vector<4x1xf32>
    %70 = arith.mulf %64, %64 : vector<4x1xf32>
    %71 = arith.subf %69, %70 : vector<4x1xf32>
    %cst_57 = arith.constant 0.000000e+00 : f32
    %72 = vector.broadcast %cst_57 : f32 to vector<4x1xf32>
    %73 = arith.maximumf %71, %72 : vector<4x1xf32>
    %74 = vector.broadcast %64 : vector<4x1xf32> to vector<4x512xf32>
    %75 = arith.subf %58, %74 : vector<4x512xf32>
    %cst_58 = arith.constant 9.99999974E-6 : f32
    %76 = vector.broadcast %cst_58 : f32 to vector<4x1xf32>
    %77 = arith.addf %73, %76 : vector<4x1xf32>
    %78 = math.rsqrt %77 : vector<4x1xf32>
    %79 = vector.broadcast %78 : vector<4x1xf32> to vector<4x512xf32>
    %80 = arith.mulf %75, %79 : vector<4x512xf32>
    %81 = vector.broadcast %59 : vector<4x1xf32> to vector<4x512xf32>
    %82 = arith.mulf %80, %81 : vector<4x512xf32>
    %83 = vector.broadcast %60 : vector<4x1xf32> to vector<4x512xf32>
    %84 = arith.addf %82, %83 : vector<4x512xf32>
    %cst_59 = arith.constant 0.000000e+00 : f32
    %85 = vector.broadcast %cst_59 : f32 to vector<4x512xf32>
    %86 = arith.cmpf ogt, %84, %85 : vector<4x512xf32>
    %cst_60 = arith.constant 2.000000e-01 : f32
    %87 = vector.broadcast %cst_60 : f32 to vector<4x512xf32>
    %88 = arith.mulf %87, %84 : vector<4x512xf32>
    %89 = arith.select %86, %84, %88 : vector<4x512xi1>, vector<4x512xf32>
    %cst_61 = arith.constant 0.000000e+00 : f32
    %90 = vector.broadcast %cst_61 : f32 to vector<4x768xf32>
    %c0_62 = arith.constant 0 : index
    %c0_63 = arith.constant 0 : index
    %91 = vector.load %arg23[%c0_62, %c0_63] : memref<4x768xf32, #tpu.memory_space<vmem>>, vector<4x768xf32>
    tpu.vector_store %arg23[%c0_62, %c0_63], %90 {strides = array<i32>} : memref<4x768xf32, #tpu.memory_space<vmem>>, vector<4x768xf32>,
    %c0_64 = arith.constant 0 : index
    %c128_65 = arith.constant 128 : index
    %92 = vector.load %arg23[%c0_64, %c128_65] : memref<4x768xf32, #tpu.memory_space<vmem>>, vector<4x512xf32>
    tpu.vector_store %arg23[%c0_64, %c128_65], %89 {strides = array<i32>} : memref<4x768xf32, #tpu.memory_space<vmem>>, vector<4x512xf32>,
    %c0_66 = arith.constant 0 : index
    %c111_67 = arith.constant 111 : index
    %93 = vector.load %arg23[%c0_66, %c111_67] : memref<4x768xf32, #tpu.memory_space<vmem>>, vector<4x512xf32>
    %c0_68 = arith.constant 0 : index
    %c0_69 = arith.constant 0 : index
    %94 = vector.load %arg16[%c0_68, %c0_69] : memref<9x512xf32, #tpu.memory_space<vmem>>, vector<1x512xf32>
    %95 = vector.broadcast %94 : vector<1x512xf32> to vector<4x512xf32>
    %96 = arith.mulf %93, %95 : vector<4x512xf32>
    %c0_70 = arith.constant 0 : index
    %c0_71 = arith.constant 0 : index
    %97 = vector.load %arg26[%c0_70, %c0_71] : memref<36x512xf32, #tpu.memory_space<vmem>>, vector<4x512xf32>
    tpu.vector_store %arg26[%c0_70, %c0_71], %96 {strides = array<i32>} : memref<36x512xf32, #tpu.memory_space<vmem>>, vector<4x512xf32>,
    %c0_72 = arith.constant 0 : index
    %c112_73 = arith.constant 112 : index
    %98 = vector.load %arg23[%c0_72, %c112_73] : memref<4x768xf32, #tpu.memory_space<vmem>>, vector<4x512xf32>
    %c1_74 = arith.constant 1 : index
    %c0_75 = arith.constant 0 : index
    %99 = vector.load %arg16[%c1_74, %c0_75] : memref<9x512xf32, #tpu.memory_space<vmem>>, vector<1x512xf32>
    %100 = vector.broadcast %99 : vector<1x512xf32> to vector<4x512xf32>
    %101 = arith.mulf %98, %100 : vector<4x512xf32>
    %c4_76 = arith.constant 4 : index
    %c0_77 = arith.constant 0 : index
    %102 = vector.load %arg26[%c4_76, %c0_77] : memref<36x512xf32, #tpu.memory_space<vmem>>, vector<4x512xf32>
    tpu.vector_store %arg26[%c4_76, %c0_77], %101 {strides = array<i32>} : memref<36x512xf32, #tpu.memory_space<vmem>>, vector<4x512xf32>,
    %c0_78 = arith.constant 0 : index
    %c113_79 = arith.constant 113 : index
    %103 = vector.load %arg23[%c0_78, %c113_79] : memref<4x768xf32, #tpu.memory_space<vmem>>, vector<4x512xf32>
    %c2_80 = arith.constant 2 : index
    %c0_81 = arith.constant 0 : index
    %104 = vector.load %arg16[%c2_80, %c0_81] : memref<9x512xf32, #tpu.memory_space<vmem>>, vector<1x512xf32>
    %105 = vector.broadcast %104 : vector<1x512xf32> to vector<4x512xf32>
    %106 = arith.mulf %103, %105 : vector<4x512xf32>
    %c8_82 = arith.constant 8 : index
    %c0_83 = arith.constant 0 : index
    %107 = vector.load %arg26[%c8_82, %c0_83] : memref<36x512xf32, #tpu.memory_space<vmem>>, vector<4x512xf32>
    tpu.vector_store %arg26[%c8_82, %c0_83], %106 {strides = array<i32>} : memref<36x512xf32, #tpu.memory_space<vmem>>, vector<4x512xf32>,
    %c0_84 = arith.constant 0 : index
    %c127_85 = arith.constant 127 : index
    %108 = vector.load %arg23[%c0_84, %c127_85] : memref<4x768xf32, #tpu.memory_space<vmem>>, vector<4x512xf32>
    %c3_86 = arith.constant 3 : index
    %c0_87 = arith.constant 0 : index
    %109 = vector.load %arg16[%c3_86, %c0_87] : memref<9x512xf32, #tpu.memory_space<vmem>>, vector<1x512xf32>
    %110 = vector.broadcast %109 : vector<1x512xf32> to vector<4x512xf32>
    %111 = arith.mulf %108, %110 : vector<4x512xf32>
    %c12 = arith.constant 12 : index
    %c0_88 = arith.constant 0 : index
    %112 = vector.load %arg26[%c12, %c0_88] : memref<36x512xf32, #tpu.memory_space<vmem>>, vector<4x512xf32>
    tpu.vector_store %arg26[%c12, %c0_88], %111 {strides = array<i32>} : memref<36x512xf32, #tpu.memory_space<vmem>>, vector<4x512xf32>,
    %c0_89 = arith.constant 0 : index
    %c128_90 = arith.constant 128 : index
    %113 = vector.load %arg23[%c0_89, %c128_90] : memref<4x768xf32, #tpu.memory_space<vmem>>, vector<4x512xf32>
    %c4_91 = arith.constant 4 : index
    %c0_92 = arith.constant 0 : index
    %114 = vector.load %arg16[%c4_91, %c0_92] : memref<9x512xf32, #tpu.memory_space<vmem>>, vector<1x512xf32>
    %115 = vector.broadcast %114 : vector<1x512xf32> to vector<4x512xf32>
    %116 = arith.mulf %113, %115 : vector<4x512xf32>
    %c16_93 = arith.constant 16 : index
    %c0_94 = arith.constant 0 : index
    %117 = vector.load %arg26[%c16_93, %c0_94] : memref<36x512xf32, #tpu.memory_space<vmem>>, vector<4x512xf32>
    tpu.vector_store %arg26[%c16_93, %c0_94], %116 {strides = array<i32>} : memref<36x512xf32, #tpu.memory_space<vmem>>, vector<4x512xf32>,
    %c0_95 = arith.constant 0 : index
    %c129_96 = arith.constant 129 : index
    %118 = vector.load %arg23[%c0_95, %c129_96] : memref<4x768xf32, #tpu.memory_space<vmem>>, vector<4x512xf32>
    %c5_97 = arith.constant 5 : index
    %c0_98 = arith.constant 0 : index
    %119 = vector.load %arg16[%c5_97, %c0_98] : memref<9x512xf32, #tpu.memory_space<vmem>>, vector<1x512xf32>
    %120 = vector.broadcast %119 : vector<1x512xf32> to vector<4x512xf32>
    %121 = arith.mulf %118, %120 : vector<4x512xf32>
    %c20 = arith.constant 20 : index
    %c0_99 = arith.constant 0 : index
    %122 = vector.load %arg26[%c20, %c0_99] : memref<36x512xf32, #tpu.memory_space<vmem>>, vector<4x512xf32>
    tpu.vector_store %arg26[%c20, %c0_99], %121 {strides = array<i32>} : memref<36x512xf32, #tpu.memory_space<vmem>>, vector<4x512xf32>,
    %c0_100 = arith.constant 0 : index
    %c143_101 = arith.constant 143 : index
    %123 = vector.load %arg23[%c0_100, %c143_101] : memref<4x768xf32, #tpu.memory_space<vmem>>, vector<4x512xf32>
    %c6_102 = arith.constant 6 : index
    %c0_103 = arith.constant 0 : index
    %124 = vector.load %arg16[%c6_102, %c0_103] : memref<9x512xf32, #tpu.memory_space<vmem>>, vector<1x512xf32>
    %125 = vector.broadcast %124 : vector<1x512xf32> to vector<4x512xf32>
    %126 = arith.mulf %123, %125 : vector<4x512xf32>
    %c24_104 = arith.constant 24 : index
    %c0_105 = arith.constant 0 : index
    %127 = vector.load %arg26[%c24_104, %c0_105] : memref<36x512xf32, #tpu.memory_space<vmem>>, vector<4x512xf32>
    tpu.vector_store %arg26[%c24_104, %c0_105], %126 {strides = array<i32>} : memref<36x512xf32, #tpu.memory_space<vmem>>, vector<4x512xf32>,
    %c0_106 = arith.constant 0 : index
    %c144_107 = arith.constant 144 : index
    %128 = vector.load %arg23[%c0_106, %c144_107] : memref<4x768xf32, #tpu.memory_space<vmem>>, vector<4x512xf32>
    %c7_108 = arith.constant 7 : index
    %c0_109 = arith.constant 0 : index
    %129 = vector.load %arg16[%c7_108, %c0_109] : memref<9x512xf32, #tpu.memory_space<vmem>>, vector<1x512xf32>
    %130 = vector.broadcast %129 : vector<1x512xf32> to vector<4x512xf32>
    %131 = arith.mulf %128, %130 : vector<4x512xf32>
    %c28 = arith.constant 28 : index
    %c0_110 = arith.constant 0 : index
    %132 = vector.load %arg26[%c28, %c0_110] : memref<36x512xf32, #tpu.memory_space<vmem>>, vector<4x512xf32>
    tpu.vector_store %arg26[%c28, %c0_110], %131 {strides = array<i32>} : memref<36x512xf32, #tpu.memory_space<vmem>>, vector<4x512xf32>,
    %c0_111 = arith.constant 0 : index
    %c145_112 = arith.constant 145 : index
    %133 = vector.load %arg23[%c0_111, %c145_112] : memref<4x768xf32, #tpu.memory_space<vmem>>, vector<4x512xf32>
    %c8_113 = arith.constant 8 : index
    %c0_114 = arith.constant 0 : index
    %134 = vector.load %arg16[%c8_113, %c0_114] : memref<9x512xf32, #tpu.memory_space<vmem>>, vector<1x512xf32>
    %135 = vector.broadcast %134 : vector<1x512xf32> to vector<4x512xf32>
    %136 = arith.mulf %133, %135 : vector<4x512xf32>
    %c32_115 = arith.constant 32 : index
    %c0_116 = arith.constant 0 : index
    %137 = vector.load %arg26[%c32_115, %c0_116] : memref<36x512xf32, #tpu.memory_space<vmem>>, vector<4x512xf32>
    tpu.vector_store %arg26[%c32_115, %c0_116], %136 {strides = array<i32>} : memref<36x512xf32, #tpu.memory_space<vmem>>, vector<4x512xf32>,
    %c0_117 = arith.constant 0 : index
    %c0_118 = arith.constant 0 : index
    %138 = vector.load %arg7[%c0_117, %c0_118] : memref<8x36xf32, #tpu.memory_space<vmem>>, vector<8x36xf32>
    %c0_119 = arith.constant 0 : index
    %c0_120 = arith.constant 0 : index
    %139 = vector.load %arg26[%c0_119, %c0_120] : memref<36x512xf32, #tpu.memory_space<vmem>>, vector<36x512xf32>
    %cst_121 = arith.constant dense<0.000000e+00> : vector<8x512xf32>
    %140 = tpu.matmul %138, %139, %cst_121 {dimension_numbers = #tpu.dot_dimension_numbers<[1], [0], [0], [1], [0, 0, 1, 1], [], []>} : vector<8x36xf32>, vector<36x512xf32>, vector<8x512xf32> -> vector<8x512xf32>
    %c0_122 = arith.constant 0 : index
    %c0_123 = arith.constant 0 : index
    %141 = vector.load %arg8[%c0_122, %c0_123] : memref<8x1xf32, #tpu.memory_space<vmem>>, vector<8x1xf32>
    %142 = vector.broadcast %141 : vector<8x1xf32> to vector<8x512xf32>
    %143 = arith.addf %140, %142 : vector<8x512xf32>
    %c0_124 = arith.constant 0 : index
    %c0_125 = arith.constant 0 : index
    %144 = vector.load %arg9[%c0_124, %c0_125] : memref<8x1xf32, #tpu.memory_space<vmem>>, vector<8x1xf32>
    %c0_126 = arith.constant 0 : index
    %c0_127 = arith.constant 0 : index
    %145 = vector.load %arg10[%c0_126, %c0_127] : memref<8x1xf32, #tpu.memory_space<vmem>>, vector<8x1xf32>
    %cst_128 = arith.constant dense<0.000000e+00> : vector<8xf32>
    %146 = vector.multi_reduction <add>, %143, %cst_128 [1] : vector<8x512xf32> to vector<8xf32>
    %147 = vector.shape_cast %146 : vector<8xf32> to vector<8x1xf32>
    %cst_129 = arith.constant 5.120000e+02 : f32
    %148 = vector.broadcast %cst_129 : f32 to vector<8x1xf32>
    %149 = arith.divf %147, %148 : vector<8x1xf32>
    %150 = arith.mulf %143, %143 : vector<8x512xf32>
    %cst_130 = arith.constant dense<0.000000e+00> : vector<8xf32>
    %151 = vector.multi_reduction <add>, %150, %cst_130 [1] : vector<8x512xf32> to vector<8xf32>
    %152 = vector.shape_cast %151 : vector<8xf32> to vector<8x1xf32>
    %cst_131 = arith.constant 5.120000e+02 : f32
    %153 = vector.broadcast %cst_131 : f32 to vector<8x1xf32>
    %154 = arith.divf %152, %153 : vector<8x1xf32>
    %155 = arith.mulf %149, %149 : vector<8x1xf32>
    %156 = arith.subf %154, %155 : vector<8x1xf32>
    %cst_132 = arith.constant 0.000000e+00 : f32
    %157 = vector.broadcast %cst_132 : f32 to vector<8x1xf32>
    %158 = arith.maximumf %156, %157 : vector<8x1xf32>
    %159 = vector.broadcast %149 : vector<8x1xf32> to vector<8x512xf32>
    %160 = arith.subf %143, %159 : vector<8x512xf32>
    %cst_133 = arith.constant 9.99999974E-6 : f32
    %161 = vector.broadcast %cst_133 : f32 to vector<8x1xf32>
    %162 = arith.addf %158, %161 : vector<8x1xf32>
    %163 = math.rsqrt %162 : vector<8x1xf32>
    %164 = vector.broadcast %163 : vector<8x1xf32> to vector<8x512xf32>
    %165 = arith.mulf %160, %164 : vector<8x512xf32>
    %166 = vector.broadcast %144 : vector<8x1xf32> to vector<8x512xf32>
    %167 = arith.mulf %165, %166 : vector<8x512xf32>
    %168 = vector.broadcast %145 : vector<8x1xf32> to vector<8x512xf32>
    %169 = arith.addf %167, %168 : vector<8x512xf32>
    %cst_134 = arith.constant 0.000000e+00 : f32
    %170 = vector.broadcast %cst_134 : f32 to vector<8x512xf32>
    %171 = arith.cmpf ogt, %169, %170 : vector<8x512xf32>
    %cst_135 = arith.constant 2.000000e-01 : f32
    %172 = vector.broadcast %cst_135 : f32 to vector<8x512xf32>
    %173 = arith.mulf %172, %169 : vector<8x512xf32>
    %174 = arith.select %171, %169, %173 : vector<8x512xi1>, vector<8x512xf32>
    %c0_136 = arith.constant 0 : index
    %c0_137 = arith.constant 0 : index
    %175 = vector.load %arg18[%c0_136, %c0_137] : memref<512x2xf32, #tpu.memory_space<vmem>>, vector<512x2xf32>
    %cst_138 = arith.constant dense<0.000000e+00> : vector<8x2xf32>
    %176 = tpu.matmul %174, %175, %cst_138 {dimension_numbers = #tpu.dot_dimension_numbers<[1], [0], [0], [1], [0, 0, 1, 1], [], []>} : vector<8x512xf32>, vector<512x2xf32>, vector<8x2xf32> -> vector<8x2xf32>
    %177 = vector.extract_strided_slice %174 {offsets = [0, 0], sizes = [8, 256], strides = [1, 1]} : vector<8x512xf32> to vector<8x256xf32>
    %cst_139 = arith.constant dense<0xFF800000> : vector<8xf32>
    %178 = vector.multi_reduction <maximumf>, %177, %cst_139 [1] : vector<8x256xf32> to vector<8xf32>
    %179 = vector.shape_cast %178 : vector<8xf32> to vector<8x1xf32>
    %c0_140 = arith.constant 0 : index
    %c0_141 = arith.constant 0 : index
    %180 = vector.load %arg20[%c0_140, %c0_141] : memref<2x2xf32, #tpu.memory_space<vmem>>, vector<1x2xf32>
    %181 = vector.broadcast %179 : vector<8x1xf32> to vector<8x2xf32>
    %182 = vector.broadcast %180 : vector<1x2xf32> to vector<8x2xf32>
    %183 = arith.mulf %181, %182 : vector<8x2xf32>
    %184 = vector.extract_strided_slice %174 {offsets = [0, 256], sizes = [8, 256], strides = [1, 1]} : vector<8x512xf32> to vector<8x256xf32>
    %cst_142 = arith.constant dense<0xFF800000> : vector<8xf32>
    %185 = vector.multi_reduction <maximumf>, %184, %cst_142 [1] : vector<8x256xf32> to vector<8xf32>
    %186 = vector.shape_cast %185 : vector<8xf32> to vector<8x1xf32>
    %c1_143 = arith.constant 1 : index
    %c0_144 = arith.constant 0 : index
    %187 = vector.load %arg20[%c1_143, %c0_144] : memref<2x2xf32, #tpu.memory_space<vmem>>, vector<1x2xf32>
    %188 = vector.broadcast %186 : vector<8x1xf32> to vector<8x2xf32>
    %189 = vector.broadcast %187 : vector<1x2xf32> to vector<8x2xf32>
    %190 = arith.mulf %188, %189 : vector<8x2xf32>
    %191 = arith.addf %183, %190 : vector<8x2xf32>
    %c0_145 = arith.constant 0 : index
    %c0_146 = arith.constant 0 : index
    %192 = vector.load %arg11[%c0_145, %c0_146] : memref<1x8xf32, #tpu.memory_space<vmem>>, vector<1x8xf32>
    %cst_147 = arith.constant dense<0.000000e+00> : vector<1x2xf32>
    %193 = tpu.matmul %192, %176, %cst_147 {dimension_numbers = #tpu.dot_dimension_numbers<[1], [0], [0], [1], [0, 0, 1, 1], [], []>} : vector<1x8xf32>, vector<8x2xf32>, vector<1x2xf32> -> vector<1x2xf32>
    %cst_148 = arith.constant 0.000000e+00 : f32
    %194 = vector.broadcast %cst_148 : f32 to vector<1x2xf32>
    %195 = arith.maximumf %193, %194 : vector<1x2xf32>
    %c0_149 = arith.constant 0 : index
    %c0_150 = arith.constant 0 : index
    %196 = vector.load %arg12[%c0_149, %c0_150] : memref<8x1xf32, #tpu.memory_space<vmem>>, vector<8x1xf32>
    %cst_151 = arith.constant dense<0.000000e+00> : vector<8x2xf32>
    %197 = tpu.matmul %196, %195, %cst_151 {dimension_numbers = #tpu.dot_dimension_numbers<[1], [0], [0], [1], [0, 0, 1, 1], [], []>} : vector<8x1xf32>, vector<1x2xf32>, vector<8x2xf32> -> vector<8x2xf32>
    %c0_152 = arith.constant 0 : index
    %c0_153 = arith.constant 0 : index
    %198 = vector.load %arg11[%c0_152, %c0_153] : memref<1x8xf32, #tpu.memory_space<vmem>>, vector<1x8xf32>
    %cst_154 = arith.constant dense<0.000000e+00> : vector<1x2xf32>
    %199 = tpu.matmul %198, %191, %cst_154 {dimension_numbers = #tpu.dot_dimension_numbers<[1], [0], [0], [1], [0, 0, 1, 1], [], []>} : vector<1x8xf32>, vector<8x2xf32>, vector<1x2xf32> -> vector<1x2xf32>
    %cst_155 = arith.constant 0.000000e+00 : f32
    %200 = vector.broadcast %cst_155 : f32 to vector<1x2xf32>
    %201 = arith.maximumf %199, %200 : vector<1x2xf32>
    %c0_156 = arith.constant 0 : index
    %c0_157 = arith.constant 0 : index
    %202 = vector.load %arg12[%c0_156, %c0_157] : memref<8x1xf32, #tpu.memory_space<vmem>>, vector<8x1xf32>
    %cst_158 = arith.constant dense<0.000000e+00> : vector<8x2xf32>
    %203 = tpu.matmul %202, %201, %cst_158 {dimension_numbers = #tpu.dot_dimension_numbers<[1], [0], [0], [1], [0, 0, 1, 1], [], []>} : vector<8x1xf32>, vector<1x2xf32>, vector<8x2xf32> -> vector<8x2xf32>
    %204 = arith.addf %197, %203 : vector<8x2xf32>
    %cst_159 = arith.constant 5.000000e-01 : f32
    %205 = vector.broadcast %cst_159 : f32 to vector<8x2xf32>
    %206 = arith.mulf %205, %204 : vector<8x2xf32>
    %207 = math.tanh %206 : vector<8x2xf32>
    %cst_160 = arith.constant 1.000000e+00 : f32
    %208 = vector.broadcast %cst_160 : f32 to vector<8x2xf32>
    %209 = arith.addf %207, %208 : vector<8x2xf32>
    %cst_161 = arith.constant 5.000000e-01 : f32
    %210 = vector.broadcast %cst_161 : f32 to vector<8x2xf32>
    %211 = arith.mulf %210, %209 : vector<8x2xf32>
    %c0_162 = arith.constant 0 : index
    %c0_163 = arith.constant 0 : index
    %212 = vector.load %arg19[%c0_162, %c0_163] : memref<2x512xf32, #tpu.memory_space<vmem>>, vector<2x512xf32>
    %cst_164 = arith.constant dense<0.000000e+00> : vector<8x512xf32>
    %213 = tpu.matmul %211, %212, %cst_164 {dimension_numbers = #tpu.dot_dimension_numbers<[1], [0], [0], [1], [0, 0, 1, 1], [], []>} : vector<8x2xf32>, vector<2x512xf32>, vector<8x512xf32> -> vector<8x512xf32>
    %214 = arith.mulf %174, %213 : vector<8x512xf32>
    %cst_165 = arith.constant 0.000000e+00 : f32
    %215 = vector.broadcast %cst_165 : f32 to vector<2x768xf32>
    %c0_166 = arith.constant 0 : index
    %c0_167 = arith.constant 0 : index
    %216 = vector.load %arg24[%c0_166, %c0_167] : memref<2x768xf32, #tpu.memory_space<vmem>>, vector<2x768xf32>
    tpu.vector_store %arg24[%c0_166, %c0_167], %215 {strides = array<i32>} : memref<2x768xf32, #tpu.memory_space<vmem>>, vector<2x768xf32>,
    %cst_168 = arith.constant dense<0.000000e+00> : vector<512xf32>
    %217 = vector.multi_reduction <add>, %214, %cst_168 [0] : vector<8x512xf32> to vector<512xf32>
    %218 = vector.shape_cast %217 : vector<512xf32> to vector<1x512xf32>
    %cst_169 = arith.constant 8.000000e+00 : f32
    %219 = vector.broadcast %cst_169 : f32 to vector<1x512xf32>
    %220 = arith.divf %218, %219 : vector<1x512xf32>
    %c0_170 = arith.constant 0 : index
    %c128_171 = arith.constant 128 : index
    %221 = vector.load %arg24[%c0_170, %c128_171] : memref<2x768xf32, #tpu.memory_space<vmem>>, vector<1x512xf32>
    tpu.vector_store %arg24[%c0_170, %c128_171], %220 {strides = array<i32>} : memref<2x768xf32, #tpu.memory_space<vmem>>, vector<1x512xf32>,
    %cst_172 = arith.constant dense<0xFF800000> : vector<512xf32>
    %222 = vector.multi_reduction <maximumf>, %214, %cst_172 [0] : vector<8x512xf32> to vector<512xf32>
    %223 = vector.shape_cast %222 : vector<512xf32> to vector<1x512xf32>
    %c1_173 = arith.constant 1 : index
    %c128_174 = arith.constant 128 : index
    %224 = vector.load %arg24[%c1_173, %c128_174] : memref<2x768xf32, #tpu.memory_space<vmem>>, vector<1x512xf32>
    tpu.vector_store %arg24[%c1_173, %c128_174], %223 {strides = array<i32>} : memref<2x768xf32, #tpu.memory_space<vmem>>, vector<1x512xf32>,
    %c0_175 = arith.constant 0 : index
    %c77 = arith.constant 77 : index
    %225 = vector.load %arg24[%c0_175, %c77] : memref<2x768xf32, #tpu.memory_space<vmem>>, vector<2x512xf32>
    %c0_176 = arith.constant 0 : index
    %c0_177 = arith.constant 0 : index
    %226 = vector.load %arg17[%c0_176, %c0_177] : memref<49x512xf32, #tpu.memory_space<vmem>>, vector<1x512xf32>
    %227 = vector.broadcast %226 : vector<1x512xf32> to vector<2x512xf32>
    %228 = arith.mulf %225, %227 : vector<2x512xf32>
    %c0_178 = arith.constant 0 : index
    %c0_179 = arith.constant 0 : index
    %229 = vector.load %arg27[%c0_178, %c0_179] : memref<98x512xf32, #tpu.memory_space<vmem>>, vector<2x512xf32>
    tpu.vector_store %arg27[%c0_178, %c0_179], %228 {strides = array<i32>} : memref<98x512xf32, #tpu.memory_space<vmem>>, vector<2x512xf32>,
    %c0_180 = arith.constant 0 : index
    %c78 = arith.constant 78 : index
    %230 = vector.load %arg24[%c0_180, %c78] : memref<2x768xf32, #tpu.memory_space<vmem>>, vector<2x512xf32>
    %c1_181 = arith.constant 1 : index
    %c0_182 = arith.constant 0 : index
    %231 = vector.load %arg17[%c1_181, %c0_182] : memref<49x512xf32, #tpu.memory_space<vmem>>, vector<1x512xf32>
    %232 = vector.broadcast %231 : vector<1x512xf32> to vector<2x512xf32>
    %233 = arith.mulf %230, %232 : vector<2x512xf32>
    %c2_183 = arith.constant 2 : index
    %c0_184 = arith.constant 0 : index
    %234 = vector.load %arg27[%c2_183, %c0_184] : memref<98x512xf32, #tpu.memory_space<vmem>>, vector<2x512xf32>
    tpu.vector_store %arg27[%c2_183, %c0_184], %233 {strides = array<i32>} : memref<98x512xf32, #tpu.memory_space<vmem>>, vector<2x512xf32>,
    %c0_185 = arith.constant 0 : index
    %c79 = arith.constant 79 : index
    %235 = vector.load %arg24[%c0_185, %c79] : memref<2x768xf32, #tpu.memory_space<vmem>>, vector<2x512xf32>
    %c2_186 = arith.constant 2 : index
    %c0_187 = arith.constant 0 : index
    %236 = vector.load %arg17[%c2_186, %c0_187] : memref<49x512xf32, #tpu.memory_space<vmem>>, vector<1x512xf32>
    %237 = vector.broadcast %236 : vector<1x512xf32> to vector<2x512xf32>
    %238 = arith.mulf %235, %237 : vector<2x512xf32>
    %c4_188 = arith.constant 4 : index
    %c0_189 = arith.constant 0 : index
    %239 = vector.load %arg27[%c4_188, %c0_189] : memref<98x512xf32, #tpu.memory_space<vmem>>, vector<2x512xf32>
    tpu.vector_store %arg27[%c4_188, %c0_189], %238 {strides = array<i32>} : memref<98x512xf32, #tpu.memory_space<vmem>>, vector<2x512xf32>,
    %c0_190 = arith.constant 0 : index
    %c80 = arith.constant 80 : index
    %240 = vector.load %arg24[%c0_190, %c80] : memref<2x768xf32, #tpu.memory_space<vmem>>, vector<2x512xf32>
    %c3_191 = arith.constant 3 : index
    %c0_192 = arith.constant 0 : index
    %241 = vector.load %arg17[%c3_191, %c0_192] : memref<49x512xf32, #tpu.memory_space<vmem>>, vector<1x512xf32>
    %242 = vector.broadcast %241 : vector<1x512xf32> to vector<2x512xf32>
    %243 = arith.mulf %240, %242 : vector<2x512xf32>
    %c6_193 = arith.constant 6 : index
    %c0_194 = arith.constant 0 : index
    %244 = vector.load %arg27[%c6_193, %c0_194] : memref<98x512xf32, #tpu.memory_space<vmem>>, vector<2x512xf32>
    tpu.vector_store %arg27[%c6_193, %c0_194], %243 {strides = array<i32>} : memref<98x512xf32, #tpu.memory_space<vmem>>, vector<2x512xf32>,
    %c0_195 = arith.constant 0 : index
    %c81 = arith.constant 81 : index
    %245 = vector.load %arg24[%c0_195, %c81] : memref<2x768xf32, #tpu.memory_space<vmem>>, vector<2x512xf32>
    %c4_196 = arith.constant 4 : index
    %c0_197 = arith.constant 0 : index
    %246 = vector.load %arg17[%c4_196, %c0_197] : memref<49x512xf32, #tpu.memory_space<vmem>>, vector<1x512xf32>
    %247 = vector.broadcast %246 : vector<1x512xf32> to vector<2x512xf32>
    %248 = arith.mulf %245, %247 : vector<2x512xf32>
    %c8_198 = arith.constant 8 : index
    %c0_199 = arith.constant 0 : index
    %249 = vector.load %arg27[%c8_198, %c0_199] : memref<98x512xf32, #tpu.memory_space<vmem>>, vector<2x512xf32>
    tpu.vector_store %arg27[%c8_198, %c0_199], %248 {strides = array<i32>} : memref<98x512xf32, #tpu.memory_space<vmem>>, vector<2x512xf32>,
    %c0_200 = arith.constant 0 : index
    %c82 = arith.constant 82 : index
    %250 = vector.load %arg24[%c0_200, %c82] : memref<2x768xf32, #tpu.memory_space<vmem>>, vector<2x512xf32>
    %c5_201 = arith.constant 5 : index
    %c0_202 = arith.constant 0 : index
    %251 = vector.load %arg17[%c5_201, %c0_202] : memref<49x512xf32, #tpu.memory_space<vmem>>, vector<1x512xf32>
    %252 = vector.broadcast %251 : vector<1x512xf32> to vector<2x512xf32>
    %253 = arith.mulf %250, %252 : vector<2x512xf32>
    %c10 = arith.constant 10 : index
    %c0_203 = arith.constant 0 : index
    %254 = vector.load %arg27[%c10, %c0_203] : memref<98x512xf32, #tpu.memory_space<vmem>>, vector<2x512xf32>
    tpu.vector_store %arg27[%c10, %c0_203], %253 {strides = array<i32>} : memref<98x512xf32, #tpu.memory_space<vmem>>, vector<2x512xf32>,
    %c0_204 = arith.constant 0 : index
    %c83 = arith.constant 83 : index
    %255 = vector.load %arg24[%c0_204, %c83] : memref<2x768xf32, #tpu.memory_space<vmem>>, vector<2x512xf32>
    %c6_205 = arith.constant 6 : index
    %c0_206 = arith.constant 0 : index
    %256 = vector.load %arg17[%c6_205, %c0_206] : memref<49x512xf32, #tpu.memory_space<vmem>>, vector<1x512xf32>
    %257 = vector.broadcast %256 : vector<1x512xf32> to vector<2x512xf32>
    %258 = arith.mulf %255, %257 : vector<2x512xf32>
    %c12_207 = arith.constant 12 : index
    %c0_208 = arith.constant 0 : index
    %259 = vector.load %arg27[%c12_207, %c0_208] : memref<98x512xf32, #tpu.memory_space<vmem>>, vector<2x512xf32>
    tpu.vector_store %arg27[%c12_207, %c0_208], %258 {strides = array<i32>} : memref<98x512xf32, #tpu.memory_space<vmem>>, vector<2x512xf32>,
    %c0_209 = arith.constant 0 : index
    %c93 = arith.constant 93 : index
    %260 = vector.load %arg24[%c0_209, %c93] : memref<2x768xf32, #tpu.memory_space<vmem>>, vector<2x512xf32>
    %c7_210 = arith.constant 7 : index
    %c0_211 = arith.constant 0 : index
    %261 = vector.load %arg17[%c7_210, %c0_211] : memref<49x512xf32, #tpu.memory_space<vmem>>, vector<1x512xf32>
    %262 = vector.broadcast %261 : vector<1x512xf32> to vector<2x512xf32>
    %263 = arith.mulf %260, %262 : vector<2x512xf32>
    %c14 = arith.constant 14 : index
    %c0_212 = arith.constant 0 : index
    %264 = vector.load %arg27[%c14, %c0_212] : memref<98x512xf32, #tpu.memory_space<vmem>>, vector<2x512xf32>
    tpu.vector_store %arg27[%c14, %c0_212], %263 {strides = array<i32>} : memref<98x512xf32, #tpu.memory_space<vmem>>, vector<2x512xf32>,
    %c0_213 = arith.constant 0 : index
    %c94 = arith.constant 94 : index
    %265 = vector.load %arg24[%c0_213, %c94] : memref<2x768xf32, #tpu.memory_space<vmem>>, vector<2x512xf32>
    %c8_214 = arith.constant 8 : index
    %c0_215 = arith.constant 0 : index
    %266 = vector.load %arg17[%c8_214, %c0_215] : memref<49x512xf32, #tpu.memory_space<vmem>>, vector<1x512xf32>
    %267 = vector.broadcast %266 : vector<1x512xf32> to vector<2x512xf32>
    %268 = arith.mulf %265, %267 : vector<2x512xf32>
    %c16_216 = arith.constant 16 : index
    %c0_217 = arith.constant 0 : index
    %269 = vector.load %arg27[%c16_216, %c0_217] : memref<98x512xf32, #tpu.memory_space<vmem>>, vector<2x512xf32>
    tpu.vector_store %arg27[%c16_216, %c0_217], %268 {strides = array<i32>} : memref<98x512xf32, #tpu.memory_space<vmem>>, vector<2x512xf32>,
    %c0_218 = arith.constant 0 : index
    %c95 = arith.constant 95 : index
    %270 = vector.load %arg24[%c0_218, %c95] : memref<2x768xf32, #tpu.memory_space<vmem>>, vector<2x512xf32>
    %c9 = arith.constant 9 : index
    %c0_219 = arith.constant 0 : index
    %271 = vector.load %arg17[%c9, %c0_219] : memref<49x512xf32, #tpu.memory_space<vmem>>, vector<1x512xf32>
    %272 = vector.broadcast %271 : vector<1x512xf32> to vector<2x512xf32>
    %273 = arith.mulf %270, %272 : vector<2x512xf32>
    %c18 = arith.constant 18 : index
    %c0_220 = arith.constant 0 : index
    %274 = vector.load %arg27[%c18, %c0_220] : memref<98x512xf32, #tpu.memory_space<vmem>>, vector<2x512xf32>
    tpu.vector_store %arg27[%c18, %c0_220], %273 {strides = array<i32>} : memref<98x512xf32, #tpu.memory_space<vmem>>, vector<2x512xf32>,
    %c0_221 = arith.constant 0 : index
    %c96 = arith.constant 96 : index
    %275 = vector.load %arg24[%c0_221, %c96] : memref<2x768xf32, #tpu.memory_space<vmem>>, vector<2x512xf32>
    %c10_222 = arith.constant 10 : index
    %c0_223 = arith.constant 0 : index
    %276 = vector.load %arg17[%c10_222, %c0_223] : memref<49x512xf32, #tpu.memory_space<vmem>>, vector<1x512xf32>
    %277 = vector.broadcast %276 : vector<1x512xf32> to vector<2x512xf32>
    %278 = arith.mulf %275, %277 : vector<2x512xf32>
    %c20_224 = arith.constant 20 : index
    %c0_225 = arith.constant 0 : index
    %279 = vector.load %arg27[%c20_224, %c0_225] : memref<98x512xf32, #tpu.memory_space<vmem>>, vector<2x512xf32>
    tpu.vector_store %arg27[%c20_224, %c0_225], %278 {strides = array<i32>} : memref<98x512xf32, #tpu.memory_space<vmem>>, vector<2x512xf32>,
    %c0_226 = arith.constant 0 : index
    %c97 = arith.constant 97 : index
    %280 = vector.load %arg24[%c0_226, %c97] : memref<2x768xf32, #tpu.memory_space<vmem>>, vector<2x512xf32>
    %c11 = arith.constant 11 : index
    %c0_227 = arith.constant 0 : index
    %281 = vector.load %arg17[%c11, %c0_227] : memref<49x512xf32, #tpu.memory_space<vmem>>, vector<1x512xf32>
    %282 = vector.broadcast %281 : vector<1x512xf32> to vector<2x512xf32>
    %283 = arith.mulf %280, %282 : vector<2x512xf32>
    %c22 = arith.constant 22 : index
    %c0_228 = arith.constant 0 : index
    %284 = vector.load %arg27[%c22, %c0_228] : memref<98x512xf32, #tpu.memory_space<vmem>>, vector<2x512xf32>
    tpu.vector_store %arg27[%c22, %c0_228], %283 {strides = array<i32>} : memref<98x512xf32, #tpu.memory_space<vmem>>, vector<2x512xf32>,
    %c0_229 = arith.constant 0 : index
    %c98 = arith.constant 98 : index
    %285 = vector.load %arg24[%c0_229, %c98] : memref<2x768xf32, #tpu.memory_space<vmem>>, vector<2x512xf32>
    %c12_230 = arith.constant 12 : index
    %c0_231 = arith.constant 0 : index
    %286 = vector.load %arg17[%c12_230, %c0_231] : memref<49x512xf32, #tpu.memory_space<vmem>>, vector<1x512xf32>
    %287 = vector.broadcast %286 : vector<1x512xf32> to vector<2x512xf32>
    %288 = arith.mulf %285, %287 : vector<2x512xf32>
    %c24_232 = arith.constant 24 : index
    %c0_233 = arith.constant 0 : index
    %289 = vector.load %arg27[%c24_232, %c0_233] : memref<98x512xf32, #tpu.memory_space<vmem>>, vector<2x512xf32>
    tpu.vector_store %arg27[%c24_232, %c0_233], %288 {strides = array<i32>} : memref<98x512xf32, #tpu.memory_space<vmem>>, vector<2x512xf32>,
    %c0_234 = arith.constant 0 : index
    %c99 = arith.constant 99 : index
    %290 = vector.load %arg24[%c0_234, %c99] : memref<2x768xf32, #tpu.memory_space<vmem>>, vector<2x512xf32>
    %c13 = arith.constant 13 : index
    %c0_235 = arith.constant 0 : index
    %291 = vector.load %arg17[%c13, %c0_235] : memref<49x512xf32, #tpu.memory_space<vmem>>, vector<1x512xf32>
    %292 = vector.broadcast %291 : vector<1x512xf32> to vector<2x512xf32>
    %293 = arith.mulf %290, %292 : vector<2x512xf32>
    %c26 = arith.constant 26 : index
    %c0_236 = arith.constant 0 : index
    %294 = vector.load %arg27[%c26, %c0_236] : memref<98x512xf32, #tpu.memory_space<vmem>>, vector<2x512xf32>
    tpu.vector_store %arg27[%c26, %c0_236], %293 {strides = array<i32>} : memref<98x512xf32, #tpu.memory_space<vmem>>, vector<2x512xf32>,
    %c0_237 = arith.constant 0 : index
    %c109 = arith.constant 109 : index
    %295 = vector.load %arg24[%c0_237, %c109] : memref<2x768xf32, #tpu.memory_space<vmem>>, vector<2x512xf32>
    %c14_238 = arith.constant 14 : index
    %c0_239 = arith.constant 0 : index
    %296 = vector.load %arg17[%c14_238, %c0_239] : memref<49x512xf32, #tpu.memory_space<vmem>>, vector<1x512xf32>
    %297 = vector.broadcast %296 : vector<1x512xf32> to vector<2x512xf32>
    %298 = arith.mulf %295, %297 : vector<2x512xf32>
    %c28_240 = arith.constant 28 : index
    %c0_241 = arith.constant 0 : index
    %299 = vector.load %arg27[%c28_240, %c0_241] : memref<98x512xf32, #tpu.memory_space<vmem>>, vector<2x512xf32>
    tpu.vector_store %arg27[%c28_240, %c0_241], %298 {strides = array<i32>} : memref<98x512xf32, #tpu.memory_space<vmem>>, vector<2x512xf32>,
    %c0_242 = arith.constant 0 : index
    %c110 = arith.constant 110 : index
    %300 = vector.load %arg24[%c0_242, %c110] : memref<2x768xf32, #tpu.memory_space<vmem>>, vector<2x512xf32>
    %c15 = arith.constant 15 : index
    %c0_243 = arith.constant 0 : index
    %301 = vector.load %arg17[%c15, %c0_243] : memref<49x512xf32, #tpu.memory_space<vmem>>, vector<1x512xf32>
    %302 = vector.broadcast %301 : vector<1x512xf32> to vector<2x512xf32>
    %303 = arith.mulf %300, %302 : vector<2x512xf32>
    %c30 = arith.constant 30 : index
    %c0_244 = arith.constant 0 : index
    %304 = vector.load %arg27[%c30, %c0_244] : memref<98x512xf32, #tpu.memory_space<vmem>>, vector<2x512xf32>
    tpu.vector_store %arg27[%c30, %c0_244], %303 {strides = array<i32>} : memref<98x512xf32, #tpu.memory_space<vmem>>, vector<2x512xf32>,
    %c0_245 = arith.constant 0 : index
    %c111_246 = arith.constant 111 : index
    %305 = vector.load %arg24[%c0_245, %c111_246] : memref<2x768xf32, #tpu.memory_space<vmem>>, vector<2x512xf32>
    %c16_247 = arith.constant 16 : index
    %c0_248 = arith.constant 0 : index
    %306 = vector.load %arg17[%c16_247, %c0_248] : memref<49x512xf32, #tpu.memory_space<vmem>>, vector<1x512xf32>
    %307 = vector.broadcast %306 : vector<1x512xf32> to vector<2x512xf32>
    %308 = arith.mulf %305, %307 : vector<2x512xf32>
    %c32_249 = arith.constant 32 : index
    %c0_250 = arith.constant 0 : index
    %309 = vector.load %arg27[%c32_249, %c0_250] : memref<98x512xf32, #tpu.memory_space<vmem>>, vector<2x512xf32>
    tpu.vector_store %arg27[%c32_249, %c0_250], %308 {strides = array<i32>} : memref<98x512xf32, #tpu.memory_space<vmem>>, vector<2x512xf32>,
    %c0_251 = arith.constant 0 : index
    %c112_252 = arith.constant 112 : index
    %310 = vector.load %arg24[%c0_251, %c112_252] : memref<2x768xf32, #tpu.memory_space<vmem>>, vector<2x512xf32>
    %c17 = arith.constant 17 : index
    %c0_253 = arith.constant 0 : index
    %311 = vector.load %arg17[%c17, %c0_253] : memref<49x512xf32, #tpu.memory_space<vmem>>, vector<1x512xf32>
    %312 = vector.broadcast %311 : vector<1x512xf32> to vector<2x512xf32>
    %313 = arith.mulf %310, %312 : vector<2x512xf32>
    %c34 = arith.constant 34 : index
    %c0_254 = arith.constant 0 : index
    %314 = vector.load %arg27[%c34, %c0_254] : memref<98x512xf32, #tpu.memory_space<vmem>>, vector<2x512xf32>
    tpu.vector_store %arg27[%c34, %c0_254], %313 {strides = array<i32>} : memref<98x512xf32, #tpu.memory_space<vmem>>, vector<2x512xf32>,
    %c0_255 = arith.constant 0 : index
    %c113_256 = arith.constant 113 : index
    %315 = vector.load %arg24[%c0_255, %c113_256] : memref<2x768xf32, #tpu.memory_space<vmem>>, vector<2x512xf32>
    %c18_257 = arith.constant 18 : index
    %c0_258 = arith.constant 0 : index
    %316 = vector.load %arg17[%c18_257, %c0_258] : memref<49x512xf32, #tpu.memory_space<vmem>>, vector<1x512xf32>
    %317 = vector.broadcast %316 : vector<1x512xf32> to vector<2x512xf32>
    %318 = arith.mulf %315, %317 : vector<2x512xf32>
    %c36 = arith.constant 36 : index
    %c0_259 = arith.constant 0 : index
    %319 = vector.load %arg27[%c36, %c0_259] : memref<98x512xf32, #tpu.memory_space<vmem>>, vector<2x512xf32>
    tpu.vector_store %arg27[%c36, %c0_259], %318 {strides = array<i32>} : memref<98x512xf32, #tpu.memory_space<vmem>>, vector<2x512xf32>,
    %c0_260 = arith.constant 0 : index
    %c114 = arith.constant 114 : index
    %320 = vector.load %arg24[%c0_260, %c114] : memref<2x768xf32, #tpu.memory_space<vmem>>, vector<2x512xf32>
    %c19 = arith.constant 19 : index
    %c0_261 = arith.constant 0 : index
    %321 = vector.load %arg17[%c19, %c0_261] : memref<49x512xf32, #tpu.memory_space<vmem>>, vector<1x512xf32>
    %322 = vector.broadcast %321 : vector<1x512xf32> to vector<2x512xf32>
    %323 = arith.mulf %320, %322 : vector<2x512xf32>
    %c38 = arith.constant 38 : index
    %c0_262 = arith.constant 0 : index
    %324 = vector.load %arg27[%c38, %c0_262] : memref<98x512xf32, #tpu.memory_space<vmem>>, vector<2x512xf32>
    tpu.vector_store %arg27[%c38, %c0_262], %323 {strides = array<i32>} : memref<98x512xf32, #tpu.memory_space<vmem>>, vector<2x512xf32>,
    %c0_263 = arith.constant 0 : index
    %c115 = arith.constant 115 : index
    %325 = vector.load %arg24[%c0_263, %c115] : memref<2x768xf32, #tpu.memory_space<vmem>>, vector<2x512xf32>
    %c20_264 = arith.constant 20 : index
    %c0_265 = arith.constant 0 : index
    %326 = vector.load %arg17[%c20_264, %c0_265] : memref<49x512xf32, #tpu.memory_space<vmem>>, vector<1x512xf32>
    %327 = vector.broadcast %326 : vector<1x512xf32> to vector<2x512xf32>
    %328 = arith.mulf %325, %327 : vector<2x512xf32>
    %c40_266 = arith.constant 40 : index
    %c0_267 = arith.constant 0 : index
    %329 = vector.load %arg27[%c40_266, %c0_267] : memref<98x512xf32, #tpu.memory_space<vmem>>, vector<2x512xf32>
    tpu.vector_store %arg27[%c40_266, %c0_267], %328 {strides = array<i32>} : memref<98x512xf32, #tpu.memory_space<vmem>>, vector<2x512xf32>,
    %c0_268 = arith.constant 0 : index
    %c125 = arith.constant 125 : index
    %330 = vector.load %arg24[%c0_268, %c125] : memref<2x768xf32, #tpu.memory_space<vmem>>, vector<2x512xf32>
    %c21 = arith.constant 21 : index
    %c0_269 = arith.constant 0 : index
    %331 = vector.load %arg17[%c21, %c0_269] : memref<49x512xf32, #tpu.memory_space<vmem>>, vector<1x512xf32>
    %332 = vector.broadcast %331 : vector<1x512xf32> to vector<2x512xf32>
    %333 = arith.mulf %330, %332 : vector<2x512xf32>
    %c42 = arith.constant 42 : index
    %c0_270 = arith.constant 0 : index
    %334 = vector.load %arg27[%c42, %c0_270] : memref<98x512xf32, #tpu.memory_space<vmem>>, vector<2x512xf32>
    tpu.vector_store %arg27[%c42, %c0_270], %333 {strides = array<i32>} : memref<98x512xf32, #tpu.memory_space<vmem>>, vector<2x512xf32>,
    %c0_271 = arith.constant 0 : index
    %c126 = arith.constant 126 : index
    %335 = vector.load %arg24[%c0_271, %c126] : memref<2x768xf32, #tpu.memory_space<vmem>>, vector<2x512xf32>
    %c22_272 = arith.constant 22 : index
    %c0_273 = arith.constant 0 : index
    %336 = vector.load %arg17[%c22_272, %c0_273] : memref<49x512xf32, #tpu.memory_space<vmem>>, vector<1x512xf32>
    %337 = vector.broadcast %336 : vector<1x512xf32> to vector<2x512xf32>
    %338 = arith.mulf %335, %337 : vector<2x512xf32>
    %c44 = arith.constant 44 : index
    %c0_274 = arith.constant 0 : index
    %339 = vector.load %arg27[%c44, %c0_274] : memref<98x512xf32, #tpu.memory_space<vmem>>, vector<2x512xf32>
    tpu.vector_store %arg27[%c44, %c0_274], %338 {strides = array<i32>} : memref<98x512xf32, #tpu.memory_space<vmem>>, vector<2x512xf32>,
    %c0_275 = arith.constant 0 : index
    %c127_276 = arith.constant 127 : index
    %340 = vector.load %arg24[%c0_275, %c127_276] : memref<2x768xf32, #tpu.memory_space<vmem>>, vector<2x512xf32>
    %c23 = arith.constant 23 : index
    %c0_277 = arith.constant 0 : index
    %341 = vector.load %arg17[%c23, %c0_277] : memref<49x512xf32, #tpu.memory_space<vmem>>, vector<1x512xf32>
    %342 = vector.broadcast %341 : vector<1x512xf32> to vector<2x512xf32>
    %343 = arith.mulf %340, %342 : vector<2x512xf32>
    %c46 = arith.constant 46 : index
    %c0_278 = arith.constant 0 : index
    %344 = vector.load %arg27[%c46, %c0_278] : memref<98x512xf32, #tpu.memory_space<vmem>>, vector<2x512xf32>
    tpu.vector_store %arg27[%c46, %c0_278], %343 {strides = array<i32>} : memref<98x512xf32, #tpu.memory_space<vmem>>, vector<2x512xf32>,
    %c0_279 = arith.constant 0 : index
    %c128_280 = arith.constant 128 : index
    %345 = vector.load %arg24[%c0_279, %c128_280] : memref<2x768xf32, #tpu.memory_space<vmem>>, vector<2x512xf32>
    %c24_281 = arith.constant 24 : index
    %c0_282 = arith.constant 0 : index
    %346 = vector.load %arg17[%c24_281, %c0_282] : memref<49x512xf32, #tpu.memory_space<vmem>>, vector<1x512xf32>
    %347 = vector.broadcast %346 : vector<1x512xf32> to vector<2x512xf32>
    %348 = arith.mulf %345, %347 : vector<2x512xf32>
    %c48_283 = arith.constant 48 : index
    %c0_284 = arith.constant 0 : index
    %349 = vector.load %arg27[%c48_283, %c0_284] : memref<98x512xf32, #tpu.memory_space<vmem>>, vector<2x512xf32>
    tpu.vector_store %arg27[%c48_283, %c0_284], %348 {strides = array<i32>} : memref<98x512xf32, #tpu.memory_space<vmem>>, vector<2x512xf32>,
    %c0_285 = arith.constant 0 : index
    %c129_286 = arith.constant 129 : index
    %350 = vector.load %arg24[%c0_285, %c129_286] : memref<2x768xf32, #tpu.memory_space<vmem>>, vector<2x512xf32>
    %c25 = arith.constant 25 : index
    %c0_287 = arith.constant 0 : index
    %351 = vector.load %arg17[%c25, %c0_287] : memref<49x512xf32, #tpu.memory_space<vmem>>, vector<1x512xf32>
    %352 = vector.broadcast %351 : vector<1x512xf32> to vector<2x512xf32>
    %353 = arith.mulf %350, %352 : vector<2x512xf32>
    %c50 = arith.constant 50 : index
    %c0_288 = arith.constant 0 : index
    %354 = vector.load %arg27[%c50, %c0_288] : memref<98x512xf32, #tpu.memory_space<vmem>>, vector<2x512xf32>
    tpu.vector_store %arg27[%c50, %c0_288], %353 {strides = array<i32>} : memref<98x512xf32, #tpu.memory_space<vmem>>, vector<2x512xf32>,
    %c0_289 = arith.constant 0 : index
    %c130 = arith.constant 130 : index
    %355 = vector.load %arg24[%c0_289, %c130] : memref<2x768xf32, #tpu.memory_space<vmem>>, vector<2x512xf32>
    %c26_290 = arith.constant 26 : index
    %c0_291 = arith.constant 0 : index
    %356 = vector.load %arg17[%c26_290, %c0_291] : memref<49x512xf32, #tpu.memory_space<vmem>>, vector<1x512xf32>
    %357 = vector.broadcast %356 : vector<1x512xf32> to vector<2x512xf32>
    %358 = arith.mulf %355, %357 : vector<2x512xf32>
    %c52 = arith.constant 52 : index
    %c0_292 = arith.constant 0 : index
    %359 = vector.load %arg27[%c52, %c0_292] : memref<98x512xf32, #tpu.memory_space<vmem>>, vector<2x512xf32>
    tpu.vector_store %arg27[%c52, %c0_292], %358 {strides = array<i32>} : memref<98x512xf32, #tpu.memory_space<vmem>>, vector<2x512xf32>,
    %c0_293 = arith.constant 0 : index
    %c131 = arith.constant 131 : index
    %360 = vector.load %arg24[%c0_293, %c131] : memref<2x768xf32, #tpu.memory_space<vmem>>, vector<2x512xf32>
    %c27 = arith.constant 27 : index
    %c0_294 = arith.constant 0 : index
    %361 = vector.load %arg17[%c27, %c0_294] : memref<49x512xf32, #tpu.memory_space<vmem>>, vector<1x512xf32>
    %362 = vector.broadcast %361 : vector<1x512xf32> to vector<2x512xf32>
    %363 = arith.mulf %360, %362 : vector<2x512xf32>
    %c54 = arith.constant 54 : index
    %c0_295 = arith.constant 0 : index
    %364 = vector.load %arg27[%c54, %c0_295] : memref<98x512xf32, #tpu.memory_space<vmem>>, vector<2x512xf32>
    tpu.vector_store %arg27[%c54, %c0_295], %363 {strides = array<i32>} : memref<98x512xf32, #tpu.memory_space<vmem>>, vector<2x512xf32>,
    %c0_296 = arith.constant 0 : index
    %c141 = arith.constant 141 : index
    %365 = vector.load %arg24[%c0_296, %c141] : memref<2x768xf32, #tpu.memory_space<vmem>>, vector<2x512xf32>
    %c28_297 = arith.constant 28 : index
    %c0_298 = arith.constant 0 : index
    %366 = vector.load %arg17[%c28_297, %c0_298] : memref<49x512xf32, #tpu.memory_space<vmem>>, vector<1x512xf32>
    %367 = vector.broadcast %366 : vector<1x512xf32> to vector<2x512xf32>
    %368 = arith.mulf %365, %367 : vector<2x512xf32>
    %c56_299 = arith.constant 56 : index
    %c0_300 = arith.constant 0 : index
    %369 = vector.load %arg27[%c56_299, %c0_300] : memref<98x512xf32, #tpu.memory_space<vmem>>, vector<2x512xf32>
    tpu.vector_store %arg27[%c56_299, %c0_300], %368 {strides = array<i32>} : memref<98x512xf32, #tpu.memory_space<vmem>>, vector<2x512xf32>,
    %c0_301 = arith.constant 0 : index
    %c142 = arith.constant 142 : index
    %370 = vector.load %arg24[%c0_301, %c142] : memref<2x768xf32, #tpu.memory_space<vmem>>, vector<2x512xf32>
    %c29 = arith.constant 29 : index
    %c0_302 = arith.constant 0 : index
    %371 = vector.load %arg17[%c29, %c0_302] : memref<49x512xf32, #tpu.memory_space<vmem>>, vector<1x512xf32>
    %372 = vector.broadcast %371 : vector<1x512xf32> to vector<2x512xf32>
    %373 = arith.mulf %370, %372 : vector<2x512xf32>
    %c58 = arith.constant 58 : index
    %c0_303 = arith.constant 0 : index
    %374 = vector.load %arg27[%c58, %c0_303] : memref<98x512xf32, #tpu.memory_space<vmem>>, vector<2x512xf32>
    tpu.vector_store %arg27[%c58, %c0_303], %373 {strides = array<i32>} : memref<98x512xf32, #tpu.memory_space<vmem>>, vector<2x512xf32>,
    %c0_304 = arith.constant 0 : index
    %c143_305 = arith.constant 143 : index
    %375 = vector.load %arg24[%c0_304, %c143_305] : memref<2x768xf32, #tpu.memory_space<vmem>>, vector<2x512xf32>
    %c30_306 = arith.constant 30 : index
    %c0_307 = arith.constant 0 : index
    %376 = vector.load %arg17[%c30_306, %c0_307] : memref<49x512xf32, #tpu.memory_space<vmem>>, vector<1x512xf32>
    %377 = vector.broadcast %376 : vector<1x512xf32> to vector<2x512xf32>
    %378 = arith.mulf %375, %377 : vector<2x512xf32>
    %c60 = arith.constant 60 : index
    %c0_308 = arith.constant 0 : index
    %379 = vector.load %arg27[%c60, %c0_308] : memref<98x512xf32, #tpu.memory_space<vmem>>, vector<2x512xf32>
    tpu.vector_store %arg27[%c60, %c0_308], %378 {strides = array<i32>} : memref<98x512xf32, #tpu.memory_space<vmem>>, vector<2x512xf32>,
    %c0_309 = arith.constant 0 : index
    %c144_310 = arith.constant 144 : index
    %380 = vector.load %arg24[%c0_309, %c144_310] : memref<2x768xf32, #tpu.memory_space<vmem>>, vector<2x512xf32>
    %c31 = arith.constant 31 : index
    %c0_311 = arith.constant 0 : index
    %381 = vector.load %arg17[%c31, %c0_311] : memref<49x512xf32, #tpu.memory_space<vmem>>, vector<1x512xf32>
    %382 = vector.broadcast %381 : vector<1x512xf32> to vector<2x512xf32>
    %383 = arith.mulf %380, %382 : vector<2x512xf32>
    %c62 = arith.constant 62 : index
    %c0_312 = arith.constant 0 : index
    %384 = vector.load %arg27[%c62, %c0_312] : memref<98x512xf32, #tpu.memory_space<vmem>>, vector<2x512xf32>
    tpu.vector_store %arg27[%c62, %c0_312], %383 {strides = array<i32>} : memref<98x512xf32, #tpu.memory_space<vmem>>, vector<2x512xf32>,
    %c0_313 = arith.constant 0 : index
    %c145_314 = arith.constant 145 : index
    %385 = vector.load %arg24[%c0_313, %c145_314] : memref<2x768xf32, #tpu.memory_space<vmem>>, vector<2x512xf32>
    %c32_315 = arith.constant 32 : index
    %c0_316 = arith.constant 0 : index
    %386 = vector.load %arg17[%c32_315, %c0_316] : memref<49x512xf32, #tpu.memory_space<vmem>>, vector<1x512xf32>
    %387 = vector.broadcast %386 : vector<1x512xf32> to vector<2x512xf32>
    %388 = arith.mulf %385, %387 : vector<2x512xf32>
    %c64_317 = arith.constant 64 : index
    %c0_318 = arith.constant 0 : index
    %389 = vector.load %arg27[%c64_317, %c0_318] : memref<98x512xf32, #tpu.memory_space<vmem>>, vector<2x512xf32>
    tpu.vector_store %arg27[%c64_317, %c0_318], %388 {strides = array<i32>} : memref<98x512xf32, #tpu.memory_space<vmem>>, vector<2x512xf32>,
    %c0_319 = arith.constant 0 : index
    %c146 = arith.constant 146 : index
    %390 = vector.load %arg24[%c0_319, %c146] : memref<2x768xf32, #tpu.memory_space<vmem>>, vector<2x512xf32>
    %c33 = arith.constant 33 : index
    %c0_320 = arith.constant 0 : index
    %391 = vector.load %arg17[%c33, %c0_320] : memref<49x512xf32, #tpu.memory_space<vmem>>, vector<1x512xf32>
    %392 = vector.broadcast %391 : vector<1x512xf32> to vector<2x512xf32>
    %393 = arith.mulf %390, %392 : vector<2x512xf32>
    %c66 = arith.constant 66 : index
    %c0_321 = arith.constant 0 : index
    %394 = vector.load %arg27[%c66, %c0_321] : memref<98x512xf32, #tpu.memory_space<vmem>>, vector<2x512xf32>
    tpu.vector_store %arg27[%c66, %c0_321], %393 {strides = array<i32>} : memref<98x512xf32, #tpu.memory_space<vmem>>, vector<2x512xf32>,
    %c0_322 = arith.constant 0 : index
    %c147 = arith.constant 147 : index
    %395 = vector.load %arg24[%c0_322, %c147] : memref<2x768xf32, #tpu.memory_space<vmem>>, vector<2x512xf32>
    %c34_323 = arith.constant 34 : index
    %c0_324 = arith.constant 0 : index
    %396 = vector.load %arg17[%c34_323, %c0_324] : memref<49x512xf32, #tpu.memory_space<vmem>>, vector<1x512xf32>
    %397 = vector.broadcast %396 : vector<1x512xf32> to vector<2x512xf32>
    %398 = arith.mulf %395, %397 : vector<2x512xf32>
    %c68 = arith.constant 68 : index
    %c0_325 = arith.constant 0 : index
    %399 = vector.load %arg27[%c68, %c0_325] : memref<98x512xf32, #tpu.memory_space<vmem>>, vector<2x512xf32>
    tpu.vector_store %arg27[%c68, %c0_325], %398 {strides = array<i32>} : memref<98x512xf32, #tpu.memory_space<vmem>>, vector<2x512xf32>,
    %c0_326 = arith.constant 0 : index
    %c157 = arith.constant 157 : index
    %400 = vector.load %arg24[%c0_326, %c157] : memref<2x768xf32, #tpu.memory_space<vmem>>, vector<2x512xf32>
    %c35 = arith.constant 35 : index
    %c0_327 = arith.constant 0 : index
    %401 = vector.load %arg17[%c35, %c0_327] : memref<49x512xf32, #tpu.memory_space<vmem>>, vector<1x512xf32>
    %402 = vector.broadcast %401 : vector<1x512xf32> to vector<2x512xf32>
    %403 = arith.mulf %400, %402 : vector<2x512xf32>
    %c70 = arith.constant 70 : index
    %c0_328 = arith.constant 0 : index
    %404 = vector.load %arg27[%c70, %c0_328] : memref<98x512xf32, #tpu.memory_space<vmem>>, vector<2x512xf32>
    tpu.vector_store %arg27[%c70, %c0_328], %403 {strides = array<i32>} : memref<98x512xf32, #tpu.memory_space<vmem>>, vector<2x512xf32>,
    %c0_329 = arith.constant 0 : index
    %c158 = arith.constant 158 : index
    %405 = vector.load %arg24[%c0_329, %c158] : memref<2x768xf32, #tpu.memory_space<vmem>>, vector<2x512xf32>
    %c36_330 = arith.constant 36 : index
    %c0_331 = arith.constant 0 : index
    %406 = vector.load %arg17[%c36_330, %c0_331] : memref<49x512xf32, #tpu.memory_space<vmem>>, vector<1x512xf32>
    %407 = vector.broadcast %406 : vector<1x512xf32> to vector<2x512xf32>
    %408 = arith.mulf %405, %407 : vector<2x512xf32>
    %c72 = arith.constant 72 : index
    %c0_332 = arith.constant 0 : index
    %409 = vector.load %arg27[%c72, %c0_332] : memref<98x512xf32, #tpu.memory_space<vmem>>, vector<2x512xf32>
    tpu.vector_store %arg27[%c72, %c0_332], %408 {strides = array<i32>} : memref<98x512xf32, #tpu.memory_space<vmem>>, vector<2x512xf32>,
    %c0_333 = arith.constant 0 : index
    %c159 = arith.constant 159 : index
    %410 = vector.load %arg24[%c0_333, %c159] : memref<2x768xf32, #tpu.memory_space<vmem>>, vector<2x512xf32>
    %c37 = arith.constant 37 : index
    %c0_334 = arith.constant 0 : index
    %411 = vector.load %arg17[%c37, %c0_334] : memref<49x512xf32, #tpu.memory_space<vmem>>, vector<1x512xf32>
    %412 = vector.broadcast %411 : vector<1x512xf32> to vector<2x512xf32>
    %413 = arith.mulf %410, %412 : vector<2x512xf32>
    %c74 = arith.constant 74 : index
    %c0_335 = arith.constant 0 : index
    %414 = vector.load %arg27[%c74, %c0_335] : memref<98x512xf32, #tpu.memory_space<vmem>>, vector<2x512xf32>
    tpu.vector_store %arg27[%c74, %c0_335], %413 {strides = array<i32>} : memref<98x512xf32, #tpu.memory_space<vmem>>, vector<2x512xf32>,
    %c0_336 = arith.constant 0 : index
    %c160 = arith.constant 160 : index
    %415 = vector.load %arg24[%c0_336, %c160] : memref<2x768xf32, #tpu.memory_space<vmem>>, vector<2x512xf32>
    %c38_337 = arith.constant 38 : index
    %c0_338 = arith.constant 0 : index
    %416 = vector.load %arg17[%c38_337, %c0_338] : memref<49x512xf32, #tpu.memory_space<vmem>>, vector<1x512xf32>
    %417 = vector.broadcast %416 : vector<1x512xf32> to vector<2x512xf32>
    %418 = arith.mulf %415, %417 : vector<2x512xf32>
    %c76 = arith.constant 76 : index
    %c0_339 = arith.constant 0 : index
    %419 = vector.load %arg27[%c76, %c0_339] : memref<98x512xf32, #tpu.memory_space<vmem>>, vector<2x512xf32>
    tpu.vector_store %arg27[%c76, %c0_339], %418 {strides = array<i32>} : memref<98x512xf32, #tpu.memory_space<vmem>>, vector<2x512xf32>,
    %c0_340 = arith.constant 0 : index
    %c161 = arith.constant 161 : index
    %420 = vector.load %arg24[%c0_340, %c161] : memref<2x768xf32, #tpu.memory_space<vmem>>, vector<2x512xf32>
    %c39 = arith.constant 39 : index
    %c0_341 = arith.constant 0 : index
    %421 = vector.load %arg17[%c39, %c0_341] : memref<49x512xf32, #tpu.memory_space<vmem>>, vector<1x512xf32>
    %422 = vector.broadcast %421 : vector<1x512xf32> to vector<2x512xf32>
    %423 = arith.mulf %420, %422 : vector<2x512xf32>
    %c78_342 = arith.constant 78 : index
    %c0_343 = arith.constant 0 : index
    %424 = vector.load %arg27[%c78_342, %c0_343] : memref<98x512xf32, #tpu.memory_space<vmem>>, vector<2x512xf32>
    tpu.vector_store %arg27[%c78_342, %c0_343], %423 {strides = array<i32>} : memref<98x512xf32, #tpu.memory_space<vmem>>, vector<2x512xf32>,
    %c0_344 = arith.constant 0 : index
    %c162 = arith.constant 162 : index
    %425 = vector.load %arg24[%c0_344, %c162] : memref<2x768xf32, #tpu.memory_space<vmem>>, vector<2x512xf32>
    %c40_345 = arith.constant 40 : index
    %c0_346 = arith.constant 0 : index
    %426 = vector.load %arg17[%c40_345, %c0_346] : memref<49x512xf32, #tpu.memory_space<vmem>>, vector<1x512xf32>
    %427 = vector.broadcast %426 : vector<1x512xf32> to vector<2x512xf32>
    %428 = arith.mulf %425, %427 : vector<2x512xf32>
    %c80_347 = arith.constant 80 : index
    %c0_348 = arith.constant 0 : index
    %429 = vector.load %arg27[%c80_347, %c0_348] : memref<98x512xf32, #tpu.memory_space<vmem>>, vector<2x512xf32>
    tpu.vector_store %arg27[%c80_347, %c0_348], %428 {strides = array<i32>} : memref<98x512xf32, #tpu.memory_space<vmem>>, vector<2x512xf32>,
    %c0_349 = arith.constant 0 : index
    %c163 = arith.constant 163 : index
    %430 = vector.load %arg24[%c0_349, %c163] : memref<2x768xf32, #tpu.memory_space<vmem>>, vector<2x512xf32>
    %c41 = arith.constant 41 : index
    %c0_350 = arith.constant 0 : index
    %431 = vector.load %arg17[%c41, %c0_350] : memref<49x512xf32, #tpu.memory_space<vmem>>, vector<1x512xf32>
    %432 = vector.broadcast %431 : vector<1x512xf32> to vector<2x512xf32>
    %433 = arith.mulf %430, %432 : vector<2x512xf32>
    %c82_351 = arith.constant 82 : index
    %c0_352 = arith.constant 0 : index
    %434 = vector.load %arg27[%c82_351, %c0_352] : memref<98x512xf32, #tpu.memory_space<vmem>>, vector<2x512xf32>
    tpu.vector_store %arg27[%c82_351, %c0_352], %433 {strides = array<i32>} : memref<98x512xf32, #tpu.memory_space<vmem>>, vector<2x512xf32>,
    %c0_353 = arith.constant 0 : index
    %c173 = arith.constant 173 : index
    %435 = vector.load %arg24[%c0_353, %c173] : memref<2x768xf32, #tpu.memory_space<vmem>>, vector<2x512xf32>
    %c42_354 = arith.constant 42 : index
    %c0_355 = arith.constant 0 : index
    %436 = vector.load %arg17[%c42_354, %c0_355] : memref<49x512xf32, #tpu.memory_space<vmem>>, vector<1x512xf32>
    %437 = vector.broadcast %436 : vector<1x512xf32> to vector<2x512xf32>
    %438 = arith.mulf %435, %437 : vector<2x512xf32>
    %c84 = arith.constant 84 : index
    %c0_356 = arith.constant 0 : index
    %439 = vector.load %arg27[%c84, %c0_356] : memref<98x512xf32, #tpu.memory_space<vmem>>, vector<2x512xf32>
    tpu.vector_store %arg27[%c84, %c0_356], %438 {strides = array<i32>} : memref<98x512xf32, #tpu.memory_space<vmem>>, vector<2x512xf32>,
    %c0_357 = arith.constant 0 : index
    %c174 = arith.constant 174 : index
    %440 = vector.load %arg24[%c0_357, %c174] : memref<2x768xf32, #tpu.memory_space<vmem>>, vector<2x512xf32>
    %c43 = arith.constant 43 : index
    %c0_358 = arith.constant 0 : index
    %441 = vector.load %arg17[%c43, %c0_358] : memref<49x512xf32, #tpu.memory_space<vmem>>, vector<1x512xf32>
    %442 = vector.broadcast %441 : vector<1x512xf32> to vector<2x512xf32>
    %443 = arith.mulf %440, %442 : vector<2x512xf32>
    %c86 = arith.constant 86 : index
    %c0_359 = arith.constant 0 : index
    %444 = vector.load %arg27[%c86, %c0_359] : memref<98x512xf32, #tpu.memory_space<vmem>>, vector<2x512xf32>
    tpu.vector_store %arg27[%c86, %c0_359], %443 {strides = array<i32>} : memref<98x512xf32, #tpu.memory_space<vmem>>, vector<2x512xf32>,
    %c0_360 = arith.constant 0 : index
    %c175 = arith.constant 175 : index
    %445 = vector.load %arg24[%c0_360, %c175] : memref<2x768xf32, #tpu.memory_space<vmem>>, vector<2x512xf32>
    %c44_361 = arith.constant 44 : index
    %c0_362 = arith.constant 0 : index
    %446 = vector.load %arg17[%c44_361, %c0_362] : memref<49x512xf32, #tpu.memory_space<vmem>>, vector<1x512xf32>
    %447 = vector.broadcast %446 : vector<1x512xf32> to vector<2x512xf32>
    %448 = arith.mulf %445, %447 : vector<2x512xf32>
    %c88 = arith.constant 88 : index
    %c0_363 = arith.constant 0 : index
    %449 = vector.load %arg27[%c88, %c0_363] : memref<98x512xf32, #tpu.memory_space<vmem>>, vector<2x512xf32>
    tpu.vector_store %arg27[%c88, %c0_363], %448 {strides = array<i32>} : memref<98x512xf32, #tpu.memory_space<vmem>>, vector<2x512xf32>,
    %c0_364 = arith.constant 0 : index
    %c176 = arith.constant 176 : index
    %450 = vector.load %arg24[%c0_364, %c176] : memref<2x768xf32, #tpu.memory_space<vmem>>, vector<2x512xf32>
    %c45 = arith.constant 45 : index
    %c0_365 = arith.constant 0 : index
    %451 = vector.load %arg17[%c45, %c0_365] : memref<49x512xf32, #tpu.memory_space<vmem>>, vector<1x512xf32>
    %452 = vector.broadcast %451 : vector<1x512xf32> to vector<2x512xf32>
    %453 = arith.mulf %450, %452 : vector<2x512xf32>
    %c90 = arith.constant 90 : index
    %c0_366 = arith.constant 0 : index
    %454 = vector.load %arg27[%c90, %c0_366] : memref<98x512xf32, #tpu.memory_space<vmem>>, vector<2x512xf32>
    tpu.vector_store %arg27[%c90, %c0_366], %453 {strides = array<i32>} : memref<98x512xf32, #tpu.memory_space<vmem>>, vector<2x512xf32>,
    %c0_367 = arith.constant 0 : index
    %c177 = arith.constant 177 : index
    %455 = vector.load %arg24[%c0_367, %c177] : memref<2x768xf32, #tpu.memory_space<vmem>>, vector<2x512xf32>
    %c46_368 = arith.constant 46 : index
    %c0_369 = arith.constant 0 : index
    %456 = vector.load %arg17[%c46_368, %c0_369] : memref<49x512xf32, #tpu.memory_space<vmem>>, vector<1x512xf32>
    %457 = vector.broadcast %456 : vector<1x512xf32> to vector<2x512xf32>
    %458 = arith.mulf %455, %457 : vector<2x512xf32>
    %c92 = arith.constant 92 : index
    %c0_370 = arith.constant 0 : index
    %459 = vector.load %arg27[%c92, %c0_370] : memref<98x512xf32, #tpu.memory_space<vmem>>, vector<2x512xf32>
    tpu.vector_store %arg27[%c92, %c0_370], %458 {strides = array<i32>} : memref<98x512xf32, #tpu.memory_space<vmem>>, vector<2x512xf32>,
    %c0_371 = arith.constant 0 : index
    %c178 = arith.constant 178 : index
    %460 = vector.load %arg24[%c0_371, %c178] : memref<2x768xf32, #tpu.memory_space<vmem>>, vector<2x512xf32>
    %c47 = arith.constant 47 : index
    %c0_372 = arith.constant 0 : index
    %461 = vector.load %arg17[%c47, %c0_372] : memref<49x512xf32, #tpu.memory_space<vmem>>, vector<1x512xf32>
    %462 = vector.broadcast %461 : vector<1x512xf32> to vector<2x512xf32>
    %463 = arith.mulf %460, %462 : vector<2x512xf32>
    %c94_373 = arith.constant 94 : index
    %c0_374 = arith.constant 0 : index
    %464 = vector.load %arg27[%c94_373, %c0_374] : memref<98x512xf32, #tpu.memory_space<vmem>>, vector<2x512xf32>
    tpu.vector_store %arg27[%c94_373, %c0_374], %463 {strides = array<i32>} : memref<98x512xf32, #tpu.memory_space<vmem>>, vector<2x512xf32>,
    %c0_375 = arith.constant 0 : index
    %c179 = arith.constant 179 : index
    %465 = vector.load %arg24[%c0_375, %c179] : memref<2x768xf32, #tpu.memory_space<vmem>>, vector<2x512xf32>
    %c48_376 = arith.constant 48 : index
    %c0_377 = arith.constant 0 : index
    %466 = vector.load %arg17[%c48_376, %c0_377] : memref<49x512xf32, #tpu.memory_space<vmem>>, vector<1x512xf32>
    %467 = vector.broadcast %466 : vector<1x512xf32> to vector<2x512xf32>
    %468 = arith.mulf %465, %467 : vector<2x512xf32>
    %c96_378 = arith.constant 96 : index
    %c0_379 = arith.constant 0 : index
    %469 = vector.load %arg27[%c96_378, %c0_379] : memref<98x512xf32, #tpu.memory_space<vmem>>, vector<2x512xf32>
    tpu.vector_store %arg27[%c96_378, %c0_379], %468 {strides = array<i32>} : memref<98x512xf32, #tpu.memory_space<vmem>>, vector<2x512xf32>,
    %c0_380 = arith.constant 0 : index
    %c0_381 = arith.constant 0 : index
    %470 = vector.load %arg13[%c0_380, %c0_381] : memref<1x98xf32, #tpu.memory_space<vmem>>, vector<1x98xf32>
    %c0_382 = arith.constant 0 : index
    %c0_383 = arith.constant 0 : index
    %471 = vector.load %arg27[%c0_382, %c0_383] : memref<98x512xf32, #tpu.memory_space<vmem>>, vector<98x512xf32>
    %cst_384 = arith.constant dense<0.000000e+00> : vector<1x512xf32>
    %472 = tpu.matmul %470, %471, %cst_384 {dimension_numbers = #tpu.dot_dimension_numbers<[1], [0], [0], [1], [0, 0, 1, 1], [], []>} : vector<1x98xf32>, vector<98x512xf32>, vector<1x512xf32> -> vector<1x512xf32>
    %cst_385 = arith.constant 5.000000e-01 : f32
    %473 = vector.broadcast %cst_385 : f32 to vector<1x512xf32>
    %474 = arith.mulf %473, %472 : vector<1x512xf32>
    %475 = math.tanh %474 : vector<1x512xf32>
    %cst_386 = arith.constant 1.000000e+00 : f32
    %476 = vector.broadcast %cst_386 : f32 to vector<1x512xf32>
    %477 = arith.addf %475, %476 : vector<1x512xf32>
    %cst_387 = arith.constant 5.000000e-01 : f32
    %478 = vector.broadcast %cst_387 : f32 to vector<1x512xf32>
    %479 = arith.mulf %478, %477 : vector<1x512xf32>
    %480 = vector.broadcast %479 : vector<1x512xf32> to vector<8x512xf32>
    %481 = arith.mulf %214, %480 : vector<8x512xf32>
    %c0_388 = arith.constant 0 : index
    %c0_389 = arith.constant 0 : index
    %482 = vector.load %arg14[%c0_388, %c0_389] : memref<8x1xf32, #tpu.memory_space<vmem>>, vector<8x1xf32>
    %c0_390 = arith.constant 0 : index
    %c0_391 = arith.constant 0 : index
    %483 = vector.load %arg15[%c0_390, %c0_391] : memref<8x1xf32, #tpu.memory_space<vmem>>, vector<8x1xf32>
    %cst_392 = arith.constant dense<0.000000e+00> : vector<8xf32>
    %484 = vector.multi_reduction <add>, %481, %cst_392 [1] : vector<8x512xf32> to vector<8xf32>
    %485 = vector.shape_cast %484 : vector<8xf32> to vector<8x1xf32>
    %cst_393 = arith.constant 5.120000e+02 : f32
    %486 = vector.broadcast %cst_393 : f32 to vector<8x1xf32>
    %487 = arith.divf %485, %486 : vector<8x1xf32>
    %488 = arith.mulf %481, %481 : vector<8x512xf32>
    %cst_394 = arith.constant dense<0.000000e+00> : vector<8xf32>
    %489 = vector.multi_reduction <add>, %488, %cst_394 [1] : vector<8x512xf32> to vector<8xf32>
    %490 = vector.shape_cast %489 : vector<8xf32> to vector<8x1xf32>
    %cst_395 = arith.constant 5.120000e+02 : f32
    %491 = vector.broadcast %cst_395 : f32 to vector<8x1xf32>
    %492 = arith.divf %490, %491 : vector<8x1xf32>
    %493 = arith.mulf %487, %487 : vector<8x1xf32>
    %494 = arith.subf %492, %493 : vector<8x1xf32>
    %cst_396 = arith.constant 0.000000e+00 : f32
    %495 = vector.broadcast %cst_396 : f32 to vector<8x1xf32>
    %496 = arith.maximumf %494, %495 : vector<8x1xf32>
    %497 = vector.broadcast %487 : vector<8x1xf32> to vector<8x512xf32>
    %498 = arith.subf %481, %497 : vector<8x512xf32>
    %cst_397 = arith.constant 9.99999974E-6 : f32
    %499 = vector.broadcast %cst_397 : f32 to vector<8x1xf32>
    %500 = arith.addf %496, %499 : vector<8x1xf32>
    %501 = math.rsqrt %500 : vector<8x1xf32>
    %502 = vector.broadcast %501 : vector<8x1xf32> to vector<8x512xf32>
    %503 = arith.mulf %498, %502 : vector<8x512xf32>
    %504 = vector.broadcast %482 : vector<8x1xf32> to vector<8x512xf32>
    %505 = arith.mulf %503, %504 : vector<8x512xf32>
    %506 = vector.broadcast %483 : vector<8x1xf32> to vector<8x512xf32>
    %507 = arith.addf %505, %506 : vector<8x512xf32>
    %cst_398 = arith.constant 0.000000e+00 : f32
    %508 = vector.broadcast %cst_398 : f32 to vector<8x512xf32>
    %509 = arith.cmpf ogt, %507, %508 : vector<8x512xf32>
    %cst_399 = arith.constant 2.000000e-01 : f32
    %510 = vector.broadcast %cst_399 : f32 to vector<8x512xf32>
    %511 = arith.mulf %510, %507 : vector<8x512xf32>
    %512 = arith.select %509, %507, %511 : vector<8x512xi1>, vector<8x512xf32>
    %c0_400 = arith.constant 0 : index
    %c0_401 = arith.constant 0 : index
    %513 = vector.load %arg21[%c0_400, %c0_401] : memref<8x512xf32, #tpu.memory_space<vmem>>, vector<8x512xf32>
    tpu.vector_store %arg21[%c0_400, %c0_401], %512 {strides = array<i32>} : memref<8x512xf32, #tpu.memory_space<vmem>>, vector<8x512xf32>,
    return
  }
}

</mosaic_0001>

<bundles_post_ra>
// kernel: up_cbam_forward.1
= control target key start
LH: loop header
LB: loop body
LE: loop exit
PB: predicated region body
PF: predicated region fallthrough
CT: control target
= control target key end

     0   :  { %v8374_v3 = vmov 0.0   ;;  %v12645_v48 = vlaneseq  ;;  %s12678_s24 = smov 111   ;;  %s12810_s28 = smov 113   ;;  %vm12752_vm0 = vcmask 908288   ;;  %vm12896_vm1 = vcmask 916480   ;;  %s12559_s2 = inlined_call_operand.vmem [shape: f32[128,512], index: 2, kind: input, shape index: {}]   ;;  %s12560_s16 = inlined_call_operand.vmem [shape: f32[9,512], index: 16, kind: input, shape index: {}]   ;;  %s12561_s1 = inlined_call_operand.vmem [shape: f32[4,128], index: 1, kind: input, shape index: {}]   ;;  %s12562_s0 = inlined_call_operand.vmem [shape: f32[4,512], index: 0, kind: input, shape index: {}]   ;;  %s12563_s4 = inlined_call_operand.vmem [shape: f32[4,1], index: 4, kind: input, shape index: {}]   ;;  %s12564_s6 = inlined_call_operand.vmem [shape: f32[4,1], index: 6, kind: input, shape index: {}]   ;;  %s12565_s5 = inlined_call_operand.vmem [shape: f32[4,1], index: 5, kind: input, shape index: {}]   ;;  %s12566_s3 = inlined_call_operand.vmem [shape: f32[4,72], index: 3, kind: input, shape index: {}]   ;;  %s12567_s8 = inlined_call_operand.vmem [shape: f32[8,1], index: 8, kind: input, shape index: {}]   ;;  %s12568_s7 = inlined_call_operand.vmem [shape: f32[8,36], index: 7, kind: input, shape index: {}]   ;;  %s12569_s18 = inlined_call_operand.vmem [shape: f32[512,2], index: 18, kind: input, shape index: {}]   ;;  %s12570_s10 = inlined_call_operand.vmem [shape: f32[8,1], index: 10, kind: input, shape index: {}]   ;;  %s12571_s9 = inlined_call_operand.vmem [shape: f32[8,1], index: 9, kind: input, shape index: {}]   ;;  %s12572_s20 = inlined_call_operand.vmem [shape: f32[2,2], index: 20, kind: input, shape index: {}]   ;;  %s12573_s11 = inlined_call_operand.vmem [shape: f32[1,8], index: 11, kind: input, shape index: {}]   ;;  %s12574_s17 = inlined_call_operand.vmem [shape: f32[49,512], index: 17, kind: input, shape index: {}]   ;;  %s12575_s12 = inlined_call_operand.vmem [shape: f32[8,1], index: 12, kind: input, shape index: {}]   ;;  %s12576_s19 = inlined_call_operand.vmem [shape: f32[2,512], index: 19, kind: input, shape index: {}]   ;;  %s12577_s13 = inlined_call_operand.vmem [shape: f32[1,98], index: 13, kind: input, shape index: {}]   ;;  %s12578_s15 = inlined_call_operand.vmem [shape: f32[8,1], index: 15, kind: input, shape index: {}]   ;;  %s12579_s14 = inlined_call_operand.vmem [shape: f32[8,1], index: 14, kind: input, shape index: {}]   ;;  %s12580_s21 = inlined_call_operand.vmem [shape: f32[8,512], index: 21, kind: output, shape index: {}]  }
   0x1   :  { %12916 = sst [smem:[#allocation128_spill]] %s12559_s2  ;;  %197 = vmatprep.mubr.f32.mxu0 %v8374_v3  ;;  %275 = vst [vmem:[#allocation2] sm:$0xff] %v8374_v3  ;;  %276 = vst [vmem:[#allocation2 + $0x8] sm:$0xff] %v8374_v3  ;;  %268 = vmatprep.mubr.f32.mxu1 %v8374_v3  ;;  %s12766_s29 = smov 127   ;;  %vm12751_vm2 = vcmask 924672   ;;  %vm12779_vm3 = vcmask 1039360  }
   0x2   :  { %12917 = sst [smem:[#allocation129_spill]] %s12560_s16  ;;  %s12926_s26 = sld [smem:[#allocation128_spill]]  ;;  %277 = vst [vmem:[#allocation2 + $0x10] sm:$0xff] %v8374_v3  ;;  %278 = vst [vmem:[#allocation2 + $0x18] sm:$0xff] %v8374_v3  ;;  %v8676_v62 = vshrl.u32 %v12645_v48, 7  ;;  %vm12825_vm4 = vcmask 7168  }
   0x3   :  { %12918 = sst [smem:[#allocation130_spill]] %s12561_s1  ;;  %279 = vst [vmem:[#allocation2 + $0x20] sm:$0xff] %v8374_v3  ;;  %1187 = vst [vmem:[#allocation3] sm:$0xff] %v8374_v3  ;;  %s12930_s1 = sld [smem:[#allocation129_spill]]  ;;  %vm12908_vm5 = vcmask 121856   ;;  %vm12831_vm6 = vcmask 130048  }
   0x4   :  { %12919 = sst [smem:[#allocation131_spill]] %s12562_s0  ;;  %1188 = vst [vmem:[#allocation3 + $0x8] sm:$0xff] %v8374_v3  ;;  %1189 = vst [vmem:[#allocation3 + $0x10] sm:$0xff] %v8374_v3  ;;  %s12932_s23 = sld [smem:[#allocation130_spill]]  ;;  %vm12717_vm7 = vcmask 138240   ;;  %vm970_vm8 = vcmask 588800  }
   0x5   :  { %12920 = sst [smem:[#allocation132_spill]] %s12563_s4  ;;  %2709 = vst [vmem:[#allocation4] sm:$0xff] %v8374_v3  ;;  %2710 = vst [vmem:[#allocation4 + $0x8] sm:$0xf] %v8374_v3  ;;  %s12590_s30 = smov 1   ;;  %vm1118_vm9 = vcmask 1043456  }
   0x6   :  { %12921 = sst [smem:[#allocation133_spill]] %s12564_s6  ;;  %s12726_s6 = smov 112   ;;  %vm1787_vm14 = vcmask 293888  }
   0x7   :  { %12922 = sst [smem:[#allocation134_spill]] %s12577_s13  ;;  %s12586_s25 = smov 15  }
   0x8   :  { %12923 = sst [smem:[#allocation135_spill]] %s12578_s15  ;;  %v70_v0 = vld [vmem:[%s12926_s26 + $0x8] sm:$0xff]  ;;  %v72_v2 = vld [vmem:[%s12926_s26 + $0x18] sm:$0xff]  ;;  %v69_v6 = vld [vmem:[%s12926_s26] sm:$0xff]  ;;  %s12588_s27 = smov 16  }
   0x9   :  { %12924 = sst [smem:[#allocation136_spill]] %s12579_s14  ;;  %v74_v1 = vld [vmem:[%s12926_s26 + $0x28] sm:$0xff]  ;;  %v76_v5 = vld [vmem:[%s12926_s26 + $0x38] sm:$0xff]  ;;  %v73_v7 = vld [vmem:[%s12926_s26 + $0x20] sm:$0xff]  ;;  %s12584_s4 = smov 17  }
   0xa   :  { %12925 = sst [smem:[#allocation137_spill]] %s12580_s21  ;;  %v8000_v4 = vpack.c.bf16 %v74_v1, %v70_v0  ;;  %v8032_v8 = vpack.c.bf16 %v76_v5, %v72_v2  ;;  %v8002_v9 = vpack.c.bf16 %v73_v7, %v69_v6  ;;  %v71_v10 = vld [vmem:[%s12926_s26 + $0x10] sm:$0xff]  ;;  %v78_v12 = vld [vmem:[%s12926_s26 + $0x48] sm:$0xff]  ;;  %v80_v15 = vld [vmem:[%s12926_s26 + $0x58] sm:$0xff]  ;;  %s12934_s16 = sld [smem:[#allocation132_spill]] }
   0xb   :  { %v75_v11 = vld [vmem:[%s12926_s26 + $0x30] sm:$0xff]  ;;  %v82_v14 = vld [vmem:[%s12926_s26 + $0x68] sm:$0xff]  ;;  %v84_v16 = vld [vmem:[%s12926_s26 + $0x78] sm:$0xff]  ;;  %s12598_s0 = smov 80   ;;  %s12600_s2 = smov 81  }
   0xc   :  { %8001 = vmatprep.subr.bf16.mxu0 %v8000_v4  ;;  %v8034_v13 = vpack.c.bf16 %v75_v11, %v71_v10  ;;  %8033 = vmatprep.subr.bf16.mxu1 %v8032_v8  ;;  %v8004_v17 = vpack.c.bf16 %v82_v14, %v78_v12  ;;  %v8036_v18 = vpack.c.bf16 %v84_v16, %v80_v15  ;;  %v77_v19 = vld [vmem:[%s12926_s26 + $0x40] sm:$0xff]  ;;  %v79_v21 = vld [vmem:[%s12926_s26 + $0x50] sm:$0xff]  ;;  %v86_v24 = vld [vmem:[%s12926_s26 + $0x88] sm:$0xff]  ;;  %v8703_v12 = vsub.s32 0, %v8676_v62  ;;  %s12667_s22 = smov 95   ;;  %s13092_s21 = smov 50  }
   0xd   :  { %8003 = vmatpush1.bf16.msra.mxu0 %v8002_v9  ;;  %v81_v20 = vld [vmem:[%s12926_s26 + $0x60] sm:$0xff]  ;;  %v83_v23 = vld [vmem:[%s12926_s26 + $0x70] sm:$0xff]  ;;  %v90_v25 = vld [vmem:[%s12926_s26 + $0xa8] sm:$0xff]  ;;  %s13096_s14 = smov 49   ;;  %s13102_s15 = smov 127  }
   0xe   :  { %8035 = vmatpush1.bf16.msra.mxu1 %v8034_v13  ;;  %v8006_v22 = vpack.c.bf16 %v81_v20, %v77_v19  ;;  %8005 = vmatprep.subr.bf16.mxu0 %v8004_v17  ;;  %v8038_v26 = vpack.c.bf16 %v83_v23, %v79_v21  ;;  %v8008_v27 = vpack.c.bf16 %v90_v25, %v86_v24  ;;  %v88_v28 = vld [vmem:[%s12926_s26 + $0x98] sm:$0xff]  ;;  %v85_v30 = vld [vmem:[%s12926_s26 + $0x80] sm:$0xff]  ;;  %v87_v33 = vld [vmem:[%s12926_s26 + $0x90] sm:$0xff]  ;;  %v8706_v13 = vsub.s32 2, %v8676_v62  ;;  %s13103_s13 = smov 48  }
   0xf   :  { %8037 = vmatprep.subr.bf16.mxu1 %v8036_v18  ;;  %v92_v29 = vld [vmem:[%s12926_s26 + $0xb8] sm:$0xff]  ;;  %v89_v32 = vld [vmem:[%s12926_s26 + $0xa0] sm:$0xff]  ;;  %v91_v34 = vld [vmem:[%s12926_s26 + $0xb0] sm:$0xff]  ;;  %12927 = vst [vmem:[#allocation8_spill] sm:$0xff] %v8703_v12  ;;  %v8718_v18 = vsub.s32 1, %v8676_v62 }
  0x10   :  { %v8040_v31 = vpack.c.bf16 %v92_v29, %v88_v28  ;;  %v8010_v35 = vpack.c.bf16 %v89_v32, %v85_v30  ;;  %v94_v36 = vld [vmem:[%s12926_s26 + $0xc8] sm:$0xff]  ;;  %v96_v38 = vld [vmem:[%s12926_s26 + $0xd8] sm:$0xff]  ;;  %v8042_v39 = vpack.c.bf16 %v91_v34, %v87_v33  ;;  %v93_v42 = vld [vmem:[%s12926_s26 + $0xc0] sm:$0xff]  ;;  %12928 = vst [vmem:[#allocation9_spill] sm:$0xff] %v8706_v13 }
  0x11   :  { %8007 = vmatpush1.bf16.msra.mxu0 %v8006_v22  ;;  %v98_v37 = vld [vmem:[%s12926_s26 + $0xe8] sm:$0xff]  ;;  %v100_v41 = vld [vmem:[%s12926_s26 + $0xf8] sm:$0xff]  ;;  %v97_v43 = vld [vmem:[%s12926_s26 + $0xe0] sm:$0xff]  ;;  %12929 = vst [vmem:[#allocation10_spill] sm:$0xff] %v8718_v18 }
  0x12   :  { %8039 = vmatpush1.bf16.msra.mxu1 %v8038_v26  ;;  %8009 = vmatprep.subr.bf16.mxu0 %v8008_v27  ;;  %v8012_v40 = vpack.c.bf16 %v98_v37, %v94_v36  ;;  %v8044_v44 = vpack.c.bf16 %v100_v41, %v96_v38  ;;  %v95_v45 = vld [vmem:[%s12926_s26 + $0xd0] sm:$0xff]  ;;  %v102_v47 = vld [vmem:[%s12926_s26 + $0x108] sm:$0xff]  ;;  %v104_v50 = vld [vmem:[%s12926_s26 + $0x118] sm:$0xff]  ;;  %v8014_v52 = vpack.c.bf16 %v97_v43, %v93_v42 }
  0x13   :  { %8041 = vmatprep.subr.bf16.mxu1 %v8040_v31  ;;  %v99_v46 = vld [vmem:[%s12926_s26 + $0xf0] sm:$0xff]  ;;  %v106_v49 = vld [vmem:[%s12926_s26 + $0x128] sm:$0xff]  ;;  %v108_v51 = vld [vmem:[%s12926_s26 + $0x138] sm:$0xff] }
  0x14   :  { %v8046_v53 = vpack.c.bf16 %v99_v46, %v95_v45  ;;  %v8016_v54 = vpack.c.bf16 %v106_v49, %v102_v47  ;;  %v101_v55 = vld [vmem:[%s12926_s26 + $0x100] sm:$0xff]  ;;  %v103_v57 = vld [vmem:[%s12926_s26 + $0x110] sm:$0xff]  ;;  %v8048_v58 = vpack.c.bf16 %v108_v51, %v104_v50  ;;  %v110_v60 = vld [vmem:[%s12926_s26 + $0x148] sm:$0xff]  ;;  %v8768_v45 = vsub.s32 3, %v8676_v62 }
  0x15   :  { %8011 = vmatpush1.bf16.msra.mxu0 %v8010_v35  ;;  %v105_v56 = vld [vmem:[%s12926_s26 + $0x120] sm:$0xff]  ;;  %v107_v59 = vld [vmem:[%s12926_s26 + $0x130] sm:$0xff]  ;;  %v114_v61 = vld [vmem:[%s12926_s26 + $0x168] sm:$0xff] }
  0x16   :  { %8043 = vmatpush1.bf16.msra.mxu1 %v8042_v39  ;;  %8013 = vmatprep.subr.bf16.mxu0 %v8012_v40  ;;  %v112_v63 = vld [vmem:[%s12926_s26 + $0x158] sm:$0xff]  ;;  %v8018_v1 = vpack.c.bf16 %v105_v56, %v101_v55  ;;  %v8050_v2 = vpack.c.bf16 %v107_v59, %v103_v57  ;;  %v8020_v4 = vpack.c.bf16 %v114_v61, %v110_v60  ;;  %v109_v5 = vld [vmem:[%s12926_s26 + $0x140] sm:$0xff]  ;;  %v111_v7 = vld [vmem:[%s12926_s26 + $0x150] sm:$0xff] }
  0x17   :  { %8045 = vmatprep.subr.bf16.mxu1 %v8044_v44  ;;  %v116_v0 = vld [vmem:[%s12926_s26 + $0x178] sm:$0xff]  ;;  %v113_v6 = vld [vmem:[%s12926_s26 + $0x160] sm:$0xff]  ;;  %v115_v9 = vld [vmem:[%s12926_s26 + $0x170] sm:$0xff]  ;;  %12931 = vst [vmem:[#allocation11_spill] sm:$0xff] %v8768_v45 }
  0x18   :  { %v8052_v8 = vpack.c.bf16 %v116_v0, %v112_v63  ;;  %v118_v10 = vld [vmem:[%s12926_s26 + $0x188] sm:$0xff]  ;;  %v120_v14 = vld [vmem:[%s12926_s26 + $0x198] sm:$0xff]  ;;  %v8022_v16 = vpack.c.bf16 %v113_v6, %v109_v5  ;;  %v117_v17 = vld [vmem:[%s12926_s26 + $0x180] sm:$0xff]  ;;  %v8054_v19 = vpack.c.bf16 %v115_v9, %v111_v7 }
  0x19   :  { %8015 = vmatpush1.bf16.msra.mxu0 %v8014_v52  ;;  %v122_v11 = vld [vmem:[%s12926_s26 + $0x1a8] sm:$0xff]  ;;  %v124_v15 = vld [vmem:[%s12926_s26 + $0x1b8] sm:$0xff]  ;;  %v121_v21 = vld [vmem:[%s12926_s26 + $0x1a0] sm:$0xff] }
  0x1a   :  { %8047 = vmatpush1.bf16.msra.mxu1 %v8046_v53  ;;  %8017 = vmatprep.subr.bf16.mxu0 %v8016_v54  ;;  %v8024_v20 = vpack.c.bf16 %v122_v11, %v118_v10  ;;  %v119_v22 = vld [vmem:[%s12926_s26 + $0x190] sm:$0xff]  ;;  %v8056_v24 = vpack.c.bf16 %v124_v15, %v120_v14  ;;  %v126_v26 = vld [vmem:[%s12926_s26 + $0x1c8] sm:$0xff]  ;;  %v128_v30 = vld [vmem:[%s12926_s26 + $0x1d8] sm:$0xff]  ;;  %v8026_v33 = vpack.c.bf16 %v121_v21, %v117_v17 }
  0x1b   :  { %8049 = vmatprep.subr.bf16.mxu1 %v8048_v58  ;;  %v314_v23 = vld [vmem:[%s12930_s1] ss:$8 sm:$0xf]  ;;  %v7808_v32 = vld [vmem:[%s12930_s1 + $0x1] ss:$8 sm:$0xf] }
  0x1c   :  { %v123_v25 = vld [vmem:[%s12926_s26 + $0x1b0] sm:$0xff]  ;;  %v130_v27 = vld [vmem:[%s12926_s26 + $0x1e8] sm:$0xff]  ;;  %v319_v28 = vrot.slane %v314_v23, %v8703_v12  ;;  %v327_v29 = vrot.slane %v314_v23, %v8706_v13  ;;  %v132_v31 = vld [vmem:[%s12926_s26 + $0x1f8] sm:$0xff]  ;;  %v323_v34 = vrot.slane %v314_v23, %v8718_v18  ;;  %v393_v42 = vrot.slane %v7808_v32, %v8703_v12 }
  0x1d   :  { %8019 = vmatpush1.bf16.msra.mxu0 %v8018_v1  ;;  %v8058_v35 = vpack.c.bf16 %v123_v25, %v119_v22  ;;  %v8028_v36 = vpack.c.bf16 %v130_v27, %v126_v26  ;;  %v125_v37 = vld [vmem:[%s12926_s26 + $0x1c0] sm:$0xff]  ;;  %v8060_v39 = vpack.c.bf16 %v132_v31, %v128_v30  ;;  %v127_v40 = vld [vmem:[%s12926_s26 + $0x1d0] sm:$0xff]  ;;  %v397_v44 = vrot.slane %v7808_v32, %v8718_v18 }
  0x1e   :  { %8051 = vmatpush1.bf16.msra.mxu1 %v8050_v2  ;;  %8021 = vmatprep.subr.bf16.mxu0 %v8020_v4  ;;  %v129_v38 = vld [vmem:[%s12926_s26 + $0x1e0] sm:$0xff]  ;;  %v131_v41 = vld [vmem:[%s12926_s26 + $0x1f0] sm:$0xff]  ;;  %v401_v47 = vrot.slane %v7808_v32, %v8706_v13  ;;  %v331_v50 = vrot.slane %v314_v23, %v8768_v45  ;;  %v405_v52 = vrot.slane %v7808_v32, %v8768_v45  ;;  %s12594_s26 = smov 78  }
  0x1f   :  { %8053 = vmatprep.subr.bf16.mxu1 %v8052_v8  ;;  %332 = vrot.lane.b32.xlu0 %v319_v28, %s12678_s24  ;;  %v8030_v43 = vpack.c.bf16 %v129_v38, %v125_v37  ;;  %v8062_v46 = vpack.c.bf16 %v131_v41, %v127_v40  ;;  %v68_v49 = vld [vmem:[%s12932_s23] sm:$0xf]  ;;  %v7812_v60 = vld [vmem:[%s12930_s1 + $0x5] ss:$8 sm:$0xf]  ;;  %s12933_s23 = sld [smem:[#allocation131_spill]] }
  0x20   :  { %336 = vrot.lane.b32.xlu1 %v327_v29, %s12678_s24  ;;  %v7809_v51 = vld [vmem:[%s12930_s1 + $0x2] ss:$8 sm:$0xf]  ;;  %v7810_v55 = vld [vmem:[%s12930_s1 + $0x3] ss:$8 sm:$0xf]  ;;  %v650_v63 = vrot.slane %v7812_v60, %v8703_v12  ;;  %v654_v0 = vrot.slane %v7812_v60, %v8718_v18  ;;  %v658_v1 = vrot.slane %v7812_v60, %v8706_v13  ;;  %v662_v4 = vrot.slane %v7812_v60, %v8768_v45 }
  0x21   :  { %8023 = vmatpush1.bf16.msra.mxu0 %v8022_v16  ;;  %v467_v53 = vrot.slane %v7809_v51, %v8703_v12  ;;  %v471_v54 = vrot.slane %v7809_v51, %v8718_v18  ;;  %v475_v56 = vrot.slane %v7809_v51, %v8706_v13  ;;  %v541_v57 = vrot.slane %v7810_v55, %v8703_v12  ;;  %v7813_v2 = vld [vmem:[%s12930_s1 + $0x6] ss:$8 sm:$0xf]  ;;  %v7814_v7 = vld [vmem:[%s12930_s1 + $0x7] ss:$8 sm:$0xf] }
  0x22   :  { %8055 = vmatpush1.bf16.msra.mxu1 %v8054_v19  ;;  %8025 = vmatprep.subr.bf16.mxu0 %v8024_v20  ;;  %v549_v58 = vrot.slane %v7810_v55, %v8706_v13  ;;  %v479_v59 = vrot.slane %v7809_v51, %v8768_v45  ;;  %v553_v61 = vrot.slane %v7810_v55, %v8768_v45  ;;  %v7815_v15 = vld [vmem:[%s12930_s1 + $0x20] ss:$8 sm:$0xf]  ;;  %v6354_v48 = vld [vmem:[#allocation4 + $0xa] sm:$0x3] }
  0x23   :  { %8057 = vmatprep.subr.bf16.mxu1 %v8056_v24  ;;  %334 = vrot.lane.b32.xlu0 %v323_v34, %s12678_s24  ;;  %v722_v5 = vrot.slane %v7813_v2, %v8703_v12  ;;  %v726_v6 = vrot.slane %v7813_v2, %v8718_v18  ;;  %v730_v8 = vrot.slane %v7813_v2, %v8706_v13 }
  0x24   :  { %406 = vrot.lane.b32.xlu1 %v393_v42, %s12726_s6  ;;  %v794_v9 = vrot.slane %v7814_v7, %v8703_v12  ;;  %v798_v10 = vrot.slane %v7814_v7, %v8718_v18  ;;  %v802_v11 = vrot.slane %v7814_v7, %v8706_v13  ;;  %v734_v14 = vrot.slane %v7813_v2, %v8768_v45 }
  0x25   :  { %8027 = vmatpush1.bf16.msra.mxu0 %v8026_v33  ;;  %v806_v16 = vrot.slane %v7814_v7, %v8768_v45  ;;  %v866_v17 = vrot.slane %v7815_v15, %v8703_v12  ;;  %v870_v19 = vrot.slane %v7815_v15, %v8718_v18  ;;  %v874_v20 = vrot.slane %v7815_v15, %v8706_v13  ;;  %v281_v22 = vld [vmem:[%s12933_s23] sm:$0xff]  ;;  %v282_v23 = vld [vmem:[%s12933_s23 + $0x8] sm:$0xff]  ;;  %s12938_s23 = smov 15  }
  0x26   :  { %8059 = vmatpush1.bf16.msra.mxu1 %v8058_v35  ;;  %8029 = vmatprep.subr.bf16.mxu0 %v8028_v36  ;;  %v878_v21 = vrot.slane %v7815_v15, %v8768_v45  ;;  %289 = vst [vmem:[#allocation2 + $0x8] sm:$0xf] %v281_v22  ;;  %291 = vst [vmem:[#allocation2 + $0x18] sm:$0xf] %v282_v23  ;;  %v285_v24 = vcombine.high %v281_v22, %v281_v22 }
  0x27   :  { %8061 = vmatprep.subr.bf16.mxu1 %v8060_v39  ;;  %408 = vrot.lane.b32.xlu0 %v397_v44, %s12726_s6  ;;  %v286_v25 = vcombine.high %v282_v23, %v282_v23 }
  0x28   :  { %410 = vrot.lane.b32.xlu1 %v401_v47, %s12726_s6  ;;  %290 = vst [vmem:[#allocation2 + $0x10] sm:$0xf] %v285_v24 }
  0x29   :  { %8031 = vmatpush1.bf16.msra.mxu0 %v8030_v43  ;;  %292 = vst [vmem:[#allocation2 + $0x20] sm:$0xf] %v286_v25 }
  0x2a   :  { %8063 = vmatpush1.bf16.msra.mxu1 %v8062_v46 }
  0x2b   :  { %338 = vrot.lane.b32.xlu0 %v331_v50, %s12678_s24 }
  0x2c   :  { %198 = vmatmul.mubr.f32.vlgmr.msra.gmra.mrb[0].mxu0 %v68_v49  ;;  %412 = vrot.lane.b32.xlu1 %v405_v52, %s12726_s6 }
  0x2d   :  { %269 = vmatmul.mubr.f32.vlgmr.msra.gmra.mrb[0].mxu1 %v68_v49  ;;  %1038 = vmatprep.mubr.f32.mxu0 %v8374_v3 }
  0x2e   :  { %1109 = vmatprep.mubr.f32.mxu1 %v8374_v3  ;;  %v545_v3 = vrot.slane %v7810_v55, %v8718_v18 }
  0x2f   :  { %480 = vrot.lane.b32.xlu0 %v467_v53, %s12810_s28 }
  0x30   :  { %482 = vrot.lane.b32.xlu1 %v471_v54, %s12810_s28 }
  0x33   :  { %484 = vrot.lane.b32.xlu0 %v475_v56, %s12810_s28 }
  0x34   :  { %554 = vrot.lane.b32.xlu1 %v541_v57, %s12766_s29 }
  0x37   :  { %556 = vrot.lane.b32.xlu0 %v545_v3, %s12766_s29 }
  0x38   :  { %558 = vrot.lane.b32.xlu1 %v549_v58, %s12766_s29 }
  0x3b   :  { %486 = vrot.lane.b32.xlu0 %v479_v59, %s12810_s28 }
  0x3c   :  { %560 = vrot.lane.b32.xlu1 %v553_v61, %s12766_s29 }
  0x3f   :  { %663 = vrot.lane.b32.xlu0 %v650_v63, %s12590_s30 }
  0x40   :  { %665 = vrot.lane.b32.xlu1 %v654_v0, %s12590_s30 }
  0x43   :  { %667 = vrot.lane.b32.xlu0 %v658_v1, %s12590_s30 }
  0x44   :  { %669 = vrot.lane.b32.xlu1 %v662_v4, %s12590_s30 }
  0x47   :  { %735 = vrot.lane.b32.xlu0 %v722_v5, %s12586_s25 }
  0x48   :  { %737 = vrot.lane.b32.xlu1 %v726_v6, %s12586_s25 }
  0x4b   :  { %739 = vrot.lane.b32.xlu0 %v730_v8, %s12586_s25 }
  0x4c   :  { %807 = vrot.lane.b32.xlu1 %v794_v9, %s12588_s27 }
  0x4f   :  { %809 = vrot.lane.b32.xlu0 %v798_v10, %s12588_s27 }
  0x50   :  { %811 = vrot.lane.b32.xlu1 %v802_v11, %s12588_s27 }
  0x53   :  { %741 = vrot.lane.b32.xlu0 %v734_v14, %s12586_s25 }
  0x54   :  { %813 = vrot.lane.b32.xlu1 %v806_v16, %s12588_s27 }
  0x57   :  { %879 = vrot.lane.b32.xlu0 %v866_v17, %s12584_s4 }
  0x58   :  { %881 = vrot.lane.b32.xlu1 %v870_v19, %s12584_s4 }
  0x5b   :  { %883 = vrot.lane.b32.xlu0 %v874_v20, %s12584_s4 }
  0x5c   :  { %885 = vrot.lane.b32.xlu1 %v878_v21, %s12584_s4 }
  0x91   :  { %v8855_v26 = vpop.permute.xlu0 %332 }
  0x92   :  { %v8857_v27 = vpop.permute.xlu1 %336  ;;  %v349_v7 = vmul.f32 0.0, %v8855_v26 }
  0x95   :  { %v8859_v28 = vpop.permute.xlu0 %334 }
  0x96   :  { %v8861_v29 = vpop.permute.xlu1 %406  ;;  %v341_v21 = vsel %vm12752_vm0, %v8855_v26, %v8859_v28 }
  0x97   :  { %v423_v8 = vmul.f32 0.0, %v8861_v29 }
  0x99   :  { %v8863_v30 = vpop.permute.xlu0 %408 }
  0x9a   :  { %v8865_v31 = vpop.permute.xlu1 %410  ;;  %v415_v23 = vsel %vm12896_vm1, %v8861_v29, %v8863_v30 }
  0x9b   :  { %v416_v26 = vsel %vm12896_vm1, %v8863_v30, %v8865_v31 }
  0x9d   :  { %v8867_v32 = vpop.permute.xlu0 %338 }
  0x9e   :  { %v8869_v33 = vpop.permute.xlu1 %412  ;;  %v343_v4 = vsel %vm12752_vm0, %v8857_v27, %v8867_v32 }
  0x9f   :  { %v417_v5 = vsel %vm12896_vm1, %v8865_v31, %v8869_v33 }
  0xa1   :  { %v8871_v34 = vpop.permute.xlu0 %480 }
  0xa2   :  { %v8873_v35 = vpop.permute.xlu1 %482  ;;  %v497_v24 = vmul.f32 0.0, %v8871_v34 }
  0xa3   :  { %v489_v30 = vsel %vm12751_vm2, %v8871_v34, %v8873_v35 }
  0xa5   :  { %v8875_v36 = vpop.permute.xlu0 %484 }
  0xa6   :  { %v8877_v37 = vpop.permute.xlu1 %554 }
  0xa7   :  { %v571_v25 = vmul.f32 0.0, %v8877_v37 }
  0xa9   :  { %v8879_v38 = vpop.permute.xlu0 %556 }
  0xaa   :  { %v8881_v39 = vpop.permute.xlu1 %558  ;;  %v563_v31 = vsel %vm12779_vm3, %v8877_v37, %v8879_v38 }
  0xad   :  { %v8883_v40 = vpop.permute.xlu0 %486 }
  0xae   :  { %v8885_v41 = vpop.permute.xlu1 %560  ;;  %v491_v11 = vsel %vm12751_vm2, %v8875_v36, %v8883_v40 }
  0xaf   :  { %v565_v14 = vsel %vm12779_vm3, %v8881_v39, %v8885_v41 }
  0xb1   :  { %v8887_v42 = vpop.permute.xlu0 %663 }
  0xb2   :  { %v8889_v43 = vpop.permute.xlu1 %665 }
  0xb5   :  { %v8891_v44 = vpop.permute.xlu0 %667 }
  0xb6   :  { %v8893_v46 = vpop.permute.xlu1 %669 }
  0xb7   :  { %v683_v47 = vmul.f32 0.0, %v8893_v46 }
  0xb9   :  { %v8896_v49 = vpop.permute.xlu0 %735  ;;  %697 = vrot.lane.b32.xlu0 %v683_v47, %s12766_s29  ;;  %v342_v47 = vsel %vm12752_vm0, %v8859_v28, %v8857_v27 }
  0xba   :  { %v8899_v50 = vpop.permute.xlu1 %737 }
  0xbd   :  { %v8901_v51 = vpop.permute.xlu0 %739 }
  0xbe   :  { %v8903_v52 = vpop.permute.xlu1 %807 }
  0xc1   :  { %v8905_v53 = vpop.permute.xlu0 %809 }
  0xc2   :  { %v8907_v54 = vpop.permute.xlu1 %811 }
  0xc5   :  { %v8909_v55 = vpop.permute.xlu0 %741 }
  0xc6   :  { %v755_v56 = vmul.f32 0.0, %v8909_v55  ;;  %v8912_v57 = vpop.permute.xlu1 %813 }
  0xc7   :  { %v827_v3 = vmul.f32 0.0, %v8912_v57 }
  0xc8   :  { %769 = vrot.lane.b32.xlu1 %v755_v56, %s12810_s28 }
  0xc9   :  { %841 = vrot.lane.b32.xlu0 %v827_v3, %s12726_s6 }
  0xff   :  { %v199_v58 = vpop.f32.mrb[0].mxu0 }
 0x100   :  { %v297_v59 = vrot.slane %v199_v58, 4  ;;  %v270_v60 = vpop.f32.mrb[0].mxu1  ;;  %v201_v61 = vpop.f32.mrb[1].mxu0 }
 0x101   :  { %v299_v63 = vrot.slane %v270_v60, 4  ;;  %v298_v0 = vrot.slane %v201_v61, 4  ;;  %v272_v1 = vpop.f32.mrb[1].mxu1 }
 0x102   :  { %305 = vst [vmem:[#allocation2 + $0x8] sm:$0xf0] %v297_v59  ;;  %v300_v2 = vrot.slane %v272_v1, 4 }
 0x103   :  { %307 = vst [vmem:[#allocation2 + $0x18] sm:$0xf0] %v299_v63  ;;  %306 = vst [vmem:[#allocation2 + $0x10] sm:$0xf0] %v298_v0  ;;  %v490_v63 = vsel %vm12751_vm2, %v8873_v35, %v8875_v36  ;;  %v564_v0 = vsel %vm12779_vm3, %v8879_v38, %v8881_v39  ;;  %v672_v38 = vsel %vm12825_vm4, %v8889_v43, %v8891_v44 }
 0x104   :  { %308 = vst [vmem:[#allocation2 + $0x20] sm:$0xf0] %v300_v2 }
 0x109   :  { %v8935_v15 = vld [vmem:[#allocation2 + $0x8] sm:$0xff] }
 0x10a   :  { %v8923_v6 = vld [vmem:[#allocation2 + $0x18] sm:$0xff]  ;;  %v8942_v22 = vld [vmem:[#allocation2 + $0x10] sm:$0xff]  ;;  %v424_v56 = vmul.f32 %v8935_v15, %v415_v23  ;;  %v350_v29 = vmul.f32 %v8935_v15, %v341_v21  ;;  %v572_v34 = vmul.f32 %v8935_v15, %v563_v31  ;;  %v679_v39 = vmul.f32 %v8935_v15, %v8887_v42  ;;  %v964_v31 = vld [vmem:[%s12934_s16] sm:$0xf]  ;;  %s12939_s16 = smov 17  }
 0x10b   :  { %v426_v9 = vmul.f32 %v417_v5, %v8923_v6  ;;  %v352_v10 = vmul.f32 %v8923_v6, %v343_v4  ;;  %v574_v19 = vmul.f32 %v565_v14, %v8923_v6  ;;  %v500_v20 = vmul.f32 %v491_v11, %v8923_v6  ;;  %v8963_v61 = vld [vmem:[#allocation2 + $0x20] sm:$0xff]  ;;  %v880_v14 = vpop.permute.xlu0 %879 }
 0x10c   :  { %v425_v59 = vmul.f32 %v416_v26, %v8942_v22  ;;  %v351_v60 = vmul.f32 %v8942_v22, %v342_v47  ;;  %v427_v1 = vmul.f32 %v8963_v61, %v8869_v33  ;;  %v353_v37 = vmul.f32 %v8963_v61, %v8867_v32 }
 0x10d   :  { %v8284_v16 = vpack.i.bf16 %v426_v9, %v423_v8  ;;  %v8279_v17 = vpack.i.bf16 %v352_v10, %v349_v7  ;;  %v8294_v3 = vpack.i.bf16 %v574_v19, %v571_v25  ;;  %v8289_v58 = vpack.i.bf16 %v500_v20, %v497_v24  ;;  %v882_v24 = vpop.permute.xlu1 %881 }
 0x10e   :  { %v8304_v27 = vpack.i.bf16 %v425_v59, %v424_v56  ;;  %v8299_v28 = vpack.i.bf16 %v351_v60, %v350_v29  ;;  %v573_v2 = vmul.f32 %v564_v0, %v8942_v22  ;;  %v498_v4 = vmul.f32 %v8935_v15, %v489_v30  ;;  %v7818_v30 = vld [vmem:[%s12930_s1 + $0x1] ss:$8 sm:$0xf] }
 0x10f   :  { %8285 = vrot.lane.b32.xlu1 %v8284_v16, %s12588_s27  ;;  %8280 = vrot.lane.b32.xlu0 %v8279_v17, %s12584_s4  ;;  %v499_v5 = vmul.f32 %v490_v63, %v8942_v22  ;;  %v673_v33 = vsel %vm12825_vm4, %v8891_v44, %v8893_v46  ;;  %v671_v32 = vsel %vm12825_vm4, %v8887_v42, %v8889_v43  ;;  %v8383_v59 = vmov 0   ;;  %v7820_v63 = vld [vmem:[%s12930_s1 + $0x3] ss:$8 sm:$0xf] }
 0x110   :  { %v8314_v35 = vpack.i.bf16 %v573_v2, %v572_v34  ;;  %v682_v7 = vmul.f32 %v8963_v61, %v673_v33  ;;  %v575_v46 = vmul.f32 %v8963_v61, %v8885_v41  ;;  %v501_v8 = vmul.f32 %v8963_v61, %v8883_v40  ;;  %8349 = vset.pattern.permute.xlu0 %v8383_v59 }
 0x111   :  { %v8309_v36 = vpack.i.bf16 %v499_v5, %v498_v4  ;;  %v680_v9 = vmul.f32 %v671_v32, %v8942_v22  ;;  %v681_v10 = vmul.f32 %v672_v38, %v8923_v6  ;;  %v743_v11 = vsel %vm12908_vm5, %v8896_v49, %v8899_v50  ;;  %v886_v29 = vpop.permute.xlu1 %885  ;;  %8350 = vset.pattern.permute.xlu1 %v8383_v59  ;;  %v1116_v4 = vld [vmem:[%s12565_s5] sm:$0xf]  ;;  %s12936_s5 = smov 1  }
 0x112   :  { %v744_v42 = vsel %vm12908_vm5, %v8899_v50, %v8901_v51  ;;  %v815_v40 = vsel %vm12831_vm6, %v8903_v52, %v8905_v53  ;;  %v816_v41 = vsel %vm12831_vm6, %v8905_v53, %v8907_v54  ;;  %v8324_v43 = vpack.i.bf16 %v682_v7, %v679_v39  ;;  %v9079_v5 = vld [vmem:[%s12930_s1] ss:$8 sm:$0xf] }
 0x113   :  { %8295 = vrot.lane.b32.xlu1 %v8294_v3, %s12590_s30  ;;  %8290 = vrot.lane.b32.xlu0 %v8289_v58, %s12586_s25  ;;  %v752_v44 = vmul.f32 %v743_v11, %v8942_v22  ;;  %v8319_v16 = vpack.i.bf16 %v681_v10, %v680_v9  ;;  %v753_v17 = vmul.f32 %v744_v42, %v8923_v6  ;;  %v9094_v10 = vld [vmem:[%s12930_s1 + $0x2] ss:$8 sm:$0xf] }
 0x114   :  { %v824_v50 = vmul.f32 %v815_v40, %v8942_v22  ;;  %v825_v19 = vmul.f32 %v816_v41, %v8923_v6  ;;  %v817_v20 = vsel %vm12831_vm6, %v8907_v54, %v8912_v57  ;;  %v745_v53 = vsel %vm12908_vm5, %v8901_v51, %v8909_v55  ;;  %v884_v57 = vpop.permute.xlu0 %883 }
 0x115   :  { %v826_v21 = vmul.f32 %v817_v20, %v8963_v61  ;;  %v751_v23 = vmul.f32 %v8935_v15, %v8896_v49  ;;  %v8329_v25 = vpack.i.bf16 %v753_v17, %v752_v44  ;;  %v754_v26 = vmul.f32 %v8963_v61, %v745_v53 }
 0x116   :  { %v8334_v47 = vpack.i.bf16 %v825_v19, %v824_v50  ;;  %v823_v54 = vmul.f32 %v8935_v15, %v8903_v52  ;;  %v888_v56 = vsel %vm12717_vm7, %v882_v24, %v884_v57  ;;  %v895_v49 = vmul.f32 %v880_v14, %v8935_v15 }
 0x117   :  { %8305 = vrot.lane.b32.xlu1 %v8304_v27, %s12588_s27  ;;  %8300 = vrot.lane.b32.xlu0 %v8299_v28, %s12584_s4  ;;  %v8339_v51 = vpack.i.bf16 %v754_v26, %v751_v23  ;;  %v897_v3 = vmul.f32 %v888_v56, %v8923_v6  ;;  %v887_v52 = vsel %vm12717_vm7, %v880_v14, %v882_v24  ;;  %v899_v28 = vmul.f32 0.0, %v886_v29 }
 0x118   :  { %v8344_v55 = vpack.i.bf16 %v826_v21, %v823_v54  ;;  %v889_v58 = vsel %vm12717_vm7, %v884_v57, %v886_v29  ;;  %v896_v60 = vmul.f32 %v887_v52, %v8942_v22  ;;  %v1273_v0 = vrot.slane %v7818_v30, %v8703_v12 }
 0x119   :  { %v898_v27 = vmul.f32 %v889_v58, %v8963_v61  ;;  %v1408_v2 = vrot.slane %v7820_v63, %v8718_v18  ;;  %v1285_v33 = vrot.slane %v7818_v30, %v8768_v45  ;;  %v1208_v38 = vrot.slane %v9079_v5, %v8703_v12 }
 0x11a   :  { %v1212_v39 = vrot.slane %v9079_v5, %v8718_v18  ;;  %v1412_v7 = vrot.slane %v7820_v63, %v8706_v13  ;;  %v1339_v42 = vrot.slane %v9094_v10, %v8703_v12  ;;  %v1343_v40 = vrot.slane %v9094_v10, %v8718_v18 }
 0x11b   :  { %441 = vrot.lane.b32.xlu1 %v427_v1, %s12588_s27  ;;  %367 = vrot.lane.b32.xlu0 %v353_v37, %s12584_s4  ;;  %v1277_v1 = vrot.slane %v7818_v30, %v8718_v18  ;;  %v1404_v37 = vrot.slane %v7820_v63, %v8703_v12  ;;  %s12937_s27 = smov 16   ;;  %s12596_s4 = smov 79  }
 0x11c   :  { %v1221_v9 = vcombine.low %v1208_v38, %v1212_v39  ;;  %v1352_v41 = vcombine.low %v1339_v42, %v1343_v40 }
 0x11d   :  { %v1417_v32 = vcombine.low %v1404_v37, %v1408_v2 }
 0x11f   :  { %8315 = vrot.lane.b32.xlu1 %v8314_v35, %s12590_s30  ;;  %8310 = vrot.lane.b32.xlu0 %v8309_v36, %s12586_s25  ;;  %v1286_v35 = vcombine.low %v1273_v0, %v1277_v1  ;;  %v1281_v36 = vrot.slane %v7818_v30, %v8706_v13 }
 0x123   :  { %589 = vrot.lane.b32.xlu1 %v575_v46, %s12590_s30  ;;  %515 = vrot.lane.b32.xlu0 %v501_v8, %s12586_s25  ;;  %s12935_s30 = sld [smem:[#allocation133_spill]]  ;;  %v1287_v46 = vcombine.low %v1281_v36, %v1285_v33  ;;  %v1416_v8 = vrot.slane %v7820_v63, %v8768_v45  ;;  %s12602_s25 = smov 82  }
 0x125   :  { %v1418_v11 = vcombine.low %v1412_v7, %v1416_v8 }
 0x127   :  { %8325 = vrot.lane.b32.xlu1 %v8324_v43, %s12766_s29  ;;  %8320 = vrot.lane.b32.xlu0 %v8319_v16, %s12766_s29 }
 0x129   :  { %v1117_v34 = vld [vmem:[%s12935_s30] sm:$0xf]  ;;  %s12592_s30 = smov 77  }
 0x12b   :  { %8330 = vrot.lane.b32.xlu1 %v8329_v25, %s12810_s28  ;;  %8335 = vrot.lane.b32.xlu0 %v8334_v47, %s12726_s6  ;;  %v9104_v43 = vpop.permute.xlu0 %697 }
 0x12f   :  { %8340 = vrot.lane.b32.xlu1 %v8339_v51, %s12810_s28  ;;  %8345 = vrot.lane.b32.xlu0 %v8344_v55, %s12726_s6 }
 0x133   :  { %905 = vrot.lane.b32.xlu1 %v895_v49, %s12678_s24  ;;  %909 = vrot.lane.b32.xlu0 %v897_v3, %s12678_s24 }
 0x137   :  { %907 = vrot.lane.b32.xlu1 %v896_v60, %s12678_s24  ;;  %911 = vrot.lane.b32.xlu0 %v898_v27, %s12678_s24 }
 0x13a   :  { %v9106_v44 = vpop.permute.xlu1 %769 }
 0x13b   :  { %913 = vrot.lane.b32.xlu1 %v899_v28, %s12678_s24  ;;  %967 = vperm.xlu0 %8349, %v964_v31   ;;  %v9108_v14 = vpop.permute.xlu0 %841 }
 0x13f   :  { %1168 = vperm.xlu0 %8349, %v1117_v34   ;;  %1159 = vperm.xlu1 %8350, %v1116_v4  }
 0x143   :  { %1288 = vrot.lane.b32.xlu1 %v1286_v35, %s12726_s6  ;;  %1419 = vrot.lane.b32.xlu0 %v1417_v32, %s12766_s29  ;;  %v7811_v32 = vld [vmem:[%s12930_s1 + $0x4] ss:$8 sm:$0xf] }
 0x147   :  { %1290 = vrot.lane.b32.xlu1 %v1287_v46, %s12726_s6  ;;  %1223 = vrot.lane.b32.xlu0 %v1221_v9, %s12678_s24 }
 0x14b   :  { %1421 = vrot.lane.b32.xlu1 %v1418_v11, %s12766_s29 }
 0x14f   :  { %1354 = vrot.lane.b32.xlu1 %v1352_v41, %s12810_s28 }
 0x181   :  { %v8286_v16 = vpop.permute.xlu1 %8285  ;;  %v8281_v17 = vpop.permute.xlu0 %8280 }
 0x182   :  { %v8288_v20 = vunpack.i.h.bf16 %v8286_v16  ;;  %v8287_v53 = vunpack.i.l.bf16 %v8286_v16  ;;  %v8282_v21 = vunpack.i.l.bf16 %v8281_v17  ;;  %v8283_v57 = vunpack.i.h.bf16 %v8281_v17 }
 0x185   :  { %v8296_v50 = vpop.permute.xlu1 %8295  ;;  %v8291_v19 = vpop.permute.xlu0 %8290 }
 0x186   :  { %v8298_v63 = vunpack.i.h.bf16 %v8296_v50  ;;  %v8297_v0 = vunpack.i.l.bf16 %v8296_v50  ;;  %v8292_v1 = vunpack.i.l.bf16 %v8291_v19  ;;  %v8293_v33 = vunpack.i.h.bf16 %v8291_v19 }
 0x187   :  { %v626_v50 = vrot.slane %v7811_v32, %v8768_v45 }
 0x189   :  { %v8306_v23 = vpop.permute.xlu1 %8305  ;;  %v8301_v24 = vpop.permute.xlu0 %8300 }
 0x18a   :  { %v8308_v25 = vunpack.i.h.bf16 %v8306_v23  ;;  %v8307_v47 = vunpack.i.l.bf16 %v8306_v23  ;;  %v8303_v26 = vunpack.i.h.bf16 %v8301_v24  ;;  %v8302_v54 = vunpack.i.l.bf16 %v8301_v24 }
 0x18c   :  { %v446_v51 = vsel %vm12831_vm6, %v8308_v25, %v8288_v20  ;;  %v444_v55 = vsel %vm12831_vm6, %v8287_v53, %v8307_v47  ;;  %v370_v56 = vsel %vm12717_vm7, %v8282_v21, %v8302_v54  ;;  %v372_v29 = vsel %vm12717_vm7, %v8303_v26, %v8283_v57 }
 0x18d   :  { %v442_v49 = vpop.permute.xlu1 %441  ;;  %v368_v3 = vpop.permute.xlu0 %367  ;;  %v371_v52 = vsel %vm12717_vm7, %v8302_v54, %v8303_v26  ;;  %v445_v58 = vsel %vm12831_vm6, %v8307_v47, %v8308_v25  ;;  %v8066_v59 = vpack.c.bf16 %v444_v55, %v370_v56  ;;  %v8082_v31 = vpack.c.bf16 %v446_v51, %v372_v29 }
 0x18e   :  { %v447_v60 = vsel %vm12831_vm6, %v8288_v20, %v442_v49  ;;  %v373_v27 = vsel %vm12717_vm7, %v8283_v57, %v368_v3  ;;  %v8064_v28 = vpack.c.bf16 %v445_v58, %v371_v52  ;;  %v618_v20 = vrot.slane %v7811_v32, %v8718_v18 }
 0x18f   :  { %v8080_v30 = vpack.c.bf16 %v447_v60, %v373_v27  ;;  %v614_v53 = vrot.slane %v7811_v32, %v8703_v12  ;;  %v622_v21 = vrot.slane %v7811_v32, %v8706_v13  ;;  %v634_v55 = vmul.f32 %v8963_v61, %v626_v50 }
 0x190   :  { %8065 = vmatprep.subr.bf16.mxu0 %v8064_v28  ;;  %v632_v51 = vmul.f32 %v618_v20, %v8942_v22 }
 0x191   :  { %8067 = vmatpush1.bf16.msra.mxu0 %v8066_v59  ;;  %v8316_v34 = vpop.permute.xlu1 %8315  ;;  %8081 = vmatprep.subr.bf16.mxu1 %v8080_v30  ;;  %v8311_v37 = vpop.permute.xlu0 %8310  ;;  %v631_v56 = vmul.f32 %v8935_v15, %v614_v53  ;;  %v633_v29 = vmul.f32 %v622_v21, %v8923_v6 }
 0x192   :  { %v8318_v2 = vunpack.i.h.bf16 %v8316_v34  ;;  %v8317_v4 = vunpack.i.l.bf16 %v8316_v34  ;;  %v8313_v35 = vunpack.i.h.bf16 %v8311_v37  ;;  %v8312_v36 = vunpack.i.l.bf16 %v8311_v37  ;;  %8083 = vmatpush1.bf16.msra.mxu1 %v8082_v31 }
 0x194   :  { %v594_v38 = vsel %vm12825_vm4, %v8318_v2, %v8298_v63  ;;  %v592_v39 = vsel %vm12825_vm4, %v8297_v0, %v8317_v4  ;;  %v518_v7 = vsel %vm12908_vm5, %v8292_v1, %v8312_v36  ;;  %v520_v46 = vsel %vm12908_vm5, %v8313_v35, %v8293_v33 }
 0x195   :  { %v590_v8 = vpop.permute.xlu1 %589  ;;  %v516_v9 = vpop.permute.xlu0 %515  ;;  %v519_v11 = vsel %vm12908_vm5, %v8312_v36, %v8313_v35  ;;  %v593_v42 = vsel %vm12825_vm4, %v8317_v4, %v8318_v2  ;;  %v8070_v40 = vpack.c.bf16 %v592_v39, %v518_v7  ;;  %v8086_v23 = vpack.c.bf16 %v594_v38, %v520_v46 }
 0x196   :  { %v595_v41 = vsel %vm12825_vm4, %v8298_v63, %v590_v8  ;;  %v521_v16 = vsel %vm12908_vm5, %v8293_v33, %v516_v9  ;;  %v8068_v17 = vpack.c.bf16 %v593_v42, %v519_v11 }
 0x197   :  { %v8084_v19 = vpack.c.bf16 %v595_v41, %v521_v16 }
 0x198   :  { %8069 = vmatprep.subr.bf16.mxu0 %v8068_v17  ;;  %v927_v17 = vld [vmem:[%s12566_s3] sm:$0xf]  ;;  %s12814_s3 = smov 126  }
 0x199   :  { %8071 = vmatpush1.bf16.msra.mxu0 %v8070_v40  ;;  %v8326_v24 = vpop.permute.xlu1 %8325  ;;  %v8321_v25 = vpop.permute.xlu0 %8320  ;;  %8085 = vmatprep.subr.bf16.mxu1 %v8084_v19  ;;  %v8370_v19 = vld [vmem:[#allocation2] sm:$0xff] }
 0x19a   :  { %v8328_v47 = vunpack.i.h.bf16 %v8326_v24  ;;  %v8327_v26 = vunpack.i.l.bf16 %v8326_v24  ;;  %v8323_v54 = vunpack.i.h.bf16 %v8321_v25  ;;  %v8322_v57 = vunpack.i.l.bf16 %v8321_v25  ;;  %8087 = vmatpush1.bf16.msra.mxu1 %v8086_v23 }
 0x19c   :  { %v701_v49 = vsel %vm12779_vm3, %v8323_v54, %v8328_v47  ;;  %v699_v3 = vsel %vm12779_vm3, %v8327_v26, %v8322_v57  ;;  %v700_v52 = vsel %vm12779_vm3, %v8322_v57, %v8323_v54  ;;  %v702_v58 = vsel %vm12779_vm3, %v8328_v47, %v9104_v43 }
 0x19d   :  { %v8331_v59 = vpop.permute.xlu1 %8330  ;;  %v8336_v60 = vpop.permute.xlu0 %8335  ;;  %v8072_v27 = vpack.c.bf16 %v700_v52, %v632_v51  ;;  %v8088_v28 = vpack.c.bf16 %v702_v58, %v634_v55  ;;  %v8074_v22 = vpack.c.bf16 %v699_v3, %v631_v56  ;;  %v8090_v30 = vpack.c.bf16 %v701_v49, %v633_v29 }
 0x19e   :  { %v8333_v61 = vunpack.i.h.bf16 %v8331_v59  ;;  %v8332_v31 = vunpack.i.l.bf16 %v8331_v59  ;;  %v8338_v15 = vunpack.i.h.bf16 %v8336_v60  ;;  %v8337_v63 = vunpack.i.l.bf16 %v8336_v60 }
 0x19f   :  { %8073 = vmatprep.subr.bf16.mxu0 %v8072_v27  ;;  %8089 = vmatprep.subr.bf16.mxu1 %v8088_v28 }
 0x1a0   :  { %8075 = vmatpush1.bf16.msra.mxu0 %v8074_v22  ;;  %8091 = vmatpush1.bf16.msra.mxu1 %v8090_v30  ;;  %v772_v6 = vsel %vm12751_vm2, %v8332_v31, %v8333_v61  ;;  %v844_v0 = vsel %vm12896_vm1, %v8337_v63, %v8338_v15 }
 0x1a1   :  { %v8341_v1 = vpop.permute.xlu1 %8340  ;;  %v8346_v43 = vpop.permute.xlu0 %8345  ;;  %v8076_v34 = vpack.c.bf16 %v844_v0, %v772_v6  ;;  %v1347_v6 = vrot.slane %v9094_v10, %v8706_v13  ;;  %v1351_v0 = vrot.slane %v9094_v10, %v8768_v45 }
 0x1a2   :  { %v8343_v37 = vunpack.i.h.bf16 %v8341_v1  ;;  %v8342_v2 = vunpack.i.l.bf16 %v8341_v1  ;;  %v8348_v4 = vunpack.i.h.bf16 %v8346_v43  ;;  %v8347_v35 = vunpack.i.l.bf16 %v8346_v43  ;;  %v7822_v1 = vld [vmem:[%s12930_s1 + $0x5] ss:$8 sm:$0xf] }
 0x1a3   :  { %8077 = vmatprep.subr.bf16.mxu0 %v8076_v34  ;;  %v1353_v43 = vcombine.low %v1347_v6, %v1351_v0  ;;  %v1514_v34 = vrot.slane %v7822_v1, %v8706_v13 }
 0x1a4   :  { %v771_v36 = vsel %vm12751_vm2, %v8342_v2, %v8332_v31  ;;  %v773_v33 = vsel %vm12751_vm2, %v8333_v61, %v8343_v37  ;;  %v843_v32 = vsel %vm12896_vm1, %v8347_v35, %v8337_v63  ;;  %v845_v38 = vsel %vm12896_vm1, %v8338_v15, %v8348_v4  ;;  %v7824_v2 = vld [vmem:[%s12930_s1 + $0x7] ss:$8 sm:$0xf] }
 0x1a5   :  { %v906_v39 = vpop.permute.xlu1 %905  ;;  %v8078_v7 = vpack.c.bf16 %v843_v32, %v771_v36  ;;  %v774_v46 = vsel %vm12751_vm2, %v8343_v37, %v9106_v44  ;;  %v846_v8 = vsel %vm12896_vm1, %v8348_v4, %v9108_v14  ;;  %v8094_v9 = vpack.c.bf16 %v845_v38, %v773_v33  ;;  %v910_v11 = vpop.permute.xlu0 %909  ;;  %v7823_v32 = vld [vmem:[%s12930_s1 + $0x6] ss:$8 sm:$0xf] }
 0x1a6   :  { %v8092_v42 = vpack.c.bf16 %v846_v8, %v774_v46  ;;  %v1518_v37 = vrot.slane %v7822_v1, %v8768_v45  ;;  %v1216_v4 = vrot.slane %v9079_v5, %v8706_v13  ;;  %v1220_v35 = vrot.slane %v9079_v5, %v8768_v45 }
 0x1a7   :  { %8079 = vmatpush1.bf16.msra.mxu0 %v8078_v7  ;;  %v1645_v36 = vrot.slane %v7824_v2, %v8706_v13  ;;  %v1649_v33 = vrot.slane %v7824_v2, %v8768_v45  ;;  %v1510_v7 = vrot.slane %v7822_v1, %v8718_v18  ;;  %v1580_v5 = vrot.slane %v7823_v32, %v8706_v13 }
 0x1a8   :  { %8093 = vmatprep.subr.bf16.mxu1 %v8092_v42  ;;  %v1520_v10 = vcombine.low %v1514_v34, %v1518_v37  ;;  %v1222_v38 = vcombine.low %v1216_v4, %v1220_v35  ;;  %v1584_v8 = vrot.slane %v7823_v32, %v8768_v45  ;;  %v1637_v42 = vrot.slane %v7824_v2, %v8703_v12 }
 0x1a9   :  { %8095 = vmatpush1.bf16.msra.mxu1 %v8094_v9  ;;  %v908_v40 = vpop.permute.xlu1 %907  ;;  %v912_v44 = vpop.permute.xlu0 %911  ;;  %v1651_v46 = vcombine.low %v1645_v36, %v1649_v33  ;;  %v7825_v9 = vld [vmem:[%s12930_s1 + $0x20] ss:$8 sm:$0xf] }
 0x1aa   :  { %v916_v41 = vsel %vm12752_vm0, %v908_v40, %v910_v11  ;;  %v915_v16 = vsel %vm12752_vm0, %v906_v39, %v908_v40  ;;  %v917_v20 = vsel %vm12752_vm0, %v910_v11, %v912_v44  ;;  %v1506_v39 = vrot.slane %v7822_v1, %v8703_v12 }
 0x1ab   :  { %990 = vmatprep.subr.mxu0 %v916_v41  ;;  %v1641_v40 = vrot.slane %v7824_v2, %v8718_v18  ;;  %v1586_v41 = vcombine.low %v1580_v5, %v1584_v8  ;;  %v1566_v2 = vld [vmem:[#allocation3 + $0x14] sm:$0xf] }
 0x1ac   :  { %991 = vmatpush1.msra.mxu0 %v915_v16  ;;  %v1519_v11 = vcombine.low %v1506_v39, %v1510_v7  ;;  %v1711_v16 = vrot.slane %v7825_v9, %v8706_v13 }
 0x1ad   :  { %v914_v14 = vpop.permute.xlu1 %913  ;;  %7816 = vmatmul.mubr.msk.f32.vlgmr.msra.gmra.mrb[2].mxu0 %vm970_vm8, %v927_v17 }
 0x1ae   :  { %v918_v50 = vsel %vm12752_vm0, %v912_v44, %v914_v14  ;;  %1867 = vmatprep.mubr.f32.mxu0 %v8370_v19  ;;  %v1650_v44 = vcombine.low %v1637_v42, %v1641_v40  ;;  %v1572_v14 = vrot.slane %v7823_v32, %v8703_v12 }
 0x1af   :  { %1061 = vmatprep.subr.mxu1 %v918_v50  ;;  %v1576_v50 = vrot.slane %v7823_v32, %v8718_v18 }
 0x1b0   :  { %1062 = vmatpush1.msra.mxu1 %v917_v20 }
 0x1b1   :  { %7817 = vmatmul.mubr.msk.f32.vlgmr.msra.gmra.mrb[2].mxu1 %vm970_vm8, %v927_v17  ;;  %v1715_v17 = vrot.slane %v7825_v9, %v8768_v45  ;;  %v1585_v20 = vcombine.low %v1572_v14, %v1576_v50 }
 0x1b2   :  { %1938 = vmatprep.mubr.f32.mxu1 %v8370_v19 }
 0x1b3   :  { %v1717_v19 = vcombine.low %v1711_v16, %v1715_v17 }
 0x1ba   :  { %v968_v53 = vpop.permute.xlu0 %967 }
 0x280   :  { %v1040_v21 = vpop.f32.mrb[2].mxu0 }
 0x281   :  { %v9159_v23 = vadd.f32 %v1040_v21, %v968_v53  ;;  %v1042_v24 = vpop.f32.mrb[3].mxu0  ;;  %v1707_v21 = vrot.slane %v7825_v9, %v8718_v18 }
 0x282   :  { %v9161_v25 = vadd.f32 %v1042_v24, %v968_v53 }
 0x283   :  { %v1119_v47 = vsel %vm1118_vm9, %v9159_v23, 0.0  ;;  %v1130_v26 = vmul.f32 %v9159_v23, %v9159_v23 }
 0x284   :  { %v1120_v54 = vsel %vm1118_vm9, %v9161_v25, 0.0  ;;  %v1131_v57 = vmul.f32 %v9161_v25, %v9161_v25  ;;  %v1111_v51 = vpop.f32.mrb[2].mxu1 }
 0x285   :  { %v9171_v55 = vadd.f32 %v1111_v51, %v968_v53  ;;  %v1113_v56 = vpop.f32.mrb[3].mxu1  ;;  %v1121_v29 = vadd.f32 %v1120_v54, %v1119_v47  ;;  %v1134_v49 = vsel %vm1118_vm9, %v1130_v26, 0.0  ;;  %v1160_v47 = vpop.permute.xlu1 %1159 }
 0x286   :  { %v9174_v3 = vadd.f32 %v1113_v56, %v968_v53  ;;  %v1135_v52 = vsel %vm1118_vm9, %v1131_v57, 0.0  ;;  %v1703_v53 = vrot.slane %v7825_v9, %v8703_v12  ;;  %v1169_v57 = vpop.permute.xlu0 %1168 }
 0x287   :  { %v1132_v58 = vmul.f32 %v9171_v55, %v9171_v55  ;;  %v1122_v59 = vsel %vm1118_vm9, %v9171_v55, 0.0  ;;  %v1136_v60 = vadd.f32 %v1135_v52, %v1134_v49 }
 0x288   :  { %v1123_v27 = vadd.f32 %v1122_v59, %v1121_v29  ;;  %v1124_v28 = vsel %vm1118_vm9, %v9174_v3, 0.0  ;;  %v1133_v22 = vmul.f32 %v9174_v3, %v9174_v3  ;;  %v1716_v24 = vcombine.low %v1703_v53, %v1707_v21 }
 0x289   :  { %v1137_v30 = vsel %vm1118_vm9, %v1132_v58, 0.0  ;;  %v9233_v26 = vpop.permute.xlu1 %1288 }
 0x28a   :  { %v1125_v61 = vadd.f32 %v1124_v28, %v1123_v27  ;;  %v1138_v31 = vadd.f32 %v1137_v30, %v1136_v60  ;;  %v1139_v15 = vsel %vm1118_vm9, %v1133_v22, 0.0  ;;  %v9239_v56 = vpop.permute.xlu0 %1419 }
 0x28c   :  { %1126 = vadd.xlane.f32.xlu1 %v1125_v61  ;;  %v1140_v63 = vadd.f32 %v1139_v15, %v1138_v31  ;;  %v1500_v31 = vld [vmem:[#allocation3 + $0x14] sm:$0xf] }
 0x28d   :  { %v9235_v54 = vpop.permute.xlu1 %1290 }
 0x28e   :  { %1141 = vadd.xlane.f32.xlu0 %v1140_v63  ;;  %v9243_v49 = vpop.permute.xlu0 %1223 }
 0x291   :  { %v9237_v51 = vpop.permute.xlu1 %1421 }
 0x295   :  { %v9241_v29 = vpop.permute.xlu1 %1354 }
 0x29d   :  { %1356 = vrot.lane.b32.xlu1 %v1353_v43, %s12810_s28  ;;  %v1631_v43 = vld [vmem:[#allocation3 + $0x14] sm:$0xf] }
 0x2a1   :  { %1523 = vrot.lane.b32.xlu1 %v1520_v10, %s12936_s5 }
 0x2a4   :  { %1225 = vrot.lane.b32.xlu0 %v1222_v38, %s12678_s24 }
 0x2a5   :  { %1654 = vrot.lane.b32.xlu1 %v1651_v46, %s12937_s27 }
 0x2a8   :  { %1521 = vrot.lane.b32.xlu0 %v1519_v11, %s12936_s5 }
 0x2a9   :  { %1589 = vrot.lane.b32.xlu1 %v1586_v41, %s12938_s23 }
 0x2ac   :  { %1652 = vrot.lane.b32.xlu0 %v1650_v44, %s12937_s27 }
 0x2ad   :  { %1720 = vrot.lane.b32.xlu1 %v1717_v19, %s12939_s16 }
 0x2b0   :  { %1587 = vrot.lane.b32.xlu0 %v1585_v20, %s12938_s23 }
 0x2b4   :  { %1718 = vrot.lane.b32.xlu0 %v1716_v24, %s12939_s16 }
 0x319   :  { %v1127_v52 = vpop.xlane.xlu1 %1126 }
 0x31a   :  { %v1129_v58 = vmul.f32 0.001953125, %v1127_v52 }
 0x31b   :  { %v1142_v59 = vpop.xlane.xlu0 %1141 }
 0x31c   :  { %v1143_v60 = vmul.f32 0.001953125, %v1142_v59  ;;  %v1144_v27 = vmul.f32 %v1129_v58, %v1129_v58  ;;  %v1147_v36 = vsub.f32 %v9159_v23, %v1129_v58  ;;  %v1148_v33 = vsub.f32 %v9161_v25, %v1129_v58  ;;  %v7821_v23 = vld [vmem:[%s12930_s1 + $0x4] ss:$8 sm:$0xf]  ;;  %s12608_s1 = smov 83  }
 0x31d   :  { %v9245_v28 = vpop.permute.xlu1 %1356  ;;  %v1149_v32 = vsub.f32 %v9171_v55, %v1129_v58  ;;  %v1150_v38 = vsub.f32 %v9174_v3, %v1129_v58  ;;  %v1469_v17 = vrot.slane %v7821_v23, %v8703_v12  ;;  %v1473_v44 = vrot.slane %v7821_v23, %v8718_v18 }
 0x31e   :  { %v1145_v22 = vsub.f32 %v1143_v60, %v1144_v27  ;;  %v1477_v14 = vrot.slane %v7821_v23, %v8706_v13  ;;  %v1481_v50 = vrot.slane %v7821_v23, %v8768_v45 }
 0x31f   :  { %v1226_v52 = vpop.permute.xlu0 %1225  ;;  %v1482_v27 = vcombine.low %v1469_v17, %v1473_v44 }
 0x320   :  { %v1146_v30 = vmax.f32 %v1145_v22, 0.0  ;;  %v1483_v22 = vcombine.low %v1477_v14, %v1481_v50  ;;  %v1424_v50 = vrot.slane %v9237_v51, 4 }
 0x321   :  { %v9247_v61 = vpop.permute.xlu1 %1523 }
 0x322   :  { %v1526_v15 = vrot.slane %v9247_v61, 4  ;;  %v1151_v63 = vadd.f32 1e-05, %v1146_v30  ;;  %v1228_v30 = vrot.slane %v1226_v52, 4 }
 0x324   :  { %v1535_v6 = vmul.f32 %v1526_v15, %v1500_v31  ;;  %8354 = vrsqrt.f32 %v1151_v63  ;;  %v9282_v31 = vpop.permute.xlu0 %1521  ;;  %v1292_v63 = vrot.slane %v9233_v26, 4 }
 0x325   :  { %v9252_v0 = vpop.permute.xlu1 %1654 }
 0x326   :  { %v1541_v1 = vcombine.low %v1535_v6, %v1535_v6  ;;  %v1657_v34 = vrot.slane %v9252_v0, 4  ;;  %v1227_v6 = vrot.slane %v9243_v49, 4 }
 0x328   :  { %1550 = vrot.lane.b32.xlu0 %v1541_v1, %s12766_s29  ;;  %v1666_v35 = vmul.f32 %v1657_v34, %v1631_v43 }
 0x329   :  { %v9256_v37 = vpop.permute.xlu1 %1589 }
 0x32a   :  { %v1592_v4 = vrot.slane %v9256_v37, 4  ;;  %v1672_v39 = vcombine.low %v1666_v35, %v1666_v35  ;;  %v1230_v35 = vsel %vm1118_vm9, %v1227_v6, %v1228_v30 }
 0x32c   :  { %v1601_v10 = vmul.f32 %v1592_v4, %v1566_v2  ;;  %v1359_v2 = vrot.slane %v9245_v28, 4 }
 0x32e   :  { %1615 = vrot.lane.b32.xlu0 %v1601_v10, %s12810_s28  ;;  %v8355_v7 = vpop.eup %8354 }
 0x32f   :  { %v1153_v46 = vmul.f32 %v8355_v7, %v1147_v36  ;;  %v1154_v5 = vmul.f32 %v8355_v7, %v1148_v33  ;;  %v1155_v8 = vmul.f32 %v8355_v7, %v1149_v32  ;;  %v1156_v9 = vmul.f32 %v8355_v7, %v1150_v38  ;;  %v1653_v7 = vpop.permute.xlu0 %1652 }
 0x330   :  { %v1294_v33 = vsel %vm12896_vm1, %v1292_v63, %v9233_v26  ;;  %v1358_v32 = vrot.slane %v9241_v29, 4 }
 0x331   :  { %v1162_v11 = vmul.f32 %v1160_v47, %v1153_v46  ;;  %v1163_v42 = vmul.f32 %v1160_v47, %v1154_v5  ;;  %v1164_v40 = vmul.f32 %v1160_v47, %v1155_v8  ;;  %v1165_v41 = vmul.f32 %v1160_v47, %v1156_v9 }
 0x332   :  { %1681 = vrot.lane.b32.xlu0 %v1672_v39, %s12726_s6  ;;  %v1231_v39 = vsel %vm12752_vm0, %v1230_v35, %v1226_v52  ;;  %v1423_v8 = vrot.slane %v9239_v56, 4  ;;  %v1361_v9 = vsel %vm1118_vm9, %v1358_v32, %v1359_v2  ;;  %v1360_v44 = vsel %vm12751_vm2, %v1358_v32, %v9241_v29 }
 0x333   :  { %v1171_v25 = vadd.f32 %v1169_v57, %v1162_v11  ;;  %v1172_v55 = vadd.f32 %v1169_v57, %v1163_v42  ;;  %v1173_v3 = vadd.f32 %v1169_v57, %v1164_v40  ;;  %v1174_v16 = vadd.f32 %v1169_v57, %v1165_v41  ;;  %v1588_v23 = vpop.permute.xlu0 %1587 }
 0x334   :  { %v1425_v26 = vsel %vm12779_vm3, %v1423_v8, %v9239_v56  ;;  %v1362_v42 = vsel %vm12751_vm2, %v1361_v9, %v9245_v28  ;;  %v1293_v56 = vrot.slane %v9235_v54, 4 }
 0x335   :  { %vm1175_vm10 = vcmp.gt.f32.partialorder %v1171_v25, 0.0  ;;  %vm1176_vm11 = vcmp.gt.f32.partialorder %v1172_v55, 0.0  ;;  %v1179_v19 = vmul.f32 0.2, %v1171_v25  ;;  %v1180_v20 = vmul.f32 0.2, %v1172_v55 }
 0x336   :  { %vm1177_vm12 = vcmp.gt.f32.partialorder %v1173_v3, 0.0  ;;  %vm1178_vm13 = vcmp.gt.f32.partialorder %v1174_v16, 0.0  ;;  %v1181_v53 = vmul.f32 0.2, %v1173_v3  ;;  %v1182_v21 = vmul.f32 0.2, %v1174_v16 }
 0x337   :  { %v1183_v24 = vsel %vm1175_vm10, %v1171_v25, %v1179_v19  ;;  %v1184_v47 = vsel %vm1176_vm11, %v1172_v55, %v1180_v20  ;;  %v1229_v55 = vsel %vm12752_vm0, %v1227_v6, %v9243_v49  ;;  %v1295_v14 = vsel %vm1118_vm9, %v1292_v63, %v1293_v56 }
 0x338   :  { %v9276_v57 = vcombine.low %v1183_v24, %v1184_v47  ;;  %v1185_v58 = vsel %vm1177_vm12, %v1173_v3, %v1181_v53  ;;  %v1186_v59 = vsel %vm1178_vm13, %v1174_v16, %v1182_v21  ;;  %v1591_v3 = vrot.slane %v1588_v23, 4 }
 0x339   :  { %v9278_v60 = vcombine.low %v1185_v58, %v1186_v59  ;;  %v1296_v29 = vsel %vm12896_vm1, %v1295_v14, %v9235_v54  ;;  %v1525_v21 = vrot.slane %v9282_v31, 4  ;;  %v1656_v58 = vrot.slane %v1653_v7, 4  ;;  %v1697_v14 = vld [vmem:[#allocation3 + $0x14] sm:$0xf] }
 0x33a   :  { %1198 = vst [vmem:[#allocation3 + $0x4] sm:$0xff] %v9276_v57  ;;  %v1486_v1 = vmul.f32 %v1482_v27, %v9276_v57  ;;  %v1594_v49 = vsel %vm1118_vm9, %v1591_v3, %v1592_v4  ;;  %v1426_v4 = vsel %vm1118_vm9, %v1423_v8, %v1424_v50  ;;  %v1593_v52 = vsel %vm12908_vm5, %v1591_v3, %v1588_v23 }
 0x33b   :  { %1199 = vst [vmem:[#allocation3 + $0xc] sm:$0xff] %v9278_v60  ;;  %v1487_v43 = vmul.f32 %v1483_v22, %v9278_v60  ;;  %v1595_v53 = vsel %vm12908_vm5, %v1594_v49, %v9256_v37  ;;  %v1427_v54 = vsel %vm12779_vm3, %v1426_v4, %v9237_v51  ;;  %v1528_v37 = vsel %vm1118_vm9, %v1525_v21, %v1526_v15 }
 0x33c   :  { %v1490_v10 = vcombine.high %v1486_v1, %v1486_v1  ;;  %1494 = vst [vmem:[#allocation6 + $0x40] sm:$0xf] %v1486_v1  ;;  %v9337_v47 = vmul.f32 %v1595_v53, %v9278_v60  ;;  %v1527_v27 = vsel %vm12825_vm4, %v1525_v21, %v9282_v31  ;;  %v1599_v22 = vmul.f32 %v1593_v52, %v9276_v57 }
 0x33d   :  { %v1491_v36 = vcombine.high %v1487_v43, %v1487_v43  ;;  %1496 = vst [vmem:[#allocation6 + $0x50] sm:$0xf] %v1487_v43  ;;  %v1659_v51 = vsel %vm1118_vm9, %v1656_v58, %v1657_v34  ;;  %v1533_v63 = vmul.f32 %v1527_v27, %v9276_v57  ;;  %v1658_v15 = vsel %vm12831_vm6, %v1656_v58, %v1653_v7  ;;  %v1719_v7 = vpop.permute.xlu0 %1718 }
 0x33e   :  { %1495 = vst [vmem:[#allocation6 + $0x48] sm:$0xf] %v1490_v10  ;;  %v1660_v31 = vsel %vm12831_vm6, %v1659_v51, %v9252_v0  ;;  %vm8384_vm11 = vmmov 0   ;;  %vm2230_vm12 = vcmask 64512   ;;  %vm2380_vm13 = vcmask 1040384  }
 0x33f   :  { %1497 = vst [vmem:[#allocation6 + $0x58] sm:$0xf] %v1491_v36  ;;  %v1665_v1 = vmul.f32 %v1660_v31, %v9278_v60 }
 0x341   :  { %v1265_v38 = vld [vmem:[#allocation3] sm:$0xff] }
 0x342   :  { %v1201_v46 = vld [vmem:[#allocation3 + $0x8] sm:$0xff]  ;;  %v9294_v5 = vmul.f32 %v1294_v33, %v1265_v38  ;;  %v9308_v40 = vmul.f32 %v1425_v26, %v1265_v38  ;;  %v1202_v25 = vld [vmem:[#allocation3 + $0x10] sm:$0xf]  ;;  %v1235_v16 = vmul.f32 %v1265_v38, %v1229_v55  ;;  %v1366_v19 = vmul.f32 %v1360_v44, %v1265_v38 }
 0x343   :  { %v9298_v11 = vmul.f32 %v1231_v39, %v1201_v46  ;;  %v9310_v41 = vmul.f32 %v1362_v42, %v1201_v46  ;;  %v1237_v28 = vmul.f32 %v1228_v30, %v1202_v25  ;;  %v1333_v17 = vld [vmem:[#allocation3 + $0x10] sm:$0xf]  ;;  %v1301_v24 = vmul.f32 %v1296_v29, %v1201_v46 }
 0x344   :  { %1311 = vrot.lane.b32.xlu0 %v9294_v5, %s12937_s27  ;;  %v1368_v20 = vmul.f32 %v1359_v2, %v1333_v17  ;;  %v1432_v59 = vmul.f32 %v1427_v54, %v1201_v46  ;;  %v1529_v30 = vsel %vm12825_vm4, %v1528_v37, %v9247_v61  ;;  %v1664_v61 = vmul.f32 %v1658_v15, %v9276_v57  ;;  %v1267_v36 = vld [vmem:[#allocation3 + $0x10] sm:$0xf]  ;;  %v1721_v46 = vpop.permute.xlu1 %1720 }
 0x345   :  { %1247 = vrot.lane.b32.xlu1 %v9298_v11, %s12939_s16  ;;  %v1534_v6 = vmul.f32 %v1529_v30, %v9278_v60  ;;  %v1241_v34 = vcombine.high %v1235_v16, %v1235_v16  ;;  %v1307_v43 = vcombine.low %v1301_v24, %v1301_v24  ;;  %v1372_v2 = vcombine.high %v1366_v19, %v1366_v19  ;;  %v1398_v39 = vld [vmem:[#allocation3 + $0x10] sm:$0xf] }
 0x346   :  { %v1438_v35 = vcombine.low %v1432_v59, %v1432_v59  ;;  %v1242_v0 = vcombine.high %v9298_v11, %v9298_v11  ;;  %v1306_v10 = vcombine.low %v9294_v5, %v9294_v5  ;;  %v1373_v33 = vcombine.high %v9310_v41, %v9310_v41  ;;  %v1781_v44 = vld [vmem:[%s12567_s8] sm:$0xff]  ;;  %s12784_s8 = smov 93  }
 0x347   :  { %v1437_v32 = vcombine.low %v9308_v40, %v9308_v40  ;;  %v1302_v38 = vmul.f32 %v1293_v56, %v1267_v36  ;;  %v1605_v5 = vcombine.high %v1599_v22, %v1599_v22  ;;  %v1433_v9 = vmul.f32 %v1424_v50, %v1398_v39 }
 0x348   :  { %1442 = vrot.lane.b32.xlu0 %v9308_v40, %s12936_s5  ;;  %v1722_v11 = vrot.slane %v1719_v7, 4  ;;  %v1723_v26 = vrot.slane %v1721_v46, 4  ;;  %v1539_v42 = vcombine.low %v1533_v63, %v1533_v63  ;;  %v1670_v23 = vcombine.low %v1664_v61, %v1664_v61 }
 0x349   :  { %1378 = vrot.lane.b32.xlu1 %v9310_v41, %s12938_s23  ;;  %v1308_v8 = vcombine.low %v1302_v38, %v1302_v38  ;;  %v1439_v41 = vcombine.low %v1433_v9, %v1433_v9  ;;  %v1540_v55 = vcombine.low %v1534_v6, %v1534_v6  ;;  %v1671_v56 = vcombine.low %v1665_v1, %v1665_v1 }
 0x34a   :  { %v1725_v40 = vsel %vm1118_vm9, %v1722_v11, %v1723_v26  ;;  %v1732_v50 = vmul.f32 %v1723_v26, %v1697_v14 }
 0x34b   :  { %v1726_v25 = vsel %vm12717_vm7, %v1725_v40, %v1721_v46 }
 0x34c   :  { %1243 = vrot.lane.b32.xlu0 %v1235_v16, %s12939_s16  ;;  %v1731_v3 = vmul.f32 %v1726_v25, %v9278_v60  ;;  %v1724_v16 = vsel %vm12717_vm7, %v1722_v11, %v1719_v7  ;;  %v1606_v60 = vcombine.high %v9337_v47, %v9337_v47 }
 0x34d   :  { %1251 = vrot.lane.b32.xlu1 %v1237_v28, %s12939_s16  ;;  %v1730_v17 = vmul.f32 %v1724_v16, %v9276_v57 }
 0x34e   :  { %v1737_v28 = vcombine.high %v1731_v3, %v1731_v3 }
 0x34f   :  { %v1736_v49 = vcombine.high %v1730_v17, %v1730_v17 }
 0x350   :  { %1374 = vrot.lane.b32.xlu0 %v1366_v19, %s12938_s23 }
 0x351   :  { %1382 = vrot.lane.b32.xlu1 %v1368_v20, %s12938_s23 }
 0x354   :  { %1315 = vrot.lane.b32.xlu0 %v1301_v24, %s12937_s27 }
 0x355   :  { %1611 = vrot.lane.b32.xlu1 %v9337_v47, %s12810_s28 }
 0x358   :  { %1446 = vrot.lane.b32.xlu0 %v1432_v59, %s12936_s5 }
 0x359   :  { %1607 = vrot.lane.b32.xlu1 %v1599_v22, %s12810_s28 }
 0x35c   :  { %1544 = vrot.lane.b32.xlu0 %v1533_v63, %s12766_s29 }
 0x35d   :  { %1548 = vrot.lane.b32.xlu1 %v1534_v6, %s12766_s29 }
 0x360   :  { %1675 = vrot.lane.b32.xlu0 %v1664_v61, %s12726_s6 }
 0x361   :  { %1679 = vrot.lane.b32.xlu1 %v1665_v1, %s12726_s6 }
 0x364   :  { %1245 = vrot.lane.b32.xlu0 %v1241_v34, %s12939_s16 }
 0x365   :  { %1313 = vrot.lane.b32.xlu1 %v1307_v43, %s12937_s27 }
 0x368   :  { %1376 = vrot.lane.b32.xlu0 %v1372_v2, %s12938_s23 }
 0x369   :  { %1444 = vrot.lane.b32.xlu1 %v1438_v35, %s12936_s5 }
 0x36c   :  { %1249 = vrot.lane.b32.xlu0 %v1242_v0, %s12939_s16 }
 0x36d   :  { %1309 = vrot.lane.b32.xlu1 %v1306_v10, %s12937_s27 }
 0x370   :  { %1380 = vrot.lane.b32.xlu0 %v1373_v33, %s12938_s23 }
 0x371   :  { %1440 = vrot.lane.b32.xlu1 %v1437_v32, %s12936_s5 }
 0x374   :  { %1609 = vrot.lane.b32.xlu0 %v1605_v5, %s12810_s28 }
 0x375   :  { %1317 = vrot.lane.b32.xlu1 %v1308_v8, %s12937_s27 }
 0x378   :  { %1542 = vrot.lane.b32.xlu0 %v1539_v42, %s12766_s29 }
 0x379   :  { %1448 = vrot.lane.b32.xlu1 %v1439_v41, %s12936_s5 }
 0x37c   :  { %1673 = vrot.lane.b32.xlu0 %v1670_v23, %s12726_s6 }
 0x37d   :  { %1546 = vrot.lane.b32.xlu1 %v1540_v55, %s12766_s29 }
 0x380   :  { %1742 = vrot.lane.b32.xlu0 %v1731_v3, %s12678_s24 }
 0x381   :  { %1677 = vrot.lane.b32.xlu1 %v1671_v56, %s12726_s6 }
 0x384   :  { %1744 = vrot.lane.b32.xlu0 %v1737_v28, %s12678_s24 }
 0x385   :  { %1738 = vrot.lane.b32.xlu1 %v1730_v17, %s12678_s24 }
 0x388   :  { %1784 = vperm.xlu0 %8349, %v1781_v44  }
 0x389   :  { %1613 = vrot.lane.b32.xlu1 %v1606_v60, %s12810_s28 }
 0x38d   :  { %1740 = vrot.lane.b32.xlu1 %v1736_v49, %s12678_s24 }
 0x391   :  { %1746 = vrot.lane.b32.xlu1 %v1732_v50, %s12678_s24 }
 0x39a   :  { %v1551_v57 = vpop.permute.xlu0 %1550 }
 0x3a0   :  { %v9408_v19 = vpop.permute.xlu0 %1615 }
 0x3a4   :  { %v1682_v20 = vpop.permute.xlu0 %1681 }
 0x3b6   :  { %v1312_v53 = vpop.permute.xlu0 %1311 }
 0x3b7   :  { %v1248_v29 = vpop.permute.xlu1 %1247 }
 0x3ba   :  { %v1443_v21 = vpop.permute.xlu0 %1442 }
 0x3bb   :  { %v1379_v24 = vpop.permute.xlu1 %1378 }
 0x3be   :  { %v1244_v4 = vpop.permute.xlu0 %1243 }
 0x3bf   :  { %v1252_v47 = vpop.permute.xlu1 %1251 }
 0x3c2   :  { %v1375_v52 = vpop.permute.xlu0 %1374 }
 0x3c3   :  { %v1383_v58 = vpop.permute.xlu1 %1382 }
 0x3c6   :  { %v1316_v54 = vpop.permute.xlu0 %1315 }
 0x3c7   :  { %v9410_v37 = vpop.permute.xlu1 %1611 }
 0x3ca   :  { %v9412_v59 = vpop.permute.xlu0 %1446 }
 0x3cb   :  { %v1608_v27 = vpop.permute.xlu1 %1607 }
 0x3ce   :  { %v9414_v22 = vpop.permute.xlu0 %1544 }
 0x3cf   :  { %v9416_v30 = vpop.permute.xlu1 %1548 }
 0x3d0   :  { %v1555_v51 = vsel %vm12779_vm3, %v9416_v30, %v1551_v57 }
 0x3d1   :  { %1563 = vst [vmem:[#allocation6 + $0x58] sm:$0xf0] %v1555_v51 }
 0x3d2   :  { %v9420_v63 = vpop.permute.xlu0 %1675 }
 0x3d3   :  { %v9422_v15 = vpop.permute.xlu1 %1679 }
 0x3d4   :  { %v1686_v6 = vsel %vm12896_vm1, %v9422_v15, %v1682_v20 }
 0x3d5   :  { %1694 = vst [vmem:[#allocation6 + $0x78] sm:$0xf0] %v1686_v6 }
 0x3d6   :  { %v1246_v31 = vpop.permute.xlu0 %1245 }
 0x3d7   :  { %v1253_v61 = vsel %vm12717_vm7, %v1244_v4, %v1246_v31  ;;  %v1254_v1 = vsel %vm12717_vm7, %v1246_v31, %v1248_v29  ;;  %v1314_v34 = vpop.permute.xlu1 %1313 }
 0x3d8   :  { %1261 = vst [vmem:[#allocation6] sm:$0xf] %v1253_v61  ;;  %1262 = vst [vmem:[#allocation6 + $0x8] sm:$0xf] %v1254_v1  ;;  %v1320_v43 = vsel %vm12831_vm6, %v1312_v53, %v1314_v34  ;;  %v1321_v2 = vsel %vm12831_vm6, %v1314_v34, %v1316_v54 }
 0x3d9   :  { %1328 = vst [vmem:[#allocation6 + $0x8] sm:$0xf0] %v1320_v43  ;;  %1329 = vst [vmem:[#allocation6 + $0x10] sm:$0xf0] %v1321_v2 }
 0x3da   :  { %v1377_v35 = vpop.permute.xlu0 %1376 }
 0x3db   :  { %v1384_v0 = vsel %vm12908_vm5, %v1375_v52, %v1377_v35  ;;  %v1385_v10 = vsel %vm12908_vm5, %v1377_v35, %v1379_v24  ;;  %v1445_v36 = vpop.permute.xlu1 %1444 }
 0x3dc   :  { %1392 = vst [vmem:[#allocation6 + $0x20] sm:$0xf] %v1384_v0  ;;  %1393 = vst [vmem:[#allocation6 + $0x28] sm:$0xf] %v1385_v10  ;;  %v1451_v33 = vsel %vm12825_vm4, %v1443_v21, %v1445_v36  ;;  %v1452_v32 = vsel %vm12825_vm4, %v1445_v36, %v9412_v59 }
 0x3dd   :  { %1459 = vst [vmem:[#allocation6 + $0x28] sm:$0xf0] %v1451_v33  ;;  %1460 = vst [vmem:[#allocation6 + $0x30] sm:$0xf0] %v1452_v32  ;;  %v1772_v32 = vld [vmem:[#allocation6 + $0x58] sm:$0xff] }
 0x3de   :  { %v1250_v38 = vpop.permute.xlu0 %1249 }
 0x3df   :  { %v1255_v39 = vsel %vm12717_vm7, %v1248_v29, %v1250_v38  ;;  %v1256_v7 = vsel %vm12717_vm7, %v1250_v38, %v1252_v47  ;;  %v1310_v46 = vpop.permute.xlu1 %1309  ;;  %vm12728_vm7 = vcmask 367616  }
 0x3e0   :  { %1263 = vst [vmem:[#allocation6 + $0x10] sm:$0xf] %v1255_v39  ;;  %1264 = vst [vmem:[#allocation6 + $0x18] sm:$0xf] %v1256_v7  ;;  %v1319_v5 = vsel %vm12831_vm6, %v1310_v46, %v1312_v53  ;;  %v1762_v41 = vld [vmem:[#allocation6 + $0x8] sm:$0xff] }
 0x3e1   :  { %1327 = vst [vmem:[#allocation6] sm:$0xf0] %v1319_v5 }
 0x3e2   :  { %v1381_v8 = vpop.permute.xlu0 %1380 }
 0x3e3   :  { %v1386_v9 = vsel %vm12908_vm5, %v1379_v24, %v1381_v8  ;;  %v1387_v11 = vsel %vm12908_vm5, %v1381_v8, %v1383_v58  ;;  %v1441_v26 = vpop.permute.xlu1 %1440 }
 0x3e4   :  { %1394 = vst [vmem:[#allocation6 + $0x30] sm:$0xf] %v1386_v9  ;;  %1395 = vst [vmem:[#allocation6 + $0x38] sm:$0xf] %v1387_v11  ;;  %v1450_v42 = vsel %vm12825_vm4, %v1441_v26, %v1443_v21  ;;  %v1766_v40 = vld [vmem:[#allocation6 + $0x28] sm:$0xff] }
 0x3e5   :  { %1458 = vst [vmem:[#allocation6 + $0x20] sm:$0xf0] %v1450_v42  ;;  %v8096_v23 = vpack.c.bf16 %v1766_v40, %v1762_v41  ;;  %v1760_v11 = vld [vmem:[%s12568_s7] sm:$0xff]  ;;  %v2023_v40 = vld [vmem:[%s12569_s18 + $0x88] sm:$0xff]  ;;  %s12821_s7 = smov 110  }
 0x3e6   :  { %v1610_v25 = vpop.permute.xlu0 %1609  ;;  %v2022_v41 = vld [vmem:[%s12569_s18 + $0x80] sm:$0xff] }
 0x3e7   :  { %v1617_v55 = vsel %vm12751_vm2, %v1608_v27, %v1610_v25  ;;  %v1618_v3 = vsel %vm12751_vm2, %v1610_v25, %v9410_v37  ;;  %8097 = vmatprep.subr.bf16.mxu0 %v8096_v23  ;;  %v1318_v56 = vpop.permute.xlu1 %1317  ;;  %v2054_v23 = vld [vmem:[%s12569_s18 + $0x180] sm:$0xff]  ;;  %v8112_v25 = vpack.c.bf16 %v2023_v40, %v2022_v41  ;;  %v2029_v41 = vld [vmem:[%s12569_s18 + $0xb8] sm:$0xff]  ;;  %v2060_v40 = vld [vmem:[%s12569_s18 + $0x1b0] sm:$0xff] }
 0x3e8   :  { %1625 = vst [vmem:[#allocation6 + $0x60] sm:$0xf] %v1617_v55  ;;  %1626 = vst [vmem:[#allocation6 + $0x68] sm:$0xf] %v1618_v3  ;;  %v1322_v16 = vsel %vm12831_vm6, %v1316_v54, %v1318_v56  ;;  %v1761_v49 = vld [vmem:[#allocation6] sm:$0xff]  ;;  %v2055_v55 = vld [vmem:[%s12569_s18 + $0x188] sm:$0xff] }
 0x3e9   :  { %1330 = vst [vmem:[#allocation6 + $0x18] sm:$0xf0] %v1322_v16  ;;  %v8144_v3 = vpack.c.bf16 %v2055_v55, %v2054_v23  ;;  %v2012_v55 = vld [vmem:[%s12569_s18 + $0x30] sm:$0xff] }
 0x3ea   :  { %v1543_v28 = vpop.permute.xlu0 %1542 }
 0x3eb   :  { %v1552_v17 = vsel %vm12779_vm3, %v1543_v28, %v9414_v22  ;;  %v1449_v44 = vpop.permute.xlu1 %1448  ;;  %v1767_v47 = vld [vmem:[#allocation6 + $0x30] sm:$0xff] }
 0x3ec   :  { %1560 = vst [vmem:[#allocation6 + $0x40] sm:$0xf0] %v1552_v17  ;;  %v1453_v60 = vsel %vm12825_vm4, %v9412_v59, %v1449_v44  ;;  %v1765_v14 = vld [vmem:[#allocation6 + $0x20] sm:$0xff] }
 0x3ed   :  { %1461 = vst [vmem:[#allocation6 + $0x38] sm:$0xf0] %v1453_v60  ;;  %v8098_v50 = vpack.c.bf16 %v1765_v14, %v1761_v49 }
 0x3ee   :  { %v1674_v57 = vpop.permute.xlu0 %1673 }
 0x3ef   :  { %v1683_v20 = vsel %vm12896_vm1, %v1674_v57, %v9420_v63  ;;  %8099 = vmatpush1.bf16.msra.mxu0 %v8098_v50  ;;  %v1547_v53 = vpop.permute.xlu1 %1546 }
 0x3f0   :  { %1691 = vst [vmem:[#allocation6 + $0x60] sm:$0xf0] %v1683_v20  ;;  %v1553_v29 = vsel %vm12779_vm3, %v9414_v22, %v1547_v53  ;;  %v1554_v21 = vsel %vm12779_vm3, %v1547_v53, %v9416_v30  ;;  %v1764_v54 = vld [vmem:[#allocation6 + $0x18] sm:$0xff]  ;;  %v1763_v22 = vld [vmem:[#allocation6 + $0x10] sm:$0xff] }
 0x3f1   :  { %1561 = vst [vmem:[#allocation6 + $0x48] sm:$0xf0] %v1553_v29  ;;  %1562 = vst [vmem:[#allocation6 + $0x50] sm:$0xf0] %v1554_v21  ;;  %v8106_v6 = vpack.c.bf16 %v1767_v47, %v1763_v22  ;;  %v2038_v22 = vld [vmem:[%s12569_s18 + $0x100] sm:$0xff] }
 0x3f2   :  { %v1743_v24 = vpop.permute.xlu0 %1742 }
 0x3f3   :  { %v1678_v4 = vpop.permute.xlu1 %1677  ;;  %v1769_v35 = vld [vmem:[#allocation6 + $0x40] sm:$0xff] }
 0x3f4   :  { %v1684_v52 = vsel %vm12896_vm1, %v9420_v63, %v1678_v4  ;;  %v1685_v58 = vsel %vm12896_vm1, %v1678_v4, %v9422_v15  ;;  %v1768_v59 = vld [vmem:[#allocation6 + $0x38] sm:$0xff] }
 0x3f5   :  { %1692 = vst [vmem:[#allocation6 + $0x68] sm:$0xf0] %v1684_v52  ;;  %1693 = vst [vmem:[#allocation6 + $0x70] sm:$0xf0] %v1685_v58  ;;  %v8104_v27 = vpack.c.bf16 %v1768_v59, %v1764_v54  ;;  %v1946_v54 = vld [vmem:[%s12570_s10] sm:$0xff]  ;;  %s12680_s10 = smov 96  }
 0x3f6   :  { %v1745_v51 = vpop.permute.xlu0 %1744  ;;  %v2006_v59 = vld [vmem:[%s12569_s18] sm:$0xff] }
 0x3f7   :  { %v1750_v30 = vsel %vm12752_vm0, %v1743_v24, %v1745_v51  ;;  %8105 = vmatprep.subr.bf16.mxu1 %v8104_v27  ;;  %v1739_v31 = vpop.permute.xlu1 %1738  ;;  %v1773_v1 = vld [vmem:[#allocation6 + $0x60] sm:$0xff]  ;;  %v2007_v27 = vld [vmem:[%s12569_s18 + $0x8] sm:$0xff] }
 0x3f8   :  { %1758 = vst [vmem:[#allocation6 + $0x90] sm:$0xf] %v1750_v30  ;;  %8107 = vmatpush1.bf16.msra.mxu1 %v8106_v6  ;;  %v1770_v34 = vld [vmem:[#allocation6 + $0x48] sm:$0xff]  ;;  %v8102_v0 = vpack.c.bf16 %v1773_v1, %v1769_v35  ;;  %v1771_v39 = vld [vmem:[#allocation6 + $0x50] sm:$0xff] }
 0x3f9   :  { %v2039_v6 = vld [vmem:[%s12569_s18 + $0x108] sm:$0xff]  ;;  %v2025_v1 = vld [vmem:[%s12569_s18 + $0x98] sm:$0xff] }
 0x3fa   :  { %v8146_v30 = vpack.c.bf16 %v2039_v6, %v2038_v22  ;;  %v2033_v22 = vld [vmem:[%s12569_s18 + $0xd8] sm:$0xff] }
 0x3fb   :  { %v1614_v61 = vpop.permute.xlu1 %1613  ;;  %v2065_v6 = vld [vmem:[%s12569_s18 + $0x1d8] sm:$0xff] }
 0x3fc   :  { %v1619_v63 = vsel %vm12751_vm2, %v9410_v37, %v1614_v61  ;;  %v1620_v15 = vsel %vm12751_vm2, %v1614_v61, %v9408_v19  ;;  %v1774_v43 = vld [vmem:[#allocation6 + $0x68] sm:$0xff]  ;;  %v2024_v61 = vld [vmem:[%s12569_s18 + $0x90] sm:$0xff] }
 0x3fd   :  { %1627 = vst [vmem:[#allocation6 + $0x70] sm:$0xf] %v1619_v63  ;;  %1628 = vst [vmem:[#allocation6 + $0x78] sm:$0xf] %v1620_v15  ;;  %v8100_v2 = vpack.c.bf16 %v1774_v43, %v1770_v34  ;;  %v2056_v63 = vld [vmem:[%s12569_s18 + $0x190] sm:$0xff]  ;;  %v8116_v15 = vpack.c.bf16 %v2025_v1, %v2024_v61  ;;  %v2057_v34 = vld [vmem:[%s12569_s18 + $0x198] sm:$0xff] }
 0x3fe   :  { %v2008_v43 = vld [vmem:[%s12569_s18 + $0x10] sm:$0xff]  ;;  %v8148_v35 = vpack.c.bf16 %v2057_v34, %v2056_v63  ;;  %v2017_v1 = vld [vmem:[%s12569_s18 + $0x58] sm:$0xff] }
 0x3ff   :  { %8101 = vmatprep.subr.bf16.mxu0 %v8100_v2  ;;  %v1741_v10 = vpop.permute.xlu1 %1740  ;;  %v1779_v42 = vld [vmem:[#allocation6 + $0x90] sm:$0xf]  ;;  %v2009_v2 = vld [vmem:[%s12569_s18 + $0x18] sm:$0xff]  ;;  %v2016_v61 = vld [vmem:[%s12569_s18 + $0x50] sm:$0xff] }
 0x400   :  { %v1748_v36 = vsel %vm12752_vm0, %v1739_v31, %v1741_v10  ;;  %v1749_v33 = vsel %vm12752_vm0, %v1741_v10, %v1743_v24  ;;  %8103 = vmatpush1.bf16.msra.mxu0 %v8102_v0  ;;  %v1945_v31 = vld [vmem:[%s12571_s9] sm:$0xff]  ;;  %v8118_v0 = vpack.c.bf16 %v2009_v2, %v2008_v43  ;;  %v2040_v10 = vld [vmem:[%s12569_s18 + $0x110] sm:$0xff]  ;;  %v2049_v34 = vld [vmem:[%s12569_s18 + $0x158] sm:$0xff]  ;;  %s12606_s9 = smov 2  }
 0x401   :  { %1756 = vst [vmem:[#allocation6 + $0x80] sm:$0xf] %v1748_v36  ;;  %1757 = vst [vmem:[#allocation6 + $0x88] sm:$0xf] %v1749_v33  ;;  %v2041_v36 = vld [vmem:[%s12569_s18 + $0x118] sm:$0xff]  ;;  %v2026_v33 = vld [vmem:[%s12569_s18 + $0xa0] sm:$0xff] }
 0x402   :  { %v2048_v63 = vld [vmem:[%s12569_s18 + $0x150] sm:$0xff]  ;;  %v2034_v43 = vld [vmem:[%s12569_s18 + $0xe0] sm:$0xff]  ;;  %v2035_v2 = vld [vmem:[%s12569_s18 + $0xe8] sm:$0xff] }
 0x403   :  { %v1747_v37 = vpop.permute.xlu1 %1746 }
 0x404   :  { %v1751_v19 = vsel %vm12752_vm0, %v1745_v51, %v1747_v37  ;;  %v1776_v38 = vld [vmem:[#allocation6 + $0x78] sm:$0xff]  ;;  %v1775_v7 = vld [vmem:[#allocation6 + $0x70] sm:$0xff]  ;;  %v8114_v51 = vpack.c.bf16 %v2007_v27, %v2006_v59  ;;  %v8150_v37 = vpack.c.bf16 %v2041_v36, %v2040_v10 }
 0x405   :  { %1759 = vst [vmem:[#allocation6 + $0x98] sm:$0xf] %v1751_v19  ;;  %v8108_v46 = vpack.c.bf16 %v1776_v38, %v1772_v32  ;;  %v8110_v5 = vpack.c.bf16 %v1775_v7, %v1771_v39  ;;  %v2027_v32 = vld [vmem:[%s12569_s18 + $0xa8] sm:$0xff]  ;;  %v2058_v19 = vld [vmem:[%s12569_s18 + $0x1a0] sm:$0xff]  ;;  %v2032_v59 = vld [vmem:[%s12569_s18 + $0xd0] sm:$0xff] }
 0x406   :  { %v2059_v38 = vld [vmem:[%s12569_s18 + $0x1a8] sm:$0xff]  ;;  %v8120_v39 = vpack.c.bf16 %v2027_v32, %v2026_v33  ;;  %v2066_v10 = vld [vmem:[%s12569_s18 + $0x1e0] sm:$0xff] }
 0x407   :  { %8109 = vmatprep.subr.bf16.mxu1 %v8108_v46  ;;  %v1785_v56 = vpop.permute.xlu0 %1784  ;;  %v8152_v7 = vpack.c.bf16 %v2059_v38, %v2058_v19  ;;  %v2010_v46 = vld [vmem:[%s12569_s18 + $0x20] sm:$0xff]  ;;  %v2067_v36 = vld [vmem:[%s12569_s18 + $0x1e8] sm:$0xff] }
 0x408   :  { %8111 = vmatpush1.bf16.msra.mxu1 %v8110_v5  ;;  %v1778_v8 = vld [vmem:[#allocation6 + $0x88] sm:$0xf]  ;;  %v1777_v9 = vld [vmem:[#allocation6 + $0x80] sm:$0xf]  ;;  %v2011_v5 = vld [vmem:[%s12569_s18 + $0x28] sm:$0xff] }
 0x409   :  { %7826 = vmatprep.subr.msk.mxu0 %vm1118_vm9, %v1778_v8  ;;  %v2042_v8 = vld [vmem:[%s12569_s18 + $0x120] sm:$0xff]  ;;  %v2019_v32 = vld [vmem:[%s12569_s18 + $0x68] sm:$0xff] }
 0x40a   :  { %7827 = vmatpush1.msk.msra.mxu0 %vm1118_vm9, %v1777_v9  ;;  %v8122_v9 = vpack.c.bf16 %v2011_v5, %v2010_v46  ;;  %v2018_v33 = vld [vmem:[%s12569_s18 + $0x60] sm:$0xff]  ;;  %v2051_v38 = vld [vmem:[%s12569_s18 + $0x168] sm:$0xff]  ;;  %v2037_v46 = vld [vmem:[%s12569_s18 + $0xf8] sm:$0xff] }
 0x40b   :  { %7828 = vmatmul.mubr.msk.f32.vlgmr.msra.gmra.mrb[4].mxu0 %vm1787_vm14, %v1760_v11  ;;  %8113 = vmatprep.subr.bf16.mxu0 %v8112_v25  ;;  %v2061_v25 = vld [vmem:[%s12569_s18 + $0x1b8] sm:$0xff]  ;;  %v2050_v19 = vld [vmem:[%s12569_s18 + $0x160] sm:$0xff]  ;;  %v2068_v5 = vld [vmem:[%s12569_s18 + $0x1f0] sm:$0xff] }
 0x40c   :  { %v1780_v26 = vld [vmem:[#allocation6 + $0x98] sm:$0xf]  ;;  %8115 = vmatpush3.bf16.msra.mxu0 %v8114_v51  ;;  %v2064_v51 = vld [vmem:[%s12569_s18 + $0x1d0] sm:$0xff] }
 0x40d   :  { %7829 = vmatprep.subr.msk.mxu1 %vm1118_vm9, %v1780_v26  ;;  %8117 = vmatprep.subr.bf16.mxu0 %v8116_v15  ;;  %v8134_v15 = vpack.c.bf16 %v2017_v1, %v2016_v61 }
 0x40e   :  { %7830 = vmatpush1.msk.msra.mxu1 %vm1118_vm9, %v1779_v42  ;;  %v2028_v42 = vld [vmem:[%s12569_s18 + $0xb0] sm:$0xff] }
 0x40f   :  { %7831 = vmatmul.mubr.msk.f32.vlgmr.msra.gmra.mrb[4].mxu1 %vm1787_vm14, %v1760_v11  ;;  %8145 = vmatprep.subr.bf16.mxu1 %v8144_v3  ;;  %v2043_v11 = vld [vmem:[%s12569_s18 + $0x128] sm:$0xff]  ;;  %v8124_v23 = vpack.c.bf16 %v2029_v41, %v2028_v42  ;;  %v2013_v3 = vld [vmem:[%s12569_s18 + $0x38] sm:$0xff]  ;;  %vm12716_vm14 = vcmask 1041408  }
 0x410   :  { %8147 = vmatpush3.bf16.msra.mxu1 %v8146_v30  ;;  %8119 = vmatpush3.bf16.msra.mxu0 %v8118_v0  ;;  %v8154_v26 = vpack.c.bf16 %v2043_v11, %v2042_v8  ;;  %v8132_v30 = vpack.c.bf16 %v2033_v22, %v2032_v59  ;;  %v8136_v0 = vpack.c.bf16 %v2035_v2, %v2034_v43  ;;  %v2069_v11 = vld [vmem:[%s12569_s18 + $0x1f8] sm:$0xff] }
 0x411   :  { %8149 = vmatprep.subr.bf16.mxu1 %v8148_v35  ;;  %8121 = vmatprep.subr.bf16.mxu0 %v8120_v39  ;;  %v8166_v35 = vpack.c.bf16 %v2049_v34, %v2048_v63  ;;  %v8138_v39 = vpack.c.bf16 %v2019_v32, %v2018_v33  ;;  %v8170_v8 = vpack.c.bf16 %v2051_v38, %v2050_v19  ;;  %v2021_v42 = vld [vmem:[%s12569_s18 + $0x78] sm:$0xff]  ;;  %v7832_v33 = vld [vmem:[%s12572_s20] ss:$0 sm:$0xff] }
 0x412   :  { %v8172_v41 = vpack.c.bf16 %v2069_v11, %v2068_v5 }
 0x414   :  { %8151 = vmatpush3.bf16.msra.mxu1 %v8150_v37  ;;  %8123 = vmatpush3.bf16.msra.mxu0 %v8122_v9  ;;  %v8168_v37 = vpack.c.bf16 %v2067_v36, %v2066_v10  ;;  %v7833_v36 = vld [vmem:[%s12572_s20 + $0x1] ss:$0 sm:$0xff]  ;;  %s12819_s20 = smov 97  }
 0x415   :  { %8153 = vmatprep.subr.bf16.mxu1 %v8152_v7  ;;  %8125 = vmatprep.subr.bf16.mxu0 %v8124_v23  ;;  %v2036_v7 = vld [vmem:[%s12569_s18 + $0xf0] sm:$0xff]  ;;  %v2053_v23 = vld [vmem:[%s12569_s18 + $0x178] sm:$0xff] }
 0x416   :  { %v8140_v9 = vpack.c.bf16 %v2037_v46, %v2036_v7  ;;  %v2229_v7 = vld [vmem:[%s12573_s11] sm:$0x1]  ;;  %s12670_s11 = smov 99  }
 0x418   :  { %8155 = vmatpush3.bf16.msra.mxu1 %v8154_v26  ;;  %v2020_v26 = vld [vmem:[%s12569_s18 + $0x70] sm:$0xff] }
 0x4de   :  { %v1869_v16 = vpop.f32.mrb[4].mxu0 }
 0x4df   :  { %v9486_v28 = vadd.f32 %v1869_v16, %v1785_v56  ;;  %v1871_v17 = vpop.f32.mrb[5].mxu0  ;;  %v8126_v16 = vpack.c.bf16 %v2013_v3, %v2012_v55  ;;  %v9692_v3 = vld [vmem:[#allocation2] sm:$0xff] }
 0x4e0   :  { %v9488_v44 = vadd.f32 %v1871_v17, %v1785_v56  ;;  %v2044_v17 = vld [vmem:[%s12569_s18 + $0x130] sm:$0xff] }
 0x4e1   :  { %v1953_v60 = vmul.f32 %v9486_v28, %v9486_v28  ;;  %8127 = vmatpush3.bf16.msra.mxu0 %v8126_v16 }
 0x4e2   :  { %v1947_v49 = vadd.f32 %v9488_v44, %v9486_v28  ;;  %v1954_v14 = vmul.f32 %v9488_v44, %v9488_v44  ;;  %v1940_v50 = vpop.f32.mrb[4].mxu1 }
 0x4e3   :  { %v9496_v57 = vadd.f32 %v1940_v50, %v1785_v56  ;;  %v1942_v20 = vpop.f32.mrb[5].mxu1  ;;  %v2031_v50 = vld [vmem:[%s12569_s18 + $0xc8] sm:$0xff] }
 0x4e4   :  { %v1957_v53 = vadd.f32 %v1954_v14, %v1953_v60  ;;  %v9498_v29 = vadd.f32 %v1942_v20, %v1785_v56  ;;  %v8156_v56 = vpack.c.bf16 %v2061_v25, %v2060_v40  ;;  %v2045_v60 = vld [vmem:[%s12569_s18 + $0x138] sm:$0xff]  ;;  %v2030_v14 = vld [vmem:[%s12569_s18 + $0xc0] sm:$0xff]  ;;  %v2052_v40 = vld [vmem:[%s12569_s18 + $0x170] sm:$0xff]  ;;  %v8142_v25 = vpack.c.bf16 %v2021_v42, %v2020_v26 }
 0x4e5   :  { %v1948_v21 = vadd.f32 %v1947_v49, %v9496_v57  ;;  %v1955_v24 = vmul.f32 %v9496_v57, %v9496_v57  ;;  %v8158_v49 = vpack.c.bf16 %v2045_v60, %v2044_v17  ;;  %v2062_v20 = vld [vmem:[%s12569_s18 + $0x1c0] sm:$0xff]  ;;  %v8174_v55 = vpack.c.bf16 %v2053_v23, %v2052_v40 }
 0x4e6   :  { %v1956_v4 = vmul.f32 %v9498_v29, %v9498_v29  ;;  %8157 = vmatprep.subr.bf16.mxu1 %v8156_v56 }
 0x4e7   :  { %v1949_v47 = vadd.f32 %v1948_v21, %v9498_v29  ;;  %v1958_v52 = vadd.f32 %v1957_v53, %v1955_v24  ;;  %8159 = vmatpush3.bf16.msra.mxu1 %v8158_v49  ;;  %v8128_v53 = vpack.c.bf16 %v2031_v50, %v2030_v14  ;;  %v2063_v21 = vld [vmem:[%s12569_s18 + $0x1c8] sm:$0xff]  ;;  %v2014_v24 = vld [vmem:[%s12569_s18 + $0x40] sm:$0xff] }
 0x4e9   :  { %1950 = vadd.xlane.f32.xlu1 %v1949_v47  ;;  %v1959_v58 = vadd.f32 %v1958_v52, %v1956_v4  ;;  %v2015_v4 = vld [vmem:[%s12569_s18 + $0x48] sm:$0xff]  ;;  %v8160_v47 = vpack.c.bf16 %v2063_v21, %v2062_v20  ;;  %8129 = vmatprep.subr.bf16.mxu0 %v8128_v53 }
 0x4ea   :  { %v8130_v52 = vpack.c.bf16 %v2015_v4, %v2014_v24 }
 0x4eb   :  { %1960 = vadd.xlane.f32.xlu0 %v1959_v58  ;;  %v2046_v58 = vld [vmem:[%s12569_s18 + $0x140] sm:$0xff]  ;;  %8161 = vmatprep.subr.bf16.mxu1 %v8160_v47 }
 0x4ec   :  { %8131 = vmatpush3.bf16.msra.mxu0 %v8130_v52 }
 0x4ed   :  { %8133 = vmatprep.subr.bf16.mxu0 %v8132_v30 }
 0x4f0   :  { %8135 = vmatpush3.bf16.msra.mxu0 %v8134_v15 }
 0x4f1   :  { %8137 = vmatprep.subr.bf16.mxu0 %v8136_v0 }
 0x4f4   :  { %8139 = vmatpush3.bf16.msra.mxu0 %v8138_v39 }
 0x4f5   :  { %8141 = vmatprep.subr.bf16.mxu0 %v8140_v9 }
 0x4f8   :  { %8143 = vmatpush3.bf16.msra.mxu0 %v8142_v25 }
 0x4f9   :  { %7980 = vmatprep.subr.mxu0 %v9692_v3 }
 0x4fa   :  { %1987 = vperm.xlu1 %8350, %v1946_v54   ;;  %v2047_v54 = vld [vmem:[%s12569_s18 + $0x148] sm:$0xff]  ;;  %s12664_s18 = smov 94  }
 0x4fb   :  { %v8162_v27 = vpack.c.bf16 %v2047_v54, %v2046_v58 }
 0x4fd   :  { %8163 = vmatpush3.bf16.msra.mxu1 %v8162_v27 }
 0x501   :  { %1978 = vperm.xlu0 %8349, %v1945_v31   ;;  %v8164_v31 = vpack.c.bf16 %v2065_v6, %v2064_v51 }
 0x503   :  { %8165 = vmatprep.subr.bf16.mxu1 %v8164_v31 }
 0x504   :  { %8167 = vmatpush3.bf16.msra.mxu1 %v8166_v35 }
 0x505   :  { %8169 = vmatprep.subr.bf16.mxu1 %v8168_v37 }
 0x508   :  { %8171 = vmatpush3.bf16.msra.mxu1 %v8170_v8 }
 0x509   :  { %8173 = vmatprep.subr.bf16.mxu1 %v8172_v41  ;;  %v8385_v41 = vmov 1983009808  }
 0x50a   :  { %v2535_v40 = vunpack.c.l.s4 %v8385_v41 }
 0x50c   :  { %8175 = vmatpush3.bf16.msra.mxu1 %v8174_v55  ;;  %v2536_v23 = vunpack.c.0.s8 %v2535_v40  ;;  %v7846_v55 = vld [vmem:[%s12574_s17 + $0x1] ss:$8 sm:$0xf] }
 0x50d   :  { %7985 = vmatprep.subr.mxu1 %v9692_v3 }
 0x50e   :  { %v9734_v25 = vsub.s32 %v2536_v23, %v8676_v62 }
 0x576   :  { %v1951_v56 = vpop.xlane.xlu1 %1950 }
 0x577   :  { %v1952_v16 = vmul.f32 0.001953125, %v1951_v56  ;;  %v7847_v56 = vld [vmem:[%s12574_s17 + $0x2] ss:$8 sm:$0xf] }
 0x578   :  { %v1961_v17 = vpop.xlane.xlu0 %1960 }
 0x579   :  { %v1962_v60 = vmul.f32 0.001953125, %v1961_v17  ;;  %v1963_v49 = vmul.f32 %v1952_v16, %v1952_v16  ;;  %v1966_v53 = vsub.f32 %v9486_v28, %v1952_v16  ;;  %v1968_v21 = vsub.f32 %v9496_v57, %v1952_v16 }
 0x57a   :  { %v1967_v24 = vsub.f32 %v9488_v44, %v1952_v16  ;;  %v1969_v4 = vsub.f32 %v9498_v29, %v1952_v16  ;;  %v1988_v31 = vpop.permute.xlu1 %1987  ;;  %v2933_v16 = vrot.slane %v7846_v55, %v8703_v12  ;;  %v2937_v17 = vrot.slane %v7846_v55, %v8718_v18 }
 0x57b   :  { %v1964_v14 = vsub.f32 %v1962_v60, %v1963_v49  ;;  %v2941_v60 = vrot.slane %v7846_v55, %v8706_v13  ;;  %v2945_v49 = vrot.slane %v7846_v55, %v8768_v45 }
 0x57d   :  { %v1965_v50 = vmax.f32 %v1964_v14, 0.0  ;;  %v3030_v14 = vrot.slane %v7847_v56, %v8703_v12 }
 0x57f   :  { %v1970_v20 = vadd.f32 1e-05, %v1965_v50  ;;  %v3034_v50 = vrot.slane %v7847_v56, %v8718_v18 }
 0x580   :  { %v1979_v27 = vpop.permute.xlu0 %1978 }
 0x581   :  { %8356 = vrsqrt.f32 %v1970_v20  ;;  %v3038_v20 = vrot.slane %v7847_v56, %v8706_v13 }
 0x58b   :  { %v8357_v47 = vpop.eup %8356 }
 0x58c   :  { %v1972_v52 = vmul.f32 %v8357_v47, %v1966_v53  ;;  %v1974_v58 = vmul.f32 %v8357_v47, %v1968_v21  ;;  %v1973_v54 = vmul.f32 %v8357_v47, %v1967_v24  ;;  %v1975_v59 = vmul.f32 %v8357_v47, %v1969_v4 }
 0x58d   :  { %v3042_v53 = vrot.slane %v7847_v56, %v8768_v45  ;;  %v2946_v21 = vcombine.low %v2933_v16, %v2937_v17  ;;  %v2947_v24 = vcombine.low %v2941_v60, %v2945_v49  ;;  %v3043_v4 = vcombine.low %v3030_v14, %v3034_v50  ;;  %v7851_v56 = vld [vmem:[%s12574_s17 + $0x6] ss:$8 sm:$0xf] }
 0x58e   :  { %v1981_v22 = vmul.f32 %v1979_v27, %v1972_v52  ;;  %v1983_v51 = vmul.f32 %v1979_v27, %v1974_v58  ;;  %v1982_v6 = vmul.f32 %v1979_v27, %v1973_v54  ;;  %v1984_v30 = vmul.f32 %v1979_v27, %v1975_v59  ;;  %v2531_v14 = vld [vmem:[%s12576_s19] sm:$0xff]  ;;  %s12675_s19 = smov 98  }
 0x58f   :  { %v3044_v47 = vcombine.low %v3038_v20, %v3042_v53  ;;  %v2954_v52 = vrot.slane %v2946_v21, %v9734_v25  ;;  %v2961_v58 = vrot.slane %v2947_v24, %v9734_v25  ;;  %v3051_v54 = vrot.slane %v3043_v4, %v9734_v25  ;;  %v7852_v21 = vld [vmem:[%s12574_s17 + $0x7] ss:$8 sm:$0xf] }
 0x590   :  { %v1991_v61 = vadd.f32 %v1988_v31, %v1982_v6  ;;  %v1993_v1 = vadd.f32 %v1988_v31, %v1984_v30  ;;  %v1990_v28 = vadd.f32 %v1988_v31, %v1981_v22  ;;  %v1992_v63 = vadd.f32 %v1988_v31, %v1983_v51  ;;  %v2305_v31 = vld [vmem:[%s12575_s12] sm:$0xff]  ;;  %s12723_s12 = smov 109  }
 0x591   :  { %v3058_v59 = vrot.slane %v3044_v47, %v9734_v25  ;;  %v2962_v27 = vcombine.low %v2954_v52, %v2961_v58  ;;  %v3418_v17 = vrot.slane %v7851_v56, %v8703_v12  ;;  %v3422_v60 = vrot.slane %v7851_v56, %v8718_v18  ;;  %v2832_v58 = vld [vmem:[%s12574_s17] ss:$8 sm:$0xf] }
 0x592   :  { %vm1995_vm15 = vcmp.gt.f32.partialorder %v1991_v61, 0.0  ;;  %v1999_v57 = vmul.f32 0.2, %v1991_v61  ;;  %vm1997_vm8 = vcmp.gt.f32.partialorder %v1993_v1, 0.0  ;;  %v2001_v44 = vmul.f32 0.2, %v1993_v1 }
 0x593   :  { %vm1994_vm9 = vcmp.gt.f32.partialorder %v1990_v28, 0.0  ;;  %v1998_v29 = vmul.f32 0.2, %v1990_v28  ;;  %vm1996_vm10 = vcmp.gt.f32.partialorder %v1992_v63, 0.0  ;;  %v2000_v15 = vmul.f32 0.2, %v1992_v63 }
 0x594   :  { %v9700_v34 = vsel %vm1995_vm15, %v1991_v61, %v1999_v57  ;;  %v9702_v43 = vsel %vm1997_vm8, %v1993_v1, %v2001_v44  ;;  %v3059_v22 = vcombine.low %v3051_v54, %v3058_v59  ;;  %v3426_v49 = vrot.slane %v7851_v56, %v8706_v13 }
 0x595   :  { %2134 = vmatprep.mubr.f32.mxu0 %v9700_v34  ;;  %2204 = vmatprep.mubr.f32.mxu1 %v9702_v43  ;;  %v9706_v2 = vsel %vm1994_vm9, %v1990_v28, %v1998_v29  ;;  %v9708_v35 = vsel %vm1996_vm10, %v1992_v63, %v2000_v15  ;;  %v7848_v63 = vld [vmem:[%s12574_s17 + $0x3] ss:$8 sm:$0xf]  ;;  %v3430_v20 = vrot.slane %v7851_v56, %v8768_v45  ;;  %v7859_v56 = vld [vmem:[%s12574_s17 + $0x26] ss:$8 sm:$0xf] }
 0x596   :  { %2135 = vmatmul.mubr.f32.vlgmr.msra.gmra.mrb[6].mxu0 %v9706_v2  ;;  %2205 = vmatmul.mubr.f32.vlgmr.msra.gmra.mrb[6].mxu1 %v9708_v35  ;;  %v2219_v0 = vmax.f32 %v9708_v35, %v9702_v43  ;;  %v2210_v10 = vmax.f32 %v9706_v2, %v9700_v34  ;;  %v3127_v57 = vrot.slane %v7848_v63, %v8703_v12  ;;  %vm12800_vm15 = vcmask 15360  }
 0x597   :  { %7987 = vmatprep.mubr.msk.f32.mxu1 %vm8384_vm11, %v9692_v3  ;;  %7982 = vmatprep.mubr.msk.f32.mxu0 %vm8384_vm11, %v9692_v3  ;;  %v3131_v44 = vrot.slane %v7848_v63, %v8718_v18  ;;  %v3135_v29 = vrot.slane %v7848_v63, %v8706_v13  ;;  %v3139_v15 = vrot.slane %v7848_v63, %v8768_v45  ;;  %v7853_v63 = vld [vmem:[%s12574_s17 + $0x20] ss:$8 sm:$0xf]  ;;  %vm12730_vm9 = vcmask 236544  }
 0x598   :  { %2220 = vmax.xlane.f32.xlu0 %v2219_v0  ;;  %2211 = vmax.xlane.f32.xlu1 %v2210_v10  ;;  %v2540_v53 = vrot.slane %v2531_v14, %v9734_v25  ;;  %v3431_v24 = vcombine.low %v3418_v17, %v3422_v60  ;;  %v3515_v4 = vrot.slane %v7852_v21, %v8703_v12  ;;  %vm12721_vm10 = vcmask 244736  }
 0x599   :  { %v3140_v0 = vcombine.low %v3127_v57, %v3131_v44  ;;  %v3141_v10 = vcombine.low %v3135_v29, %v3139_v15  ;;  %v3519_v47 = vrot.slane %v7852_v21, %v8718_v18  ;;  %v3523_v52 = vrot.slane %v7852_v21, %v8706_v13 }
 0x59a   :  { %v3432_v59 = vcombine.low %v3426_v49, %v3430_v20  ;;  %v2845_v29 = vrot.slane %v2832_v58, %v8706_v13  ;;  %v2849_v15 = vrot.slane %v2832_v58, %v8768_v45 }
 0x5a9   :  { %2963 = vrot.lane.b32.xlu1 %v2962_v27, %s12594_s26  ;;  %v2548_v27 = vcombine.high %v2540_v53, %v2540_v53  ;;  %s12747_s26 = smov 114  }
 0x5ad   :  { %3060 = vrot.lane.b32.xlu1 %v3059_v22, %s12596_s4  ;;  %v3527_v22 = vrot.slane %v7852_v21, %v8768_v45  ;;  %v7858_v21 = vld [vmem:[%s12574_s17 + $0x25] ss:$8 sm:$0xf]  ;;  %s12604_s4 = smov 14  }
 0x625   :  { %v2221_v37 = vpop.xlane.xlu0 %2220  ;;  %v2212_v32 = vpop.xlane.xlu1 %2211 }
 0x626   :  { %v2227_v19 = vmul.f32 %v7833_v36, %v2221_v37  ;;  %v2218_v38 = vmul.f32 %v7832_v33, %v2212_v32  ;;  %v7849_v36 = vld [vmem:[%s12574_s17 + $0x4] ss:$8 sm:$0xf]  ;;  %v3155_v33 = vrot.slane %v3141_v10, %v9734_v25 }
 0x627   :  { %v3225_v37 = vrot.slane %v7849_v36, %v8703_v12  ;;  %v3229_v32 = vrot.slane %v7849_v36, %v8718_v18 }
 0x628   :  { %v2228_v39 = vadd.f32 %v2227_v19, %v2218_v38  ;;  %v3233_v19 = vrot.slane %v7849_v36, %v8706_v13  ;;  %v3237_v38 = vrot.slane %v7849_v36, %v8768_v45 }
 0x62a   :  { %7986 = vmatpush3.msra.mxu1 %v2228_v39 }
 0x62b   :  { %7988 = vmatmul.mubr.msk.f32.vlgmr.msra.gmra.mrb[8].mxu1 %vm2230_vm12, %v2229_v7  ;;  %7840 = vmatprep.subr.msk.mxu1 %vm12716_vm14, %v2548_v27 }
 0x62c   :  { %2627 = vmatprep.mubr.f32.mxu1 %v9692_v3  ;;  %7841 = vmatpush1.msk.msra.mxu1 %vm12716_vm14, %v2540_v53 }
 0x669   :  { %v7934_v46 = vpop.f32.mrb[6].mxu0  ;;  %v7969_v5 = vpop.f32.mrb[6].mxu1 }
 0x66a   :  { %v7935_v8 = vpop.f32.mrb[7].mxu0  ;;  %v7970_v9 = vpop.f32.mrb[7].mxu1 }
 0x66b   :  { %v7936_v11 = vadd.f32 %v7935_v8, %v7934_v46  ;;  %v7971_v26 = vadd.f32 %v7970_v9, %v7969_v5  ;;  %v3239_v46 = vcombine.low %v3233_v19, %v3237_v38  ;;  %v7850_v5 = vld [vmem:[%s12574_s17 + $0x5] ss:$8 sm:$0xf]  ;;  %v3617_v19 = vrot.slane %v7853_v63, %v8718_v18 }
 0x66c   :  { %v3321_v9 = vrot.slane %v7850_v5, %v8703_v12  ;;  %v3333_v41 = vrot.slane %v7850_v5, %v8768_v45  ;;  %v3621_v38 = vrot.slane %v7853_v63, %v8706_v13 }
 0x66d   :  { %v2207_v42 = vadd.f32 %v7971_v26, %v7936_v11  ;;  %v3325_v11 = vrot.slane %v7850_v5, %v8718_v18  ;;  %v3329_v26 = vrot.slane %v7850_v5, %v8706_v13  ;;  %v3625_v5 = vrot.slane %v7853_v63, %v8768_v45 }
 0x66f   :  { %7981 = vmatpush3.msra.mxu0 %v2207_v42  ;;  %v3253_v42 = vrot.slane %v3239_v46, %v9734_v25  ;;  %v3334_v40 = vcombine.low %v3321_v9, %v3325_v11  ;;  %v3335_v55 = vcombine.low %v3329_v26, %v3333_v41  ;;  %v3627_v41 = vcombine.low %v3621_v38, %v3625_v5 }
 0x670   :  { %7983 = vmatmul.mubr.msk.f32.vlgmr.msra.gmra.mrb[8].mxu0 %vm2230_vm12, %v2229_v7  ;;  %7990 = vmatprep.subr.mxu0 %v9692_v3  ;;  %v3238_v7 = vcombine.low %v3225_v37, %v3229_v32  ;;  %v2851_v32 = vcombine.low %v2845_v29, %v2849_v15  ;;  %vm3785_vm12 = vcmask 269312  }
 0x671   :  { %7992 = vmatprep.mubr.msk.f32.mxu0 %vm8384_vm11, %v9692_v3  ;;  %v3342_v16 = vrot.slane %v3334_v40, %v9734_v25  ;;  %v3349_v50 = vrot.slane %v3335_v55, %v9734_v25 }
 0x672   :  { %v3246_v8 = vrot.slane %v3238_v7, %v9734_v25  ;;  %v2865_v9 = vrot.slane %v2851_v32, %v9734_v25  ;;  %v7862_v32 = vld [vmem:[%s12574_s17 + $0x41] ss:$8 sm:$0xf] }
 0x673   :  { %v3350_v54 = vcombine.low %v3342_v16, %v3349_v50 }
 0x674   :  { %v3254_v23 = vcombine.low %v3246_v8, %v3253_v42 }
 0x6fe   :  { %v2372_v51 = vpop.f32.mrb[8].mxu1 }
 0x6ff   :  { %v2376_v6 = vmax.f32 %v2372_v51, 0.0  ;;  %v7989_v30 = vpop.f32.mrb[9].mxu1  ;;  %v3439_v51 = vrot.slane %v3431_v24, %v9734_v25 }
 0x700   :  { %v2533_v30 = vcombine.high %v2531_v14, %v2531_v14  ;;  %v3641_v14 = vrot.slane %v3627_v41, %v9734_v25  ;;  %v4483_v41 = vrot.slane %v7862_v32, %v8703_v12 }
 0x701   :  { %7991 = vmatpush3.msk.msra.mxu0 %vm2380_vm13, %v2376_v6  ;;  %v3528_v6 = vcombine.low %v3515_v4, %v3519_v47  ;;  %v4194_v4 = vrot.slane %v7859_v56, %v8703_v12  ;;  %v4198_v47 = vrot.slane %v7859_v56, %v8718_v18 }
 0x702   :  { %7993 = vmatmul.mubr.msk.f32.vlgmr.msra.gmra.mrb[10].mxu0 %vm12825_vm4, %v2305_v31  ;;  %7995 = vmatprep.subr.mxu0 %v9692_v3  ;;  %v9827_v44 = vrot.slane %v2533_v30, %v9734_v25  ;;  %v4097_v30 = vrot.slane %v7858_v21, %v8703_v12 }
 0x703   :  { %7997 = vmatprep.mubr.msk.f32.mxu0 %vm8384_vm11, %v9692_v3  ;;  %v3536_v57 = vrot.slane %v3528_v6, %v9734_v25  ;;  %v4207_v6 = vcombine.low %v4194_v4, %v4198_v47  ;;  %vm12718_vm11 = vcmask 629760  }
 0x704   :  { %v2549_v37 = vcombine.high %v9827_v44, %v9827_v44 }
 0x705   :  { %v4215_v15 = vrot.slane %v4207_v6, %v9734_v25 }
 0x706   :  { %7843 = vmatprep.subr.msk.mxu1 %vm12716_vm14, %v2549_v37 }
 0x743   :  { %v2300_v61 = vpop.f32.mrb[8].mxu0 }
 0x744   :  { %v2304_v1 = vmax.f32 %v2300_v61, 0.0  ;;  %v7984_v28 = vpop.f32.mrb[9].mxu0  ;;  %v3446_v61 = vrot.slane %v3432_v59, %v9734_v25 }
 0x745   :  { %v2841_v28 = vrot.slane %v2832_v58, %v8718_v18 }
 0x746   :  { %7996 = vmatpush3.msk.msra.mxu0 %vm2380_vm13, %v2304_v1  ;;  %v3529_v1 = vcombine.low %v3523_v52, %v3527_v22  ;;  %v3447_v10 = vcombine.low %v3439_v51, %v3446_v61  ;;  %v4202_v52 = vrot.slane %v7859_v56, %v8706_v13  ;;  %v7860_v22 = vld [vmem:[%s12574_s17 + $0x27] ss:$8 sm:$0xf]  ;;  %v4206_v51 = vrot.slane %v7859_v56, %v8768_v45 }
 0x747   :  { %7998 = vmatmul.mubr.msk.f32.vlgmr.msra.gmra.mrb[10].mxu0 %vm12825_vm4, %v2305_v31  ;;  %v2837_v31 = vrot.slane %v2832_v58, %v8703_v12  ;;  %v4299_v37 = vrot.slane %v7860_v22, %v8706_v13  ;;  %vm3688_vm13 = vcmask 277504  }
 0x748   :  { %7625 = vmatprep.mubr.f32.mxu0 %v9692_v3  ;;  %v3148_v3 = vrot.slane %v3140_v0, %v9734_v25  ;;  %v7855_v0 = vld [vmem:[%s12574_s17 + $0x22] ss:$8 sm:$0xf]  ;;  %v3543_v36 = vrot.slane %v3529_v1, %v9734_v25  ;;  %v4208_v29 = vcombine.low %v4202_v52, %v4206_v51 }
 0x749   :  { %v3806_v8 = vrot.slane %v7855_v0, %v8703_v12  ;;  %v3810_v26 = vrot.slane %v7855_v0, %v8718_v18  ;;  %v3814_v42 = vrot.slane %v7855_v0, %v8706_v13  ;;  %v3818_v40 = vrot.slane %v7855_v0, %v8768_v45 }
 0x74a   :  { %v3156_v39 = vcombine.low %v3148_v3, %v3155_v33  ;;  %v2850_v3 = vcombine.low %v2837_v31, %v2841_v28  ;;  %v3613_v33 = vrot.slane %v7853_v63, %v8703_v12  ;;  %v3544_v7 = vcombine.low %v3536_v57, %v3543_v36  ;;  %v7856_v57 = vld [vmem:[%s12574_s17 + $0x23] ss:$8 sm:$0xf] }
 0x74b   :  { %v3819_v60 = vcombine.low %v3806_v8, %v3810_v26  ;;  %v3820_v50 = vcombine.low %v3814_v42, %v3818_v40  ;;  %v4101_v31 = vrot.slane %v7858_v21, %v8718_v18  ;;  %v4105_v28 = vrot.slane %v7858_v21, %v8706_v13  ;;  %v7857_v40 = vld [vmem:[%s12574_s17 + $0x24] ss:$8 sm:$0xf] }
 0x74c   :  { %3157 = vrot.lane.b32.xlu1 %v3156_v39, %s12598_s0  ;;  %v7854_v39 = vld [vmem:[%s12574_s17 + $0x21] ss:$8 sm:$0xf]  ;;  %v2858_v46 = vrot.slane %v2850_v3, %v9734_v25  ;;  %v3626_v11 = vcombine.low %v3613_v33, %v3617_v19  ;;  %v4109_v63 = vrot.slane %v7858_v21, %v8768_v45  ;;  %v4295_v33 = vrot.slane %v7860_v22, %v8718_v18  ;;  %s12616_s0 = smov 19  }
 0x74d   :  { %v3713_v55 = vrot.slane %v7854_v39, %v8718_v18  ;;  %v3717_v49 = vrot.slane %v7854_v39, %v8706_v13  ;;  %v3721_v20 = vrot.slane %v7854_v39, %v8768_v45  ;;  %v3827_v24 = vrot.slane %v3819_v60, %v9734_v25 }
 0x74e   :  { %v2866_v16 = vcombine.low %v2858_v46, %v2865_v9  ;;  %v3634_v17 = vrot.slane %v3626_v11, %v9734_v25  ;;  %v4110_v0 = vcombine.low %v4097_v30, %v4101_v31  ;;  %v4111_v3 = vcombine.low %v4105_v28, %v4109_v63 }
 0x74f   :  { %v3723_v59 = vcombine.low %v3717_v49, %v3721_v20  ;;  %v4222_v19 = vrot.slane %v4208_v29, %v9734_v25  ;;  %v3907_v8 = vrot.slane %v7856_v57, %v8718_v18  ;;  %v3911_v9 = vrot.slane %v7856_v57, %v8706_v13 }
 0x750   :  { %3255 = vrot.lane.b32.xlu1 %v3254_v23, %s12600_s2  ;;  %v3709_v23 = vrot.slane %v7854_v39, %v8703_v12  ;;  %2867 = vrot.lane.b32.xlu0 %v2866_v16, %s12592_s30  ;;  %v3642_v58 = vcombine.low %v3634_v17, %v3641_v14  ;;  %v4118_v38 = vrot.slane %v4110_v0, %v9734_v25  ;;  %s12732_s30 = smov 125   ;;  %s12742_s2 = smov 115  }
 0x751   :  { %v3737_v1 = vrot.slane %v3723_v59, %v9734_v25  ;;  %v4303_v39 = vrot.slane %v7860_v22, %v8768_v45  ;;  %v4125_v46 = vrot.slane %v4111_v3, %v9734_v25  ;;  %v4223_v11 = vcombine.low %v4215_v15, %v4222_v19  ;;  %v7867_v19 = vld [vmem:[%s12574_s17 + $0x46] ss:$8 sm:$0xf] }
 0x752   :  { %v3722_v53 = vcombine.low %v3709_v23, %v3713_v55  ;;  %v3915_v42 = vrot.slane %v7856_v57, %v8768_v45  ;;  %v4487_v16 = vrot.slane %v7862_v32, %v8718_v18  ;;  %v4491_v49 = vrot.slane %v7862_v32, %v8706_v13 }
 0x753   :  { %v4305_v26 = vcombine.low %v4299_v37, %v4303_v39  ;;  %v4126_v23 = vcombine.low %v4118_v38, %v4125_v46  ;;  %v4495_v14 = vrot.slane %v7862_v32, %v8768_v45  ;;  %v4001_v21 = vrot.slane %v7857_v40, %v8703_v12 }
 0x754   :  { %3351 = vrot.lane.b32.xlu1 %v3350_v54, %s12602_s25  ;;  %v3834_v54 = vrot.slane %v3820_v50, %v9734_v25  ;;  %v3730_v27 = vrot.slane %v3722_v53, %v9734_v25  ;;  %v3917_v60 = vcombine.low %v3911_v9, %v3915_v42  ;;  %v7866_v50 = vld [vmem:[%s12574_s17 + $0x45] ss:$8 sm:$0xf]  ;;  %v4496_v53 = vcombine.low %v4483_v41, %v4487_v16  ;;  %s12620_s25 = smov 31  }
 0x755   :  { %v4319_v17 = vrot.slane %v4305_v26, %v9734_v25  ;;  %v4497_v52 = vcombine.low %v4491_v49, %v4495_v14  ;;  %v4867_v51 = vrot.slane %v7866_v50, %v8703_v12  ;;  %v4871_v31 = vrot.slane %v7866_v50, %v8718_v18  ;;  %v7861_v26 = vld [vmem:[%s12574_s17 + $0x40] ss:$8 sm:$0xf] }
 0x756   :  { %v3835_v61 = vcombine.low %v3827_v24, %v3834_v54  ;;  %v3738_v36 = vcombine.low %v3730_v27, %v3737_v1  ;;  %v4005_v24 = vrot.slane %v7857_v40, %v8718_v18  ;;  %v3931_v47 = vrot.slane %v3917_v60, %v9734_v25  ;;  %v7863_v54 = vld [vmem:[%s12574_s17 + $0x42] ss:$8 sm:$0xf]  ;;  %v7864_v1 = vld [vmem:[%s12574_s17 + $0x43] ss:$8 sm:$0xf] }
 0x757   :  { %v4504_v59 = vrot.slane %v4496_v53, %v9734_v25  ;;  %v4013_v27 = vrot.slane %v7857_v40, %v8768_v45  ;;  %v4511_v30 = vrot.slane %v4497_v52, %v9734_v25  ;;  %v4578_v29 = vrot.slane %v7863_v54, %v8703_v12  ;;  %v7868_v60 = vld [vmem:[%s12574_s17 + $0x47] ss:$8 sm:$0xf] }
 0x758   :  { %3448 = vrot.lane.b32.xlu1 %v3447_v10, %s12608_s1  ;;  %v4291_v10 = vrot.slane %v7860_v22, %v8703_v12  ;;  %3836 = vrot.lane.b32.xlu0 %v3835_v61, %s12680_s10  ;;  %v4014_v22 = vcombine.low %v4001_v21, %v4005_v24  ;;  %v4875_v61 = vrot.slane %v7866_v50, %v8706_v13  ;;  %s12612_s1 = smov 13  }
 0x759   :  { %v4512_v15 = vcombine.low %v4504_v59, %v4511_v30  ;;  %v4880_v0 = vcombine.low %v4867_v51, %v4871_v31  ;;  %v4590_v37 = vrot.slane %v7863_v54, %v8768_v45  ;;  %v4673_v32 = vrot.slane %v7864_v1, %v8703_v12 }
 0x75a   :  { %v4304_v5 = vcombine.low %v4291_v10, %v4295_v33  ;;  %v4022_v63 = vrot.slane %v4014_v22, %v9734_v25  ;;  %v4582_v10 = vrot.slane %v7863_v54, %v8718_v18  ;;  %v4681_v46 = vrot.slane %v7864_v1, %v8706_v13 }
 0x75b   :  { %v4888_v38 = vrot.slane %v4880_v0, %v9734_v25  ;;  %v4976_v14 = vrot.slane %v7867_v19, %v8768_v45  ;;  %v4393_v24 = vrot.slane %v7861_v26, %v8718_v18  ;;  %v5060_v59 = vrot.slane %v7868_v60, %v8703_v12 }
 0x75c   :  { %3545 = vrot.lane.b32.xlu1 %v3544_v7, %s12784_s8  ;;  %v3903_v7 = vrot.slane %v7856_v57, %v8703_v12  ;;  %v4312_v55 = vrot.slane %v4304_v5, %v9734_v25  ;;  %4224 = vrot.lane.b32.xlu0 %v4223_v11, %s12723_s12  ;;  %v4879_v57 = vrot.slane %v7866_v50, %v8768_v45 }
 0x75d   :  { %v4591_v39 = vcombine.low %v4578_v29, %v4582_v10  ;;  %v4685_v11 = vrot.slane %v7864_v1, %v8768_v45  ;;  %v5064_v51 = vrot.slane %v7868_v60, %v8718_v18 }
 0x75e   :  { %v3916_v56 = vcombine.low %v3903_v7, %v3907_v8  ;;  %v4320_v4 = vcombine.low %v4312_v55, %v4319_v17  ;;  %v4881_v33 = vcombine.low %v4875_v61, %v4879_v57  ;;  %v4677_v7 = vrot.slane %v7864_v1, %v8718_v18 }
 0x75f   :  { %v4599_v42 = vrot.slane %v4591_v39, %v9734_v25  ;;  %v4687_v16 = vcombine.low %v4681_v46, %v4685_v11  ;;  %v4972_v17 = vrot.slane %v7867_v19, %v8706_v13  ;;  %v5072_v61 = vrot.slane %v7868_v60, %v8768_v45 }
 0x760   :  { %3643 = vrot.lane.b32.xlu1 %v3642_v58, %s12664_s18  ;;  %v3924_v20 = vrot.slane %v3916_v56, %v9734_v25  ;;  %v4009_v58 = vrot.slane %v7857_v40, %v8706_v13  ;;  %4321 = vrot.lane.b32.xlu0 %v4320_v4, %s12821_s7  ;;  %v4895_v8 = vrot.slane %v4881_v33, %v9734_v25  ;;  %v7876_v33 = vld [vmem:[%s12574_s17 + $0x65] ss:$8 sm:$0xf] }
 0x761   :  { %v4686_v41 = vcombine.low %v4673_v32, %v4677_v7  ;;  %v4964_v40 = vrot.slane %v7867_v19, %v8703_v12  ;;  %v4701_v21 = vrot.slane %v4687_v16, %v9734_v25  ;;  %v4397_v4 = vrot.slane %v7861_v26, %v8706_v13 }
 0x762   :  { %v3932_v6 = vcombine.low %v3924_v20, %v3931_v47  ;;  %v4015_v28 = vcombine.low %v4009_v58, %v4013_v27  ;;  %v4896_v55 = vcombine.low %v4888_v38, %v4895_v8  ;;  %v4389_v20 = vrot.slane %v7861_v26, %v8703_v12  ;;  %v7872_v47 = vld [vmem:[%s12574_s17 + $0x61] ss:$8 sm:$0xf]  ;;  %v7873_v8 = vld [vmem:[%s12574_s17 + $0x62] ss:$8 sm:$0xf] }
 0x763   :  { %v4694_v49 = vrot.slane %v4686_v41, %v9734_v25  ;;  %v4978_v52 = vcombine.low %v4972_v17, %v4976_v14  ;;  %v5221_v1 = vrot.slane %v7872_v47, %v8703_v12  ;;  %v5073_v57 = vcombine.low %v5060_v59, %v5064_v51 }
 0x764   :  { %3739 = vrot.lane.b32.xlu1 %v3738_v36, %s12667_s22  ;;  %v4586_v36 = vrot.slane %v7863_v54, %v8706_v13  ;;  %v4029_v3 = vrot.slane %v4015_v28, %v9734_v25  ;;  %4513 = vrot.lane.b32.xlu0 %v4512_v15, %s12726_s6  ;;  %v4401_v54 = vrot.slane %v7861_v26, %v8768_v45  ;;  %v7865_v28 = vld [vmem:[%s12574_s17 + $0x44] ss:$8 sm:$0xf] }
 0x765   :  { %v4702_v27 = vcombine.low %v4694_v49, %v4701_v21  ;;  %v4402_v22 = vcombine.low %v4389_v20, %v4393_v24  ;;  %v4992_v30 = vrot.slane %v4978_v52, %v9734_v25  ;;  %v5225_v29 = vrot.slane %v7872_v47, %v8718_v18  ;;  %v7877_v52 = vld [vmem:[%s12574_s17 + $0x66] ss:$8 sm:$0xf] }
 0x766   :  { %v4030_v5 = vcombine.low %v4022_v63, %v4029_v3  ;;  %v4592_v9 = vcombine.low %v4586_v36, %v4590_v37  ;;  %v4403_v31 = vcombine.low %v4397_v4, %v4401_v54  ;;  %v5229_v15 = vrot.slane %v7872_v47, %v8706_v13 }
 0x767   :  { %v4410_v63 = vrot.slane %v4402_v22, %v9734_v25  ;;  %v5233_v3 = vrot.slane %v7872_v47, %v8768_v45  ;;  %v5081_v37 = vrot.slane %v5073_v57, %v9734_v25  ;;  %v5234_v32 = vcombine.low %v5221_v1, %v5225_v29 }
 0x768   :  { %4127 = vrot.lane.b32.xlu1 %v4126_v23, %s12670_s11  ;;  %v4968_v23 = vrot.slane %v7867_v19, %v8718_v18  ;;  %v4606_v56 = vrot.slane %v4592_v9, %v9734_v25  ;;  %4897 = vrot.lane.b32.xlu0 %v4896_v55, %s12732_s30  ;;  %v4417_v10 = vrot.slane %v4403_v31, %v9734_v25  ;;  %v7875_v31 = vld [vmem:[%s12574_s17 + $0x64] ss:$8 sm:$0xf] }
 0x769   :  { %v4771_v19 = vrot.slane %v7865_v28, %v8703_v12  ;;  %v4775_v38 = vrot.slane %v7865_v28, %v8718_v18  ;;  %v5235_v46 = vcombine.low %v5229_v15, %v5233_v3  ;;  %v5242_v9 = vrot.slane %v5234_v32, %v9734_v25 }
 0x76a   :  { %v4977_v50 = vcombine.low %v4964_v40, %v4968_v23  ;;  %v4607_v53 = vcombine.low %v4599_v42, %v4606_v56  ;;  %v4418_v39 = vcombine.low %v4410_v63, %v4417_v10  ;;  %v4783_v11 = vrot.slane %v7865_v28, %v8768_v45  ;;  %v7874_v56 = vld [vmem:[%s12574_s17 + $0x63] ss:$8 sm:$0xf]  ;;  %v7878_v10 = vld [vmem:[%s12574_s17 + $0x67] ss:$8 sm:$0xf] }
 0x76b   :  { %v4784_v26 = vcombine.low %v4771_v19, %v4775_v38  ;;  %v5601_v42 = vrot.slane %v7876_v33, %v8703_v12  ;;  %v5249_v40 = vrot.slane %v5235_v46, %v9734_v25  ;;  %v5605_v23 = vrot.slane %v7876_v33, %v8718_v18 }
 0x76c   :  { %3933 = vrot.lane.b32.xlu1 %v3932_v6, %s12819_s20  ;;  %v4985_v58 = vrot.slane %v4977_v50, %v9734_v25  ;;  %v5068_v6 = vrot.slane %v7868_v60, %v8706_v13  ;;  %4703 = vrot.lane.b32.xlu0 %v4702_v27, %s12747_s26  ;;  %v5609_v55 = vrot.slane %v7876_v33, %v8706_v13 }
 0x76d   :  { %v4792_v17 = vrot.slane %v4784_v26, %v9734_v25  ;;  %v5613_v60 = vrot.slane %v7876_v33, %v8768_v45  ;;  %v5316_v49 = vrot.slane %v7873_v8, %v8703_v12  ;;  %v5250_v14 = vcombine.low %v5242_v9, %v5249_v40 }
 0x76e   :  { %v4993_v0 = vcombine.low %v4985_v58, %v4992_v30  ;;  %v5074_v36 = vcombine.low %v5068_v6, %v5072_v61  ;;  %v5614_v50 = vcombine.low %v5601_v42, %v5605_v23  ;;  %v5320_v20 = vrot.slane %v7873_v8, %v8718_v18 }
 0x76f   :  { %v5615_v24 = vcombine.low %v5609_v55, %v5613_v60  ;;  %v5328_v4 = vrot.slane %v7873_v8, %v8768_v45  ;;  %v5411_v47 = vrot.slane %v7874_v56, %v8703_v12  ;;  %v5415_v59 = vrot.slane %v7874_v56, %v8718_v18 }
 0x770   :  { %4031 = vrot.lane.b32.xlu1 %v4030_v5, %s12675_s19  ;;  %v5088_v7 = vrot.slane %v5074_v36, %v9734_v25  ;;  %v4779_v5 = vrot.slane %v7865_v28, %v8706_v13  ;;  %4419 = vrot.lane.b32.xlu0 %v4418_v39, %s12678_s24  ;;  %v5622_v58 = vrot.slane %v5614_v50, %v9734_v25 }
 0x771   :  { %v5329_v54 = vcombine.low %v5316_v49, %v5320_v20  ;;  %v5419_v27 = vrot.slane %v7874_v56, %v8706_v13  ;;  %v5629_v51 = vrot.slane %v5615_v24, %v9734_v25  ;;  %v5423_v30 = vrot.slane %v7874_v56, %v8768_v45  ;;  %v7882_v24 = vld [vmem:[%s12574_s17 + $0x83] ss:$8 sm:$0xf] }
 0x772   :  { %v5089_v41 = vcombine.low %v5081_v37, %v5088_v7  ;;  %v4785_v16 = vcombine.low %v4779_v5, %v4783_v11  ;;  %v5424_v1 = vcombine.low %v5411_v47, %v5415_v59  ;;  %v5696_v28 = vrot.slane %v7877_v52, %v8703_v12  ;;  %v7880_v7 = vld [vmem:[%s12574_s17 + $0x81] ss:$8 sm:$0xf] }
 0x773   :  { %v5337_v61 = vrot.slane %v5329_v54, %v9734_v25  ;;  %v5700_v63 = vrot.slane %v7877_v52, %v8718_v18  ;;  %v5630_v57 = vcombine.low %v5622_v58, %v5629_v51  ;;  %v5425_v15 = vcombine.low %v5419_v27, %v5423_v30  ;;  %v7879_v51 = vld [vmem:[%s12574_s17 + $0x80] ss:$8 sm:$0xf] }
 0x774   :  { %4608 = vrot.lane.b32.xlu1 %v4607_v53, %s12810_s28  ;;  %v5324_v53 = vrot.slane %v7873_v8, %v8706_v13  ;;  %v4799_v21 = vrot.slane %v4785_v16, %v9734_v25  ;;  %5251 = vrot.lane.b32.xlu0 %v5250_v14, %s12936_s5  ;;  %v5432_v36 = vrot.slane %v5424_v1, %v9734_v25  ;;  %v7884_v16 = vld [vmem:[%s12574_s17 + $0x85] ss:$8 sm:$0xf] }
 0x775   :  { %v5708_v3 = vrot.slane %v7877_v52, %v8768_v45  ;;  %v5709_v33 = vcombine.low %v5696_v28, %v5700_v63  ;;  %v5507_v37 = vrot.slane %v7875_v31, %v8703_v12  ;;  %v5439_v19 = vrot.slane %v5425_v15, %v9734_v25 }
 0x776   :  { %v4800_v22 = vcombine.low %v4792_v17, %v4799_v21  ;;  %v5330_v6 = vcombine.low %v5324_v53, %v5328_v4  ;;  %v5511_v38 = vrot.slane %v7875_v31, %v8718_v18  ;;  %v5515_v39 = vrot.slane %v7875_v31, %v8706_v13 }
 0x777   :  { %v5717_v5 = vrot.slane %v5709_v33, %v9734_v25  ;;  %v5519_v8 = vrot.slane %v7875_v31, %v8768_v45  ;;  %v5791_v9 = vrot.slane %v7878_v10, %v8703_v12  ;;  %v5440_v11 = vcombine.low %v5432_v36, %v5439_v19 }
 0x778   :  { %4994 = vrot.lane.b32.xlu1 %v4993_v0, %s12814_s3  ;;  %v5344_v29 = vrot.slane %v5330_v6, %v9734_v25  ;;  %v5704_v0 = vrot.slane %v7877_v52, %v8706_v13  ;;  %5631 = vrot.lane.b32.xlu0 %v5630_v57, %s12604_s4  ;;  %v5520_v26 = vcombine.low %v5507_v37, %v5511_v38  ;;  %s12610_s4 = smov 3  }
 0x779   :  { %v5795_v42 = vrot.slane %v7878_v10, %v8718_v18  ;;  %v5521_v23 = vcombine.low %v5515_v39, %v5519_v8  ;;  %v5803_v55 = vrot.slane %v7878_v10, %v8768_v45  ;;  %v5981_v56 = vrot.slane %v7880_v7, %v8703_v12 }
 0x77a   :  { %v5345_v32 = vcombine.low %v5337_v61, %v5344_v29  ;;  %v5710_v46 = vcombine.low %v5704_v0, %v5708_v3  ;;  %v5528_v17 = vrot.slane %v5520_v26, %v9734_v25  ;;  %v5985_v49 = vrot.slane %v7880_v7, %v8718_v18  ;;  %v7881_v29 = vld [vmem:[%s12574_s17 + $0x82] ss:$8 sm:$0xf] }
 0x77b   :  { %v5804_v60 = vcombine.low %v5791_v9, %v5795_v42  ;;  %v5989_v14 = vrot.slane %v7880_v7, %v8706_v13  ;;  %v5535_v20 = vrot.slane %v5521_v23, %v9734_v25  ;;  %v5993_v21 = vrot.slane %v7880_v7, %v8768_v45  ;;  %v7886_v23 = vld [vmem:[%s12574_s17 + $0x87] ss:$8 sm:$0xf] }
 0x77c   :  { %5090 = vrot.lane.b32.xlu1 %v5089_v41, %s12766_s29  ;;  %v5799_v41 = vrot.slane %v7878_v10, %v8706_v13  ;;  %v5724_v40 = vrot.slane %v5710_v46, %v9734_v25  ;;  %5441 = vrot.lane.b32.xlu0 %v5440_v11, %s12610_s4  ;;  %v5994_v47 = vcombine.low %v5981_v56, %v5985_v49  ;;  %v7885_v46 = vld [vmem:[%s12574_s17 + $0x86] ss:$8 sm:$0xf]  ;;  %s12634_s4 = smov 34  }
 0x77d   :  { %v5812_v4 = vrot.slane %v5804_v60, %v9734_v25  ;;  %v6361_v52 = vrot.slane %v7884_v16, %v8703_v12  ;;  %v6365_v58 = vrot.slane %v7884_v16, %v8718_v18  ;;  %v5536_v54 = vcombine.low %v5528_v17, %v5535_v20  ;;  %v7883_v20 = vld [vmem:[%s12574_s17 + $0x84] ss:$8 sm:$0xf] }
 0x77e   :  { %v5725_v50 = vcombine.low %v5717_v5, %v5724_v40  ;;  %v5805_v53 = vcombine.low %v5799_v41, %v5803_v55  ;;  %v5995_v27 = vcombine.low %v5989_v14, %v5993_v21  ;;  %v6002_v6 = vrot.slane %v5994_v47, %v9734_v25 }
 0x77f   :  { %v6373_v30 = vrot.slane %v7884_v16, %v8768_v45  ;;  %v6374_v31 = vcombine.low %v6361_v52, %v6365_v58  ;;  %v6171_v61 = vrot.slane %v7882_v24, %v8703_v12  ;;  %v6175_v63 = vrot.slane %v7882_v24, %v8718_v18 }
 0x780   :  { %4801 = vrot.lane.b32.xlu1 %v4800_v22, %s12742_s2  ;;  %v5819_v59 = vrot.slane %v5805_v53, %v9734_v25  ;;  %v6369_v22 = vrot.slane %v7884_v16, %v8706_v13  ;;  %5537 = vrot.lane.b32.xlu0 %v5536_v54, %s12612_s1  ;;  %v6009_v28 = vrot.slane %v5995_v27, %v9734_v25  ;;  %s12614_s1 = smov 18  }
 0x781   :  { %v6179_v57 = vrot.slane %v7882_v24, %v8706_v13  ;;  %v6382_v0 = vrot.slane %v6374_v31, %v9734_v25  ;;  %v6183_v10 = vrot.slane %v7882_v24, %v8768_v45  ;;  %v5887_v36 = vrot.slane %v7879_v51, %v8703_v12 }
 0x782   :  { %v5820_v1 = vcombine.low %v5812_v4, %v5819_v59  ;;  %v6375_v15 = vcombine.low %v6369_v22, %v6373_v30  ;;  %v6010_v3 = vcombine.low %v6002_v6, %v6009_v28  ;;  %v6184_v33 = vcombine.low %v6171_v61, %v6175_v63  ;;  %v7888_v59 = vld [vmem:[%s12574_s17 + $0xa1] ss:$8 sm:$0xf] }
 0x783   :  { %v5891_v37 = vrot.slane %v7879_v51, %v8718_v18  ;;  %v6185_v38 = vcombine.low %v6179_v57, %v6183_v10  ;;  %v5899_v39 = vrot.slane %v7879_v51, %v8768_v45  ;;  %v6076_v7 = vrot.slane %v7881_v29, %v8703_v12 }
 0x784   :  { %5346 = vrot.lane.b32.xlu1 %v5345_v32, %s12606_s9  ;;  %v5895_v32 = vrot.slane %v7879_v51, %v8706_v13  ;;  %v6389_v19 = vrot.slane %v6375_v15, %v9734_v25  ;;  %v6192_v5 = vrot.slane %v6184_v33, %v9734_v25  ;;  %v6080_v9 = vrot.slane %v7881_v29, %v8718_v18  ;;  %v7892_v15 = vld [vmem:[%s12574_s17 + $0xa5] ss:$8 sm:$0xf]  ;;  %s12628_s9 = smov 30  }
 0x785   :  { %v5900_v8 = vcombine.low %v5887_v36, %v5891_v37  ;;  %v6084_v11 = vrot.slane %v7881_v29, %v8706_v13  ;;  %v6199_v42 = vrot.slane %v6185_v38, %v9734_v25  ;;  %v6088_v40 = vrot.slane %v7881_v29, %v8768_v45 }
 0x786   :  { %v6390_v26 = vcombine.low %v6382_v0, %v6389_v19  ;;  %v5901_v41 = vcombine.low %v5895_v32, %v5899_v39  ;;  %v6089_v56 = vcombine.low %v6076_v7, %v6080_v9  ;;  %v6456_v16 = vrot.slane %v7885_v46, %v8703_v12 }
 0x787   :  { %v5908_v55 = vrot.slane %v5900_v8, %v9734_v25  ;;  %v6460_v17 = vrot.slane %v7885_v46, %v8718_v18  ;;  %v6200_v60 = vcombine.low %v6192_v5, %v6199_v42  ;;  %v6090_v14 = vcombine.low %v6084_v11, %v6088_v40 }
 0x788   :  { %5726 = vrot.lane.b32.xlu1 %v5725_v50, %s12938_s23  ;;  %v5915_v49 = vrot.slane %v5901_v41, %v9734_v25  ;;  %v6464_v50 = vrot.slane %v7885_v46, %v8706_v13  ;;  %v6097_v53 = vrot.slane %v6089_v56, %v9734_v25  ;;  %v6468_v21 = vrot.slane %v7885_v46, %v8768_v45  ;;  %v7890_v46 = vld [vmem:[%s12574_s17 + $0xa3] ss:$8 sm:$0xf] }
 0x789   :  { %v6469_v24 = vcombine.low %v6456_v16, %v6460_v17  ;;  %v6551_v4 = vrot.slane %v7886_v23, %v8703_v12  ;;  %v6104_v52 = vrot.slane %v6090_v14, %v9734_v25  ;;  %v6555_v58 = vrot.slane %v7886_v23, %v8718_v18  ;;  %v7887_v16 = vld [vmem:[%s12574_s17 + $0xa0] ss:$8 sm:$0xf] }
 0x78a   :  { %v5916_v47 = vcombine.low %v5908_v55, %v5915_v49  ;;  %v6559_v54 = vrot.slane %v7886_v23, %v8706_v13  ;;  %v6470_v27 = vcombine.low %v6464_v50, %v6468_v21  ;;  %v6563_v51 = vrot.slane %v7886_v23, %v8768_v45 }
 0x78b   :  { %v6477_v22 = vrot.slane %v6469_v24, %v9734_v25  ;;  %v6267_v6 = vrot.slane %v7883_v20, %v8703_v12  ;;  %v6105_v30 = vcombine.low %v6097_v53, %v6104_v52  ;;  %v6564_v31 = vcombine.low %v6551_v4, %v6555_v58 }
 0x78c   :  { %5821 = vrot.lane.b32.xlu1 %v5820_v1, %s12937_s27  ;;  %v6271_v61 = vrot.slane %v7883_v20, %v8718_v18  ;;  %v6275_v1 = vrot.slane %v7883_v20, %v8706_v13  ;;  %v6484_v28 = vrot.slane %v6470_v27, %v9734_v25  ;;  %v6565_v63 = vcombine.low %v6559_v54, %v6563_v51  ;;  %v7893_v51 = vld [vmem:[%s12574_s17 + $0xa6] ss:$8 sm:$0xf] }
 0x78d   :  { %v6279_v57 = vrot.slane %v7883_v20, %v8768_v45  ;;  %v6741_v29 = vrot.slane %v7888_v59, %v8703_v12  ;;  %6106 = vrot.lane.b32.xlu0 %v6105_v30, %s12616_s0  ;;  %v6572_v0 = vrot.slane %v6564_v31, %v9734_v25  ;;  %v6745_v36 = vrot.slane %v7888_v59, %v8718_v18  ;;  %s12618_s0 = smov 32  }
 0x78e   :  { %v6280_v10 = vcombine.low %v6267_v6, %v6271_v61  ;;  %v6485_v33 = vcombine.low %v6477_v22, %v6484_v28  ;;  %v6579_v37 = vrot.slane %v6565_v63, %v9734_v25  ;;  %v6753_v19 = vrot.slane %v7888_v59, %v8768_v45 }
 0x78f   :  { %v6281_v32 = vcombine.low %v6275_v1, %v6279_v57  ;;  %v6754_v38 = vcombine.low %v6741_v29, %v6745_v36  ;;  %v7121_v39 = vrot.slane %v7892_v15, %v8703_v12  ;;  %v7125_v7 = vrot.slane %v7892_v15, %v8718_v18  ;;  %v7894_v57 = vld [vmem:[%s12574_s17 + $0xa7] ss:$8 sm:$0xf] }
 0x790   :  { %6011 = vrot.lane.b32.xlu1 %v6010_v3, %s12614_s1  ;;  %v6749_v3 = vrot.slane %v7888_v59, %v8706_v13  ;;  %s12624_s1 = smov 29   ;;  %v6580_v5 = vcombine.low %v6572_v0, %v6579_v37  ;;  %v6288_v8 = vrot.slane %v6280_v10, %v9734_v25  ;;  %v7129_v11 = vrot.slane %v7892_v15, %v8706_v13 }
 0x791   :  { %6486 = vrot.lane.b32.xlu0 %v6485_v33, %s12618_s0  ;;  %v6762_v42 = vrot.slane %v6754_v38, %v9734_v25  ;;  %v7133_v41 = vrot.slane %v7892_v15, %v8768_v45  ;;  %v7134_v40 = vcombine.low %v7121_v39, %v7125_v7  ;;  %v6931_v55 = vrot.slane %v7890_v46, %v8703_v12  ;;  %s12622_s0 = smov 33  }
 0x792   :  { %v6755_v9 = vcombine.low %v6749_v3, %v6753_v19  ;;  %v6935_v56 = vrot.slane %v7890_v46, %v8718_v18  ;;  %v6939_v49 = vrot.slane %v7890_v46, %v8706_v13  ;;  %v6943_v50 = vrot.slane %v7890_v46, %v8768_v45 }
 0x793   :  { %v7135_v17 = vcombine.low %v7129_v11, %v7133_v41  ;;  %v6647_v24 = vrot.slane %v7887_v16, %v8703_v12  ;;  %v6651_v4 = vrot.slane %v7887_v16, %v8718_v18  ;;  %v6655_v54 = vrot.slane %v7887_v16, %v8706_v13 }
 0x794   :  { %6391 = vrot.lane.b32.xlu1 %v6390_v26, %s12620_s25  ;;  %v6295_v26 = vrot.slane %v6281_v32, %v9734_v25  ;;  %v6769_v23 = vrot.slane %v6755_v9, %v9734_v25  ;;  %v6944_v20 = vcombine.low %v6931_v55, %v6935_v56  ;;  %s12626_s25 = smov 35   ;;  %v6945_v52 = vcombine.low %v6939_v49, %v6943_v50  ;;  %v7891_v32 = vld [vmem:[%s12574_s17 + $0xa4] ss:$8 sm:$0xf] }
 0x795   :  { %6581 = vrot.lane.b32.xlu0 %v6580_v5, %s12622_s0  ;;  %v7149_v21 = vrot.slane %v7135_v17, %v9734_v25  ;;  %v6659_v59 = vrot.slane %v7887_v16, %v8768_v45  ;;  %v6660_v22 = vcombine.low %v6647_v24, %v6651_v4  ;;  %v7216_v10 = vrot.slane %v7893_v51, %v8703_v12  ;;  %s12764_s0 = smov 47  }
 0x796   :  { %v6770_v14 = vcombine.low %v6762_v42, %v6769_v23  ;;  %v6296_v53 = vcombine.low %v6288_v8, %v6295_v26  ;;  %v6952_v58 = vrot.slane %v6944_v20, %v9734_v25  ;;  %v6959_v6 = vrot.slane %v6945_v52, %v9734_v25 }
 0x797   :  { %v6661_v30 = vcombine.low %v6655_v54, %v6659_v59  ;;  %v6668_v1 = vrot.slane %v6660_v22, %v9734_v25  ;;  %v7220_v3 = vrot.slane %v7893_v51, %v8718_v18  ;;  %v7224_v33 = vrot.slane %v7893_v51, %v8706_v13 }
 0x798   :  { %6201 = vrot.lane.b32.xlu1 %v6200_v60, %s12624_s1  ;;  %v7142_v60 = vrot.slane %v7134_v40, %v9734_v25  ;;  %s12753_s1 = smov 48   ;;  %v6960_v29 = vcombine.low %v6952_v58, %v6959_v6  ;;  %v7228_v37 = vrot.slane %v7893_v51, %v8768_v45  ;;  %v7311_v38 = vrot.slane %v7894_v57, %v8703_v12 }
 0x799   :  { %6297 = vrot.lane.b32.xlu0 %v6296_v53, %s12628_s9  ;;  %v6675_v15 = vrot.slane %v6661_v30, %v9734_v25  ;;  %v7229_v7 = vcombine.low %v7216_v10, %v7220_v3  ;;  %v7315_v5 = vrot.slane %v7894_v57, %v8718_v18  ;;  %v7319_v9 = vrot.slane %v7894_v57, %v8706_v13  ;;  %s12632_s9 = smov 45  }
 0x79a   :  { %v7150_v27 = vcombine.low %v7142_v60, %v7149_v21  ;;  %v7230_v46 = vcombine.low %v7224_v33, %v7228_v37  ;;  %v7323_v11 = vrot.slane %v7894_v57, %v8768_v45  ;;  %v7027_v26 = vrot.slane %v7891_v32, %v8703_v12  ;;  %v7895_v21 = vld [vmem:[%s12574_s17 + $0xc0] ss:$8 sm:$0xf] }
 0x79b   :  { %v6676_v8 = vcombine.low %v6668_v1, %v6675_v15  ;;  %v7237_v41 = vrot.slane %v7229_v7, %v9734_v25  ;;  %v7324_v23 = vcombine.low %v7311_v38, %v7315_v5  ;;  %v7031_v56 = vrot.slane %v7891_v32, %v8718_v18 }
 0x79c   :  { %5917 = vrot.lane.b32.xlu1 %v5916_v47, %s12939_s16  ;;  %v7889_v47 = vld [vmem:[%s12574_s17 + $0xa2] ss:$8 sm:$0xf]  ;;  %v7244_v40 = vrot.slane %v7230_v46, %v9734_v25  ;;  %v7325_v55 = vcombine.low %v7319_v9, %v7323_v11  ;;  %v7035_v16 = vrot.slane %v7891_v32, %v8706_v13  ;;  %v7039_v17 = vrot.slane %v7891_v32, %v8768_v45 }
 0x79d   :  { %v6836_v31 = vrot.slane %v7889_v47, %v8703_v12  ;;  %v6840_v61 = vrot.slane %v7889_v47, %v8718_v18  ;;  %v6844_v28 = vrot.slane %v7889_v47, %v8706_v13  ;;  %v6848_v63 = vrot.slane %v7889_v47, %v8768_v45  ;;  %v8372_v32 = vld [vmem:[#allocation2] sm:$0xff] }
 0x79e   :  { %v7245_v60 = vcombine.low %v7237_v41, %v7244_v40  ;;  %v7332_v49 = vrot.slane %v7324_v23, %v9734_v25  ;;  %v7339_v50 = vrot.slane %v7325_v55, %v9734_v25  ;;  %v7040_v20 = vcombine.low %v7027_v26, %v7031_v56  ;;  %v5214_v55 = vld [vmem:[#allocation4 + $0xa] sm:$0x3] }
 0x79f   :  { %v6849_v0 = vcombine.low %v6836_v31, %v6840_v61  ;;  %v6850_v36 = vcombine.low %v6844_v28, %v6848_v63  ;;  %v7041_v53 = vcombine.low %v7035_v16, %v7039_v17  ;;  %v7407_v52 = vrot.slane %v7895_v21, %v8703_v12 }
 0x7a0   :  { %6771 = vrot.lane.b32.xlu1 %v6770_v14, %s12626_s25  ;;  %s12630_s25 = smov 46   ;;  %v10220_v14 = vpop.permute.xlu1 %2963  ;;  %v7340_v24 = vcombine.low %v7332_v49, %v7339_v50  ;;  %v7048_v4 = vrot.slane %v7040_v20, %v9734_v25  ;;  %v7411_v58 = vrot.slane %v7895_v21, %v8718_v18  ;;  %v7415_v54 = vrot.slane %v7895_v21, %v8706_v13  ;;  %v5309_v20 = vld [vmem:[#allocation4 + $0xa] sm:$0x3] }
 0x7a1   :  { %v6857_v19 = vrot.slane %v6849_v0, %v9734_v25  ;;  %v6864_v39 = vrot.slane %v6850_v36, %v9734_v25  ;;  %v7055_v47 = vrot.slane %v7041_v53, %v9734_v25  ;;  %v7419_v59 = vrot.slane %v7895_v21, %v8768_v45 }
 0x7a3   :  { %v6865_v42 = vcombine.low %v6857_v19, %v6864_v39  ;;  %v7421_v22 = vcombine.low %v7415_v54, %v7419_v59  ;;  %v7056_v6 = vcombine.low %v7048_v4, %v7055_v47  ;;  %v5404_v4 = vld [vmem:[#allocation4 + $0xa] sm:$0x3] }
 0x7a4   :  { %7151 = vrot.lane.b32.xlu1 %v7150_v27, %s12753_s1  ;;  %v7420_v27 = vcombine.low %v7407_v52, %v7411_v58  ;;  %v10234_v51 = vpop.permute.xlu1 %3060 }
 0x7a5   :  { %6866 = vrot.lane.b32.xlu0 %v6865_v42, %s12632_s9  ;;  %s12773_s9 = smov 49   ;;  %v7435_v31 = vrot.slane %v7421_v22, %v9734_v25 }
 0x7a6   :  { %v7428_v30 = vrot.slane %v7420_v27, %v9734_v25 }
 0x7a8   :  { %6961 = vrot.lane.b32.xlu1 %v6960_v29, %s12630_s25  ;;  %s12775_s25 = smov 50   ;;  %v7436_v61 = vcombine.low %v7428_v30, %v7435_v31 }
 0x7a9   :  { %7246 = vrot.lane.b32.xlu0 %v7245_v60, %s12773_s9 }
 0x7ac   :  { %6677 = vrot.lane.b32.xlu1 %v6676_v8, %s12634_s4  ;;  %s12782_s4 = smov 51  }
 0x7ad   :  { %7341 = vrot.lane.b32.xlu0 %v7340_v24, %s12775_s25 }
 0x7b0   :  { %7437 = vrot.lane.b32.xlu1 %v7436_v61, %s12782_s4  ;;  %v5500_v61 = vld [vmem:[#allocation4 + $0xa] sm:$0x3] }
 0x7b1   :  { %7057 = vrot.lane.b32.xlu0 %v7056_v6, %s12764_s0  ;;  %v5594_v6 = vld [vmem:[#allocation4 + $0xa] sm:$0x3] }
 0x7be   :  { %v10241_v1 = vpop.permute.xlu1 %3157 }
 0x7bf   :  { %12940 = vst [vmem:[#allocation12_spill] sm:$0xff] %v10241_v1 }
 0x7c2   :  { %v10243_v29 = vpop.permute.xlu1 %3255  ;;  %v10251_v37 = vpop.permute.xlu0 %2867 }
 0x7c6   :  { %v10245_v15 = vpop.permute.xlu1 %3351 }
 0x7ca   :  { %v10247_v0 = vpop.permute.xlu1 %3448  ;;  %v10259_v38 = vpop.permute.xlu0 %3836 }
 0x7cb   :  { %12941 = vst [vmem:[#allocation13_spill] sm:$0xff] %v10247_v0  ;;  %12943 = vst [vmem:[#allocation15_spill] sm:$0xff] %v10259_v38 }
 0x7ce   :  { %v10249_v33 = vpop.permute.xlu1 %3545  ;;  %v10263_v7 = vpop.permute.xlu0 %4224 }
 0x7cf   :  { %12942 = vst [vmem:[#allocation14_spill] sm:$0xff] %v10249_v33  ;;  %12945 = vst [vmem:[#allocation17_spill] sm:$0xff] %v10263_v7 }
 0x7d2   :  { %v10256_v19 = vpop.permute.xlu1 %3643  ;;  %v10267_v5 = vpop.permute.xlu0 %4321 }
 0x7d3   :  { %12947 = vst [vmem:[#allocation19_spill] sm:$0xff] %v10267_v5 }
 0x7d6   :  { %v10261_v39 = vpop.permute.xlu1 %3739 }
 0x7d7   :  { %12944 = vst [vmem:[#allocation16_spill] sm:$0xff] %v10261_v39 }
 0x7da   :  { %v10265_v46 = vpop.permute.xlu1 %4127 }
 0x7db   :  { %12946 = vst [vmem:[#allocation18_spill] sm:$0xff] %v10265_v46 }
 0x7de   :  { %v10269_v8 = vpop.permute.xlu1 %3933 }
 0x7df   :  { %12948 = vst [vmem:[#allocation20_spill] sm:$0xff] %v10269_v8 }
 0x7e2   :  { %v10273_v9 = vpop.permute.xlu1 %4031 }
 0x7e3   :  { %12950 = vst [vmem:[#allocation22_spill] sm:$0xff] %v10273_v9 }
 0x7e6   :  { %v10277_v26 = vpop.permute.xlu1 %4608 }
 0x7e7   :  { %12952 = vst [vmem:[#allocation24_spill] sm:$0xff] %v10277_v26 }
 0x7ea   :  { %v10281_v41 = vpop.permute.xlu1 %4994 }
 0x7eb   :  { %12954 = vst [vmem:[#allocation26_spill] sm:$0xff] %v10281_v41 }
 0x7ee   :  { %v10285_v23 = vpop.permute.xlu1 %5090 }
 0x7ef   :  { %12955 = vst [vmem:[#allocation27_spill] sm:$0xff] %v10285_v23 }
 0x7f2   :  { %v10292_v60 = vpop.permute.xlu1 %4801 }
 0x7f6   :  { %v10296_v53 = vpop.permute.xlu1 %5346 }
 0x7f7   :  { %12958 = vst [vmem:[#allocation30_spill] sm:$0xff] %v10296_v53  ;;  %v12643_v24 = vrot.slane %v10296_v53, 6 }
 0x7f9   :  { %v5353_v52 = vmul.f32 %v12643_v24, %v5309_v20 }
 0x7fa   :  { %v10310_v22 = vpop.permute.xlu1 %5726 }
 0x7fb   :  { %v5379_v59 = vrot.slane %v5353_v52, %v9734_v25  ;;  %12960 = vst [vmem:[#allocation32_spill] sm:$0xff] %v10310_v22 }
 0x7fd   :  { %v5380_v31 = vcombine.low %v5379_v59, %v5379_v59 }
 0x81a   :  { %v2523_v28 = vpop.f32.mrb[10].mxu0 }
 0x81b   :  { %v2527_v63 = vmul.f32 0.5, %v2523_v28  ;;  %v7999_v57 = vpop.f32.mrb[11].mxu0 }
 0x81d   :  { %8358 = vtanh.f32 %v2527_v63 }
 0x827   :  { %v8359_v10 = vpop.eup %8358 }
 0x828   :  { %v2529_v36 = vadd.f32 1.0, %v8359_v10  ;;  %v12642_v10 = vrot.slane %v10310_v22, 6 }
 0x82a   :  { %v2530_v3 = vmul.f32 0.5, %v2529_v36  ;;  %v10319_v36 = vpop.permute.xlu1 %5821 }
 0x82b   :  { %12962 = vst [vmem:[#allocation34_spill] sm:$0xff] %v10319_v36 }
 0x82c   :  { %7842 = vmatmul.mubr.msk.f32.vlgmr.msra.gmra.mrb[10].mxu1 %vm12800_vm15, %v2530_v3 }
 0x82d   :  { %7844 = vmatpush1.msk.msra.mxu1 %vm12716_vm14, %v9827_v44  ;;  %2698 = vmatprep.mubr.f32.mxu1 %v8372_v32  ;;  %v10271_v44 = vpop.permute.xlu0 %4513  ;;  %vm3397_vm14 = vcmask 375808  }
 0x82e   :  { %12949 = vst [vmem:[#allocation21_spill] sm:$0xff] %v10271_v44  ;;  %v10330_v59 = vpop.permute.xlu1 %6011 }
 0x82f   :  { %12963 = vst [vmem:[#allocation35_spill] sm:$0xff] %v10330_v59 }
 0x830   :  { %7845 = vmatmul.mubr.msk.f32.vlgmr.msra.gmra.mrb[12].mxu1 %vm12800_vm15, %v2530_v3 }
 0x831   :  { %7696 = vmatprep.mubr.f32.mxu1 %v8372_v32  ;;  %v10275_v11 = vpop.permute.xlu0 %4897  ;;  %v5689_v32 = vld [vmem:[#allocation4 + $0xa] sm:$0x3] }
 0x832   :  { %12951 = vst [vmem:[#allocation23_spill] sm:$0xff] %v10275_v11 }
 0x835   :  { %v10279_v42 = vpop.permute.xlu0 %4703 }
 0x836   :  { %12953 = vst [vmem:[#allocation25_spill] sm:$0xff] %v10279_v42 }
 0x839   :  { %v10283_v40 = vpop.permute.xlu0 %4419 }
 0x83d   :  { %v10287_v56 = vpop.permute.xlu0 %5251 }
 0x83e   :  { %12956 = vst [vmem:[#allocation28_spill] sm:$0xff] %v10287_v56  ;;  %v12640_v16 = vrot.slane %v10287_v56, 6 }
 0x840   :  { %v5258_v17 = vmul.f32 %v12640_v16, %v5214_v55 }
 0x841   :  { %v10294_v50 = vpop.permute.xlu0 %5631 }
 0x842   :  { %v5278_v49 = vcombine.low %v5258_v17, %v5258_v17  ;;  %12957 = vst [vmem:[#allocation29_spill] sm:$0xff] %v10294_v50  ;;  %v12639_v54 = vrot.slane %v10294_v50, 6  ;;  %v5784_v17 = vld [vmem:[#allocation4 + $0xa] sm:$0x3] }
 0x844   :  { %v5285_v21 = vrot.slane %v5278_v49, %v9734_v25  ;;  %v5638_v57 = vmul.f32 %v12639_v54, %v5594_v6  ;;  %v12636_v49 = vrot.slane %v10319_v36, 6 }
 0x845   :  { %v10300_v47 = vpop.permute.xlu0 %5441 }
 0x846   :  { %12959 = vst [vmem:[#allocation31_spill] sm:$0xff] %v10300_v47  ;;  %5294 = vrot.lane.b32.xlu1 %v5285_v21, %s12766_s29  ;;  %v12637_v58 = vrot.slane %v10300_v47, 6  ;;  %v5658_v21 = vcombine.low %v5638_v57, %v5638_v57  ;;  %v5828_v52 = vmul.f32 %v12636_v49, %v5784_v17  ;;  %v7114_v47 = vld [vmem:[#allocation4 + $0xa] sm:$0x3]  ;;  %s13031_s29 = smov 13  }
 0x848   :  { %v5448_v27 = vmul.f32 %v12637_v58, %v5404_v4  ;;  %v5733_v4 = vmul.f32 %v12642_v10, %v5689_v32 }
 0x849   :  { %v10312_v28 = vpop.permute.xlu0 %5537 }
 0x84a   :  { %v5468_v30 = vcombine.low %v5448_v27, %v5448_v27  ;;  %12961 = vst [vmem:[#allocation33_spill] sm:$0xff] %v10312_v28  ;;  %v12638_v63 = vrot.slane %v10312_v28, 6  ;;  %5389 = vrot.lane.b32.xlu1 %v5380_v31, %s12814_s3  ;;  %v5759_v6 = vrot.slane %v5733_v4, %v9734_v25  ;;  %v10335_v31 = vpop.permute.xlu1 %6391 }
 0x84b   :  { %12964 = vst [vmem:[#allocation36_spill] sm:$0xff] %v10335_v31 }
 0x84c   :  { %v5475_v3 = vrot.slane %v5468_v30, %v9734_v25  ;;  %v5544_v55 = vmul.f32 %v12638_v63, %v5500_v61  ;;  %v5848_v30 = vcombine.low %v5828_v52, %v5828_v52  ;;  %v5665_v61 = vrot.slane %v5658_v21, %v9734_v25  ;;  %v5880_v21 = vld [vmem:[#allocation4 + $0xa] sm:$0x3] }
 0x84d   :  { %v10338_v57 = vpop.permute.xlu0 %6106  ;;  %v5760_v17 = vcombine.low %v5759_v6, %v5759_v6  ;;  %v6164_v63 = vld [vmem:[#allocation4 + $0xa] sm:$0x3] }
 0x84e   :  { %v5476_v20 = vcombine.low %v5475_v3, %v5475_v3  ;;  %v5570_v27 = vrot.slane %v5544_v55, %v9734_v25  ;;  %12965 = vst [vmem:[#allocation37_spill] sm:$0xff] %v10338_v57  ;;  %v12641_v3 = vrot.slane %v10330_v59, 6  ;;  %v10342_v32 = vpop.permute.xlu1 %6201  ;;  %v5855_v55 = vrot.slane %v5848_v30, %v9734_v25  ;;  %v6069_v30 = vld [vmem:[#allocation4 + $0xa] sm:$0x3] }
 0x850   :  { %5485 = vrot.lane.b32.xlu1 %v5476_v20, %s12732_s30  ;;  %v5974_v20 = vld [vmem:[#allocation4 + $0xa] sm:$0x3]  ;;  %v5856_v58 = vcombine.low %v5855_v55, %v5855_v55  ;;  %s13005_s30 = smov 29  }
 0x851   :  { %v10345_v4 = vpop.permute.xlu0 %6486  ;;  %v6018_v52 = vmul.f32 %v12641_v3, %v5974_v20 }
 0x852   :  { %12966 = vst [vmem:[#allocation38_spill] sm:$0xff] %v10345_v4  ;;  %v10351_v49 = vpop.permute.xlu1 %5917 }
 0x853   :  { %12967 = vst [vmem:[#allocation39_spill] sm:$0xff] %v10351_v49  ;;  %v12644_v6 = vrot.slane %v10351_v49, 6  ;;  %v6038_v20 = vcombine.low %v6018_v52, %v6018_v52  ;;  %v12650_v52 = vrot.slane %v10335_v31, 6 }
 0x854   :  { %5579 = vrot.lane.b32.xlu1 %v5570_v27, %s12742_s2  ;;  %v12647_v27 = vrot.slane %v10342_v32, 6  ;;  %s13011_s2 = smov 31  }
 0x855   :  { %v5924_v54 = vmul.f32 %v12644_v6, %v5880_v21  ;;  %v10357_v16 = vpop.permute.xlu0 %6581  ;;  %v6045_v21 = vrot.slane %v6038_v20, %v9734_v25 }
 0x856   :  { %v6208_v3 = vmul.f32 %v12647_v27, %v6164_v63  ;;  %v12652_v20 = vrot.slane %v10357_v16, 6 }
 0x857   :  { %v5950_v55 = vrot.slane %v5924_v54, %v9734_v25  ;;  %v6260_v54 = vld [vmem:[#allocation4 + $0xa] sm:$0x3] }
 0x858   :  { %5674 = vrot.lane.b32.xlu1 %v5665_v61, %s12747_s26  ;;  %v12646_v61 = vrot.slane %v10338_v57, 6  ;;  %v6228_v10 = vcombine.low %v6208_v3, %v6208_v3  ;;  %v6398_v3 = vmul.f32 %v12650_v52, %v6354_v48  ;;  %s13014_s26 = smov 18  }
 0x859   :  { %v10368_v6 = vpop.permute.xlu0 %6297 }
 0x85a   :  { %v12653_v63 = vrot.slane %v10368_v6, 6  ;;  %v6418_v27 = vcombine.low %v6398_v3, %v6398_v3 }
 0x85c   :  { %5769 = vrot.lane.b32.xlu1 %v5760_v17, %s12810_s28  ;;  %v6113_v17 = vmul.f32 %v12646_v61, %v6069_v30  ;;  %v6235_v30 = vrot.slane %v6228_v10, %v9734_v25 }
 0x85e   :  { %v6139_v24 = vrot.slane %v6113_v17, %v9734_v25  ;;  %v12651_v17 = vrot.slane %v10345_v4, 6  ;;  %v6236_v61 = vcombine.low %v6235_v30, %v6235_v30  ;;  %v6425_v30 = vrot.slane %v6418_v27, %v9734_v25  ;;  %v6924_v4 = vld [vmem:[#allocation4 + $0xa] sm:$0x3] }
 0x860   :  { %5865 = vrot.lane.b32.xlu1 %v5856_v58, %s12726_s6  ;;  %v6140_v58 = vcombine.low %v6139_v24, %v6139_v24  ;;  %v6544_v24 = vld [vmem:[#allocation4 + $0xa] sm:$0x3]  ;;  %s13002_s6 = smov 35  }
 0x861   :  { %v6588_v49 = vmul.f32 %v12652_v20, %v6544_v24  ;;  %v10393_v24 = vpop.permute.xlu1 %6771 }
 0x862   :  { %12968 = vst [vmem:[#allocation40_spill] sm:$0xff] %v10393_v24 }
 0x864   :  { %5959 = vrot.lane.b32.xlu1 %v5950_v55, %s12678_s24  ;;  %v6304_v55 = vmul.f32 %v12653_v63, %v6260_v54  ;;  %s12974_s24 = smov 79  }
 0x866   :  { %v6330_v48 = vrot.slane %v6304_v55, %v9734_v25 }
 0x868   :  { %6054 = vrot.lane.b32.xlu1 %v6045_v21, %s12821_s7  ;;  %v6449_v21 = vld [vmem:[#allocation4 + $0xa] sm:$0x3] }
 0x869   :  { %v6493_v10 = vmul.f32 %v12651_v17, %v6449_v21 }
 0x86b   :  { %v6519_v52 = vrot.slane %v6493_v10, %v9734_v25  ;;  %v6640_v10 = vld [vmem:[#allocation4 + $0xa] sm:$0x3] }
 0x86c   :  { %6149 = vrot.lane.b32.xlu1 %v6140_v58, %s12723_s12  ;;  %v6608_v58 = vcombine.low %v6588_v49, %v6588_v49  ;;  %s12999_s12 = smov 45  }
 0x86d   :  { %v6520_v54 = vcombine.low %v6519_v52, %v6519_v52  ;;  %v12659_v52 = vrot.slane %v10393_v24, 6 }
 0x86e   :  { %v6615_v3 = vrot.slane %v6608_v58, %v9734_v25 }
 0x870   :  { %6245 = vrot.lane.b32.xlu1 %v6236_v61, %s12670_s11  ;;  %v6616_v21 = vcombine.low %v6615_v3, %v6615_v3  ;;  %v10396_v61 = vpop.permute.xlu1 %7151  ;;  %s12972_s11 = smov 81  }
 0x871   :  { %12969 = vst [vmem:[#allocation41_spill] sm:$0xff] %v10396_v61 }
 0x874   :  { %6339 = vrot.lane.b32.xlu1 %v6330_v48, %s12675_s19  ;;  %v10398_v55 = vpop.permute.xlu1 %6961  ;;  %v6734_v48 = vld [vmem:[#allocation4 + $0xa] sm:$0x3]  ;;  %s12973_s19 = smov 80  }
 0x875   :  { %v12669_v20 = vrot.slane %v10398_v55, 6 }
 0x878   :  { %6434 = vrot.lane.b32.xlu1 %v6425_v30, %s12819_s20  ;;  %v10400_v49 = vpop.permute.xlu1 %6677  ;;  %v10406_v30 = vpop.permute.xlu0 %6866 }
 0x879   :  { %v12658_v27 = vrot.slane %v10400_v49, 6  ;;  %v12666_v3 = vrot.slane %v10406_v30, 6 }
 0x87b   :  { %v6684_v58 = vmul.f32 %v12658_v27, %v6640_v10  ;;  %v6968_v27 = vmul.f32 %v12669_v20, %v6924_v4 }
 0x87c   :  { %6529 = vrot.lane.b32.xlu1 %v6520_v54, %s12680_s10  ;;  %v6778_v54 = vmul.f32 %v12659_v52, %v6734_v48  ;;  %v10416_v10 = vpop.permute.xlu0 %7246  ;;  %s12975_s10 = smov 78  }
 0x87d   :  { %v6710_v17 = vrot.slane %v6684_v58, %v9734_v25  ;;  %v6988_v58 = vcombine.low %v6968_v27, %v6968_v27 }
 0x87e   :  { %v6798_v63 = vcombine.low %v6778_v54, %v6778_v54  ;;  %v12672_v54 = vrot.slane %v10396_v61, 6 }
 0x880   :  { %6625 = vrot.lane.b32.xlu1 %v6616_v21, %s12667_s22  ;;  %v6829_v21 = vld [vmem:[#allocation4 + $0xa] sm:$0x3]  ;;  %v6805_v48 = vrot.slane %v6798_v63, %v9734_v25  ;;  %v10423_v36 = vpop.permute.xlu0 %7341  ;;  %v7158_v4 = vmul.f32 %v12672_v54, %v7114_v47  ;;  %s12971_s22 = smov 82  }
 0x881   :  { %v6873_v57 = vmul.f32 %v12666_v3, %v6829_v21  ;;  %v6995_v21 = vrot.slane %v6988_v58, %v9734_v25  ;;  %v12683_v54 = vrot.slane %v10423_v36, 6 }
 0x882   :  { %v7178_v20 = vcombine.low %v7158_v4, %v7158_v4 }
 0x883   :  { %v6899_v52 = vrot.slane %v6873_v57, %v9734_v25  ;;  %v6996_v63 = vcombine.low %v6995_v21, %v6995_v21  ;;  %v7304_v21 = vld [vmem:[#allocation4 + $0xa] sm:$0x3] }
 0x884   :  { %6719 = vrot.lane.b32.xlu1 %v6710_v17, %s12664_s18  ;;  %s12970_s18 = smov 83   ;;  %v10428_v3 = vpop.permute.xlu0 %7057  ;;  %v7185_v28 = vrot.slane %v7178_v20, %v9734_v25 }
 0x885   :  { %v6900_v17 = vcombine.low %v6899_v52, %v6899_v52  ;;  %v12677_v57 = vrot.slane %v10428_v3, 6  ;;  %v12682_v52 = vrot.slane %v10416_v10, 6 }
 0x888   :  { %6814 = vrot.lane.b32.xlu1 %v6805_v48, %s12784_s8  ;;  %v7020_v48 = vld [vmem:[#allocation4 + $0xa] sm:$0x3]  ;;  %s13064_s8 = smov 32  }
 0x889   :  { %v7064_v27 = vmul.f32 %v12677_v57, %v7020_v48 }
 0x88b   :  { %v7090_v58 = vrot.slane %v7064_v27, %v9734_v25 }
 0x88c   :  { %6909 = vrot.lane.b32.xlu1 %v6900_v17, %s12970_s18  ;;  %v7209_v17 = vld [vmem:[#allocation4 + $0xa] sm:$0x3] }
 0x88d   :  { %v7253_v47 = vmul.f32 %v12682_v52, %v7209_v17 }
 0x88f   :  { %v7279_v48 = vrot.slane %v7253_v47, %v9734_v25 }
 0x890   :  { %7005 = vrot.lane.b32.xlu1 %v6996_v63, %s12971_s22  ;;  %v7348_v63 = vmul.f32 %v12683_v54, %v7304_v21 }
 0x891   :  { %v7280_v57 = vcombine.low %v7279_v48, %v7279_v48  ;;  %v8426_v48 = vmov 1966171168  }
 0x892   :  { %v7368_v4 = vcombine.low %v7348_v63, %v7348_v63  ;;  %v2747_v63 = vunpack.c.l.s4 %v8426_v48 }
 0x894   :  { %7099 = vrot.lane.b32.xlu1 %v7090_v58, %s12972_s11  ;;  %v7375_v27 = vrot.slane %v7368_v4, %v9734_v25  ;;  %v2748_v61 = vunpack.c.0.s8 %v2747_v63 }
 0x896   :  { %v7376_v58 = vcombine.low %v7375_v27, %v7375_v27  ;;  %v2751_v38 = vsub.s32 %v2748_v61, %v8676_v62  ;;  %v10476_v62 = vpop.permute.xlu1 %7437 }
 0x897   :  { %12981 = vst [vmem:[#allocation46_spill] sm:$0xff] %v10476_v62  ;;  %v13027_v62 = vld [vmem:[#allocation16_spill] sm:$0xff] }
 0x898   :  { %7194 = vrot.lane.b32.xlu1 %v7185_v28, %s12973_s19 }
 0x89c   :  { %7289 = vrot.lane.b32.xlu1 %v7280_v57, %s12974_s24 }
 0x8a0   :  { %7385 = vrot.lane.b32.xlu1 %v7376_v58, %s12975_s10 }
 0x8ff   :  { %v2629_v17 = vpop.f32.mrb[10].mxu1 }
 0x900   :  { %v10451_v52 = vmul.f32 %v2629_v17, %v9706_v2  ;;  %v2631_v20 = vpop.f32.mrb[11].mxu1 }
 0x901   :  { %v10454_v47 = vmul.f32 %v2631_v20, %v9700_v34 }
 0x902   :  { %12976 = vst [vmem:[#allocation42_spill] sm:$0xff] %v10451_v52  ;;  %v2711_v21 = vrot.slane %v10451_v52, 4 }
 0x903   :  { %12977 = vst [vmem:[#allocation43_spill] sm:$0xff] %v10454_v47  ;;  %v2717_v28 = vrot.slane %v10454_v47, 4  ;;  %v2700_v57 = vpop.f32.mrb[12].mxu1 }
 0x904   :  { %v2712_v4 = vadd.f32 %v2711_v21, %v10451_v52  ;;  %v2776_v27 = vmax.f32 %v10451_v52, %v2711_v21  ;;  %v10461_v58 = vmul.f32 %v2700_v57, %v9708_v35  ;;  %v2702_v2 = vpop.f32.mrb[13].mxu1 }
 0x905   :  { %v2718_v17 = vadd.f32 %v2717_v28, %v10454_v47  ;;  %v2782_v34 = vmax.f32 %v10454_v47, %v2717_v28  ;;  %v10466_v20 = vmul.f32 %v2702_v2, %v9702_v43 }
 0x906   :  { %12978 = vst [vmem:[#allocation44_spill] sm:$0xff] %v10461_v58  ;;  %v2713_v54 = vrot.slane %v2712_v4, 2  ;;  %v2777_v50 = vrot.slane %v2776_v27, 2  ;;  %v2723_v48 = vrot.slane %v10461_v58, 4 }
 0x907   :  { %12979 = vst [vmem:[#allocation45_spill] sm:$0xff] %v10466_v20  ;;  %v2719_v56 = vrot.slane %v2718_v17, 2  ;;  %v2783_v11 = vrot.slane %v2782_v34, 2  ;;  %v2729_v21 = vrot.slane %v10466_v20, 4 }
 0x908   :  { %v2714_v52 = vadd.f32 %v2713_v54, %v2712_v4  ;;  %v2778_v35 = vmax.f32 %v2776_v27, %v2777_v50  ;;  %v2724_v57 = vadd.f32 %v2723_v48, %v10461_v58  ;;  %v2788_v24 = vmax.f32 %v10461_v58, %v2723_v48 }
 0x909   :  { %v2720_v44 = vadd.f32 %v2719_v56, %v2718_v17  ;;  %v2784_v28 = vmax.f32 %v2782_v34, %v2783_v11  ;;  %v2730_v43 = vadd.f32 %v2729_v21, %v10466_v20  ;;  %v2794_v2 = vmax.f32 %v10466_v20, %v2729_v21 }
 0x90a   :  { %v2715_v47 = vrot.slane %v2714_v52, 1  ;;  %v2779_v31 = vrot.slane %v2778_v35, 1  ;;  %v2725_v45 = vrot.slane %v2724_v57, 2  ;;  %v2789_v13 = vrot.slane %v2788_v24, 2 }
 0x90b   :  { %v2721_v63 = vrot.slane %v2720_v44, 1  ;;  %v2785_v18 = vrot.slane %v2784_v28, 1  ;;  %v2731_v12 = vrot.slane %v2730_v43, 2  ;;  %v2795_v59 = vrot.slane %v2794_v2, 2 }
 0x90c   :  { %v2716_v54 = vadd.f32 %v2715_v47, %v2714_v52  ;;  %v2780_v50 = vmax.f32 %v2778_v35, %v2779_v31  ;;  %v2726_v4 = vadd.f32 %v2725_v45, %v2724_v57  ;;  %v2790_v27 = vmax.f32 %v2788_v24, %v2789_v13 }
 0x90d   :  { %v2722_v9 = vadd.f32 %v2721_v63, %v2720_v44  ;;  %v2786_v48 = vmax.f32 %v2784_v28, %v2785_v18  ;;  %v2732_v56 = vadd.f32 %v2731_v12, %v2730_v43  ;;  %v2796_v11 = vmax.f32 %v2794_v2, %v2795_v59 }
 0x90e   :  { %v2727_v17 = vrot.slane %v2726_v4, 1  ;;  %v2791_v34 = vrot.slane %v2790_v27, 1  ;;  %v2736_v58 = vmul.f32 0.125, %v2716_v54  ;;  %v12745_v63 = vrot.slane %v10234_v51, 6 }
 0x90f   :  { %v2737_v21 = vmul.f32 0.125, %v2722_v9  ;;  %v2733_v20 = vrot.slane %v2732_v56, 1  ;;  %v2797_v22 = vrot.slane %v2796_v11, 1  ;;  %v2803_v39 = vcombine.low %v2780_v50, %v2786_v48 }
 0x910   :  { %v2728_v7 = vadd.f32 %v2727_v17, %v2726_v4  ;;  %v2792_v53 = vmax.f32 %v2790_v27, %v2791_v34  ;;  %v12980_v9 = vlaneseq  ;;  %v12987_v50 = vrot.slane %v10357_v16, 6 }
 0x911   :  { %v2734_v23 = vadd.f32 %v2733_v20, %v2732_v56  ;;  %v2798_v52 = vmax.f32 %v2796_v11, %v2797_v22  ;;  %v2744_v45 = vcombine.low %v2736_v58, %v2737_v21  ;;  %v2811_v18 = vrot.slane %v2803_v39, %v2751_v38  ;;  %v10478_v22 = vpop.permute.xlu1 %5294 }
 0x912   :  { %v2738_v31 = vmul.f32 0.125, %v2728_v7  ;;  %vm2771_vm8 = vcmp.lt.s32.totalorder %v12980_v9, 512  ;;  %12982 = vst [vmem:[#allocation47_spill] sm:$0xff] %v10478_v22  ;;  %v2869_v39 = vrot.slane %v10251_v37, 6  ;;  %v12986_v58 = vrot.slane %v10368_v6, 6 }
 0x913   :  { %v2739_v13 = vmul.f32 0.125, %v2734_v23  ;;  %v2804_v44 = vcombine.low %v2792_v53, %v2798_v52  ;;  %v2752_v24 = vrot.slane %v2744_v45, %v2751_v38  ;;  %v6584_v4 = vsel %vm3785_vm12, %v12987_v50, %v10357_v16 }
 0x914   :  { %v6300_v20 = vsel %vm12721_vm10, %v12986_v58, %v10368_v6  ;;  %v2871_v54 = vsel %vm12718_vm11, %v2869_v39, %v10251_v37  ;;  %v12989_v6 = vrot.slane %v10398_v55, 6  ;;  %v12990_v11 = vrot.slane %v10406_v30, 6 }
 0x915   :  { %v2745_v12 = vcombine.low %v2738_v31, %v2739_v13  ;;  %v2818_v59 = vrot.slane %v2804_v44, %v2751_v38  ;;  %v10480_v7 = vpop.permute.xlu1 %5389  ;;  %vm12720_vm11 = vcmask 654336   ;;  %v12735_v9 = vrot.slane %v10249_v33, 6 }
 0x916   :  { %12983 = vst [vmem:[#allocation48_spill] sm:$0xff] %v10480_v7  ;;  %v6964_v48 = vsel %vm3397_vm14, %v12989_v6, %v10398_v55  ;;  %v6869_v17 = vsel %vm12728_vm7, %v12990_v11, %v10406_v30  ;;  %v12736_v30 = vrot.slane %v10241_v1, 6  ;;  %vm12731_vm10 = vcmask 809984  }
 0x917   :  { %v2759_v47 = vrot.slane %v2745_v12, %v2751_v38  ;;  %v2819_v35 = vcombine.low %v2811_v18, %v2818_v59  ;;  %v12739_v59 = vrot.slane %v10247_v0, 6  ;;  %v12734_v50 = vrot.slane %v10269_v8, 6 }
 0x918   :  { %v3161_v12 = vsel %vm12720_vm11, %v12736_v30, %v10241_v1  ;;  %vm12725_vm11 = vcmask 760832   ;;  %v12737_v6 = vrot.slane %v10267_v5, 6  ;;  %v12746_v11 = vrot.slane %v10220_v14, 6 }
 0x919   :  { %v2760_v57 = vcombine.low %v2752_v24, %v2759_v47  ;;  %v2826_v28 = vrot.slane %v2819_v35, %v2751_v38  ;;  %v10482_v23 = vpop.permute.xlu1 %5485  ;;  %vm12741_vm7 = vcmask 400384   ;;  %v13009_v37 = vrot.slane %v10428_v3, 6 }
 0x91a   :  { %12984 = vst [vmem:[#allocation49_spill] sm:$0xff] %v10482_v23  ;;  %v13024_v22 = vrot.slane %v10279_v42, 6 }
 0x91b   :  { %v2767_v43 = vrot.slane %v2760_v57, %v2751_v38  ;;  %2829 = vst.msk [vmem:[#allocation4 + $0x3] ss:$2 sm:$0xf] %vm2771_vm8, %v2826_v28  ;;  %v12985_v38 = vrot.slane %v10342_v32, 6 }
 0x91d   :  { %2774 = vst.msk [vmem:[#allocation4 + $0x2] ss:$2 sm:$0xf] %vm2771_vm8, %v2767_v43  ;;  %v6204_v61 = vsel %vm12730_vm9, %v12985_v38, %v10342_v32  ;;  %v12988_v32 = vrot.slane %v10400_v49, 6  ;;  %vm12719_vm8 = vcmask 646144   ;;  %v10521_v16 = vpop.permute.xlu1 %5579  ;;  %v12738_v38 = vrot.slane %v10265_v46, 6 }
 0x91e   :  { %12991 = vst [vmem:[#allocation50_spill] sm:$0xff] %v10521_v16  ;;  %v3064_v52 = vsel %vm12719_vm8, %v12745_v63, %v10234_v51  ;;  %vm12722_vm8 = vcmask 678912   ;;  %vm3300_vm9 = vcmask 384000  }
 0x91f   :  { %v6680_v27 = vsel %vm3688_vm13, %v12988_v32, %v10400_v49  ;;  %v3452_v35 = vsel %vm12722_vm8, %v12739_v59, %v10247_v0  ;;  %vm12729_vm8 = vcmask 793600  }
 0x921   :  { %v10555_v18 = vpop.permute.xlu1 %5674 }
 0x922   :  { %12996 = vst [vmem:[#allocation55_spill] sm:$0xff] %v10555_v18 }
 0x924   :  { %v10485_v53 = vld [vmem:[#allocation4] sm:$0xff] }
 0x925   :  { %v10495_v2 = vld [vmem:[#allocation4 + $0x2] sm:$0xff]  ;;  %v10515_v56 = vmul.f32 %v2871_v54, %v10485_v53  ;;  %v10547_v13 = vmul.f32 %v3064_v52, %v10485_v53  ;;  %v10563_v24 = vmul.f32 %v3161_v12, %v10485_v53  ;;  %v10577_v57 = vmul.f32 %v3452_v35, %v10485_v53  ;;  %v10583_v43 = vpop.permute.xlu1 %5769 }
 0x926   :  { %v10524_v34 = vmul.f32 %v6204_v61, %v10495_v2  ;;  %v10527_v49 = vmul.f32 %v6300_v20, %v10495_v2  ;;  %v10530_v21 = vmul.f32 %v6584_v4, %v10495_v2  ;;  %v10533_v55 = vmul.f32 %v6680_v27, %v10495_v2  ;;  %12997 = vst [vmem:[#allocation56_spill] sm:$0xff] %v10583_v43 }
 0x927   :  { %v10541_v31 = vmul.f32 %v6964_v48, %v10495_v2  ;;  %v10544_v45 = vmul.f32 %v6869_v17, %v10495_v2  ;;  %v10551_v44 = vrot.slane %v10515_v56, %v9734_v25  ;;  %v10567_v47 = vrot.slane %v10547_v13, %v9734_v25  ;;  %v2831_v17 = vld [vmem:[#allocation4 + $0x8] sm:$0x3] }
 0x928   :  { %12992 = vst [vmem:[#allocation51_spill] sm:$0xff] %v10524_v34  ;;  %12993 = vst [vmem:[#allocation52_spill] sm:$0xff] %v10530_v21  ;;  %v10581_v28 = vrot.slane %v10563_v24, %v9734_v25  ;;  %v3549_v61 = vsel %vm12725_vm11, %v12735_v9, %v10249_v33  ;;  %v10597_v20 = vrot.slane %v10577_v57, %v9734_v25  ;;  %vm12740_vm11 = vcmask 900096   ;;  %v13025_v33 = vld [vmem:[#allocation27_spill] sm:$0xff] }
 0x929   :  { %12994 = vst [vmem:[#allocation53_spill] sm:$0xff] %v10541_v31  ;;  %12995 = vst [vmem:[#allocation54_spill] sm:$0xff] %v10544_v45  ;;  %2902 = vrot.lane.b32.xlu1 %v10551_v44, %s12782_s4  ;;  %v10593_v58 = vmul.f32 %v3549_v61, %v10485_v53  ;;  %v4131_v54 = vsel %vm12731_vm10, %v12738_v38, %v10265_v46  ;;  %v10606_v4 = vpop.permute.xlu1 %5865  ;;  %v3937_v48 = vsel %vm12729_vm8, %v12734_v50, %v10269_v8  ;;  %vm3009_vm8 = vcmask 408576  }
 0x92a   :  { %12998 = vst [vmem:[#allocation57_spill] sm:$0xff] %v10597_v20  ;;  %13000 = vst [vmem:[#allocation58_spill] sm:$0xff] %v10606_v4  ;;  %v10609_v32 = vmul.f32 %v4131_v54, %v10485_v53  ;;  %v10624_v52 = vmul.f32 %v3937_v48, %v10485_v53  ;;  %v4325_v61 = vsel %vm12740_vm11, %v12737_v6, %v10267_v5  ;;  %v12744_v54 = vrot.slane %v10277_v26, 6 }
 0x92b   :  { %v10613_v27 = vrot.slane %v10593_v58, %v9734_v25  ;;  %vm2966_vm10 = vcmask 637952   ;;  %v2875_v48 = vmul.f32 %v2869_v39, %v2831_v17  ;;  %v13006_v50 = vrot.slane %v10416_v10, 6 }
 0x92c   :  { %13003 = vst [vmem:[#allocation60_spill] sm:$0xff] %v10624_v52  ;;  %v10628_v12 = vrot.slane %v10609_v32, %v9734_v25  ;;  %v10646_v30 = vmul.f32 %v4325_v61, %v10485_v53  ;;  %v10650_v6 = vrot.slane %v10624_v52, %v9734_v25  ;;  %v13008_v38 = vrot.slane %v10423_v36, 6 }
 0x92d   :  { %3098 = vrot.lane.b32.xlu1 %v10567_v47, %s12773_s9  ;;  %13001 = vst [vmem:[#allocation59_spill] sm:$0xff] %v10613_v27  ;;  %v10630_v35 = vpop.permute.xlu1 %5959  ;;  %v7249_v9 = vsel %vm12741_vm7, %v13006_v50, %v10416_v10  ;;  %v7060_v39 = vsel %vm3300_vm9, %v13009_v37, %v10428_v3  ;;  %v2967_v10 = vsel %vm2966_vm10, %v12746_v11, %v10220_v14  ;;  %v12749_v17 = vrot.slane %v10281_v41, 6  ;;  %s13037_s9 = smov 34  }
 0x92e   :  { %13004 = vst [vmem:[#allocation61_spill] sm:$0xff] %v10630_v35  ;;  %13007 = vst [vmem:[#allocation62_spill] sm:$0xff] %v10646_v30  ;;  %v7344_v59 = vsel %vm3009_vm8, %v13008_v38, %v10423_v36  ;;  %v4611_v50 = vsel %vm12751_vm2, %v12744_v54, %v10277_v26  ;;  %vm12750_vm11 = vcmask 662528   ;;  %v3257_v36 = vrot.slane %v10243_v29, 6  ;;  %v3218_v35 = vld [vmem:[#allocation4 + $0x8] sm:$0x3] }
 0x92f   :  { %vm12755_vm7 = vcmask 1031168   ;;  %v10671_v38 = vmul.f32 %v7249_v9, %v10495_v2  ;;  %v10678_v61 = vmul.f32 %v2967_v10, %v10485_v53  ;;  %v10681_v37 = vmul.f32 %v7344_v59, %v10495_v2  ;;  %v13032_v26 = vld [vmem:[#allocation15_spill] sm:$0xff] }
 0x930   :  { %v10684_v54 = vmul.f32 %v7060_v39, %v10495_v2  ;;  %v2901_v63 = vrot.slane %v2875_v48, %v9734_v25  ;;  %v10688_v11 = vmul.f32 %v4611_v50, %v10485_v53  ;;  %v10692_v9 = vrot.slane %v10646_v30, %v9734_v25 }
 0x931   :  { %3200 = vrot.lane.b32.xlu1 %v10581_v28, %s12753_s1  ;;  %13010 = vst [vmem:[#allocation63_spill] sm:$0xff] %v10671_v38  ;;  %v10675_v3 = vpop.permute.xlu1 %6054  ;;  %13013 = vst [vmem:[#allocation65_spill] sm:$0xff] %v10681_v37  ;;  %v4998_v10 = vsel %vm12755_vm7, %v12749_v17, %v10281_v41  ;;  %v3259_v39 = vsel %vm12750_vm11, %v3257_v36, %v10243_v29  ;;  %v10709_v50 = vrot.slane %v10678_v61, %v9734_v25  ;;  %vm12781_vm11 = vcmask 941056   ;;  %s13020_s1 = smov 2  }
 0x932   :  { %13012 = vst [vmem:[#allocation64_spill] sm:$0xff] %v10675_v3  ;;  %2910 = vrot.lane.b32.xlu0 %v2901_v63, %s12782_s4  ;;  %v10705_v48 = vmul.f32 %v3259_v39, %v10485_v53  ;;  %v10712_v17 = vmul.f32 %v4998_v10, %v10485_v53  ;;  %v10716_v63 = vrot.slane %v10688_v11, %v9734_v25  ;;  %v13016_v29 = vrot.slane %v10283_v40, 6  ;;  %s13072_s4 = smov 19  }
 0x933   :  { %vm3354_vm2 = vcmask 670720   ;;  %v3263_v10 = vmul.f32 %v3257_v36, %v3218_v35  ;;  %v13018_v3 = vrot.slane %v10292_v60, 6  ;;  %v13019_v35 = vrot.slane %v10245_v15, 6 }
 0x934   :  { %v4422_v39 = vsel %vm12752_vm0, %v13016_v29, %v10283_v40  ;;  %v10739_v29 = vrot.slane %v10712_v17, %v9734_v25  ;;  %vm12772_vm0 = vcmask 932864   ;;  %vm12762_vm7 = vcmask 769024  }
 0x935   :  { %3486 = vrot.lane.b32.xlu1 %v10597_v20, %s12999_s12  ;;  %v10718_v59 = vpop.permute.xlu1 %6149  ;;  %v10735_v43 = vmul.f32 %v4422_v39, %v10485_v53  ;;  %v4805_v18 = vsel %vm12781_vm11, %v13018_v3, %v10292_v60  ;;  %v3355_v36 = vsel %vm3354_vm2, %v13019_v35, %v10245_v15  ;;  %v3645_v39 = vrot.slane %v10256_v19, 6  ;;  %v13057_v20 = vld [vmem:[#allocation9_spill] sm:$0xff] }
 0x936   :  { %13015 = vst [vmem:[#allocation66_spill] sm:$0xff] %v10718_v59  ;;  %3003 = vrot.lane.b32.xlu0 %v10709_v50, %s12775_s25  ;;  %v10732_v59 = vrot.slane %v10705_v48, %v9734_v25  ;;  %v10758_v7 = vmul.f32 %v3355_v36, %v10485_v53  ;;  %v3289_v3 = vrot.slane %v3263_v10, %v9734_v25  ;;  %s13038_s25 = smov 14   ;;  %v13042_v4 = vrot.slane %v13032_v26, 6 }
 0x937   :  { %13017 = vst [vmem:[#allocation67_spill] sm:$0xff] %v10735_v43  ;;  %v10762_v5 = vmul.f32 %v4805_v18, %v10485_v53  ;;  %v10766_v35 = vrot.slane %v10735_v43, %v9734_v25  ;;  %v4707_v8 = vsel %vm12772_vm0, %v13024_v22, %v10279_v42  ;;  %v3647_v36 = vsel %vm12762_vm7, %v3645_v39, %v10256_v19  ;;  %v3606_v22 = vld [vmem:[#allocation4 + $0x8] sm:$0x3] }
 0x938   :  { %13022 = vst [vmem:[#allocation69_spill] sm:$0xff] %v10758_v7  ;;  %v10779_v18 = vmul.f32 %v3647_v36, %v10485_v53  ;;  %v10783_v10 = vrot.slane %v10758_v7, %v9734_v25  ;;  %v10787_v1 = vmul.f32 %v4707_v8, %v10485_v53  ;;  %vm3742_vm7 = vcmask 777216   ;;  %v13058_v7 = vld [vmem:[#allocation11_spill] sm:$0xff] }
 0x939   :  { %3588 = vrot.lane.b32.xlu1 %v10613_v27, %s13002_s6  ;;  %v10755_v16 = vpop.permute.xlu1 %6245  ;;  %13023 = vst [vmem:[#allocation70_spill] sm:$0xff] %v10762_v5  ;;  %v13029_v36 = vrot.slane %v13025_v33, 6  ;;  %v3651_v8 = vmul.f32 %v3645_v39, %v3606_v22  ;;  %vm12786_vm0 = vcmask 785408   ;;  %v13035_v39 = vld [vmem:[#allocation30_spill] sm:$0xff]  ;;  %vm4368_vm11 = vcmask 146432  }
 0x93a   :  { %3290 = vrot.lane.b32.xlu0 %v10732_v59, %s12764_s0  ;;  %13021 = vst [vmem:[#allocation68_spill] sm:$0xff] %v10755_v16  ;;  %13026 = vst [vmem:[#allocation71_spill] sm:$0xff] %v10779_v18  ;;  %v10805_v41 = vrot.slane %v10779_v18, %v9734_v25  ;;  %v13036_v22 = vrot.slane %v13035_v39, 6  ;;  %v13056_v27 = vld [vmem:[#allocation10_spill] sm:$0xff] }
 0x93b   :  { %v5093_v42 = vsel %vm12779_vm3, %v13029_v36, %v13025_v33  ;;  %v10817_v33 = vrot.slane %v10787_v1, %v9734_v25  ;;  %vm12798_vm3 = vcmask 891904  }
 0x93c   :  { %v10813_v36 = vmul.f32 %v5093_v42, %v10485_v53  ;;  %v5349_v16 = vsel %vm12800_vm15, %v13036_v22, %v13035_v39  ;;  %v13040_v42 = vld [vmem:[#allocation17_spill] sm:$0xff]  ;;  %v3840_v39 = vsel %vm12786_vm0, %v13042_v4, %v13032_v26  ;;  %vm12804_vm0 = vcmask 801792  }
 0x93d   :  { %4167 = vrot.lane.b32.xlu1 %v10628_v12, %s13005_s30  ;;  %v10793_v19 = vpop.permute.xlu1 %6339  ;;  %13034 = vst [vmem:[#allocation73_spill] sm:$0xff] %v10817_v33  ;;  %v10839_v22 = vmul.f32 %v5349_v16, %v10495_v2  ;;  %v7869_v16 = vld [vmem:[%s12574_s17 + $0x60] ss:$8 sm:$0xf]  ;;  %v13047_v4 = vrot.slane %v13040_v42, 6  ;;  %v10860_v26 = vmul.f32 %v3840_v39, %v10485_v53  ;;  %s13054_s17 = smov 33  }
 0x93e   :  { %3298 = vrot.lane.b32.xlu0 %v3289_v3, %s12764_s0  ;;  %v10791_v3 = vrot.slane %v10762_v5, %v9734_v25  ;;  %13028 = vst [vmem:[#allocation72_spill] sm:$0xff] %v10793_v19  ;;  %s13030_s0 = smov 46   ;;  %v13033_v19 = vrot.slane %v13027_v62, 6  ;;  %v5159_v18 = vrot.slane %v7869_v16, %v13056_v27  ;;  %v5163_v0 = vrot.slane %v7869_v16, %v13057_v20  ;;  %v13062_v20 = vld [vmem:[#allocation36_spill] sm:$0xff] }
 0x93f   :  { %13043 = vst [vmem:[#allocation75_spill] sm:$0xff] %v10839_v22  ;;  %vm12808_vm15 = vcmask 285696  }
 0x940   :  { %v3743_v43 = vsel %vm3742_vm7, %v13033_v19, %v13027_v62  ;;  %v3677_v62 = vrot.slane %v3651_v8, %v9734_v25  ;;  %v4228_v8 = vsel %vm12798_vm3, %v13047_v4, %v13040_v42  ;;  %v10876_v4 = vrot.slane %v10839_v22, %v9734_v25  ;;  %v13055_v42 = vld [vmem:[#allocation8_spill] sm:$0xff] }
 0x941   :  { %3976 = vrot.lane.b32.xlu1 %v10650_v6, %s13011_s2  ;;  %v10827_v19 = vpop.permute.xlu1 %6434  ;;  %v10831_v46 = vmul.f32 %v3743_v43, %v10485_v53  ;;  %vm3980_vm3 = vcmask 252928  }
 0x942   :  { %3391 = vrot.lane.b32.xlu0 %v10783_v10, %s13030_s0  ;;  %13039 = vst [vmem:[#allocation30_spill] sm:$0xff] %v10827_v19  ;;  %v13045_v19 = vld [vmem:[#allocation32_spill] sm:$0xff] }
 0x943   :  { %13041 = vst [vmem:[#allocation74_spill] sm:$0xff] %v10831_v46  ;;  %v13046_v5 = vrot.slane %v13045_v19, 6 }
 0x945   :  { %4364 = vrot.lane.b32.xlu1 %v10692_v9, %s13014_s26  ;;  %v5729_v43 = vsel %vm12908_vm5, %v13046_v5, %v13045_v19  ;;  %v10864_v5 = vrot.slane %v10831_v46, %v9734_v25  ;;  %v10878_v39 = vpop.permute.xlu1 %6529  ;;  %v5155_v46 = vrot.slane %v7869_v16, %v13055_v42 }
 0x946   :  { %3678 = vrot.lane.b32.xlu0 %v10805_v41, %s13037_s9  ;;  %v10872_v52 = vmul.f32 %v5729_v43, %v10495_v2  ;;  %v10893_v43 = vrot.slane %v10860_v26, %v9734_v25 }
 0x948   :  { %13051 = vst [vmem:[#allocation32_spill] sm:$0xff] %v10872_v52  ;;  %13059 = vst [vmem:[#allocation10_spill] sm:$0xff] %v10893_v43 }
 0x949   :  { %4645 = vrot.lane.b32.xlu1 %v10716_v63, %s12938_s23 }
 0x94a   :  { %3686 = vrot.lane.b32.xlu0 %v3677_v62, %s13037_s9  ;;  %v13048_v62 = vld [vmem:[#allocation22_spill] sm:$0xff] }
 0x94b   :  { %v4033_v19 = vrot.slane %v13048_v62, 6  ;;  %13052 = vst [vmem:[#allocation22_spill] sm:$0xff] %v10876_v4 }
 0x94d   :  { %5032 = vrot.lane.b32.xlu1 %v10739_v29, %s13020_s1  ;;  %v4035_v42 = vsel %vm12804_vm0, %v4033_v19, %v13048_v62  ;;  %vm12823_vm0 = vcmask 392192  }
 0x94e   :  { %3779 = vrot.lane.b32.xlu0 %v10864_v5, %s13054_s17  ;;  %v10915_v62 = vmul.f32 %v4035_v42, %v10485_v53 }
 0x951   :  { %4453 = vrot.lane.b32.xlu1 %v10766_v35, %s12939_s16 }
 0x952   :  { %3874 = vrot.lane.b32.xlu0 %v10893_v43, %s13064_s8 }
 0x955   :  { %4836 = vrot.lane.b32.xlu1 %v10791_v3, %s13031_s29 }
 0x959   :  { %4746 = vrot.lane.b32.xlu1 %v10817_v33, %s13038_s25  ;;  %v10843_v33 = vrot.slane %v10813_v36, %v9734_v25 }
 0x95b   :  { %13044 = vst [vmem:[#allocation76_spill] sm:$0xff] %v10843_v33 }
 0x95d   :  { %5132 = vrot.lane.b32.xlu1 %v10843_v33, %s12936_s5  ;;  %v13049_v33 = vld [vmem:[#allocation35_spill] sm:$0xff] }
 0x95e   :  { %v13050_v23 = vrot.slane %v13049_v33, 6  ;;  %13053 = vst [vmem:[#allocation35_spill] sm:$0xff] %v10878_v39  ;;  %v5168_v39 = vcombine.low %v5155_v46, %v5159_v18  ;;  %v13070_v46 = vld [vmem:[#allocation40_spill] sm:$0xff] }
 0x95f   :  { %v13071_v18 = vrot.slane %v13070_v46, 6 }
 0x960   :  { %v6014_v30 = vsel %vm4368_vm11, %v13050_v23, %v13049_v33  ;;  %v5167_v33 = vrot.slane %v7869_v16, %v13058_v7  ;;  %v10889_v23 = vmul.f32 %v4228_v8, %v10485_v53  ;;  %v10902_v7 = vrot.slane %v10872_v52, %v9734_v25 }
 0x961   :  { %5383 = vrot.lane.b32.xlu1 %v10876_v4, %s12814_s3  ;;  %v10898_v27 = vmul.f32 %v6014_v30, %v10495_v2  ;;  %v13063_v16 = vrot.slane %v13062_v20, 6  ;;  %v10912_v30 = vpop.permute.xlu1 %6625  ;;  %v13067_v4 = vld [vmem:[#allocation21_spill] sm:$0xff]  ;;  %v6774_v42 = vsel %vm12808_vm15, %v13071_v18, %v13070_v46  ;;  %v13074_v18 = vld [vmem:[#allocation23_spill] sm:$0xff]  ;;  %vm12907_vm15 = vcmask 1022976   ;;  %s13082_s3 = smov 93  }
 0x962   :  { %13061 = vst [vmem:[#allocation11_spill] sm:$0xff] %v10902_v7  ;;  %v5169_v22 = vcombine.low %v5163_v0, %v5167_v33  ;;  %13065 = vst [vmem:[#allocation36_spill] sm:$0xff] %v10912_v30  ;;  %v10919_v52 = vrot.slane %v10889_v23, %v9734_v25  ;;  %v5176_v33 = vrot.slane %v5168_v39, %v9734_v25  ;;  %v13073_v30 = vrot.slane %v13067_v4, 6 }
 0x963   :  { %13060 = vst [vmem:[#allocation9_spill] sm:$0xff] %v10898_v27  ;;  %v6394_v8 = vsel %vm3980_vm3, %v13063_v16, %v13062_v20  ;;  %v3994_v16 = vld [vmem:[#allocation4 + $0x8] sm:$0x3]  ;;  %v10927_v0 = vrot.slane %v10898_v27, %v9734_v25  ;;  %v10949_v39 = vmul.f32 %v6774_v42, %v10495_v2 }
 0x964   :  { %13066 = vst [vmem:[#allocation77_spill] sm:$0xff] %v10919_v52  ;;  %v10923_v43 = vmul.f32 %v6394_v8, %v10495_v2  ;;  %4262 = vrot.lane.b32.xlu0 %v10919_v52, %s13072_s4  ;;  %v5183_v20 = vrot.slane %v5169_v22, %v9734_v25  ;;  %v4039_v8 = vmul.f32 %v4033_v19, %v3994_v16  ;;  %v13077_v19 = vld [vmem:[#allocation41_spill] sm:$0xff]  ;;  %v5148_v42 = vld [vmem:[#allocation4 + $0x2] sm:$0xff] }
 0x965   :  { %5763 = vrot.lane.b32.xlu1 %v10902_v7, %s12810_s28  ;;  %13069 = vst [vmem:[#allocation79_spill] sm:$0xff] %v10927_v0  ;;  %v10941_v7 = vrot.slane %v10915_v62, %v9734_v25  ;;  %v4516_v46 = vsel %vm12896_vm1, %v13073_v30, %v13067_v4  ;;  %v13078_v16 = vrot.slane %v13077_v19, 6  ;;  %s13079_s28 = smov 30  }
 0x966   :  { %13068 = vst [vmem:[#allocation78_spill] sm:$0xff] %v10923_v43  ;;  %v10953_v22 = vrot.slane %v10923_v43, %v9734_v25  ;;  %v5184_v30 = vcombine.low %v5176_v33, %v5183_v20  ;;  %v10966_v52 = vmul.f32 %v4516_v46, %v10485_v53  ;;  %v4065_v4 = vrot.slane %v4039_v8, %v9734_v25 }
 0x967   :  { %v7154_v27 = vsel %vm12823_vm0, %v13078_v16, %v13077_v19  ;;  %v10978_v20 = vrot.slane %v10949_v39, %v9734_v25  ;;  %vm12826_vm0 = vcmask 113664  }
 0x968   :  { %13075 = vst [vmem:[#allocation40_spill] sm:$0xff] %v10953_v22  ;;  %4066 = vrot.lane.b32.xlu0 %v10941_v7, %s13079_s28  ;;  %v10974_v19 = vmul.f32 %v7154_v27, %v10495_v2  ;;  %v5186_v33 = vmul.f32 %v5184_v30, %v5148_v42 }
 0x969   :  { %6050 = vrot.lane.b32.xlu1 %v10927_v0, %s12821_s7  ;;  %v10955_v0 = vpop.permute.xlu1 %6719  ;;  %13081 = vst [vmem:[#allocation41_spill] sm:$0xff] %v10978_v20  ;;  %s13088_s7 = smov 51  }
 0x96a   :  { %13076 = vst [vmem:[#allocation80_spill] sm:$0xff] %v10955_v0  ;;  %v13080_v0 = vrot.slane %v13074_v18, 6  ;;  %v5195_v27 = vrot.slane %v5186_v33, %v9734_v25  ;;  %7870 = vst.sshfl [vmem:[#allocation7 + $0xc0] sm:$0x3 pattern:$0x76325410] %v5186_v33  ;;  %v5188_v16 = vcombine.high %v5186_v33, %v5186_v33 }
 0x96c   :  { %v4901_v43 = vsel %vm12907_vm15, %v13080_v0, %v13074_v18  ;;  %4074 = vrot.lane.b32.xlu0 %v4065_v4, %s13079_s28  ;;  %v10990_v0 = vrot.slane %v10966_v52, %v9734_v25  ;;  %v10995_v4 = vrot.slane %v10974_v19, %v9734_v25  ;;  %v5203_v30 = vcombine.high %v5195_v27, %v5195_v27 }
 0x96d   :  { %6430 = vrot.lane.b32.xlu1 %v10953_v22, %s12819_s20  ;;  %v10983_v46 = vpop.permute.xlu1 %6814  ;;  %v10986_v8 = vmul.f32 %v4901_v43, %v10485_v53  ;;  %v4382_v22 = vld [vmem:[#allocation4 + $0x8] sm:$0x3]  ;;  %v5202_v53 = vrot.slane %v5188_v16, %v9734_v25  ;;  %7871 = vst.sshfl [vmem:[#allocation7 + $0xd0] sm:$0x3 pattern:$0x76325410] %v5188_v16  ;;  %v2893_v18 = vcombine.high %v10551_v44, %v10551_v44 }
 0x96e   :  { %13083 = vst [vmem:[#allocation81_spill] sm:$0xff] %v10983_v46  ;;  %13084 = vst [vmem:[#allocation82_spill] sm:$0xff] %v10995_v4  ;;  %v13085_v43 = vrot.slane %v10283_v40, 6  ;;  %s13087_s20 = smov 3   ;;  %v13089_v40 = vrot.slane %v10292_v60, 6  ;;  %v3071_v44 = vcombine.high %v10547_v13, %v10547_v13 }
 0x96f   :  { %v11006_v33 = vrot.slane %v10986_v8, %v9734_v25  ;;  %5210 = vst [vmem:[#allocation7 + $0xc8] sm:$0x3] %v5203_v30  ;;  %v5204_v46 = vcombine.high %v5202_v53, %v5202_v53 }
 0x970   :  { %4552 = vrot.lane.b32.xlu0 %v10990_v0, %s12937_s27  ;;  %v4426_v42 = vmul.f32 %v13085_v43, %v4382_v22  ;;  %v13090_v43 = vld [vmem:[#allocation28_spill] sm:$0xff] }
 0x971   :  { %6810 = vrot.lane.b32.xlu1 %v10978_v20, %s13082_s3  ;;  %v4764_v20 = vld [vmem:[#allocation4 + $0x8] sm:$0x3]  ;;  %v11010_v27 = vpop.permute.xlu1 %6909  ;;  %5212 = vst [vmem:[#allocation7 + $0xd8] sm:$0x3] %v5204_v46  ;;  %v13091_v30 = vrot.slane %v13090_v43, 6  ;;  %v13093_v46 = vld [vmem:[#allocation29_spill] sm:$0xff] }
 0x972   :  { %13086 = vst [vmem:[#allocation83_spill] sm:$0xff] %v11010_v27  ;;  %v4809_v22 = vmul.f32 %v13089_v40, %v4764_v20  ;;  %v4452_v16 = vrot.slane %v4426_v42, %v9734_v25  ;;  %v2990_v27 = vcombine.high %v10709_v50, %v10709_v50  ;;  %v13094_v42 = vrot.slane %v13093_v46, 6  ;;  %s13108_s3 = smov 47  }
 0x973   :  { %v5254_v53 = vsel %vm12825_vm4, %v13091_v30, %v13090_v43  ;;  %v3168_v50 = vcombine.low %v10563_v24, %v10563_v24  ;;  %v11041_v40 = vrot.slane %v3071_v44, %v9734_v25  ;;  %vm4846_vm4 = vcmask 105472  }
 0x974   :  { %4937 = vrot.lane.b32.xlu0 %v11006_v33, %s13087_s20  ;;  %v4835_v20 = vrot.slane %v4809_v22, %v9734_v25  ;;  %v5634_v13 = vsel %vm12826_vm0, %v13094_v42, %v13093_v46  ;;  %vm12828_vm0 = vcmask 23552   ;;  %v13105_v46 = vld [vmem:[#allocation31_spill] sm:$0xff] }
 0x975   :  { %7190 = vrot.lane.b32.xlu1 %v10995_v4, %s12973_s19  ;;  %v11028_v60 = vpop.permute.xlu1 %7005  ;;  %13095 = vst [vmem:[#allocation28_spill] sm:$0xff] %v11041_v40  ;;  %v11058_v30 = vrot.slane %v3168_v50, %v9734_v25  ;;  %v13106_v42 = vrot.slane %v13105_v46, 6  ;;  %v3281_v50 = vcombine.high %v10732_v59, %v10732_v59  ;;  %s13107_s19 = smov 114   ;;  %v3459_v59 = vcombine.high %v10577_v57, %v10577_v57  ;;  %v13125_v4 = vld [vmem:[#allocation39_spill] sm:$0xff] }
 0x978   :  { %4461 = vrot.lane.b32.xlu0 %v4452_v16, %s12939_s16  ;;  %v13098_v16 = vld [vmem:[#allocation33_spill] sm:$0xff] }
 0x979   :  { %2904 = vrot.lane.b32.xlu1 %v2893_v18, %s13088_s7  ;;  %v11031_v18 = vmul.f32 %v5254_v53, %v10495_v2  ;;  %v13099_v43 = vrot.slane %v13098_v16, 6  ;;  %13100 = vst [vmem:[#allocation33_spill] sm:$0xff] %v11058_v30  ;;  %v11060_v53 = vpop.permute.xlu1 %7099 }
 0x97a   :  { %13101 = vst [vmem:[#allocation84_spill] sm:$0xff] %v11060_v53  ;;  %v13110_v53 = vld [vmem:[#allocation34_spill] sm:$0xff] }
 0x97b   :  { %v11051_v22 = vrot.slane %v11031_v18, %v9734_v25  ;;  %v5540_v24 = vsel %vm4846_vm4, %v13099_v43, %v13098_v16 }
 0x97c   :  { %4844 = vrot.lane.b32.xlu0 %v4835_v20, %s13031_s29  ;;  %v11067_v44 = vmul.f32 %v5540_v24, %v10495_v2 }
 0x97d   :  { %3005 = vrot.lane.b32.xlu1 %v2990_v27, %s13092_s21  ;;  %v11047_v27 = vmul.f32 %v5634_v13, %v10495_v2  ;;  %13097 = vst [vmem:[#allocation29_spill] sm:$0xff] %v11051_v22  ;;  %v5444_v13 = vsel %vm12828_vm0, %v13106_v42, %v13105_v46  ;;  %v11082_v16 = vpop.permute.xlu1 %7194  ;;  %v13111_v46 = vrot.slane %v13110_v53, 6  ;;  %vm12834_vm0 = vcmask 154624  }
 0x97e   :  { %13109 = vst [vmem:[#allocation31_spill] sm:$0xff] %v11082_v16  ;;  %v11085_v43 = vmul.f32 %v5444_v13, %v10495_v2  ;;  %v11089_v24 = vrot.slane %v11067_v44, %v9734_v25 }
 0x97f   :  { %v11071_v20 = vrot.slane %v11047_v27, %v9734_v25  ;;  %v5824_v42 = vsel %vm12831_vm6, %v13111_v46, %v13110_v53  ;;  %v13113_v53 = vld [vmem:[#allocation37_spill] sm:$0xff]  ;;  %vm3882_vm6 = vcmask 261120  }
 0x980   :  { %5290 = vrot.lane.b32.xlu0 %v11051_v22, %s13102_s15  ;;  %v11103_v13 = vmul.f32 %v5824_v42, %v10495_v2  ;;  %v11107_v16 = vrot.slane %v11085_v43, %v9734_v25  ;;  %v13114_v46 = vrot.slane %v13113_v53, 6  ;;  %s13117_s15 = smov 125  }
 0x981   :  { %3102 = vrot.lane.b32.xlu1 %v11041_v40, %s13096_s14  ;;  %13104 = vst [vmem:[#allocation85_spill] sm:$0xff] %v11071_v20  ;;  %v11118_v40 = vpop.permute.xlu1 %7289 }
 0x982   :  { %v6109_v57 = vsel %vm12834_vm0, %v13114_v46, %v13113_v53  ;;  %13116 = vst [vmem:[#allocation37_spill] sm:$0xff] %v11118_v40  ;;  %vm13127_vm0 = vcmask 138240  }
 0x983   :  { %v11125_v42 = vmul.f32 %v6109_v57, %v10495_v2 }
 0x984   :  { %5670 = vrot.lane.b32.xlu0 %v11071_v20, %s13107_s19  ;;  %s13112_s19 = smov 115  }
 0x985   :  { %3196 = vrot.lane.b32.xlu1 %v11058_v30, %s13103_s13  ;;  %v11116_v30 = vrot.slane %v3459_v59, %v9734_v25  ;;  %13118 = vst [vmem:[#allocation86_spill] sm:$0xff] %v11125_v42  ;;  %v11142_v57 = vpop.permute.xlu1 %7385 }
 0x987   :  { %13115 = vst [vmem:[#allocation34_spill] sm:$0xff] %v11116_v30 }
 0x988   :  { %5571 = vrot.lane.b32.xlu0 %v11089_v24, %s13112_s19  ;;  %s13122_s19 = smov 112  }
 0x989   :  { %3292 = vrot.lane.b32.xlu1 %v3281_v50, %s13108_s3  ;;  %v3378_v50 = vcombine.high %v10783_v10, %v10783_v10  ;;  %v3556_v10 = vcombine.low %v10593_v58, %v10593_v58  ;;  %v13119_v58 = vld [vmem:[#allocation38_spill] sm:$0xff] }
 0x98a   :  { %v13120_v59 = vrot.slane %v13119_v58, 6 }
 0x98b   :  { %v11136_v46 = vrot.slane %v3556_v10, %v9734_v25 }
 0x98c   :  { %5483 = vrot.lane.b32.xlu0 %v11107_v16, %s13117_s15  ;;  %v6489_v53 = vsel %vm3882_vm6, %v13120_v59, %v13119_v58  ;;  %v13126_v58 = vrot.slane %v13125_v4, 6  ;;  %v3669_v59 = vcombine.high %v10805_v41, %v10805_v41 }
 0x98d   :  { %3393 = vrot.lane.b32.xlu1 %v3378_v50, %s13030_s0  ;;  %v11129_v50 = vrot.slane %v11103_v13, %v9734_v25  ;;  %13121 = vst [vmem:[#allocation38_spill] sm:$0xff] %v11136_v46  ;;  %v11145_v40 = vmul.f32 %v6489_v53, %v10495_v2 }
 0x98e   :  { %v5920_v10 = vsel %vm13127_vm0, %v13126_v58, %v13125_v4  ;;  %v3766_v4 = vcombine.high %v10864_v5, %v10864_v5  ;;  %v11189_v5 = vrot.slane %v10527_v49, %v9734_v25  ;;  %vm2912_vm0 = vcmask 416768  }
 0x98f   :  { %13123 = vst [vmem:[#allocation87_spill] sm:$0xff] %v11145_v40  ;;  %v11161_v53 = vmul.f32 %v5920_v10, %v10495_v2  ;;  %v4042_v2 = vcombine.high %v10915_v62, %v10915_v62  ;;  %v3960_v10 = vcombine.low %v10650_v6, %v10650_v6  ;;  %v11202_v6 = vrot.slane %v10524_v34, %v9734_v25 }
 0x990   :  { %5863 = vrot.lane.b32.xlu0 %v11129_v50, %s13122_s19  ;;  %s13128_s19 = smov 109   ;;  %13133 = vst [vmem:[#allocation90_spill] sm:$0xff] %v11189_v5  ;;  %v4138_v62 = vcombine.low %v10609_v32, %v10609_v32 }
 0x991   :  { %3490 = vrot.lane.b32.xlu1 %v11116_v30, %s12999_s12  ;;  %v11149_v30 = vrot.slane %v11125_v42, %v9734_v25  ;;  %v11176_v41 = vrot.slane %v11161_v53, %v9734_v25 }
 0x992   :  { %v11222_v32 = vrot.slane %v4138_v62, %v9734_v25  ;;  %v4235_v62 = vcombine.high %v10889_v23, %v10889_v23 }
 0x993   :  { %13124 = vst [vmem:[#allocation88_spill] sm:$0xff] %v11149_v30  ;;  %13131 = vst [vmem:[#allocation89_spill] sm:$0xff] %v11176_v41 }
 0x994   :  { %6143 = vrot.lane.b32.xlu0 %v11149_v30, %s13128_s19  ;;  %s13132_s19 = smov 111   ;;  %v3847_v30 = vcombine.high %v10860_v26, %v10860_v26  ;;  %13139 = vst [vmem:[#allocation94_spill] sm:$0xff] %v11222_v32  ;;  %v11243_v26 = vrot.slane %v10671_v38, %v9734_v25  ;;  %v11263_v23 = vrot.slane %v4235_v62, %v9734_v25 }
 0x995   :  { %3584 = vrot.lane.b32.xlu1 %v11136_v46, %s13002_s6  ;;  %v11165_v46 = vrot.slane %v11145_v40, %v9734_v25  ;;  %s13130_s6 = smov 96   ;;  %v4444_v62 = vcombine.high %v10766_v35, %v10766_v35  ;;  %v2878_v35 = vcombine.high %v10515_v56, %v10515_v56  ;;  %v13155_v56 = vrot.slane %v10220_v14, 6 }
 0x996   :  { %13143 = vst [vmem:[#allocation97_spill] sm:$0xff] %v11243_v26 }
 0x997   :  { %13129 = vst [vmem:[#allocation39_spill] sm:$0xff] %v11165_v46 }
 0x998   :  { %6523 = vrot.lane.b32.xlu0 %v11165_v46, %s13130_s6  ;;  %s13135_s6 = smov 98   ;;  %v4348_v46 = vcombine.low %v10692_v9, %v10692_v9  ;;  %v11230_v9 = vrot.slane %v10544_v45, %v9734_v25  ;;  %v4154_v45 = vcombine.high %v10628_v12, %v10628_v12 }
 0x999   :  { %3680 = vrot.lane.b32.xlu1 %v3669_v59, %s13037_s9 }
 0x99a   :  { %13141 = vst [vmem:[#allocation95_spill] sm:$0xff] %v11230_v9 }
 0x99b   :  { %v11167_v42 = vpop.permute.xlu1 %2902 }
 0x99c   :  { %5951 = vrot.lane.b32.xlu0 %v11176_v41, %s13132_s19 }
 0x99d   :  { %3781 = vrot.lane.b32.xlu1 %v3766_v4, %s13054_s17  ;;  %v11194_v4 = vrot.slane %v4042_v2, %v9734_v25  ;;  %v11215_v2 = vrot.slane %v10530_v21, %v9734_v25  ;;  %v11235_v21 = vrot.slane %v3847_v30, %v9734_v25  ;;  %v11256_v30 = vrot.slane %v10533_v55, %v9734_v25 }
 0x99f   :  { %v11180_v58 = vpop.permute.xlu1 %3098  ;;  %13145 = vst [vmem:[#allocation99_spill] sm:$0xff] %v11256_v30 }
 0x9a0   :  { %6331 = vrot.lane.b32.xlu0 %v11189_v5, %s13135_s6 }
 0x9a1   :  { %3974 = vrot.lane.b32.xlu1 %v3960_v10, %s13011_s2  ;;  %s13137_s2 = smov 99  }
 0x9a3   :  { %v11191_v59 = vpop.permute.xlu1 %3200 }
 0x9a4   :  { %13134 = vst [vmem:[#allocation91_spill] sm:$0xff] %v11191_v59  ;;  %6243 = vrot.lane.b32.xlu0 %v11202_v6, %s13137_s2 }
 0x9a5   :  { %4070 = vrot.lane.b32.xlu1 %v11194_v4, %s13079_s28  ;;  %s13140_s28 = smov 95  }
 0x9a7   :  { %v11206_v10 = vpop.permute.xlu1 %3486 }
 0x9a8   :  { %13136 = vst [vmem:[#allocation92_spill] sm:$0xff] %v11206_v10  ;;  %6623 = vrot.lane.b32.xlu0 %v11215_v2, %s13140_s28 }
 0x9a9   :  { %4362 = vrot.lane.b32.xlu1 %v4348_v46, %s13014_s26 }
 0x9ab   :  { %v11219_v5 = vpop.permute.xlu1 %3588 }
 0x9ac   :  { %13138 = vst [vmem:[#allocation93_spill] sm:$0xff] %v11219_v5  ;;  %6903 = vrot.lane.b32.xlu0 %v11230_v9, %s12970_s18  ;;  %v11258_v9 = vpop.permute.xlu0 %2910  ;;  %s13148_s18 = smov 94   ;;  %v4827_v5 = vcombine.high %v10791_v3, %v10791_v3 }
 0x9ad   :  { %4163 = vrot.lane.b32.xlu1 %v11222_v32, %s13005_s30  ;;  %13146 = vst [vmem:[#allocation100_spill] sm:$0xff] %v11258_v9 }
 0x9af   :  { %v11232_v46 = vpop.permute.xlu1 %4167 }
 0x9b0   :  { %13142 = vst [vmem:[#allocation96_spill] sm:$0xff] %v11232_v46  ;;  %7283 = vrot.lane.b32.xlu0 %v11243_v26, %s12974_s24  ;;  %v11273_v12 = vpop.permute.xlu0 %3003  ;;  %v4714_v26 = vcombine.low %v10787_v1, %v10787_v1  ;;  %s13184_s24 = smov 127  }
 0x9b1   :  { %3878 = vrot.lane.b32.xlu1 %v11235_v21, %s13064_s8  ;;  %13150 = vst [vmem:[#allocation103_spill] sm:$0xff] %v11273_v12 }
 0x9b2   :  { %v11293_v1 = vrot.slane %v4714_v26, %v9734_v25  ;;  %v5100_v26 = vcombine.low %v10813_v36, %v10813_v36  ;;  %v11323_v36 = vrot.slane %v2878_v35, %v9734_v25 }
 0x9b3   :  { %v11247_v32 = vpop.permute.xlu1 %3976 }
 0x9b4   :  { %13144 = vst [vmem:[#allocation98_spill] sm:$0xff] %v11247_v32  ;;  %6711 = vrot.lane.b32.xlu0 %v11256_v30, %s13148_s18  ;;  %v11286_v30 = vrot.slane %v10541_v31, %v9734_v25  ;;  %v11288_v40 = vpop.permute.xlu0 %3290  ;;  %13153 = vst [vmem:[#allocation106_spill] sm:$0xff] %v11293_v1  ;;  %v2926_v31 = vld [vmem:[#allocation4 + $0x8] sm:$0x3]  ;;  %v11328_v3 = vrot.slane %v5100_v26, %v9734_v25  ;;  %v13159_v26 = vrot.slane %v10234_v51, 6 }
 0x9b5   :  { %4169 = vrot.lane.b32.xlu1 %v4154_v45, %s13005_s30  ;;  %v11271_v45 = vrot.slane %v10684_v54, %v9734_v25  ;;  %v3086_v51 = vcombine.low %v10567_v47, %v10567_v47  ;;  %v3266_v47 = vcombine.high %v10705_v48, %v10705_v48  ;;  %v13168_v48 = vrot.slane %v10245_v15, 6 }
 0x9b6   :  { %13157 = vst [vmem:[#allocation109_spill] sm:$0xff] %v11328_v3 }
 0x9b7   :  { %v11260_v38 = vpop.permute.xlu1 %4364  ;;  %13149 = vst [vmem:[#allocation102_spill] sm:$0xff] %v11271_v45 }
 0x9b8   :  { %13147 = vst [vmem:[#allocation101_spill] sm:$0xff] %v11260_v38  ;;  %7091 = vrot.lane.b32.xlu0 %v11271_v45, %s12972_s11  ;;  %v11305_v45 = vpop.permute.xlu0 %3298 }
 0x9b9   :  { %4266 = vrot.lane.b32.xlu1 %v11263_v23, %s13072_s4  ;;  %13154 = vst [vmem:[#allocation107_spill] sm:$0xff] %v11305_v45  ;;  %v2974_v45 = vcombine.low %v10678_v61, %v10678_v61 }
 0x9bb   :  { %v11277_v9 = vpop.permute.xlu1 %4645  ;;  %v11337_v61 = vrot.slane %v2974_v45, %v9734_v25 }
 0x9bc   :  { %13151 = vst [vmem:[#allocation104_spill] sm:$0xff] %v11277_v9  ;;  %7003 = vrot.lane.b32.xlu0 %v11286_v30, %s12971_s22 }
 0x9bd   :  { %4455 = vrot.lane.b32.xlu1 %v4444_v62, %s12939_s16  ;;  %v11303_v62 = vrot.slane %v10681_v37, %v9734_v25  ;;  %v11320_v37 = vpop.permute.xlu0 %3391 }
 0x9be   :  { %13156 = vst [vmem:[#allocation108_spill] sm:$0xff] %v11320_v37 }
 0x9bf   :  { %v11290_v41 = vpop.permute.xlu1 %5032 }
 0x9c0   :  { %13152 = vst [vmem:[#allocation105_spill] sm:$0xff] %v11290_v41  ;;  %7383 = vrot.lane.b32.xlu0 %v11303_v62, %s12975_s10 }
 0x9c1   :  { %4742 = vrot.lane.b32.xlu1 %v11293_v1, %s13038_s25  ;;  %v2971_v1 = vmul.f32 %v13155_v56, %v2926_v31  ;;  %v11334_v31 = vpop.permute.xlu0 %3678  ;;  %v4633_v56 = vcombine.low %v10716_v63, %v10716_v63 }
 0x9c3   :  { %v11309_v34 = vpop.permute.xlu1 %4453  ;;  %v2991_v14 = vcombine.low %v2971_v1, %v2971_v1 }
 0x9c4   :  { %2906 = vrot.lane.b32.xlu0 %v11323_v36, %s13088_s7 }
 0x9c5   :  { %4838 = vrot.lane.b32.xlu1 %v4827_v5, %s13031_s29  ;;  %v3023_v5 = vld [vmem:[#allocation4 + $0x8] sm:$0x3]  ;;  %v11348_v1 = vpop.permute.xlu0 %3686  ;;  %v2998_v10 = vrot.slane %v2991_v14, %v9734_v25 }
 0x9c6   :  { %13160 = vst [vmem:[#allocation111_spill] sm:$0xff] %v11348_v1 }
 0x9c7   :  { %v11325_v20 = vpop.permute.xlu1 %4836 }
 0x9c8   :  { %2999 = vrot.lane.b32.xlu0 %v11337_v61, %s13092_s21 }
 0x9c9   :  { %5128 = vrot.lane.b32.xlu1 %v11328_v3, %s12936_s5  ;;  %v3068_v3 = vmul.f32 %v13159_v26, %v3023_v5  ;;  %v11358_v22 = vpop.permute.xlu0 %3779  ;;  %v4618_v5 = vcombine.high %v10688_v11, %v10688_v11  ;;  %v3314_v26 = vld [vmem:[#allocation4 + $0x8] sm:$0x3] }
 0x9cb   :  { %v11339_v35 = vpop.permute.xlu1 %4746  ;;  %v3094_v63 = vrot.slane %v3068_v3, %v9734_v25 }
 0x9cc   :  { %13158 = vst [vmem:[#allocation110_spill] sm:$0xff] %v11339_v35  ;;  %v5020_v35 = vcombine.low %v10739_v29, %v10739_v29  ;;  %3007 = vrot.lane.b32.xlu0 %v2998_v10, %s13092_s21 }
 0x9cd   :  { %4643 = vrot.lane.b32.xlu1 %v4633_v56, %s12938_s23  ;;  %v4539_v56 = vcombine.high %v10990_v0, %v10990_v0  ;;  %v11370_v29 = vpop.permute.xlu0 %3874  ;;  %v3095_v10 = vcombine.low %v3094_v63, %v3094_v63  ;;  %v3184_v0 = vcombine.low %v10581_v28, %v10581_v28  ;;  %v5005_v63 = vcombine.high %v10712_v17, %v10712_v17 }
 0x9ce   :  { %13163 = vst [vmem:[#allocation114_spill] sm:$0xff] %v11370_v29  ;;  %v5451_v17 = vcombine.low %v11085_v43, %v11085_v43 }
 0x9cf   :  { %v11351_v45 = vpop.permute.xlu1 %5132 }
 0x9d0   :  { %13161 = vst [vmem:[#allocation112_spill] sm:$0xff] %v11351_v45  ;;  %3096 = vrot.lane.b32.xlu0 %v3086_v51, %s13096_s14  ;;  %v11422_v43 = vrot.slane %v5451_v17, %v9734_v25  ;;  %v5562_v17 = vcombine.high %v11089_v24, %v11089_v24  ;;  %v13201_v45 = vld [vmem:[#allocation49_spill] sm:$0xff] }
 0x9d1   :  { %5030 = vrot.lane.b32.xlu1 %v5020_v35, %s13020_s1  ;;  %v11375_v35 = vrot.slane %v4618_v5, %v9734_v25  ;;  %v4924_v5 = vcombine.high %v11006_v33, %v11006_v33  ;;  %v11408_v33 = vrot.slane %v5005_v63, %v9734_v25  ;;  %v13176_v63 = vld [vmem:[#allocation13_spill] sm:$0xff] }
 0x9d2   :  { %13175 = vst [vmem:[#allocation123_spill] sm:$0xff] %v11422_v43 }
 0x9d3   :  { %v11364_v14 = vpop.permute.xlu1 %5383  ;;  %13165 = vst [vmem:[#allocation116_spill] sm:$0xff] %v11375_v35  ;;  %13172 = vst [vmem:[#allocation120_spill] sm:$0xff] %v11408_v33 }
 0x9d4   :  { %13162 = vst [vmem:[#allocation113_spill] sm:$0xff] %v11364_v14  ;;  %3104 = vrot.lane.b32.xlu0 %v3095_v10, %s13096_s14  ;;  %v13169_v10 = vld [vmem:[#allocation69_spill] sm:$0xff]  ;;  %s13182_s14 = smov 112  }
 0x9d5   :  { %4554 = vrot.lane.b32.xlu1 %v4539_v56, %s12937_s27  ;;  %v3359_v56 = vmul.f32 %v13168_v48, %v3314_v26  ;;  %v3411_v26 = vld [vmem:[#allocation4 + $0x8] sm:$0x3]  ;;  %v13177_v48 = vrot.slane %v13176_v63, 6 }
 0x9d6   :  { %v11382_v11 = vpop.permute.xlu0 %4262 }
 0x9d7   :  { %v11372_v3 = vpop.permute.xlu1 %5763  ;;  %13166 = vst [vmem:[#allocation117_spill] sm:$0xff] %v11382_v11  ;;  %v3379_v15 = vcombine.low %v3359_v56, %v3359_v56  ;;  %v3456_v56 = vmul.f32 %v13177_v48, %v3411_v26  ;;  %v13180_v26 = vld [vmem:[#allocation57_spill] sm:$0xff] }
 0x9d8   :  { %13164 = vst [vmem:[#allocation115_spill] sm:$0xff] %v11372_v3  ;;  %3198 = vrot.lane.b32.xlu0 %v3184_v0, %s13103_s13  ;;  %v11401_v3 = vrot.slane %v3266_v47, %v9734_v25  ;;  %s13179_s13 = smov 115   ;;  %v3474_v48 = vcombine.low %v13180_v26, %v13180_v26  ;;  %v13185_v26 = vld [vmem:[#allocation71_spill] sm:$0xff] }
 0x9d9   :  { %4649 = vrot.lane.b32.xlu1 %v11375_v35, %s12938_s23  ;;  %v3362_v35 = vcombine.low %v13169_v10, %v13169_v10 }
 0x9da   :  { %v11398_v28 = vpop.permute.xlu0 %4066 }
 0x9db   :  { %v11388_v51 = vpop.permute.xlu1 %6050  ;;  %13170 = vst [vmem:[#allocation69_spill] sm:$0xff] %v11398_v28  ;;  %v11417_v47 = vrot.slane %v3362_v35, %v9734_v25  ;;  %v3386_v35 = vrot.slane %v3379_v15, %v9734_v25  ;;  %v5261_v15 = vcombine.low %v11031_v18, %v11031_v18  ;;  %v5641_v18 = vcombine.low %v11047_v27, %v11047_v27  ;;  %v13187_v27 = vld [vmem:[#allocation59_spill] sm:$0xff] }
 0x9dc   :  { %13167 = vst [vmem:[#allocation118_spill] sm:$0xff] %v11388_v51  ;;  %3294 = vrot.lane.b32.xlu0 %v11401_v3, %s13108_s3 }
 0x9dd   :  { %4939 = vrot.lane.b32.xlu1 %v4924_v5, %s13087_s20 }
 0x9de   :  { %v11414_v0 = vpop.permute.xlu0 %4074 }
 0x9df   :  { %v11405_v51 = vpop.permute.xlu1 %6430  ;;  %13173 = vst [vmem:[#allocation121_spill] sm:$0xff] %v11414_v0 }
 0x9e0   :  { %13171 = vst [vmem:[#allocation119_spill] sm:$0xff] %v11405_v51  ;;  %3387 = vrot.lane.b32.xlu0 %v11417_v47, %s13030_s0  ;;  %v5831_v51 = vcombine.low %v11103_v13, %v11103_v13 }
 0x9e1   :  { %5036 = vrot.lane.b32.xlu1 %v11408_v33, %s13020_s1  ;;  %v3482_v33 = vrot.slane %v3456_v56, %v9734_v25 }
 0x9e2   :  { %v11430_v10 = vpop.permute.xlu0 %4552 }
 0x9e3   :  { %v11419_v5 = vpop.permute.xlu1 %6810 }
 0x9e4   :  { %13174 = vst [vmem:[#allocation122_spill] sm:$0xff] %v11419_v5  ;;  %3395 = vrot.lane.b32.xlu0 %v3386_v35, %s13030_s0  ;;  %v3483_v35 = vcombine.low %v3482_v33, %v3482_v33  ;;  %v3654_v33 = vcombine.high %v13185_v26, %v13185_v26 }
 0x9e5   :  { %5479 = vrot.lane.b32.xlu1 %v11422_v43, %s13117_s15 }
 0x9e6   :  { %v11442_v63 = vpop.permute.xlu0 %4937 }
 0x9e7   :  { %v11435_v5 = vpop.permute.xlu1 %7190 }
 0x9e8   :  { %13178 = vst [vmem:[#allocation13_spill] sm:$0xff] %v11435_v5  ;;  %v11451_v5 = vrot.slane %v5831_v51, %v9734_v25  ;;  %3484 = vrot.lane.b32.xlu0 %v3474_v48, %s12999_s12  ;;  %v11466_v51 = vrot.slane %v5261_v15, %v9734_v25  ;;  %v5927_v15 = vcombine.high %v11161_v53, %v11161_v53 }
 0x9e9   :  { %5573 = vrot.lane.b32.xlu1 %v5562_v17, %s13179_s13 }
 0x9ea   :  { %13181 = vst [vmem:[#allocation57_spill] sm:$0xff] %v11451_v5  ;;  %v11459_v56 = vpop.permute.xlu0 %4461  ;;  %v11500_v53 = vrot.slane %v5927_v15, %v9734_v25  ;;  %v6227_v15 = vcombine.low %v11202_v6, %v11202_v6  ;;  %v13198_v6 = vld [vmem:[#allocation62_spill] sm:$0xff] }
 0x9eb   :  { %v11448_v13 = vpop.permute.xlu1 %2904  ;;  %13183 = vst [vmem:[#allocation124_spill] sm:$0xff] %v11459_v56  ;;  %v11485_v56 = vrot.slane %v5641_v18, %v9734_v25  ;;  %v13194_v18 = vld [vmem:[#allocation60_spill] sm:$0xff] }
 0x9ec   :  { %v2913_v24 = vsel %vm2912_vm0, %v11167_v42, %v11448_v13  ;;  %3492 = vrot.lane.b32.xlu0 %v3483_v35, %s12999_s12  ;;  %s13188_s12 = smov 35   ;;  %13193 = vst [vmem:[#allocation125_spill] sm:$0xff] %v11500_v53 }
 0x9ed   :  { %2921 = vst [vmem:[#allocation7] sm:$0x3] %v2913_v24  ;;  %5859 = vrot.lane.b32.xlu1 %v11451_v5, %s13182_s14  ;;  %v3572_v24 = vcombine.low %v13187_v27, %v13187_v27  ;;  %s13189_s14 = smov 114   ;;  %v11495_v27 = vrot.slane %v3654_v33, %v9734_v25  ;;  %v6307_v33 = vcombine.high %v10527_v49, %v10527_v49  ;;  %v4090_v5 = vld [vmem:[#allocation4 + $0x8] sm:$0x3] }
 0x9ee   :  { %v11476_v48 = vpop.permute.xlu0 %4844 }
 0x9ef   :  { %v11463_v17 = vpop.permute.xlu1 %3005  ;;  %13186 = vst [vmem:[#allocation71_spill] sm:$0xff] %v11476_v48 }
 0x9f0   :  { %v3012_v42 = vsel %vm3009_vm8, %v11273_v12, %v11463_v17  ;;  %3586 = vrot.lane.b32.xlu0 %v3572_v24, %s13188_s12  ;;  %v3944_v24 = vcombine.low %v13194_v18, %v13194_v18  ;;  %s13197_s12 = smov 31  }
 0x9f1   :  { %3020 = vst [vmem:[#allocation7 + $0x10] sm:$0xc] %v3012_v42  ;;  %5286 = vrot.lane.b32.xlu1 %v11466_v51, %s13184_s24  ;;  %v13190_v42 = vld [vmem:[#allocation74_spill] sm:$0xff] }
 0x9f2   :  { %v3750_v26 = vcombine.low %v13190_v42, %v13190_v42  ;;  %v11492_v48 = vpop.permute.xlu0 %5290 }
 0x9f3   :  { %v11482_v35 = vpop.permute.xlu1 %3102  ;;  %13191 = vst [vmem:[#allocation59_spill] sm:$0xff] %v11492_v48 }
 0x9f4   :  { %3682 = vrot.lane.b32.xlu0 %v11495_v27, %s13037_s9  ;;  %v11511_v48 = vrot.slane %v3750_v26, %v9734_v25 }
 0x9f5   :  { %5666 = vrot.lane.b32.xlu1 %v11485_v56, %s13189_s14 }
 0x9f6   :  { %v11508_v42 = vpop.permute.xlu0 %5670 }
 0x9f7   :  { %v11497_v14 = vpop.permute.xlu1 %3196  ;;  %13195 = vst [vmem:[#allocation60_spill] sm:$0xff] %v11508_v42  ;;  %v11533_v42 = vrot.slane %v6307_v33, %v9734_v25  ;;  %v4057_v33 = vcombine.high %v10941_v7, %v10941_v7 }
 0x9f8   :  { %13192 = vst [vmem:[#allocation74_spill] sm:$0xff] %v11497_v14  ;;  %3775 = vrot.lane.b32.xlu0 %v11511_v48, %s13054_s17 }
 0x9f9   :  { %5955 = vrot.lane.b32.xlu1 %v11500_v53, %s13132_s19  ;;  %v11528_v53 = vrot.slane %v3944_v24, %v9734_v25  ;;  %13196 = vst [vmem:[#allocation126_spill] sm:$0xff] %v11533_v42  ;;  %v4332_v24 = vcombine.low %v13198_v6, %v13198_v6 }
 0x9fa   :  { %v11525_v26 = vpop.permute.xlu0 %5571 }
 0x9fb   :  { %v11515_v0 = vpop.permute.xlu1 %3292  ;;  %v11562_v7 = vrot.slane %v4332_v24, %v9734_v25 }
 0x9fc   :  { %v3301_v18 = vsel %vm3300_vm9, %v11288_v40, %v11515_v0  ;;  %3972 = vrot.lane.b32.xlu0 %v11528_v53, %s13197_s12 }
 0x9fd   :  { %3309 = vst [vmem:[#allocation7 + $0x20] sm:$0x3] %v3301_v18  ;;  %6241 = vrot.lane.b32.xlu1 %v6227_v15, %s13137_s2  ;;  %v13200_v18 = vld [vmem:[#allocation9_spill] sm:$0xff] }
 0x9fe   :  { %v11544_v15 = vpop.permute.xlu0 %5483  ;;  %v6021_v1 = vcombine.low %v13200_v18, %v13200_v18  ;;  %v3702_v18 = vld [vmem:[#allocation4 + $0x8] sm:$0x3] }
 0x9ff   :  { %v11530_v49 = vpop.permute.xlu1 %3393  ;;  %13199 = vst [vmem:[#allocation62_spill] sm:$0xff] %v11544_v15  ;;  %v5490_v12 = vsel %vm12907_vm15, %v11544_v15, %v13201_v45  ;;  %v13206_v45 = vld [vmem:[#allocation58_spill] sm:$0xff]  ;;  %vm13253_vm15 = vcmask 400384  }
 0xa00   :  { %v3400_v40 = vsel %vm3397_vm14, %v11320_v37, %v11530_v49  ;;  %5498 = vst [vmem:[#allocation7 + $0xd8] sm:$0xc0] %v5490_v12  ;;  %v13210_v12 = vld [vmem:[#allocation16_spill] sm:$0xff] }
 0xa01   :  { %3408 = vst [vmem:[#allocation7 + $0x30] sm:$0xc] %v3400_v40  ;;  %6335 = vrot.lane.b32.xlu1 %v11533_v42, %s13135_s6  ;;  %v6607_v40 = vcombine.low %v11215_v2, %v11215_v2  ;;  %s13203_s6 = smov 30   ;;  %v13205_v42 = vld [vmem:[#allocation78_spill] sm:$0xff]  ;;  %v11572_v2 = vrot.slane %v6021_v1, %v9734_v25  ;;  %v13211_v24 = vrot.slane %v13210_v12, 6  ;;  %v6687_v1 = vcombine.high %v10533_v55, %v10533_v55  ;;  %v13216_v12 = vld [vmem:[#allocation15_spill] sm:$0xff] }
 0xa02   :  { %4068 = vrot.lane.b32.xlu0 %v4057_v33, %s13203_s6  ;;  %v11559_v6 = vpop.permute.xlu0 %5863  ;;  %v6401_v11 = vcombine.low %v13205_v42, %v13205_v42 }
 0xa03   :  { %v11553_v37 = vpop.permute.xlu1 %3490  ;;  %13204 = vst [vmem:[#allocation49_spill] sm:$0xff] %v11559_v6  ;;  %v5870_v15 = vsel %vm12896_vm1, %v11559_v6, %v13206_v45  ;;  %13208 = vst [vmem:[#allocation58_spill] sm:$0xff] %v11572_v2  ;;  %v3747_v33 = vmul.f32 %v13211_v24, %v3702_v18  ;;  %v3799_v6 = vld [vmem:[#allocation4 + $0x8] sm:$0x3]  ;;  %v13217_v24 = vrot.slane %v13216_v12, 6  ;;  %vm13227_vm1 = vcmask 809984  }
 0xa04   :  { %13202 = vst [vmem:[#allocation9_spill] sm:$0xff] %v11553_v37  ;;  %5878 = vst [vmem:[#allocation7 + $0xf8] sm:$0xc0] %v5870_v15  ;;  %v11589_v15 = vrot.slane %v6401_v11, %v9734_v25 }
 0xa05   :  { %6621 = vrot.lane.b32.xlu1 %v6607_v40, %s13140_s28  ;;  %s13209_s28 = smov 110   ;;  %v13213_v40 = vld [vmem:[#allocation10_spill] sm:$0xff] }
 0xa06   :  { %4360 = vrot.lane.b32.xlu0 %v11562_v7, %s13014_s26  ;;  %v11580_v42 = vpop.permute.xlu0 %6143  ;;  %v3862_v45 = vcombine.low %v13213_v40, %v13213_v40  ;;  %13214 = vst [vmem:[#allocation10_spill] sm:$0xff] %v11589_v15  ;;  %v3844_v40 = vmul.f32 %v13217_v24, %v3799_v6  ;;  %v13221_v6 = vld [vmem:[#allocation18_spill] sm:$0xff]  ;;  %v4187_v24 = vld [vmem:[#allocation4 + $0x8] sm:$0x3] }
 0xa07   :  { %v11569_v29 = vpop.permute.xlu1 %3584  ;;  %13212 = vst [vmem:[#allocation16_spill] sm:$0xff] %v11580_v42  ;;  %v13219_v42 = vld [vmem:[#allocation77_spill] sm:$0xff] }
 0xa08   :  { %13207 = vst [vmem:[#allocation78_spill] sm:$0xff] %v11569_v29  ;;  %v4250_v11 = vcombine.low %v13219_v42, %v13219_v42  ;;  %v3870_v42 = vrot.slane %v3844_v40, %v9734_v25  ;;  %v13223_v40 = vld [vmem:[#allocation17_spill] sm:$0xff] }
 0xa09   :  { %6046 = vrot.lane.b32.xlu1 %v11572_v2, %s13209_s28  ;;  %s13215_s28 = smov 97   ;;  %v3767_v2 = vcombine.low %v3747_v33, %v3747_v33  ;;  %v13222_v33 = vrot.slane %v13221_v6, 6 }
 0xa0a   :  { %3872 = vrot.lane.b32.xlu0 %v3862_v45, %s13064_s8  ;;  %v11599_v55 = vpop.permute.xlu0 %6523  ;;  %v11606_v45 = vrot.slane %v6687_v1, %v9734_v25 }
 0xa0b   :  { %v11586_v28 = vpop.permute.xlu1 %3680  ;;  %13218 = vst [vmem:[#allocation15_spill] sm:$0xff] %v11599_v55  ;;  %v3774_v1 = vrot.slane %v3767_v2, %v9734_v25  ;;  %v13224_v2 = vrot.slane %v13223_v40, 6  ;;  %v7367_v40 = vcombine.low %v11303_v62, %v11303_v62  ;;  %v13229_v62 = vld [vmem:[#allocation36_spill] sm:$0xff] }
 0xa0c   :  { %v3689_v18 = vsel %vm3688_vm13, %v11334_v31, %v11586_v28  ;;  %13220 = vst [vmem:[#allocation77_spill] sm:$0xff] %v11606_v45 }
 0xa0d   :  { %3697 = vst [vmem:[#allocation7 + $0x40] sm:$0x3] %v3689_v18  ;;  %6426 = vrot.lane.b32.xlu1 %v11589_v15, %s13215_s28  ;;  %v4135_v18 = vmul.f32 %v13222_v33, %v4090_v5  ;;  %v4232_v6 = vmul.f32 %v13224_v2, %v4187_v24 }
 0xa0e   :  { %4260 = vrot.lane.b32.xlu0 %v4250_v11, %s13072_s4  ;;  %v11617_v12 = vpop.permute.xlu0 %5951  ;;  %v7067_v11 = vcombine.high %v10684_v54, %v10684_v54  ;;  %v3871_v54 = vcombine.low %v3870_v42, %v3870_v42  ;;  %v13226_v42 = vld [vmem:[#allocation68_spill] sm:$0xff] }
 0xa0f   :  { %v11603_v43 = vpop.permute.xlu1 %3781  ;;  %v4155_v33 = vcombine.low %v4135_v18, %v4135_v18  ;;  %v6781_v18 = vcombine.low %v10949_v39, %v10949_v39  ;;  %v13228_v39 = vld [vmem:[#allocation67_spill] sm:$0xff] }
 0xa10   :  { %v3788_v31 = vsel %vm3785_vm12, %v11358_v22, %v11603_v43 }
 0xa11   :  { %3796 = vst [vmem:[#allocation7 + $0x50] sm:$0xc] %v3788_v31  ;;  %6715 = vrot.lane.b32.xlu1 %v11606_v45, %s13148_s18  ;;  %v6987_v31 = vcombine.low %v11286_v30, %v11286_v30  ;;  %v11638_v30 = vrot.slane %v7067_v11, %v9734_v25  ;;  %v4162_v24 = vrot.slane %v4155_v33, %v9734_v25 }
 0xa12   :  { %3783 = vrot.lane.b32.xlu0 %v3774_v1, %s13054_s17  ;;  %v11633_v45 = vpop.permute.xlu0 %6331  ;;  %v4258_v1 = vrot.slane %v4232_v6, %v9734_v25  ;;  %v4429_v6 = vcombine.high %v13228_v39, %v13228_v39 }
 0xa13   :  { %v11622_v15 = vpop.permute.xlu1 %3974  ;;  %13225 = vst [vmem:[#allocation18_spill] sm:$0xff] %v11638_v30 }
 0xa14   :  { %v3983_v5 = vsel %vm3980_vm3, %v11622_v15, %v11247_v32 }
 0xa15   :  { %3991 = vst [vmem:[#allocation7 + $0x50] sm:$0xc0] %v3983_v5  ;;  %7001 = vrot.lane.b32.xlu1 %v6987_v31, %s12971_s22 }
 0xa16   :  { %3880 = vrot.lane.b32.xlu0 %v3871_v54, %s13064_s8  ;;  %v11644_v31 = vpop.permute.xlu0 %6243  ;;  %v4259_v54 = vcombine.low %v4258_v1, %v4258_v1  ;;  %v11681_v1 = vrot.slane %v4429_v6, %v9734_v25 }
 0xa17   :  { %v11635_v55 = vpop.permute.xlu1 %4070  ;;  %v6250_v5 = vsel %vm13227_vm1, %v11644_v31, %v13226_v42  ;;  %v7161_v42 = vcombine.low %v10974_v19, %v10974_v19  ;;  %vm13239_vm1 = vcmask 236544  }
 0xa18   :  { %6258 = vst [vmem:[#allocation7 + $0x118] sm:$0xc0] %v6250_v5 }
 0xa19   :  { %7095 = vrot.lane.b32.xlu1 %v11638_v30, %s12972_s11  ;;  %s13235_s11 = smov 80   ;;  %v2989_v30 = vcombine.high %v11337_v61, %v11337_v61 }
 0xa1a   :  { %4171 = vrot.lane.b32.xlu0 %v4162_v24, %s13005_s30  ;;  %v11663_v33 = vpop.permute.xlu0 %6623  ;;  %s13232_s30 = smov 93  }
 0xa1b   :  { %v11652_v11 = vpop.permute.xlu1 %4362  ;;  %v6630_v24 = vsel %vm3742_vm7, %v11663_v33, %v13229_v62  ;;  %v13238_v62 = vld [vmem:[#allocation73_spill] sm:$0xff] }
 0xa1c   :  { %v4371_v2 = vsel %vm4368_vm11, %v11652_v11, %v11260_v38  ;;  %v11673_v38 = vrot.slane %v6781_v18, %v9734_v25  ;;  %6638 = vst [vmem:[#allocation7 + $0x138] sm:$0xc0] %v6630_v24  ;;  %v13236_v18 = vld [vmem:[#allocation70_spill] sm:$0xff]  ;;  %v4730_v6 = vcombine.low %v13238_v62, %v13238_v62 }
 0xa1d   :  { %4379 = vst [vmem:[#allocation7 + $0x70] sm:$0xc0] %v4371_v2  ;;  %7381 = vrot.lane.b32.xlu1 %v7367_v40, %s12975_s10  ;;  %v11686_v2 = vrot.slane %v7161_v42, %v9734_v25  ;;  %v4812_v39 = vcombine.high %v13236_v18, %v13236_v18  ;;  %v2894_v42 = vcombine.high %v11323_v36, %v11323_v36 }
 0xa1e   :  { %13231 = vst [vmem:[#allocation68_spill] sm:$0xff] %v11673_v38  ;;  %4268 = vrot.lane.b32.xlu0 %v4259_v54, %s13072_s4  ;;  %v11678_v40 = vpop.permute.xlu0 %6903 }
 0xa1f   :  { %v11670_v5 = vpop.permute.xlu1 %4163  ;;  %13233 = vst [vmem:[#allocation67_spill] sm:$0xff] %v11678_v40  ;;  %13234 = vst [vmem:[#allocation36_spill] sm:$0xff] %v11686_v2 }
 0xa20   :  { %13230 = vst [vmem:[#allocation17_spill] sm:$0xff] %v11670_v5  ;;  %v11710_v5 = vrot.slane %v4812_v39, %v9734_v25  ;;  %v4476_v39 = vld [vmem:[#allocation4 + $0x8] sm:$0x3] }
 0xa21   :  { %6806 = vrot.lane.b32.xlu1 %v11673_v38, %s13232_s30 }
 0xa22   :  { %4457 = vrot.lane.b32.xlu0 %v11681_v1, %s12939_s16  ;;  %v11694_v54 = vpop.permute.xlu0 %7283 }
 0xa23   :  { %v11683_v19 = vpop.permute.xlu1 %3878  ;;  %13237 = vst [vmem:[#allocation70_spill] sm:$0xff] %v11694_v54  ;;  %v3670_v54 = vcombine.high %v11495_v27, %v11495_v27 }
 0xa25   :  { %7186 = vrot.lane.b32.xlu1 %v11686_v2, %s13235_s11  ;;  %v3282_v2 = vcombine.high %v11401_v3, %v11401_v3  ;;  %v4571_v3 = vld [vmem:[#allocation4 + $0x8] sm:$0x3] }
 0xa26   :  { %4744 = vrot.lane.b32.xlu0 %v4730_v6, %s13038_s25  ;;  %v11707_v18 = vpop.permute.xlu0 %6711  ;;  %v13242_v6 = vld [vmem:[#allocation76_spill] sm:$0xff] }
 0xa27   :  { %v11698_v24 = vpop.permute.xlu1 %4169  ;;  %13240 = vst [vmem:[#allocation73_spill] sm:$0xff] %v11707_v18 }
 0xa28   :  { %v4176_v32 = vsel %vm13239_vm1, %v11232_v46, %v11698_v24  ;;  %vm13243_vm1 = vcmask 138240  }
 0xa29   :  { %4184 = vst [vmem:[#allocation7 + $0x70] sm:$0xc] %v4176_v32  ;;  %2908 = vrot.lane.b32.xlu1 %v2894_v42, %s13088_s7  ;;  %v4523_v32 = vcombine.low %v10966_v52, %v10966_v52  ;;  %v5116_v42 = vcombine.low %v13242_v6, %v13242_v6  ;;  %v13244_v52 = vld [vmem:[#allocation21_spill] sm:$0xff]  ;;  %v4908_v6 = vcombine.low %v10986_v8, %v10986_v8  ;;  %v13246_v8 = vld [vmem:[#allocation24_spill] sm:$0xff]  ;;  %s13304_s7 = smov 110  }
 0xa2a   :  { %4840 = vrot.lane.b32.xlu0 %v11710_v5, %s13031_s29  ;;  %v11721_v36 = vpop.permute.xlu0 %7091 }
 0xa2b   :  { %v11712_v62 = vpop.permute.xlu1 %4266  ;;  %13241 = vst [vmem:[#allocation127_spill] sm:$0xff] %v11721_v36  ;;  %v11741_v18 = vrot.slane %v4523_v32, %v9734_v25 }
 0xa2d   :  { %3001 = vrot.lane.b32.xlu1 %v2989_v30, %s13092_s21  ;;  %v13245_v30 = vrot.slane %v13244_v52, 6  ;;  %s13258_s21 = smov 112  }
 0xa2e   :  { %5130 = vrot.lane.b32.xlu0 %v5116_v42, %s12936_s5  ;;  %v11738_v36 = vpop.permute.xlu0 %7003 }
 0xa2f   :  { %v11725_v46 = vpop.permute.xlu1 %4455  ;;  %v4520_v38 = vmul.f32 %v13245_v30, %v4476_v39  ;;  %v7010_v42 = vsel %vm3354_vm2, %v11738_v36, %v11028_v60  ;;  %v13247_v39 = vrot.slane %v13246_v8, 6  ;;  %v11758_v30 = vrot.slane %v4908_v6, %v9734_v25  ;;  %v4860_v60 = vld [vmem:[#allocation4 + $0x8] sm:$0x3] }
 0xa30   :  { %v4463_v61 = vsel %vm13243_vm1, %v11309_v34, %v11725_v46  ;;  %7018 = vst [vmem:[#allocation7 + $0x158] sm:$0xc0] %v7010_v42  ;;  %v13248_v6 = vld [vmem:[#allocation23_spill] sm:$0xff]  ;;  %vm13252_vm1 = vcmask 15360  }
 0xa31   :  { %4471 = vst [vmem:[#allocation7 + $0x80] sm:$0x3] %v4463_v61  ;;  %3296 = vrot.lane.b32.xlu1 %v3282_v2, %s13108_s3  ;;  %v3377_v2 = vcombine.high %v11417_v47, %v11417_v47  ;;  %v4615_v32 = vmul.f32 %v13247_v39, %v4571_v3  ;;  %v4540_v61 = vcombine.low %v4520_v38, %v4520_v38  ;;  %v13249_v3 = vrot.slane %v13248_v6, 6  ;;  %v4957_v39 = vld [vmem:[#allocation4 + $0x8] sm:$0x3]  ;;  %s13309_s3 = smov 77  }
 0xa32   :  { %4548 = vrot.lane.b32.xlu0 %v11741_v18, %s12937_s27  ;;  %v11755_v52 = vpop.permute.xlu0 %7383 }
 0xa33   :  { %v11746_v34 = vpop.permute.xlu1 %4742  ;;  %v7390_v47 = vsel %vm2966_vm10, %v11755_v52, %v11142_v57  ;;  %v4641_v57 = vrot.slane %v4615_v32, %v9734_v25  ;;  %v4547_v27 = vrot.slane %v4540_v61, %v9734_v25 }
 0xa34   :  { %7398 = vst [vmem:[#allocation7 + $0x178] sm:$0xc0] %v7390_v47 }
 0xa35   :  { %3389 = vrot.lane.b32.xlu1 %v3377_v2, %s13030_s0  ;;  %v4905_v2 = vmul.f32 %v13249_v3, %v4860_v60  ;;  %v4642_v6 = vcombine.low %v4641_v57, %v4641_v57  ;;  %s13373_s0 = smov 35  }
 0xa36   :  { %4933 = vrot.lane.b32.xlu0 %v11758_v30, %s13087_s20  ;;  %v11776_v8 = vpop.permute.xlu0 %2906 }
 0xa37   :  { %v11763_v42 = vpop.permute.xlu1 %4838  ;;  %v2914_v47 = vsel %vm2912_vm0, %v11448_v13, %v11776_v8  ;;  %v3863_v13 = vcombine.low %v11235_v21, %v11235_v21  ;;  %v4251_v21 = vcombine.low %v11263_v23, %v11263_v23 }
 0xa38   :  { %v4847_v38 = vsel %vm4846_vm4, %v11325_v20, %v11763_v42  ;;  %v3765_v20 = vcombine.high %v11511_v48, %v11511_v48  ;;  %2922 = vst [vmem:[#allocation7 + $0x8] sm:$0x3] %v2914_v47 }
 0xa39   :  { %4855 = vst [vmem:[#allocation7 + $0xa0] sm:$0x3] %v4847_v38  ;;  %3684 = vrot.lane.b32.xlu1 %v3670_v54, %s13037_s9  ;;  %v13250_v54 = vld [vmem:[#allocation26_spill] sm:$0xff]  ;;  %v4925_v38 = vcombine.low %v4905_v2, %v4905_v2  ;;  %s13362_s9 = smov 45  }
 0xa3a   :  { %4556 = vrot.lane.b32.xlu0 %v4547_v27, %s12937_s27  ;;  %v13251_v32 = vrot.slane %v13250_v54, 6  ;;  %v11790_v61 = vpop.permute.xlu0 %2999 }
 0xa3b   :  { %v11782_v40 = vpop.permute.xlu1 %5128  ;;  %v4932_v2 = vrot.slane %v4925_v38, %v9734_v25 }
 0xa3c   :  { %v5002_v60 = vmul.f32 %v13251_v32, %v4957_v39 }
 0xa3d   :  { %3777 = vrot.lane.b32.xlu1 %v3765_v20, %s13054_s17  ;;  %s13386_s17 = smov 29  }
 0xa3e   :  { %4651 = vrot.lane.b32.xlu0 %v4642_v6, %s12938_s23  ;;  %v5028_v27 = vrot.slane %v5002_v60, %v9734_v25  ;;  %v3008_v47 = vpop.permute.xlu0 %3007  ;;  %v5547_v6 = vcombine.high %v11067_v44, %v11067_v44 }
 0xa3f   :  { %v4644_v3 = vpop.permute.xlu1 %4643  ;;  %v3013_v57 = vsel %vm3009_vm8, %v11463_v17, %v3008_v47  ;;  %v3959_v17 = vcombine.low %v11528_v53, %v11528_v53 }
 0xa40   :  { %v4653_v48 = vsel %vm12908_vm5, %v4644_v3, %v11277_v9  ;;  %3021 = vst [vmem:[#allocation7 + $0x18] sm:$0xc] %v3013_v57  ;;  %v5029_v32 = vcombine.low %v5028_v27, %v5028_v27  ;;  %vm13254_vm5 = vcmask 130048   ;;  %v4347_v27 = vcombine.low %v11562_v7, %v11562_v7 }
 0xa41   :  { %4661 = vst [vmem:[#allocation7 + $0x80] sm:$0x30] %v4653_v48  ;;  %3876 = vrot.lane.b32.xlu1 %v3863_v13, %s13064_s8  ;;  %v5467_v13 = vcombine.low %v11107_v16, %v11107_v16  ;;  %v11832_v44 = vrot.slane %v5547_v6, %v9734_v25  ;;  %v4058_v7 = vcombine.high %v11194_v4, %v11194_v4  ;;  %v13261_v6 = vld [vmem:[#allocation11_spill] sm:$0xff] }
 0xa42   :  { %4941 = vrot.lane.b32.xlu0 %v4932_v2, %s13087_s20  ;;  %v3097_v54 = vpop.permute.xlu0 %3096 }
 0xa43   :  { %v5031_v39 = vpop.permute.xlu1 %5030  ;;  %v3107_v60 = vsel %vm13253_vm15, %v3097_v54, %v11180_v58 }
 0xa44   :  { %v5040_v20 = vsel %vm13252_vm1, %v5031_v39, %v11290_v41  ;;  %3115 = vst [vmem:[#allocation7] sm:$0x30] %v3107_v60 }
 0xa45   :  { %5048 = vst [vmem:[#allocation7 + $0xa0] sm:$0x30] %v5040_v20  ;;  %4264 = vrot.lane.b32.xlu1 %v4251_v21, %s13072_s4  ;;  %v5847_v20 = vcombine.low %v11129_v50, %v11129_v50 }
 0xa46   :  { %5038 = vrot.lane.b32.xlu0 %v5029_v32, %s13020_s1  ;;  %v3105_v3 = vpop.permute.xlu0 %3104  ;;  %v4538_v32 = vcombine.high %v11741_v18, %v11741_v18 }
 0xa47   :  { %v11810_v38 = vpop.permute.xlu1 %4554  ;;  %v3110_v53 = vsel %vm13253_vm15, %v11482_v35, %v3105_v3  ;;  %vm13257_vm15 = vcmask 23552   ;;  %v5751_v3 = vcombine.low %v13261_v6, %v13261_v6 }
 0xa48   :  { %v4560_v23 = vsel %vm13254_vm5, %v11430_v10, %v11810_v38  ;;  %3118 = vst [vmem:[#allocation7 + $0x18] sm:$0x30] %v3110_v53  ;;  %vm13255_vm5 = vcmask 392192  }
 0xa49   :  { %4568 = vst [vmem:[#allocation7 + $0x90] sm:$0xc] %v4560_v23  ;;  %3970 = vrot.lane.b32.xlu1 %v3959_v17, %s13197_s12  ;;  %vm13256_vm1 = vmmov %vm13255_vm5  ;;  %v13259_v17 = vld [vmem:[#allocation22_spill] sm:$0xff] }
 0xa4a   :  { %5481 = vrot.lane.b32.xlu0 %v5467_v13, %s13117_s15  ;;  %v3199_v47 = vpop.permute.xlu0 %3198  ;;  %v5371_v23 = vcombine.low %v13259_v17, %v13259_v17 }
 0xa4b   :  { %v11825_v48 = vpop.permute.xlu1 %4649  ;;  %v3206_v16 = vsel %vm13255_vm5, %v11497_v14, %v3199_v47  ;;  %v3207_v2 = vsel %vm13256_vm1, %v3199_v47, %v11191_v59  ;;  %vm13263_vm5 = vcmask 941056   ;;  %v13264_v47 = vld [vmem:[#allocation75_spill] sm:$0xff]  ;;  %vm13267_vm1 = vcmask 367616  }
 0xa4c   :  { %3214 = vst [vmem:[#allocation7 + $0x8] sm:$0xc0] %v3206_v16  ;;  %3215 = vst [vmem:[#allocation7 + $0x10] sm:$0xc0] %v3207_v2  ;;  %v5356_v16 = vcombine.high %v13264_v47, %v13264_v47 }
 0xa4d   :  { %4358 = vrot.lane.b32.xlu1 %v4347_v27, %s13014_s26  ;;  %v4445_v27 = vcombine.high %v11681_v1, %v11681_v1 }
 0xa4e   :  { %5575 = vrot.lane.b32.xlu0 %v11832_v44, %s13179_s13  ;;  %v11848_v21 = vpop.permute.xlu0 %3294 }
 0xa4f   :  { %v11838_v57 = vpop.permute.xlu1 %4939  ;;  %v3302_v4 = vsel %vm3300_vm9, %v11515_v0, %v11848_v21  ;;  %v4923_v0 = vcombine.high %v11758_v30, %v11758_v30 }
 0xa50   :  { %v4946_v39 = vsel %vm13257_vm15, %v11442_v63, %v11838_v57  ;;  %3310 = vst [vmem:[#allocation7 + $0x28] sm:$0x3] %v3302_v4  ;;  %v4828_v4 = vcombine.high %v11710_v5, %v11710_v5  ;;  %vm13268_vm15 = vmmov %vm13267_vm1  ;;  %v13269_v5 = vld [vmem:[#allocation32_spill] sm:$0xff] }
 0xa51   :  { %4954 = vst [vmem:[#allocation7 + $0xb0] sm:$0xc] %v4946_v39  ;;  %4072 = vrot.lane.b32.xlu1 %v4058_v7, %s13203_s6  ;;  %s13260_s6 = smov 126   ;;  %v13266_v39 = vld [vmem:[#allocation92_spill] sm:$0xff] }
 0xa52   :  { %5861 = vrot.lane.b32.xlu0 %v5847_v20, %s13258_s21  ;;  %v11861_v60 = vpop.permute.xlu0 %3387 }
 0xa53   :  { %v11855_v54 = vpop.permute.xlu1 %5036 }
 0xa55   :  { %4550 = vrot.lane.b32.xlu1 %v4538_v32, %s12937_s27  ;;  %s13262_s27 = smov 113   ;;  %v11897_v32 = vrot.slane %v5356_v16, %v9734_v25  ;;  %v5656_v16 = vcombine.high %v11485_v56, %v11485_v56  ;;  %v13275_v56 = vld [vmem:[#allocation123_spill] sm:$0xff] }
 0xa56   :  { %5381 = vrot.lane.b32.xlu0 %v5371_v23, %s13260_s6  ;;  %v3396_v18 = vpop.permute.xlu0 %3395 }
 0xa57   :  { %v11865_v50 = vpop.permute.xlu1 %5479  ;;  %v3401_v13 = vsel %vm3397_vm14, %v11530_v49, %v3396_v18  ;;  %v13265_v49 = vld [vmem:[#allocation29_spill] sm:$0xff]  ;;  %v5736_v18 = vcombine.high %v13269_v5, %v13269_v5 }
 0xa58   :  { %3409 = vst [vmem:[#allocation7 + $0x38] sm:$0xc] %v3401_v13  ;;  %v5277_v7 = vcombine.high %v13265_v49, %v13265_v49 }
 0xa59   :  { %4935 = vrot.lane.b32.xlu1 %v4923_v0, %s13087_s20  ;;  %v5276_v0 = vcombine.high %v11466_v51, %v11466_v51  ;;  %v11925_v49 = vrot.slane %v5736_v18, %v9734_v25  ;;  %s13305_s20 = smov 79  }
 0xa5a   :  { %5761 = vrot.lane.b32.xlu0 %v5751_v3, %s13262_s27  ;;  %v3485_v2 = vpop.permute.xlu0 %3484  ;;  %v13270_v3 = vld [vmem:[#allocation85_spill] sm:$0xff] }
 0xa5b   :  { %v11875_v53 = vpop.permute.xlu1 %5573  ;;  %v3495_v1 = vsel %vm13267_vm1, %v3485_v2, %v13266_v39  ;;  %v5657_v13 = vcombine.high %v13270_v3, %v13270_v3 }
 0xa5c   :  { %v5581_v30 = vsel %vm13263_vm5, %v11525_v26, %v11875_v53  ;;  %3503 = vst [vmem:[#allocation7 + $0x20] sm:$0x30] %v3495_v1  ;;  %vm13271_vm5 = vcmask 285696  }
 0xa5d   :  { %5589 = vst [vmem:[#allocation7 + $0xe0] sm:$0x3] %v5581_v30  ;;  %4459 = vrot.lane.b32.xlu1 %v4445_v27, %s12939_s16  ;;  %v13272_v30 = vld [vmem:[#allocation93_spill] sm:$0xff]  ;;  %vm13273_vm1 = vmmov %vm13271_vm5  ;;  %s13301_s16 = smov 83  }
 0xa5e   :  { %5292 = vrot.lane.b32.xlu0 %v5277_v7, %s13184_s24  ;;  %v3493_v26 = vpop.permute.xlu0 %3492  ;;  %v13274_v7 = vld [vmem:[#allocation86_spill] sm:$0xff] }
 0xa5f   :  { %v11890_v20 = vpop.permute.xlu1 %5859  ;;  %v3498_v17 = vsel %vm13268_vm15, %v11553_v37, %v3493_v26  ;;  %v6116_v1 = vcombine.high %v13274_v7, %v13274_v7  ;;  %vm13280_vm15 = vcmask 809984   ;;  %v13298_v37 = vld [vmem:[#allocation117_spill] sm:$0xff] }
 0xa60   :  { %3506 = vst [vmem:[#allocation7 + $0x38] sm:$0x30] %v3498_v17  ;;  %v5466_v17 = vcombine.low %v13275_v56, %v13275_v56 }
 0xa61   :  { %4842 = vrot.lane.b32.xlu1 %v4828_v4, %s13031_s29  ;;  %s13291_s29 = smov 95  }
 0xa62   :  { %5387 = vrot.lane.b32.xlu0 %v11897_v32, %s13260_s6  ;;  %v3587_v6 = vpop.permute.xlu0 %3586 }
 0xa63   :  { %v11901_v23 = vpop.permute.xlu1 %5286  ;;  %v3594_v27 = vsel %vm13271_vm5, %v11569_v29, %v3587_v6  ;;  %v3595_v47 = vsel %vm13273_vm1, %v3587_v6, %v13272_v30  ;;  %v13277_v6 = vld [vmem:[#allocation89_spill] sm:$0xff]  ;;  %vm13285_vm5 = vcmask 244736   ;;  %v13294_v30 = vld [vmem:[#allocation114_spill] sm:$0xff] }
 0xa64   :  { %3602 = vst [vmem:[#allocation7 + $0x28] sm:$0xc0] %v3594_v27  ;;  %3603 = vst [vmem:[#allocation7 + $0x30] sm:$0xc0] %v3595_v47  ;;  %v5942_v3 = vcombine.high %v13277_v6, %v13277_v6  ;;  %v11950_v47 = vrot.slane %v6116_v1, %v9734_v25 }
 0xa65   :  { %5288 = vrot.lane.b32.xlu1 %v5276_v0, %s13184_s24  ;;  %v13276_v0 = vld [vmem:[#allocation51_spill] sm:$0xff]  ;;  %vm13286_vm1 = vmmov %vm13285_vm5  ;;  %s13288_s24 = smov 96  }
 0xa66   :  { %5672 = vrot.lane.b32.xlu0 %v5657_v13, %s13189_s14  ;;  %v11922_v2 = vpop.permute.xlu0 %3682  ;;  %v6211_v5 = vcombine.low %v13276_v0, %v13276_v0  ;;  %v6132_v6 = vcombine.low %v11950_v47, %v11950_v47 }
 0xa67   :  { %v11916_v51 = vpop.permute.xlu1 %5666  ;;  %v3690_v4 = vsel %vm3688_vm13, %v11586_v28, %v11922_v2  ;;  %v13278_v28 = vld [vmem:[#allocation87_spill] sm:$0xff] }
 0xa68   :  { %3698 = vst [vmem:[#allocation7 + $0x48] sm:$0x3] %v3690_v4  ;;  %v6496_v13 = vcombine.high %v13278_v28, %v13278_v28 }
 0xa69   :  { %5668 = vrot.lane.b32.xlu1 %v5656_v16, %s13189_s14  ;;  %v13279_v16 = vld [vmem:[#allocation57_spill] sm:$0xff]  ;;  %s13281_s14 = smov 109  }
 0xa6a   :  { %5767 = vrot.lane.b32.xlu0 %v11925_v49, %s13262_s27  ;;  %v11941_v18 = vpop.permute.xlu0 %3775  ;;  %v5846_v7 = vcombine.low %v13279_v16, %v13279_v16  ;;  %v13283_v16 = vld [vmem:[#allocation90_spill] sm:$0xff] }
 0xa6b   :  { %v11932_v26 = vpop.permute.xlu1 %5955 }
 0xa6d   :  { %5477 = vrot.lane.b32.xlu1 %v5466_v17, %s13117_s15  ;;  %v6218_v17 = vrot.slane %v6211_v5, %v9734_v25  ;;  %s13287_s15 = smov 98  }
 0xa6e   :  { %5953 = vrot.lane.b32.xlu0 %v5942_v3, %s13132_s19  ;;  %v11959_v56 = vpop.permute.xlu0 %3972  ;;  %v11970_v3 = vrot.slane %v6496_v13, %v9734_v25 }
 0xa6f   :  { %v11947_v27 = vpop.permute.xlu1 %6241  ;;  %v3982_v1 = vsel %vm3980_vm3, %v11959_v56, %v11622_v15  ;;  %v6322_v15 = vcombine.high %v13283_v16, %v13283_v16  ;;  %v13289_v16 = vld [vmem:[#allocation54_spill] sm:$0xff] }
 0xa70   :  { %v6249_v4 = vsel %vm13280_vm15, %v11947_v27, %v11644_v31  ;;  %3990 = vst [vmem:[#allocation7 + $0x48] sm:$0xc0] %v3982_v1  ;;  %v13282_v31 = vld [vmem:[#allocation52_spill] sm:$0xff]  ;;  %v6512_v1 = vcombine.low %v11970_v3, %v11970_v3  ;;  %vm13299_vm15 = vcmask 154624  }
 0xa71   :  { %6257 = vst [vmem:[#allocation7 + $0x110] sm:$0xc0] %v6249_v4  ;;  %5857 = vrot.lane.b32.xlu1 %v5846_v7, %s13258_s21  ;;  %v6591_v5 = vcombine.low %v13282_v31, %v13282_v31  ;;  %v13284_v7 = vld [vmem:[#allocation69_spill] sm:$0xff] }
 0xa72   :  { %6239 = vrot.lane.b32.xlu0 %v6218_v17, %s13137_s2 }
 0xa73   :  { %v11965_v0 = vpop.permute.xlu1 %6335 }
 0xa74   :  { %v4069_v28 = vpop.permute.xlu0 %4068 }
 0xa75   :  { %6145 = vrot.lane.b32.xlu1 %v6132_v6, %s13281_s14  ;;  %v4077_v4 = vsel %vm13285_vm5, %v13284_v7, %v4069_v28  ;;  %v4078_v41 = vsel %vm13286_vm1, %v4069_v28, %v11635_v55  ;;  %v6598_v28 = vrot.slane %v6591_v5, %v9734_v25  ;;  %v6876_v7 = vcombine.high %v13289_v16, %v13289_v16  ;;  %v13293_v16 = vld [vmem:[#allocation63_spill] sm:$0xff]  ;;  %vm13308_vm1 = vmmov %vm13299_vm15 }
 0xa76   :  { %4085 = vst [vmem:[#allocation7 + $0x60] sm:$0x3] %v4077_v4  ;;  %4086 = vst [vmem:[#allocation7 + $0x68] sm:$0x3] %v4078_v41  ;;  %6333 = vrot.lane.b32.xlu0 %v6322_v15, %s13287_s15  ;;  %v6226_v15 = vcombine.low %v6218_v17, %v6218_v17  ;;  %v7256_v9 = vcombine.high %v13293_v16, %v13293_v16  ;;  %vm13307_vm5 = vcmask 236544  }
 0xa77   :  { %v11982_v13 = vpop.permute.xlu1 %6621  ;;  %v12006_v5 = vrot.slane %v6876_v7, %v9734_v25  ;;  %v6606_v17 = vcombine.low %v6598_v28, %v6598_v28  ;;  %v13297_v7 = vld [vmem:[#allocation53_spill] sm:$0xff] }
 0xa78   :  { %v6629_v6 = vsel %vm3742_vm7, %v11982_v13, %v11663_v33  ;;  %v11991_v31 = vpop.permute.xlu0 %4360  ;;  %v6971_v29 = vcombine.low %v13297_v7, %v13297_v7  ;;  %v12021_v16 = vrot.slane %v7256_v9, %v9734_v25  ;;  %v13303_v7 = vld [vmem:[#allocation65_spill] sm:$0xff] }
 0xa79   :  { %6637 = vst [vmem:[#allocation7 + $0x130] sm:$0xc0] %v6629_v6  ;;  %6525 = vrot.lane.b32.xlu1 %v6512_v1, %s13288_s24  ;;  %v4370_v41 = vsel %vm4368_vm11, %v11991_v31, %v11652_v11  ;;  %v13292_v1 = vld [vmem:[#allocation88_spill] sm:$0xff]  ;;  %v7351_v39 = vcombine.low %v13303_v7, %v13303_v7 }
 0xa7a   :  { %4378 = vst [vmem:[#allocation7 + $0x68] sm:$0xc0] %v4370_v41  ;;  %6619 = vrot.lane.b32.xlu0 %v6598_v28, %s13291_s29  ;;  %v6131_v6 = vcombine.low %v13292_v1, %v13292_v1  ;;  %v6892_v28 = vcombine.low %v12006_v5, %v12006_v5  ;;  %v6978_v59 = vrot.slane %v6971_v29, %v9734_v25 }
 0xa7b   :  { %v11999_v4 = vpop.permute.xlu1 %6046  ;;  %v7358_v7 = vrot.slane %v7351_v39, %v9734_v25 }
 0xa7c   :  { %13290 = vst [vmem:[#allocation76_spill] sm:$0xff] %v11999_v4  ;;  %v3873_v33 = vpop.permute.xlu0 %3872 }
 0xa7d   :  { %6237 = vrot.lane.b32.xlu1 %v6226_v15, %s13137_s2  ;;  %v3883_v11 = vsel %vm3882_vm6, %v3873_v33, %v13294_v30  ;;  %v13296_v15 = vld [vmem:[#allocation39_spill] sm:$0xff]  ;;  %s13350_s2 = smov 48  }
 0xa7e   :  { %3891 = vst [vmem:[#allocation7 + $0x40] sm:$0x30] %v3883_v11  ;;  %6141 = vrot.lane.b32.xlu0 %v6131_v6, %s13281_s14  ;;  %v6511_v1 = vcombine.low %v13296_v15, %v13296_v15  ;;  %v13300_v6 = vld [vmem:[#allocation46_spill] sm:$0xff]  ;;  %v13302_v15 = vld [vmem:[#allocation79_spill] sm:$0xff] }
 0xa7f   :  { %v12012_v4 = vpop.permute.xlu1 %6426  ;;  %v12915_v11 = vrot.slane %v13300_v6, 6  ;;  %v6037_v9 = vcombine.high %v13302_v15, %v13302_v15 }
 0xa80   :  { %13295 = vst [vmem:[#allocation21_spill] sm:$0xff] %v12012_v4  ;;  %v4261_v41 = vpop.permute.xlu0 %4260 }
 0xa81   :  { %6617 = vrot.lane.b32.xlu1 %v6606_v17, %s13291_s29  ;;  %v4271_v33 = vsel %vm13299_vm15, %v4261_v41, %v13298_v37  ;;  %vm13311_vm15 = vcmask 138240  }
 0xa82   :  { %4279 = vst [vmem:[#allocation7 + $0x60] sm:$0x30] %v4271_v33  ;;  %6521 = vrot.lane.b32.xlu0 %v6511_v1, %s13288_s24  ;;  %v7272_v33 = vcombine.low %v12021_v16, %v12021_v16  ;;  %v7440_v1 = vsel %vm2912_vm0, %v12915_v11, %v13300_v6 }
 0xa83   :  { %v12025_v4 = vpop.permute.xlu1 %6715 }
 0xa84   :  { %v3784_v17 = vpop.permute.xlu0 %3783 }
 0xa85   :  { %6905 = vrot.lane.b32.xlu1 %v6892_v28, %s13301_s16  ;;  %v3789_v41 = vsel %vm3785_vm12, %v11603_v43, %v3784_v17  ;;  %v8373_v43 = vld [vmem:[#allocation4 + $0x2] sm:$0xff] }
 0xa86   :  { %3797 = vst [vmem:[#allocation7 + $0x58] sm:$0xc] %v3789_v41  ;;  %6052 = vrot.lane.b32.xlu0 %v6037_v9, %s13304_s7  ;;  %v12052_v17 = vmul.f32 %v8373_v43, %v7440_v1  ;;  %v6986_v41 = vcombine.low %v6978_v59, %v6978_v59  ;;  %v13306_v9 = vld [vmem:[#allocation40_spill] sm:$0xff] }
 0xa87   :  { %v12039_v14 = vpop.permute.xlu1 %7001 }
 0xa88   :  { %v7009_v28 = vsel %vm3354_vm2, %v12039_v14, %v11738_v36  ;;  %v3881_v29 = vpop.permute.xlu0 %3880  ;;  %v7447_v1 = vcombine.high %v12052_v17, %v12052_v17 }
 0xa89   :  { %7017 = vst [vmem:[#allocation7 + $0x150] sm:$0xc0] %v7009_v28  ;;  %7285 = vrot.lane.b32.xlu1 %v7272_v33, %s13305_s20  ;;  %v3886_v15 = vsel %vm3882_vm6, %v11683_v19, %v3881_v29  ;;  %v6417_v33 = vcombine.high %v13306_v9, %v13306_v9  ;;  %v7366_v29 = vcombine.low %v7358_v7, %v7358_v7 }
 0xa8a   :  { %3894 = vst [vmem:[#allocation7 + $0x58] sm:$0x30] %v3886_v15  ;;  %6147 = vrot.lane.b32.xlu0 %v11950_v47, %s13281_s14 }
 0xa8b   :  { %v12057_v11 = vpop.permute.xlu1 %7095 }
 0xa8c   :  { %v4172_v36 = vpop.permute.xlu0 %4171 }
 0xa8d   :  { %6997 = vrot.lane.b32.xlu1 %v6986_v41, %s12971_s22  ;;  %v4177_v28 = vsel %vm13307_vm5, %v11698_v24, %v4172_v36  ;;  %v7461_v24 = vrot.slane %v7447_v1, %v9734_v25  ;;  %vm13312_vm5 = vcmask 113664  }
 0xa8e   :  { %4185 = vst [vmem:[#allocation7 + $0x78] sm:$0xc] %v4177_v28  ;;  %6432 = vrot.lane.b32.xlu0 %v6417_v33, %s13215_s28 }
 0xa8f   :  { %v12068_v39 = vpop.permute.xlu1 %7381 }
 0xa90   :  { %v7389_v47 = vsel %vm2966_vm10, %v12068_v39, %v11755_v52  ;;  %v4269_v43 = vpop.permute.xlu0 %4268  ;;  %v13310_v52 = vld [vmem:[#allocation99_spill] sm:$0xff] }
 0xa91   :  { %7397 = vst [vmem:[#allocation7 + $0x170] sm:$0xc0] %v7389_v47  ;;  %7377 = vrot.lane.b32.xlu1 %v7366_v29, %s12975_s10  ;;  %v4274_v15 = vsel %vm13308_vm1, %v11712_v62, %v4269_v43  ;;  %v6702_v9 = vcombine.high %v13310_v52, %v13310_v52  ;;  %v7463_v29 = vcombine.high %v7461_v24, %v7461_v24  ;;  %v13313_v47 = vld [vmem:[#allocation110_spill] sm:$0xff]  ;;  %vm13314_vm1 = vmmov %vm13312_vm5 }
 0xa92   :  { %4282 = vst [vmem:[#allocation7 + $0x78] sm:$0x30] %v4274_v15  ;;  %6527 = vrot.lane.b32.xlu0 %v11970_v3, %s13288_s24 }
 0xa93   :  { %v12077_v41 = vpop.permute.xlu1 %6806 }
 0xa94   :  { %v12083_v36 = vpop.permute.xlu0 %4457 }
 0xa95   :  { %7475 = vrot.lane.b32.xlu1 %v7461_v24, %s13309_s3  ;;  %v4464_v33 = vsel %vm13311_vm15, %v11725_v46, %v12083_v36  ;;  %v13315_v24 = vld [vmem:[#allocation100_spill] sm:$0xff] }
 0xa96   :  { %4472 = vst [vmem:[#allocation7 + $0x88] sm:$0x3] %v4464_v33  ;;  %6713 = vrot.lane.b32.xlu0 %v6702_v9, %s13148_s18  ;;  %v13316_v33 = vld [vmem:[#allocation102_spill] sm:$0xff] }
 0xa97   :  { %v12090_v28 = vpop.permute.xlu1 %7186 }
 0xa98   :  { %v4745_v3 = vpop.permute.xlu0 %4744 }
 0xa99   :  { %7477 = vrot.lane.b32.xlu1 %v7463_v29, %s13309_s3  ;;  %v4752_v1 = vsel %vm13312_vm5, %v11746_v34, %v4745_v3  ;;  %v4753_v43 = vsel %vm13314_vm1, %v4745_v3, %v13313_v47  ;;  %v7082_v29 = vcombine.high %v13316_v33, %v13316_v33  ;;  %v13322_v33 = vld [vmem:[#allocation107_spill] sm:$0xff]  ;;  %vm13337_vm5 = vcmask 1022976  }
 0xa9a   :  { %4760 = vst [vmem:[#allocation7 + $0x88] sm:$0xc0] %v4752_v1  ;;  %4761 = vst [vmem:[#allocation7 + $0x90] sm:$0xc0] %v4753_v43  ;;  %6999 = vrot.lane.b32.xlu0 %v6978_v59, %s12971_s22  ;;  %s13317_s22 = smov 81  }
 0xa9b   :  { %v2909_v15 = vpop.permute.xlu1 %2908  ;;  %vm13339_vm1 = vmmov %vm13337_vm5 }
 0xa9c   :  { %v2915_v46 = vsel %vm2912_vm0, %v11776_v8, %v2909_v15  ;;  %v2916_v52 = vsel %vm2912_vm0, %v2909_v15, %v13315_v24  ;;  %v12103_v9 = vpop.permute.xlu0 %4840  ;;  %v13318_v8 = vld [vmem:[#allocation103_spill] sm:$0xff]  ;;  %vm13319_vm0 = vcmask 7168   ;;  %v13320_v24 = vld [vmem:[#allocation112_spill] sm:$0xff] }
 0xa9d   :  { %2923 = vst [vmem:[#allocation7 + $0x10] sm:$0x3] %v2915_v46  ;;  %2924 = vst [vmem:[#allocation7 + $0x18] sm:$0x3] %v2916_v52  ;;  %v4848_v3 = vsel %vm4846_vm4, %v11763_v42, %v12103_v9 }
 0xa9e   :  { %4856 = vst [vmem:[#allocation7 + $0xa8] sm:$0x3] %v4848_v3  ;;  %7093 = vrot.lane.b32.xlu0 %v7082_v29, %s13317_s22  ;;  %vm13321_vm15 = vmmov %vm13319_vm0 }
 0xa9f   :  { %v3002_v1 = vpop.permute.xlu1 %3001 }
 0xaa0   :  { %v3010_v59 = vsel %vm3009_vm8, %v11790_v61, %v3002_v1  ;;  %v3011_v43 = vsel %vm3009_vm8, %v3002_v1, %v13318_v8  ;;  %v5131_v15 = vpop.permute.xlu0 %5130  ;;  %v13323_v1 = vld [vmem:[#allocation95_spill] sm:$0xff] }
 0xaa1   :  { %3018 = vst [vmem:[#allocation7] sm:$0xc] %v3010_v59  ;;  %3019 = vst [vmem:[#allocation7 + $0x8] sm:$0xc] %v3011_v43  ;;  %v5137_v46 = vsel %vm13319_vm0, %v11782_v40, %v5131_v15  ;;  %v5138_v52 = vsel %vm13321_vm15, %v5131_v15, %v13320_v24  ;;  %v6891_v59 = vcombine.low %v13323_v1, %v13323_v1  ;;  %v13327_v1 = vld [vmem:[#allocation41_spill] sm:$0xff]  ;;  %vm13341_vm0 = vcmask 941056  }
 0xaa2   :  { %5145 = vst [vmem:[#allocation7 + $0xa8] sm:$0xc0] %v5137_v46  ;;  %5146 = vst [vmem:[#allocation7 + $0xb0] sm:$0xc0] %v5138_v52  ;;  %7379 = vrot.lane.b32.xlu0 %v7358_v7, %s12975_s10  ;;  %v13324_v7 = vld [vmem:[#allocation108_spill] sm:$0xff]  ;;  %v13325_v46 = vld [vmem:[#allocation97_spill] sm:$0xff] }
 0xaa3   :  { %v3297_v42 = vpop.permute.xlu1 %3296  ;;  %v7271_v52 = vcombine.low %v13325_v46, %v13325_v46  ;;  %s13342_s10 = smov 49   ;;  %vm13343_vm15 = vcmask 244736  }
 0xaa4   :  { %v3303_v61 = vsel %vm3300_vm9, %v11848_v21, %v3297_v42  ;;  %v3304_v29 = vsel %vm3300_vm9, %v3297_v42, %v13322_v33  ;;  %v12124_v3 = vpop.permute.xlu0 %4548  ;;  %v13326_v33 = vld [vmem:[#allocation111_spill] sm:$0xff]  ;;  %vm13329_vm9 = vcmask 121856  }
 0xaa5   :  { %3311 = vst [vmem:[#allocation7 + $0x30] sm:$0x3] %v3303_v61  ;;  %3312 = vst [vmem:[#allocation7 + $0x38] sm:$0x3] %v3304_v29 }
 0xaa6   :  { %6901 = vrot.lane.b32.xlu0 %v6891_v59, %s13301_s16  ;;  %v6797_v59 = vcombine.high %v13327_v1, %v13327_v1  ;;  %v3120_v1 = vld [vmem:[#allocation4 + $0x8] sm:$0x3] }
 0xaa7   :  { %v3390_v8 = vpop.permute.xlu1 %3389 }
 0xaa8   :  { %v3398_v43 = vsel %vm3397_vm14, %v11861_v60, %v3390_v8  ;;  %v3399_v15 = vsel %vm3397_vm14, %v3390_v8, %v13324_v7  ;;  %v12133_v21 = vpop.permute.xlu0 %4933  ;;  %vm13328_vm14 = vcmask 130048  }
 0xaa9   :  { %3406 = vst [vmem:[#allocation7 + $0x20] sm:$0xc] %v3398_v43  ;;  %3407 = vst [vmem:[#allocation7 + $0x28] sm:$0xc] %v3399_v15 }
 0xaaa   :  { %7281 = vrot.lane.b32.xlu0 %v7271_v52, %s13305_s20 }
 0xaab   :  { %v3685_v42 = vpop.permute.xlu1 %3684 }
 0xaac   :  { %v3691_v61 = vsel %vm3688_vm13, %v11922_v2, %v3685_v42  ;;  %v3692_v29 = vsel %vm3688_vm13, %v3685_v42, %v13326_v33  ;;  %v4557_v60 = vpop.permute.xlu0 %4556  ;;  %v13330_v42 = vld [vmem:[#allocation82_spill] sm:$0xff]  ;;  %vm13332_vm13 = vcmask 154624  }
 0xaad   :  { %3699 = vst [vmem:[#allocation7 + $0x50] sm:$0x3] %v3691_v61  ;;  %3700 = vst [vmem:[#allocation7 + $0x58] sm:$0x3] %v3692_v29  ;;  %v4561_v8 = vsel %vm13328_vm14, %v11810_v38, %v4557_v60  ;;  %v7177_v61 = vcombine.high %v13330_v42, %v13330_v42 }
 0xaae   :  { %4569 = vst [vmem:[#allocation7 + $0x98] sm:$0xc] %v4561_v8  ;;  %6812 = vrot.lane.b32.xlu0 %v6797_v59, %s13232_s30  ;;  %vm13333_vm8 = vmmov %vm13332_vm13 }
 0xaaf   :  { %v3778_v43 = vpop.permute.xlu1 %3777  ;;  %vm13345_vm14 = vmmov %vm13343_vm15 }
 0xab0   :  { %v3786_v7 = vsel %vm3785_vm12, %v11941_v18, %v3778_v43  ;;  %v3787_v2 = vsel %vm3785_vm12, %v3778_v43, %v11358_v22  ;;  %v4652_v15 = vpop.permute.xlu0 %4651  ;;  %vm13331_vm12 = vcmask 23552  }
 0xab1   :  { %3794 = vst [vmem:[#allocation7 + $0x40] sm:$0xc] %v3786_v7  ;;  %3795 = vst [vmem:[#allocation7 + $0x48] sm:$0xc] %v3787_v2  ;;  %v4656_v46 = vsel %vm13329_vm9, %v11825_v48, %v4652_v15  ;;  %v13338_v15 = vld [vmem:[#allocation62_spill] sm:$0xff]  ;;  %vm13347_vm9 = vcmask 916480  }
 0xab2   :  { %4664 = vst [vmem:[#allocation7 + $0x98] sm:$0x30] %v4656_v46  ;;  %6907 = vrot.lane.b32.xlu0 %v12006_v5, %s13301_s16 }
 0xab3   :  { %v3877_v52 = vpop.permute.xlu1 %3876 }
 0xab4   :  { %v3884_v38 = vsel %vm3882_vm6, %v13294_v30, %v3877_v52  ;;  %v3885_v18 = vsel %vm3882_vm6, %v3877_v52, %v11683_v19  ;;  %v4942_v22 = vpop.permute.xlu0 %4941  ;;  %v12170_v19 = vrot.slane %v12052_v17, %v9734_v25  ;;  %vm13334_vm6 = vcmask 15360  }
 0xab5   :  { %3892 = vst [vmem:[#allocation7 + $0x48] sm:$0x30] %v3884_v38  ;;  %3893 = vst [vmem:[#allocation7 + $0x50] sm:$0x30] %v3885_v18  ;;  %v4947_v33 = vsel %vm13331_vm12, %v11838_v57, %v4942_v22  ;;  %v13340_v18 = vld [vmem:[#allocation28_spill] sm:$0xff] }
 0xab6   :  { %4955 = vst [vmem:[#allocation7 + $0xb8] sm:$0xc] %v4947_v33  ;;  %7192 = vrot.lane.b32.xlu0 %v7177_v61, %s13235_s11  ;;  %v7462_v17 = vcombine.high %v12170_v19, %v12170_v19  ;;  %v3087_v22 = vcombine.low %v13340_v18, %v13340_v18  ;;  %vm13349_vm12 = vmmov %vm13347_vm9 }
 0xab7   :  { %v4265_v29 = vpop.permute.xlu1 %4264 }
 0xab8   :  { %v4272_v5 = vsel %vm13332_vm13, %v13298_v37, %v4265_v29  ;;  %v4273_v30 = vsel %vm13333_vm8, %v4265_v29, %v11712_v62  ;;  %v5039_v60 = vpop.permute.xlu0 %5038  ;;  %v13335_v62 = vld [vmem:[#allocation12_spill] sm:$0xff]  ;;  %v13344_v29 = vld [vmem:[#allocation121_spill] sm:$0xff]  ;;  %vm13351_vm13 = vcmask 130048  }
 0xab9   :  { %4280 = vst [vmem:[#allocation7 + $0x68] sm:$0x30] %v4272_v5  ;;  %4281 = vst [vmem:[#allocation7 + $0x70] sm:$0x30] %v4273_v30  ;;  %v5043_v57 = vsel %vm13334_vm6, %v11855_v54, %v5039_v60  ;;  %v13336_v8 = vrot.slane %v13335_v62, 6  ;;  %v13346_v30 = vld [vmem:[#allocation33_spill] sm:$0xff] }
 0xaba   :  { %5051 = vst [vmem:[#allocation7 + $0xb8] sm:$0x30] %v5043_v57  ;;  %7287 = vrot.lane.b32.xlu0 %v12021_v16, %s13305_s20  ;;  %v3183_v60 = vcombine.low %v13346_v30, %v13346_v30  ;;  %v3508_v57 = vld [vmem:[#allocation4 + $0x8] sm:$0x3]  ;;  %vm13352_vm8 = vmmov %vm13351_vm13  ;;  %vm13356_vm6 = vcmask 1031168   ;;  %v13366_v30 = vld [vmem:[#allocation20_spill] sm:$0xff] }
 0xabb   :  { %v3971_v59 = vpop.permute.xlu1 %3970  ;;  %v3165_v43 = vmul.f32 %v13336_v8, %v3120_v1 }
 0xabc   :  { %v3981_v37 = vsel %vm3980_vm3, %v3971_v59, %v11959_v56  ;;  %v5482_v7 = vpop.permute.xlu0 %5481  ;;  %v13348_v59 = vld [vmem:[#allocation49_spill] sm:$0xff] }
 0xabd   :  { %3989 = vst [vmem:[#allocation7 + $0x40] sm:$0xc0] %v3981_v37  ;;  %v5488_v2 = vsel %vm13337_vm5, %v11865_v50, %v5482_v7  ;;  %v5489_v46 = vsel %vm13339_vm1, %v5482_v7, %v13338_v15  ;;  %v3185_v16 = vcombine.low %v3165_v43, %v3165_v43  ;;  %v13353_v43 = vld [vmem:[#allocation14_spill] sm:$0xff]  ;;  %vm13357_vm5 = vcmask 23552  }
 0xabe   :  { %5496 = vst [vmem:[#allocation7 + $0xc8] sm:$0xc0] %v5488_v2  ;;  %5497 = vst [vmem:[#allocation7 + $0xd0] sm:$0xc0] %v5489_v46  ;;  %7473 = vrot.lane.b32.xlu0 %v7462_v17, %s13309_s3  ;;  %v13354_v7 = vrot.slane %v13353_v43, 6  ;;  %v13355_v46 = vld [vmem:[#allocation113_spill] sm:$0xff] }
 0xabf   :  { %v4359_v52 = vpop.permute.xlu1 %4358  ;;  %v3192_v1 = vrot.slane %v3185_v16, %v9734_v25  ;;  %vm13358_vm1 = vmmov %vm13357_vm5  ;;  %v13371_v43 = vld [vmem:[#allocation47_spill] sm:$0xff] }
 0xac0   :  { %v4369_v56 = vsel %vm4368_vm11, %v4359_v52, %v11991_v31  ;;  %v12189_v38 = vpop.permute.xlu0 %5575  ;;  %v3553_v17 = vmul.f32 %v13354_v7, %v3508_v57 }
 0xac1   :  { %4377 = vst [vmem:[#allocation7 + $0x60] sm:$0xc0] %v4369_v56  ;;  %v5582_v42 = vsel %vm13341_vm0, %v11875_v53, %v12189_v38  ;;  %v3193_v15 = vcombine.low %v3192_v1, %v3192_v1  ;;  %vm13361_vm0 = vcmask 924672  }
 0xac2   :  { %5590 = vst [vmem:[#allocation7 + $0xe8] sm:$0x3] %v5582_v42  ;;  %3100 = vrot.lane.b32.xlu0 %v3087_v22, %s13342_s10  ;;  %v3573_v16 = vcombine.low %v3553_v17, %v3553_v17  ;;  %v13359_v22 = vld [vmem:[#allocation34_spill] sm:$0xff] }
 0xac3   :  { %v4073_v61 = vpop.permute.xlu1 %4072  ;;  %v3475_v42 = vcombine.low %v13359_v22, %v13359_v22  ;;  %v13377_v22 = vld [vmem:[#allocation48_spill] sm:$0xff] }
 0xac4   :  { %v4079_v33 = vsel %vm13343_vm15, %v11635_v55, %v4073_v61  ;;  %v4080_v31 = vsel %vm13345_vm14, %v4073_v61, %v13344_v29  ;;  %v5862_v5 = vpop.permute.xlu0 %5861  ;;  %v3896_v61 = vld [vmem:[#allocation4 + $0x8] sm:$0x3]  ;;  %vm13363_vm15 = vcmask 138240  }
 0xac5   :  { %4087 = vst [vmem:[#allocation7 + $0x70] sm:$0x3] %v4079_v33  ;;  %4088 = vst [vmem:[#allocation7 + $0x78] sm:$0x3] %v4080_v31  ;;  %v5868_v53 = vsel %vm13347_vm9, %v11890_v20, %v5862_v5  ;;  %v5869_v37 = vsel %vm13349_vm12, %v5862_v5, %v13348_v59  ;;  %v13360_v33 = vld [vmem:[#allocation115_spill] sm:$0xff]  ;;  %v13364_v5 = vld [vmem:[#allocation124_spill] sm:$0xff] }
 0xac6   :  { %5876 = vst [vmem:[#allocation7 + $0xe8] sm:$0xc0] %v5868_v53  ;;  %5877 = vst [vmem:[#allocation7 + $0xf0] sm:$0xc0] %v5869_v37  ;;  %3194 = vrot.lane.b32.xlu0 %v3183_v60, %s13350_s2  ;;  %v13367_v60 = vrot.slane %v13366_v30, 6  ;;  %v13368_v53 = vld [vmem:[#allocation38_spill] sm:$0xff]  ;;  %v3580_v37 = vrot.slane %v3573_v16, %v9734_v25 }
 0xac7   :  { %v4551_v62 = vpop.permute.xlu1 %4550  ;;  %vm13365_vm14 = vmmov %vm13363_vm15  ;;  %v3571_v59 = vcombine.low %v13368_v53, %v13368_v53  ;;  %vm13370_vm9 = vcmask 1039360  }
 0xac8   :  { %v4558_v55 = vsel %vm13351_vm13, %v12124_v3, %v4551_v62  ;;  %v4559_v8 = vsel %vm13352_vm8, %v4551_v62, %v11430_v10  ;;  %v5382_v2 = vpop.permute.xlu0 %5381  ;;  %v3941_v1 = vmul.f32 %v13367_v60, %v3896_v61  ;;  %v4284_v62 = vld [vmem:[#allocation4 + $0x8] sm:$0x3]  ;;  %vm13372_vm12 = vmmov %vm13370_vm9  ;;  %v13382_v60 = vld [vmem:[#allocation60_spill] sm:$0xff] }
 0xac9   :  { %4566 = vst [vmem:[#allocation7 + $0x80] sm:$0xc] %v4558_v55  ;;  %4567 = vst [vmem:[#allocation7 + $0x88] sm:$0xc] %v4559_v8  ;;  %v5391_v52 = vsel %vm13356_vm6, %v5382_v2, %v13355_v46  ;;  %v13369_v55 = vld [vmem:[#allocation59_spill] sm:$0xff] }
 0xaca   :  { %5399 = vst [vmem:[#allocation7 + $0xc0] sm:$0x30] %v5391_v52  ;;  %3202 = vrot.lane.b32.xlu0 %v3193_v15, %s13350_s2  ;;  %v13374_v2 = vld [vmem:[#allocation71_spill] sm:$0xff]  ;;  %vm13378_vm13 = vmmov %vm13356_vm6  ;;  %vm13383_vm6 = vcmask 932864  }
 0xacb   :  { %v4936_v56 = vpop.permute.xlu1 %4935  ;;  %v13375_v52 = vld [vmem:[#allocation19_spill] sm:$0xff]  ;;  %vm13379_vm8 = vmmov %vm13370_vm9 }
 0xacc   :  { %v4944_v3 = vsel %vm13357_vm5, %v12133_v21, %v4936_v56  ;;  %v4945_v10 = vsel %vm13358_vm1, %v4936_v56, %v11442_v63  ;;  %v5762_v18 = vpop.permute.xlu0 %5761  ;;  %v13376_v56 = vrot.slane %v13375_v52, 6  ;;  %vm13385_vm5 = vmmov %vm13383_vm6 }
 0xacd   :  { %4952 = vst [vmem:[#allocation7 + $0xa0] sm:$0xc] %v4944_v3  ;;  %4953 = vst [vmem:[#allocation7 + $0xa8] sm:$0xc] %v4945_v10  ;;  %v5771_v29 = vsel %vm13361_vm0, %v5762_v18, %v13360_v33  ;;  %v3961_v10 = vcombine.low %v3941_v1, %v3941_v1  ;;  %v3581_v18 = vcombine.low %v3580_v37, %v3580_v37 }
 0xace   :  { %5779 = vst [vmem:[#allocation7 + $0xe0] sm:$0x30] %v5771_v29  ;;  %3488 = vrot.lane.b32.xlu0 %v3475_v42, %s13362_s9  ;;  %v4329_v3 = vmul.f32 %v13376_v56, %v4284_v62  ;;  %vm13387_vm1 = vmmov %vm13385_vm5 }
 0xacf   :  { %v4460_v31 = vpop.permute.xlu1 %4459  ;;  %v3968_v30 = vrot.slane %v3961_v10, %v9734_v25  ;;  %vm13388_vm0 = vmmov %vm13387_vm1 }
 0xad0   :  { %v4465_v21 = vsel %vm13363_vm15, %v12083_v36, %v4460_v31  ;;  %v4466_v63 = vsel %vm13365_vm14, %v4460_v31, %v13364_v5  ;;  %v5293_v57 = vpop.permute.xlu0 %5292  ;;  %v4349_v31 = vcombine.low %v4329_v3, %v4329_v3  ;;  %v13381_v5 = vld [vmem:[#allocation94_spill] sm:$0xff]  ;;  %vm13390_vm15 = vcmask 924672  }
 0xad1   :  { %4473 = vst [vmem:[#allocation7 + $0x90] sm:$0x3] %v4465_v21  ;;  %4474 = vst [vmem:[#allocation7 + $0x98] sm:$0x3] %v4466_v63  ;;  %v5298_v8 = vsel %vm13370_vm9, %v13369_v55, %v5293_v57  ;;  %v5299_v36 = vsel %vm13372_vm12, %v5293_v57, %v13371_v43  ;;  %v4153_v63 = vcombine.high %v13381_v5, %v13381_v5  ;;  %v13384_v57 = vld [vmem:[#allocation55_spill] sm:$0xff]  ;;  %v13389_v43 = vld [vmem:[#allocation56_spill] sm:$0xff] }
 0xad2   :  { %5306 = vst [vmem:[#allocation7 + $0xd0] sm:$0xc] %v5298_v8  ;;  %5307 = vst [vmem:[#allocation7 + $0xd8] sm:$0xc] %v5299_v36  ;;  %3582 = vrot.lane.b32.xlu0 %v3571_v59, %s13373_s0  ;;  %v4356_v8 = vrot.slane %v4349_v31, %v9734_v25  ;;  %vm13391_vm14 = vcmask 1022976   ;;  %vm13392_vm9 = vcmask 908288  }
 0xad3   :  { %v4843_v7 = vpop.permute.xlu1 %4842  ;;  %vm13393_vm12 = vmmov %vm13392_vm9  ;;  %v13401_v5 = vld [vmem:[#allocation120_spill] sm:$0xff] }
 0xad4   :  { %v4849_v17 = vsel %vm4846_vm4, %v12103_v9, %v4843_v7  ;;  %v4850_v15 = vsel %vm4846_vm4, %v4843_v7, %v13374_v2  ;;  %v12247_v16 = vpop.permute.xlu0 %5387  ;;  %vm13380_vm4 = vmmov %vm13379_vm8  ;;  %v4357_v2 = vcombine.low %v4356_v8, %v4356_v8 }
 0xad5   :  { %4857 = vst [vmem:[#allocation7 + $0xb0] sm:$0x3] %v4849_v17  ;;  %4858 = vst [vmem:[#allocation7 + $0xb8] sm:$0x3] %v4850_v15  ;;  %v5394_v42 = vsel %vm13378_vm13, %v12247_v16, %v13377_v22  ;;  %vm13394_vm13 = vcmask 916480  }
 0xad6   :  { %5402 = vst [vmem:[#allocation7 + $0xd8] sm:$0x30] %v5394_v42  ;;  %3590 = vrot.lane.b32.xlu0 %v3581_v18, %s13373_s0  ;;  %v4666_v22 = vld [vmem:[#allocation4 + $0x8] sm:$0x3] }
 0xad7   :  { %v5289_v61 = vpop.permute.xlu1 %5288 }
 0xad8   :  { %v5296_v9 = vsel %vm13379_vm8, %v11901_v23, %v5289_v61  ;;  %v5297_v29 = vsel %vm13380_vm4, %v5289_v61, %v13369_v55  ;;  %v5673_v21 = vpop.permute.xlu0 %5672  ;;  %v3969_v55 = vcombine.low %v3968_v30, %v3968_v30  ;;  %vm13396_vm8 = vcmask 809984   ;;  %v13397_v61 = vld [vmem:[#allocation16_spill] sm:$0xff]  ;;  %v5053_v30 = vld [vmem:[#allocation4 + $0x8] sm:$0x3] }
 0xad9   :  { %5304 = vst [vmem:[#allocation7 + $0xc0] sm:$0xc] %v5296_v9  ;;  %5305 = vst [vmem:[#allocation7 + $0xc8] sm:$0xc] %v5297_v29  ;;  %v5678_v1 = vsel %vm13383_vm6, %v13382_v60, %v5673_v21  ;;  %v5679_v53 = vsel %vm13385_vm5, %v5673_v21, %v13384_v57  ;;  %vm13398_vm4 = vcmask 891904   ;;  %v13399_v29 = vld [vmem:[#allocation25_spill] sm:$0xff] }
 0xada   :  { %5686 = vst [vmem:[#allocation7 + $0xf0] sm:$0xc] %v5678_v1  ;;  %5687 = vst [vmem:[#allocation7 + $0xf8] sm:$0xc] %v5679_v53  ;;  %4165 = vrot.lane.b32.xlu0 %v4153_v63, %s13386_s17  ;;  %v13400_v31 = vrot.slane %v13399_v29, 6  ;;  %v5021_v63 = vcombine.low %v13401_v5, %v13401_v5  ;;  %vm13402_vm6 = vcmask 801792  }
 0xadb   :  { %v5669_v59 = vpop.permute.xlu1 %5668  ;;  %vm13403_vm5 = vmmov %vm13402_vm6  ;;  %v13404_v57 = vld [vmem:[#allocation15_spill] sm:$0xff] }
 0xadc   :  { %v5676_v23 = vsel %vm13387_vm1, %v11916_v51, %v5669_v59  ;;  %v5677_v37 = vsel %vm13388_vm0, %v5669_v59, %v13382_v60  ;;  %v12269_v62 = vpop.permute.xlu0 %5767  ;;  %vm13405_vm1 = vcmask 785408   ;;  %v13406_v59 = vld [vmem:[#allocation27_spill] sm:$0xff]  ;;  %vm13409_vm0 = vmmov %vm13396_vm8 }
 0xadd   :  { %5684 = vst [vmem:[#allocation7 + $0xe0] sm:$0xc] %v5676_v23  ;;  %5685 = vst [vmem:[#allocation7 + $0xe8] sm:$0xc] %v5677_v37  ;;  %v5774_v36 = vsel %vm13390_vm15, %v12269_v62, %v13389_v43  ;;  %v13407_v23 = vrot.slane %v13406_v59, 6  ;;  %v5372_v59 = vcombine.low %v11897_v32, %v11897_v32 }
 0xade   :  { %5782 = vst [vmem:[#allocation7 + $0xf8] sm:$0x30] %v5774_v36  ;;  %3978 = vrot.lane.b32.xlu0 %v3969_v55, %s13197_s12  ;;  %vm13411_vm15 = vmmov %vm13398_vm4  ;;  %s13535_s12 = sld [smem:[#allocation135_spill]] }
 0xadf   :  { %v5478_v7 = vpop.permute.xlu1 %5477  ;;  %v5097_v37 = vmul.f32 %v13407_v23, %v5053_v30  ;;  %v13421_v23 = vld [vmem:[#allocation66_spill] sm:$0xff] }
 0xae0   :  { %v5487_v51 = vsel %vm13391_vm14, %v5478_v7, %v11865_v50  ;;  %v5954_v17 = vpop.permute.xlu0 %5953  ;;  %v13395_v50 = vld [vmem:[#allocation116_spill] sm:$0xff]  ;;  %vm13412_vm14 = vmmov %vm13405_vm1 }
 0xae1   :  { %5495 = vst [vmem:[#allocation7 + $0xc0] sm:$0xc0] %v5487_v51  ;;  %v5961_v15 = vsel %vm13392_vm9, %v11617_v12, %v5954_v17  ;;  %v5962_v52 = vsel %vm13393_vm12, %v5954_v17, %v11932_v26  ;;  %v4634_v18 = vcombine.low %v13395_v50, %v13395_v50  ;;  %v5117_v17 = vcombine.low %v5097_v37, %v5097_v37 }
 0xae2   :  { %5969 = vst [vmem:[#allocation7 + $0x100] sm:$0x3] %v5961_v15  ;;  %5970 = vst [vmem:[#allocation7 + $0x108] sm:$0x3] %v5962_v52  ;;  %4366 = vrot.lane.b32.xlu0 %v4357_v2, %s13014_s26  ;;  %v13410_v15 = vld [vmem:[#allocation109_spill] sm:$0xff]  ;;  %vm13414_vm9 = vcmask 678912  }
 0xae3   :  { %v5858_v56 = vpop.permute.xlu1 %5857  ;;  %v5115_v52 = vcombine.low %v13410_v15, %v13410_v15  ;;  %v13427_v15 = vld [vmem:[#allocation35_spill] sm:$0xff] }
 0xae4   :  { %v5867_v3 = vsel %vm13394_vm13, %v5858_v56, %v11890_v20  ;;  %v6240_v10 = vpop.permute.xlu0 %6239  ;;  %v4711_v20 = vmul.f32 %v13400_v31, %v4666_v22  ;;  %v5124_v22 = vrot.slane %v5117_v17, %v9734_v25  ;;  %vm13420_vm13 = vcmask 646144  }
 0xae5   :  { %5875 = vst [vmem:[#allocation7 + $0xe0] sm:$0xc0] %v5867_v3  ;;  %v6248_v12 = vsel %vm13396_vm8, %v6240_v10, %v11947_v27  ;;  %vm13422_vm8 = vmmov %vm13398_vm4 }
 0xae6   :  { %6256 = vst [vmem:[#allocation7 + $0x108] sm:$0xc0] %v6248_v12  ;;  %4647 = vrot.lane.b32.xlu0 %v4634_v18, %s12938_s23  ;;  %v4731_v55 = vcombine.low %v4711_v20, %v4711_v20  ;;  %v5125_v20 = vcombine.low %v5124_v22, %v5124_v22 }
 0xae7   :  { %v6146_v42 = vpop.permute.xlu1 %6145 }
 0xae8   :  { %v6152_v9 = vsel %vm13398_vm4, %v13397_v61, %v6146_v42  ;;  %v6334_v21 = vpop.permute.xlu0 %6333  ;;  %v4738_v56 = vrot.slane %v4731_v55, %v9734_v25 }
 0xae9   :  { %6160 = vst [vmem:[#allocation7 + $0x108] sm:$0x30] %v6152_v9  ;;  %v6341_v60 = vsel %vm13402_vm6, %v11633_v45, %v6334_v21  ;;  %v6342_v27 = vsel %vm13403_vm5, %v6334_v21, %v11965_v0  ;;  %v13408_v45 = vld [vmem:[#allocation106_spill] sm:$0xff]  ;;  %vm13424_vm6 = vcmask 793600  }
 0xaea   :  { %6349 = vst [vmem:[#allocation7 + $0x120] sm:$0x3] %v6341_v60  ;;  %6350 = vst [vmem:[#allocation7 + $0x128] sm:$0x3] %v6342_v27  ;;  %5034 = vrot.lane.b32.xlu0 %v5021_v63, %s13020_s1  ;;  %v4729_v43 = vcombine.low %v13408_v45, %v13408_v45  ;;  %v13415_v21 = vld [vmem:[#allocation118_spill] sm:$0xff]  ;;  %v13417_v63 = vld [vmem:[#allocation64_spill] sm:$0xff] }
 0xaeb   :  { %v12300_v1 = vpop.permute.xlu1 %6525  ;;  %v13419_v27 = vld [vmem:[#allocation70_spill] sm:$0xff]  ;;  %vm13426_vm5 = vmmov %vm13424_vm6 }
 0xaec   :  { %v6532_v53 = vsel %vm13405_vm1, %v13404_v57, %v12300_v1  ;;  %v6620_v8 = vpop.permute.xlu0 %6619 }
 0xaed   :  { %6540 = vst [vmem:[#allocation7 + $0x128] sm:$0x30] %v6532_v53  ;;  %v6628_v36 = vsel %vm3742_vm7, %v6620_v8, %v11982_v13 }
 0xaee   :  { %6636 = vst [vmem:[#allocation7 + $0x128] sm:$0xc0] %v6628_v36  ;;  %4740 = vrot.lane.b32.xlu0 %v4729_v43, %s13038_s25  ;;  %v5752_v43 = vcombine.low %v11925_v49, %v11925_v49  ;;  %v13423_v36 = vld [vmem:[#allocation119_spill] sm:$0xff] }
 0xaef   :  { %v6238_v7 = vpop.permute.xlu1 %6237 }
 0xaf0   :  { %v6247_v51 = vsel %vm13409_vm0, %v6238_v7, %v6240_v10  ;;  %v6142_v2 = vpop.permute.xlu0 %6141  ;;  %v4739_v10 = vcombine.low %v4738_v56, %v4738_v56  ;;  %vm13428_vm0 = vmmov %vm13405_vm1 }
 0xaf1   :  { %6255 = vst [vmem:[#allocation7 + $0x100] sm:$0xc0] %v6247_v51  ;;  %v6151_v3 = vsel %vm13411_vm15, %v6142_v2, %v13397_v61  ;;  %v13413_v61 = vld [vmem:[#allocation67_spill] sm:$0xff]  ;;  %v13425_v51 = vld [vmem:[#allocation30_spill] sm:$0xff]  ;;  %v5563_v2 = vcombine.high %v11832_v44, %v11832_v44  ;;  %vm13431_vm15 = vcmask 769024  }
 0xaf2   :  { %6159 = vst [vmem:[#allocation7 + $0x100] sm:$0x30] %v6151_v3  ;;  %5126 = vrot.lane.b32.xlu0 %v5115_v52, %s12936_s5 }
 0xaf3   :  { %v6618_v50 = vpop.permute.xlu1 %6617 }
 0xaf4   :  { %v6627_v13 = vsel %vm3742_vm7, %v6618_v50, %v6620_v8  ;;  %v6522_v18 = vpop.permute.xlu0 %6521  ;;  %vm13416_vm7 = vcmask 900096   ;;  %v13429_v50 = vld [vmem:[#allocation58_spill] sm:$0xff] }
 0xaf5   :  { %6635 = vst [vmem:[#allocation7 + $0x120] sm:$0xc0] %v6627_v13  ;;  %v6531_v12 = vsel %vm13412_vm14, %v6522_v18, %v13404_v57  ;;  %vm13418_vm12 = vmmov %vm13416_vm7  ;;  %v6036_v13 = vcombine.high %v13429_v50, %v13429_v50  ;;  %v13430_v18 = vld [vmem:[#allocation73_spill] sm:$0xff] }
 0xaf6   :  { %6539 = vst [vmem:[#allocation7 + $0x120] sm:$0x30] %v6531_v12  ;;  %4748 = vrot.lane.b32.xlu0 %v4739_v10, %s13038_s25  ;;  %vm13432_vm14 = vmmov %vm13431_vm15  ;;  %v13447_v50 = vld [vmem:[#allocation81_spill] sm:$0xff]  ;;  %s13537_s25 = sld [smem:[#allocation137_spill]] }
 0xaf7   :  { %v12324_v9 = vpop.permute.xlu1 %6905 }
 0xaf8   :  { %v6912_v29 = vsel %vm13414_vm9, %v13413_v61, %v12324_v9  ;;  %v6053_v31 = vpop.permute.xlu0 %6052  ;;  %vm13433_vm9 = vcmask 629760  }
 0xaf9   :  { %6920 = vst [vmem:[#allocation7 + $0x148] sm:$0x30] %v6912_v29  ;;  %v6058_v5 = vsel %vm13416_vm7, %v13415_v21, %v6053_v31  ;;  %v6059_v30 = vsel %vm13418_vm12, %v6053_v31, %v13417_v63  ;;  %v13434_v29 = vld [vmem:[#allocation10_spill] sm:$0xff]  ;;  %vm13437_vm7 = vcmask 662528  }
 0xafa   :  { %6066 = vst [vmem:[#allocation7 + $0x110] sm:$0xc] %v6058_v5  ;;  %6067 = vst [vmem:[#allocation7 + $0x118] sm:$0xc] %v6059_v30  ;;  %5134 = vrot.lane.b32.xlu0 %v5125_v20, %s12936_s5  ;;  %v6416_v31 = vcombine.high %v13434_v29, %v13434_v29  ;;  %v13435_v30 = vld [vmem:[#allocation125_spill] sm:$0xff]  ;;  %s13524_s5 = sld [smem:[#allocation134_spill]] }
 0xafb   :  { %v12334_v60 = vpop.permute.xlu1 %7285  ;;  %vm13438_vm12 = vmmov %vm13437_vm7 }
 0xafc   :  { %v7292_v57 = vsel %vm13420_vm13, %v13419_v27, %v12334_v60  ;;  %v6148_v53 = vpop.permute.xlu0 %6147 }
 0xafd   :  { %7300 = vst [vmem:[#allocation7 + $0x168] sm:$0x30] %v7292_v57  ;;  %v6154_v37 = vsel %vm13422_vm8, %v6148_v53, %v13421_v23  ;;  %v6153_v55 = vsel %vm13398_vm4, %v6146_v42, %v6148_v53  ;;  %v5943_v57 = vcombine.high %v13435_v30, %v13435_v30  ;;  %v13436_v53 = vld [vmem:[#allocation127_spill] sm:$0xff] }
 0xafe   :  { %6162 = vst [vmem:[#allocation7 + $0x118] sm:$0x30] %v6154_v37  ;;  %5385 = vrot.lane.b32.xlu0 %v5372_v59, %s13260_s6  ;;  %6161 = vst [vmem:[#allocation7 + $0x110] sm:$0x30] %v6153_v55  ;;  %v13439_v37 = vld [vmem:[#allocation126_spill] sm:$0xff] }
 0xaff   :  { %v6998_v8 = vpop.permute.xlu1 %6997  ;;  %v6323_v55 = vcombine.high %v13439_v37, %v13439_v37 }
 0xb00   :  { %v6433_v45 = vpop.permute.xlu0 %6432 }
 0xb01   :  { %v6438_v7 = vsel %vm13424_vm6, %v13423_v36, %v6433_v45  ;;  %v6439_v32 = vsel %vm13426_vm5, %v6433_v45, %v13425_v51  ;;  %vm13455_vm5 = vcmask 654336  }
 0xb02   :  { %6446 = vst [vmem:[#allocation7 + $0x130] sm:$0xc] %v6438_v7  ;;  %6447 = vst [vmem:[#allocation7 + $0x138] sm:$0xc] %v6439_v32  ;;  %5765 = vrot.lane.b32.xlu0 %v5752_v43, %s13262_s27  ;;  %v13440_v7 = vld [vmem:[#allocation68_spill] sm:$0xff] }
 0xb03   :  { %v7378_v17 = vpop.permute.xlu1 %7377  ;;  %v6796_v51 = vcombine.high %v13440_v7, %v13440_v7 }
 0xb04   :  { %v6528_v42 = vpop.permute.xlu0 %6527 }
 0xb05   :  { %v6534_v52 = vsel %vm13405_vm1, %v6528_v42, %v13427_v15  ;;  %v6533_v49 = vsel %vm13428_vm0, %v12300_v1, %v6528_v42  ;;  %vm13457_vm1 = vmmov %vm13455_vm5 }
 0xb06   :  { %6542 = vst [vmem:[#allocation7 + $0x138] sm:$0x30] %v6534_v52  ;;  %6541 = vst [vmem:[#allocation7 + $0x130] sm:$0x30] %v6533_v49  ;;  %5577 = vrot.lane.b32.xlu0 %v5563_v2, %s13179_s13  ;;  %v13442_v2 = vld [vmem:[#allocation36_spill] sm:$0xff]  ;;  %v13444_v52 = vld [vmem:[#allocation77_spill] sm:$0xff] }
 0xb07   :  { %v12359_v56 = vpop.permute.xlu1 %7475  ;;  %v6703_v49 = vcombine.high %v13444_v52, %v13444_v52 }
 0xb08   :  { %v6714_v3 = vpop.permute.xlu0 %6713 }
 0xb09   :  { %v6721_v10 = vsel %vm13431_vm15, %v13430_v18, %v6714_v3  ;;  %v6722_v44 = vsel %vm13432_vm14, %v6714_v3, %v12025_v4  ;;  %v13445_v3 = vld [vmem:[#allocation122_spill] sm:$0xff]  ;;  %vm13461_vm14 = vmmov %vm13433_vm9 }
 0xb0a   :  { %6729 = vst [vmem:[#allocation7 + $0x140] sm:$0x3] %v6721_v10  ;;  %6730 = vst [vmem:[#allocation7 + $0x148] sm:$0x3] %v6722_v44  ;;  %6048 = vrot.lane.b32.xlu0 %v6036_v13, %s13304_s7  ;;  %v13449_v10 = vld [vmem:[#allocation18_spill] sm:$0xff] }
 0xb0b   :  { %v12368_v22 = vpop.permute.xlu1 %7477  ;;  %v7400_v44 = vld [vmem:[#allocation4 + $0xa] sm:$0x3] }
 0xb0c   :  { %v7483_v1 = vsel %vm13433_vm9, %v12359_v56, %v12368_v22  ;;  %v7000_v12 = vpop.permute.xlu0 %6999  ;;  %vm13462_vm9 = vcmask 400384  }
 0xb0d   :  { %7491 = vst [vmem:[#allocation7 + $0x190] sm:$0x3] %v7483_v1  ;;  %v7008_v20 = vsel %vm3354_vm2, %v7000_v12, %v12039_v14  ;;  %v7007_v5 = vsel %vm3354_vm2, %v6998_v8, %v7000_v12  ;;  %vm13441_vm2 = vcmask 678912   ;;  %v13451_v12 = vld [vmem:[#allocation83_spill] sm:$0xff] }
 0xb0e   :  { %7016 = vst [vmem:[#allocation7 + $0x148] sm:$0xc0] %v7008_v20  ;;  %6428 = vrot.lane.b32.xlu0 %v6416_v31, %s13215_s28  ;;  %7015 = vst [vmem:[#allocation7 + $0x140] sm:$0xc0] %v7007_v5  ;;  %v13453_v31 = vrot.slane %v13300_v6, 6  ;;  %v13459_v6 = vld [vmem:[#allocation37_spill] sm:$0xff] }
 0xb0f   :  { %vm13450_vm4 = vmmov %vm13441_vm2 }
 0xb10   :  { %v7094_v63 = vpop.permute.xlu0 %7093  ;;  %vm13452_vm6 = vmmov %vm13441_vm2  ;;  %v7444_v20 = vmul.f32 %v13453_v31, %v7400_v44 }
 0xb11   :  { %v7101_v59 = vsel %vm13437_vm7, %v13436_v53, %v7094_v63  ;;  %v7102_v23 = vsel %vm13438_vm12, %v7094_v63, %v12057_v11  ;;  %v13454_v63 = vld [vmem:[#allocation13_spill] sm:$0xff]  ;;  %vm13463_vm7 = vmmov %vm13462_vm9  ;;  %vm13465_vm12 = vcmask 392192  }
 0xb12   :  { %7109 = vst [vmem:[#allocation7 + $0x160] sm:$0x3] %v7101_v59  ;;  %7110 = vst [vmem:[#allocation7 + $0x168] sm:$0x3] %v7102_v23  ;;  %5957 = vrot.lane.b32.xlu0 %v5943_v57, %s13132_s19  ;;  %v13456_v57 = vld [vmem:[#allocation31_spill] sm:$0xff]  ;;  %v7470_v59 = vrot.slane %v7444_v20, %v9734_v25 }
 0xb14   :  { %v7380_v14 = vpop.permute.xlu0 %7379 }
 0xb15   :  { %v7388_v8 = vsel %vm2966_vm10, %v7380_v14, %v12068_v39  ;;  %v7387_v45 = vsel %vm2966_vm10, %v7378_v17, %v7380_v14  ;;  %v7176_v39 = vcombine.high %v13442_v2, %v13442_v2  ;;  %vm13443_vm10 = vmmov %vm13420_vm13  ;;  %vm13446_vm13 = vcmask 760832  }
 0xb16   :  { %7396 = vst [vmem:[#allocation7 + $0x168] sm:$0xc0] %v7388_v8  ;;  %6337 = vrot.lane.b32.xlu0 %v6323_v55, %s13287_s15  ;;  %7395 = vst [vmem:[#allocation7 + $0x160] sm:$0xc0] %v7387_v45  ;;  %v13464_v45 = vld [vmem:[#allocation74_spill] sm:$0xff] }
 0xb17   :  { %vm13448_vm8 = vmmov %vm13446_vm13 }
 0xb18   :  { %v6902_v43 = vpop.permute.xlu0 %6901  ;;  %vm13458_vm0 = vmmov %vm13443_vm10 }
 0xb19   :  { %v6911_v32 = vsel %vm13441_vm2, %v6902_v43, %v13413_v61  ;;  %vm13460_vm15 = vmmov %vm13458_vm0 }
 0xb1a   :  { %6919 = vst [vmem:[#allocation7 + $0x140] sm:$0x30] %v6911_v32  ;;  %6808 = vrot.lane.b32.xlu0 %v6796_v51, %s13232_s30  ;;  %v13466_v51 = vld [vmem:[#allocation91_spill] sm:$0xff]  ;;  %vm13467_vm2 = vmmov %vm13465_vm12  ;;  %s13536_s30 = sld [smem:[#allocation136_spill]] }
 0xb1c   :  { %v7282_v42 = vpop.permute.xlu0 %7281 }
 0xb1d   :  { %v7291_v17 = vsel %vm13443_vm10, %v7282_v42, %v13419_v27  ;;  %v7083_v27 = vcombine.high %v13449_v10, %v13449_v10  ;;  %v13468_v42 = vld [vmem:[#allocation92_spill] sm:$0xff]  ;;  %vm13469_vm10 = vcmask 367616  }
 0xb1e   :  { %7299 = vst [vmem:[#allocation7 + $0x160] sm:$0x30] %v7291_v17  ;;  %7188 = vrot.lane.b32.xlu0 %v7176_v39, %s13235_s11  ;;  %v13472_v17 = vld [vmem:[#allocation78_spill] sm:$0xff] }
 0xb20   :  { %v6813_v15 = vpop.permute.xlu0 %6812 }
 0xb21   :  { %v6818_v61 = vsel %vm13446_vm13, %v13445_v3, %v6813_v15  ;;  %v6819_v13 = vsel %vm13448_vm8, %v6813_v15, %v13447_v50  ;;  %vm13471_vm13 = vmmov %vm13469_vm10  ;;  %vm13473_vm8 = vcmask 285696  }
 0xb22   :  { %6826 = vst [vmem:[#allocation7 + $0x150] sm:$0xc] %v6818_v61  ;;  %6827 = vst [vmem:[#allocation7 + $0x158] sm:$0xc] %v6819_v13  ;;  %6717 = vrot.lane.b32.xlu0 %v6703_v49, %s13148_s18  ;;  %v13474_v49 = vld [vmem:[#allocation93_spill] sm:$0xff] }
 0xb24   :  { %v6908_v18 = vpop.permute.xlu0 %6907 }
 0xb25   :  { %v6913_v1 = vsel %vm13450_vm4, %v12324_v9, %v6908_v18  ;;  %v6914_v29 = vsel %vm13452_vm6, %v6908_v18, %v13451_v12  ;;  %vm13475_vm4 = vmmov %vm13473_vm8  ;;  %vm13477_vm6 = vcmask 236544  }
 0xb26   :  { %6921 = vst [vmem:[#allocation7 + $0x150] sm:$0x30] %v6913_v1  ;;  %6922 = vst [vmem:[#allocation7 + $0x158] sm:$0x30] %v6914_v29  ;;  %7097 = vrot.lane.b32.xlu0 %v7083_v27, %s13317_s22  ;;  %v13476_v27 = vld [vmem:[#allocation17_spill] sm:$0xff]  ;;  %v13478_v1 = vld [vmem:[#allocation96_spill] sm:$0xff] }
 0xb28   :  { %v7193_v5 = vpop.permute.xlu0 %7192 }
 0xb29   :  { %v7198_v30 = vsel %vm13455_vm5, %v13454_v63, %v7193_v5  ;;  %v7199_v53 = vsel %vm13457_vm1, %v7193_v5, %v13456_v57  ;;  %vm13479_vm5 = vmmov %vm13477_vm6  ;;  %v13480_v57 = vld [vmem:[#allocation98_spill] sm:$0xff] }
 0xb2a   :  { %7206 = vst [vmem:[#allocation7 + $0x170] sm:$0xc] %v7198_v30  ;;  %7207 = vst [vmem:[#allocation7 + $0x178] sm:$0xc] %v7199_v53  ;;  %7471 = vrot.lane.b32.xlu0 %v12170_v19, %s13309_s3 }
 0xb2c   :  { %v7288_v9 = vpop.permute.xlu0 %7287 }
 0xb2d   :  { %v7293_v23 = vsel %vm13458_vm0, %v12334_v60, %v7288_v9  ;;  %v7294_v14 = vsel %vm13460_vm15, %v7288_v9, %v13459_v6  ;;  %vm13488_vm15 = vcmask 113664  }
 0xb2e   :  { %7301 = vst [vmem:[#allocation7 + $0x170] sm:$0x30] %v7293_v23  ;;  %7302 = vst [vmem:[#allocation7 + $0x178] sm:$0x30] %v7294_v14  ;;  %7479 = vrot.lane.b32.xlu0 %v7470_v59, %s13309_s3 }
 0xb30   :  { %v12431_v37 = vpop.permute.xlu0 %7473 }
 0xb31   :  { %v7482_v55 = vsel %vm13461_vm14, %v12431_v37, %v12359_v56  ;;  %vm13489_vm14 = vcmask 7168  }
 0xb32   :  { %7490 = vst [vmem:[#allocation7 + $0x188] sm:$0x3] %v7482_v55 }
 0xb34   :  { %v3101_v19 = vpop.permute.xlu0 %3100 }
 0xb35   :  { %v3108_v25 = vsel %vm13462_vm9, %v11180_v58, %v3101_v19  ;;  %v3109_v60 = vsel %vm13463_vm7, %v3101_v19, %v11482_v35  ;;  %v13470_v58 = vld [vmem:[#allocation9_spill] sm:$0xff]  ;;  %vm13490_vm9 = vmmov %vm13488_vm15 }
 0xb36   :  { %3116 = vst [vmem:[#allocation7 + $0x8] sm:$0x30] %v3108_v25  ;;  %3117 = vst [vmem:[#allocation7 + $0x10] sm:$0x30] %v3109_v60  ;;  %v7503_v19 = vld [vmem:[#allocation7 + $0x48] sm:$0xff] }
 0xb37   :  { %v13481_v25 = vld [vmem:[#allocation101_spill] sm:$0xff]  ;;  %vm13491_vm7 = vmmov %vm13489_vm14 }
 0xb38   :  { %v3195_v8 = vpop.permute.xlu0 %3194 }
 0xb39   :  { %v3205_v43 = vsel %vm13465_vm12, %v3195_v8, %v13464_v45  ;;  %v7502_v45 = vld [vmem:[#allocation7 + $0x40] sm:$0xff]  ;;  %vm13492_vm12 = vcmask 1031168  }
 0xb3a   :  { %3213 = vst [vmem:[#allocation7] sm:$0xc0] %v3205_v43 }
 0xb3c   :  { %v3203_v7 = vpop.permute.xlu0 %3202 }
 0xb3d   :  { %v3208_v32 = vsel %vm13467_vm2, %v13466_v51, %v3203_v7  ;;  %v7495_v50 = vld [vmem:[#allocation7 + $0x8] sm:$0xff]  ;;  %v7496_v6 = vld [vmem:[#allocation7 + $0x10] sm:$0xff]  ;;  %vm13493_vm2 = vmmov %vm13492_vm12 }
 0xb3e   :  { %3216 = vst [vmem:[#allocation7 + $0x18] sm:$0xc0] %v3208_v32 }
 0xb40   :  { %v3489_v56 = vpop.permute.xlu0 %3488 }
 0xb41   :  { %v3496_v2 = vsel %vm13469_vm10, %v13468_v42, %v3489_v56  ;;  %v3497_v39 = vsel %vm13471_vm13, %v3489_v56, %v13470_v58  ;;  %v7494_v29 = vld [vmem:[#allocation7] sm:$0xff]  ;;  %vm13494_vm10 = vcmask 924672  }
 0xb42   :  { %3504 = vst [vmem:[#allocation7 + $0x28] sm:$0x30] %v3496_v2  ;;  %3505 = vst [vmem:[#allocation7 + $0x30] sm:$0x30] %v3497_v39  ;;  %v13482_v56 = vld [vmem:[#allocation104_spill] sm:$0xff]  ;;  %v7508_v39 = vld [vmem:[#allocation7 + $0x70] sm:$0xff] }
 0xb43   :  { %vm13495_vm13 = vmmov %vm13494_vm10 }
 0xb44   :  { %v3583_v35 = vpop.permute.xlu0 %3582 }
 0xb45   :  { %v3593_v15 = vsel %vm13473_vm8, %v3583_v35, %v13472_v17  ;;  %v7497_v9 = vld [vmem:[#allocation7 + $0x18] sm:$0xff]  ;;  %v13485_v35 = vld [vmem:[#allocation105_spill] sm:$0xff]  ;;  %vm13496_vm8 = vcmask 941056  }
 0xb46   :  { %3601 = vst [vmem:[#allocation7 + $0x20] sm:$0xc0] %v3593_v15 }
 0xb48   :  { %v3591_v52 = vpop.permute.xlu0 %3590 }
 0xb49   :  { %v3596_v61 = vsel %vm13475_vm4, %v13474_v49, %v3591_v52  ;;  %v7499_v13 = vld [vmem:[#allocation7 + $0x28] sm:$0xff]  ;;  %v7500_v30 = vld [vmem:[#allocation7 + $0x30] sm:$0xff]  ;;  %vm13498_vm4 = vmmov %vm13496_vm8 }
 0xb4a   :  { %3604 = vst [vmem:[#allocation7 + $0x38] sm:$0xc0] %v3596_v61  ;;  %v8176_v18 = vpack.c.bf16 %v7499_v13, %v7495_v50  ;;  %v8202_v14 = vpack.c.bf16 %v7500_v30, %v7496_v6  ;;  %v7504_v50 = vld [vmem:[#allocation7 + $0x50] sm:$0xff] }
 0xb4b   :  { %v8206_v13 = vpack.c.bf16 %v7508_v39, %v7504_v50 }
 0xb4c   :  { %v4166_v10 = vpop.permute.xlu0 %4165  ;;  %8177 = vmatprep.subr.bf16.mxu0 %v8176_v18 }
 0xb4d   :  { %v4174_v44 = vsel %vm13477_vm6, %v13476_v27, %v4166_v10  ;;  %v4175_v12 = vsel %vm13479_vm5, %v4166_v10, %v13478_v1  ;;  %v7498_v31 = vld [vmem:[#allocation7 + $0x20] sm:$0xff]  ;;  %vm13500_vm6 = vcmask 900096  }
 0xb4e   :  { %4182 = vst [vmem:[#allocation7 + $0x60] sm:$0xc] %v4174_v44  ;;  %4183 = vst [vmem:[#allocation7 + $0x68] sm:$0xc] %v4175_v12  ;;  %v8178_v20 = vpack.c.bf16 %v7498_v31, %v7494_v29 }
 0xb4f   :  { %vm13501_vm5 = vmmov %vm13500_vm6 }
 0xb50   :  { %v3979_v5 = vpop.permute.xlu0 %3978  ;;  %8179 = vmatpush1.bf16.msra.mxu0 %v8178_v20 }
 0xb51   :  { %v3984_v53 = vsel %vm3980_vm3, %v13480_v57, %v3979_v5  ;;  %v7501_v59 = vld [vmem:[#allocation7 + $0x38] sm:$0xff]  ;;  %vm13483_vm3 = vcmask 121856  }
 0xb52   :  { %3992 = vst [vmem:[#allocation7 + $0x58] sm:$0xc0] %v3984_v53  ;;  %v8200_v23 = vpack.c.bf16 %v7501_v59, %v7497_v9  ;;  %vm13484_vm1 = vmmov %vm13483_vm3 }
 0xb54   :  { %v4367_v55 = vpop.permute.xlu0 %4366  ;;  %8201 = vmatprep.subr.bf16.mxu1 %v8200_v23 }
 0xb55   :  { %v4372_v60 = vsel %vm4368_vm11, %v13481_v25, %v4367_v55  ;;  %8203 = vmatpush1.bf16.msra.mxu1 %v8202_v14  ;;  %v7507_v8 = vld [vmem:[#allocation7 + $0x68] sm:$0xff]  ;;  %v7506_v43 = vld [vmem:[#allocation7 + $0x60] sm:$0xff]  ;;  %vm13486_vm11 = vcmask 15360   ;;  %v13497_v25 = vld [vmem:[#allocation50_spill] sm:$0xff] }
 0xb56   :  { %4380 = vst [vmem:[#allocation7 + $0x78] sm:$0xc0] %v4372_v60  ;;  %v8180_v7 = vpack.c.bf16 %v7507_v8, %v7503_v19  ;;  %v8182_v51 = vpack.c.bf16 %v7506_v43, %v7502_v45  ;;  %vm13487_vm0 = vmmov %vm13486_vm11  ;;  %v13499_v8 = vld [vmem:[#allocation76_spill] sm:$0xff] }
 0xb58   :  { %v4648_v32 = vpop.permute.xlu0 %4647  ;;  %8181 = vmatprep.subr.bf16.mxu0 %v8180_v7 }
 0xb59   :  { %v4654_v42 = vsel %vm13483_vm3, %v13482_v56, %v4648_v32  ;;  %v4655_v2 = vsel %vm13484_vm1, %v4648_v32, %v11825_v48  ;;  %8183 = vmatpush1.bf16.msra.mxu0 %v8182_v51  ;;  %v7505_v52 = vld [vmem:[#allocation7 + $0x58] sm:$0xff]  ;;  %vm13503_vm3 = vcmask 793600  }
 0xb5a   :  { %4662 = vst [vmem:[#allocation7 + $0x88] sm:$0x30] %v4654_v42  ;;  %4663 = vst [vmem:[#allocation7 + $0x90] sm:$0x30] %v4655_v2  ;;  %v7521_v2 = vld [vmem:[#allocation7 + $0xd8] sm:$0xff] }
 0xb5b   :  { %vm13504_vm1 = vmmov %vm13503_vm3 }
 0xb5c   :  { %v5035_v58 = vpop.permute.xlu0 %5034 }
 0xb5d   :  { %v5041_v17 = vsel %vm13486_vm11, %v13485_v35, %v5035_v58  ;;  %v5042_v15 = vsel %vm13487_vm0, %v5035_v58, %v11855_v54  ;;  %v7509_v49 = vld [vmem:[#allocation7 + $0x78] sm:$0xff]  ;;  %v13502_v58 = vld [vmem:[#allocation21_spill] sm:$0xff]  ;;  %vm13505_vm11 = vcmask 908288  }
 0xb5e   :  { %5049 = vst [vmem:[#allocation7 + $0xa8] sm:$0x30] %v5041_v17  ;;  %5050 = vst [vmem:[#allocation7 + $0xb0] sm:$0x30] %v5042_v15  ;;  %v8204_v61 = vpack.c.bf16 %v7509_v49, %v7505_v52 }
 0xb5f   :  { %vm13507_vm0 = vmmov %vm13505_vm11 }
 0xb60   :  { %v4741_v18 = vpop.permute.xlu0 %4740  ;;  %8205 = vmatprep.subr.bf16.mxu1 %v8204_v61 }
 0xb61   :  { %v4751_v48 = vsel %vm13488_vm15, %v4741_v18, %v11746_v34  ;;  %8207 = vmatpush1.bf16.msra.mxu1 %v8206_v13  ;;  %v7511_v44 = vld [vmem:[#allocation7 + $0x88] sm:$0xff]  ;;  %v7512_v55 = vld [vmem:[#allocation7 + $0x90] sm:$0xff]  ;;  %vm13508_vm15 = vcmask 801792  }
 0xb62   :  { %4759 = vst [vmem:[#allocation7 + $0x80] sm:$0xc0] %v4751_v48  ;;  %v13506_v13 = vld [vmem:[#allocation61_spill] sm:$0xff] }
 0xb64   :  { %v5127_v10 = vpop.permute.xlu0 %5126 }
 0xb65   :  { %v5136_v27 = vsel %vm13489_vm14, %v5127_v10, %v11782_v40  ;;  %v7515_v54 = vld [vmem:[#allocation7 + $0xa8] sm:$0xff]  ;;  %v7516_v9 = vld [vmem:[#allocation7 + $0xb0] sm:$0xff]  ;;  %vm13510_vm14 = vmmov %vm13508_vm15 }
 0xb66   :  { %5144 = vst [vmem:[#allocation7 + $0xa0] sm:$0xc0] %v5136_v27  ;;  %v8184_v1 = vpack.c.bf16 %v7515_v54, %v7511_v44  ;;  %v13509_v27 = vld [vmem:[#allocation72_spill] sm:$0xff] }
 0xb68   :  { %v4749_v12 = vpop.permute.xlu0 %4748  ;;  %8185 = vmatprep.subr.bf16.mxu0 %v8184_v1 }
 0xb69   :  { %v4754_v29 = vsel %vm13490_vm9, %v13313_v47, %v4749_v12  ;;  %v7510_v20 = vld [vmem:[#allocation7 + $0x80] sm:$0xff]  ;;  %vm13511_vm9 = vcmask 760832  }
 0xb6a   :  { %4762 = vst [vmem:[#allocation7 + $0x98] sm:$0xc0] %v4754_v29 }
 0xb6c   :  { %v5135_v31 = vpop.permute.xlu0 %5134 }
 0xb6d   :  { %v5139_v34 = vsel %vm13491_vm7, %v13320_v24, %v5135_v31  ;;  %v7514_v5 = vld [vmem:[#allocation7 + $0xa0] sm:$0xff]  ;;  %vm13512_vm7 = vmmov %vm13511_vm9 }
 0xb6e   :  { %5147 = vst [vmem:[#allocation7 + $0xb8] sm:$0xc0] %v5139_v34  ;;  %v8186_v30 = vpack.c.bf16 %v7514_v5, %v7510_v20 }
 0xb70   :  { %v5386_v57 = vpop.permute.xlu0 %5385  ;;  %8187 = vmatpush1.bf16.msra.mxu0 %v8186_v30 }
 0xb71   :  { %v5392_v40 = vsel %vm13492_vm12, %v13355_v46, %v5386_v57  ;;  %v5393_v53 = vsel %vm13493_vm2, %v5386_v57, %v12247_v16  ;;  %v7513_v23 = vld [vmem:[#allocation7 + $0x98] sm:$0xff]  ;;  %v8210_v46 = vpack.c.bf16 %v7516_v9, %v7512_v55  ;;  %vm13513_vm12 = vcmask 654336  }
 0xb72   :  { %5400 = vst [vmem:[#allocation7 + $0xc8] sm:$0x30] %v5392_v40  ;;  %5401 = vst [vmem:[#allocation7 + $0xd0] sm:$0x30] %v5393_v53 }
 0xb73   :  { %vm13514_vm2 = vmmov %vm13513_vm12 }
 0xb74   :  { %v5766_v47 = vpop.permute.xlu0 %5765 }
 0xb75   :  { %v5772_v59 = vsel %vm13494_vm10, %v13360_v33, %v5766_v47  ;;  %v5773_v24 = vsel %vm13495_vm13, %v5766_v47, %v12269_v62  ;;  %v7517_v6 = vld [vmem:[#allocation7 + $0xb8] sm:$0xff]  ;;  %v7522_v62 = vld [vmem:[#allocation7 + $0xe0] sm:$0xff]  ;;  %vm13515_vm10 = vcmask 769024  }
 0xb76   :  { %5780 = vst [vmem:[#allocation7 + $0xe8] sm:$0x30] %v5772_v59  ;;  %5781 = vst [vmem:[#allocation7 + $0xf0] sm:$0x30] %v5773_v24  ;;  %v8208_v14 = vpack.c.bf16 %v7517_v6, %v7513_v23  ;;  %v13516_v24 = vld [vmem:[#allocation80_spill] sm:$0xff] }
 0xb77   :  { %vm13517_vm13 = vmmov %vm13515_vm10 }
 0xb78   :  { %v5578_v19 = vpop.permute.xlu0 %5577  ;;  %8209 = vmatprep.subr.bf16.mxu1 %v8208_v14  ;;  %v13519_v14 = vld [vmem:[#allocation84_spill] sm:$0xff] }
 0xb79   :  { %v5583_v16 = vsel %vm13496_vm8, %v12189_v38, %v5578_v19  ;;  %v5584_v60 = vsel %vm13498_vm4, %v5578_v19, %v13497_v25  ;;  %8211 = vmatpush1.bf16.msra.mxu1 %v8210_v46  ;;  %v7519_v7 = vld [vmem:[#allocation7 + $0xc8] sm:$0xff]  ;;  %v7518_v38 = vld [vmem:[#allocation7 + $0xc0] sm:$0xff]  ;;  %v7520_v15 = vld [vmem:[#allocation7 + $0xd0] sm:$0xff]  ;;  %vm13518_vm8 = vcmask 662528  }
 0xb7a   :  { %5591 = vst [vmem:[#allocation7 + $0xf0] sm:$0x3] %v5583_v16  ;;  %5592 = vst [vmem:[#allocation7 + $0xf8] sm:$0x3] %v5584_v60  ;;  %v8190_v56 = vpack.c.bf16 %v7522_v62, %v7518_v38  ;;  %v7543_v62 = vld [vmem:[#allocation7 + $0x188] sm:$0x3] }
 0xb7b   :  { %vm13520_vm4 = vmmov %vm13518_vm8 }
 0xb7c   :  { %v6049_v33 = vpop.permute.xlu0 %6048 }
 0xb7d   :  { %v6056_v45 = vsel %vm13500_vm6, %v13499_v8, %v6049_v33  ;;  %v6057_v43 = vsel %vm13501_vm5, %v6049_v33, %v13415_v21  ;;  %v7523_v51 = vld [vmem:[#allocation7 + $0xe8] sm:$0xff]  ;;  %vm13521_vm6 = vcmask 629760   ;;  %vm13522_vm5 = vcmask 1041408  }
 0xb7e   :  { %6064 = vst [vmem:[#allocation7 + $0x100] sm:$0xc] %v6056_v45  ;;  %6065 = vst [vmem:[#allocation7 + $0x108] sm:$0xc] %v6057_v43  ;;  %v8188_v32 = vpack.c.bf16 %v7523_v51, %v7519_v7 }
 0xb80   :  { %v6429_v42 = vpop.permute.xlu0 %6428  ;;  %8189 = vmatprep.subr.bf16.mxu0 %v8188_v32 }
 0xb81   :  { %v6436_v39 = vsel %vm13503_vm3, %v13502_v58, %v6429_v42  ;;  %v6437_v35 = vsel %vm13504_vm1, %v6429_v42, %v13423_v36  ;;  %8191 = vmatpush1.bf16.msra.mxu0 %v8190_v56  ;;  %v7525_v17 = vld [vmem:[#allocation7 + $0xf8] sm:$0xff]  ;;  %v7524_v21 = vld [vmem:[#allocation7 + $0xf0] sm:$0xff]  ;;  %vm13523_vm3 = vmmov %vm13521_vm6 }
 0xb82   :  { %6444 = vst [vmem:[#allocation7 + $0x120] sm:$0xc] %v6436_v39  ;;  %6445 = vst [vmem:[#allocation7 + $0x128] sm:$0xc] %v6437_v35  ;;  %v8212_v52 = vpack.c.bf16 %v7525_v17, %v7521_v2  ;;  %v8214_v49 = vpack.c.bf16 %v7524_v21, %v7520_v15 }
 0xb83   :  { %vm13525_vm1 = vmmov %vm13522_vm5 }
 0xb84   :  { %v5958_v61 = vpop.permute.xlu0 %5957  ;;  %8213 = vmatprep.subr.bf16.mxu1 %v8212_v52 }
 0xb85   :  { %v5963_v50 = vsel %vm13505_vm11, %v11932_v26, %v5958_v61  ;;  %v5964_v18 = vsel %vm13507_vm0, %v5958_v61, %v13506_v13  ;;  %8215 = vmatpush1.bf16.msra.mxu1 %v8214_v49  ;;  %v7527_v48 = vld [vmem:[#allocation7 + $0x108] sm:$0xff]  ;;  %v7526_v1 = vld [vmem:[#allocation7 + $0x100] sm:$0xff]  ;;  %vm13526_vm11 = vmmov %vm13510_vm14 }
 0xb86   :  { %5971 = vst [vmem:[#allocation7 + $0x110] sm:$0x3] %v5963_v50  ;;  %5972 = vst [vmem:[#allocation7 + $0x118] sm:$0x3] %v5964_v18 }
 0xb87   :  { %vm13527_vm0 = vmmov %vm13525_vm1 }
 0xb88   :  { %v6338_v36 = vpop.permute.xlu0 %6337 }
 0xb89   :  { %v6343_v10 = vsel %vm13508_vm15, %v11965_v0, %v6338_v36  ;;  %v6344_v44 = vsel %vm13510_vm14, %v6338_v36, %v13509_v27  ;;  %v7531_v54 = vld [vmem:[#allocation7 + $0x128] sm:$0xff]  ;;  %v7530_v12 = vld [vmem:[#allocation7 + $0x120] sm:$0xff]  ;;  %vm13528_vm15 = vmmov %vm13527_vm0 }
 0xb8a   :  { %6351 = vst [vmem:[#allocation7 + $0x130] sm:$0x3] %v6343_v10  ;;  %6352 = vst [vmem:[#allocation7 + $0x138] sm:$0x3] %v6344_v44  ;;  %v8192_v26 = vpack.c.bf16 %v7531_v54, %v7527_v48  ;;  %v8194_v29 = vpack.c.bf16 %v7530_v12, %v7526_v1  ;;  %v13530_v10 = vld [vmem:[#allocation8_spill] sm:$0xff]  ;;  %v13531_v12 = vld [vmem:[#allocation42_spill] sm:$0xff] }
 0xb8b   :  { %vm13529_vm14 = vmmov %vm13526_vm11 }
 0xb8c   :  { %v6809_v31 = vpop.permute.xlu0 %6808  ;;  %8193 = vmatprep.subr.bf16.mxu0 %v8192_v26 }
 0xb8d   :  { %v6816_v34 = vsel %vm13511_vm9, %v12077_v41, %v6809_v31  ;;  %v6817_v20 = vsel %vm13512_vm7, %v6809_v31, %v13445_v3  ;;  %8195 = vmatpush1.bf16.msra.mxu0 %v8194_v29  ;;  %v7529_v5 = vld [vmem:[#allocation7 + $0x118] sm:$0xff]  ;;  %v7528_v53 = vld [vmem:[#allocation7 + $0x110] sm:$0xff] }
 0xb8e   :  { %6824 = vst [vmem:[#allocation7 + $0x140] sm:$0xc] %v6816_v34  ;;  %6825 = vst [vmem:[#allocation7 + $0x148] sm:$0xc] %v6817_v20  ;;  %v13532_v31 = vld [vmem:[#allocation43_spill] sm:$0xff] }
 0xb90   :  { %v7189_v0 = vpop.permute.xlu0 %7188 }
 0xb91   :  { %v7196_v30 = vsel %vm13513_vm12, %v12090_v28, %v7189_v0  ;;  %v7197_v57 = vsel %vm13514_vm2, %v7189_v0, %v13454_v63  ;;  %v7533_v40 = vld [vmem:[#allocation7 + $0x138] sm:$0xff]  ;;  %v7532_v47 = vld [vmem:[#allocation7 + $0x130] sm:$0xff] }
 0xb92   :  { %7204 = vst [vmem:[#allocation7 + $0x160] sm:$0xc] %v7196_v30  ;;  %7205 = vst [vmem:[#allocation7 + $0x168] sm:$0xc] %v7197_v57  ;;  %v8216_v41 = vpack.c.bf16 %v7533_v40, %v7529_v5  ;;  %v8218_v9 = vpack.c.bf16 %v7532_v47, %v7528_v53  ;;  %v13533_v53 = vld [vmem:[#allocation44_spill] sm:$0xff] }
 0xb94   :  { %v6718_v59 = vpop.permute.xlu0 %6717  ;;  %8217 = vmatprep.subr.bf16.mxu1 %v8216_v41 }
 0xb95   :  { %v6723_v3 = vsel %vm13515_vm10, %v12025_v4, %v6718_v59  ;;  %v6724_v23 = vsel %vm13517_vm13, %v6718_v59, %v13516_v24  ;;  %8219 = vmatpush1.bf16.msra.mxu1 %v8218_v9  ;;  %v7535_v63 = vld [vmem:[#allocation7 + $0x148] sm:$0xff]  ;;  %v7534_v19 = vld [vmem:[#allocation7 + $0x140] sm:$0xff] }
 0xb96   :  { %6731 = vst [vmem:[#allocation7 + $0x150] sm:$0x3] %v6723_v3  ;;  %6732 = vst [vmem:[#allocation7 + $0x158] sm:$0x3] %v6724_v23  ;;  %v13534_v9 = vld [vmem:[#allocation45_spill] sm:$0xff] }
 0xb98   :  { %v7098_v28 = vpop.permute.xlu0 %7097 }
 0xb99   :  { %v7103_v6 = vsel %vm13518_vm8, %v12057_v11, %v7098_v28  ;;  %v7104_v55 = vsel %vm13520_vm4, %v7098_v28, %v13519_v14  ;;  %v7539_v46 = vld [vmem:[#allocation7 + $0x168] sm:$0xff]  ;;  %v7538_v16 = vld [vmem:[#allocation7 + $0x160] sm:$0xff] }
 0xb9a   :  { %7111 = vst [vmem:[#allocation7 + $0x170] sm:$0x3] %v7103_v6  ;;  %7112 = vst [vmem:[#allocation7 + $0x178] sm:$0x3] %v7104_v55  ;;  %v8196_v4 = vpack.c.bf16 %v7539_v46, %v7535_v63  ;;  %v8198_v25 = vpack.c.bf16 %v7538_v16, %v7534_v19  ;;  %v7740_v55 = vld [vmem:[%s13535_s12] sm:$0xff] }
 0xb9b   :  { %v7739_v46 = vld [vmem:[%s13536_s30] sm:$0xff] }
 0xb9c   :  { %v7472_v60 = vpop.permute.xlu0 %7471  ;;  %8197 = vmatprep.subr.bf16.mxu0 %v8196_v4 }
 0xb9d   :  { %v7481_v33 = vsel %vm13521_vm6, %v7472_v60, %v12431_v37  ;;  %8199 = vmatpush1.bf16.msra.mxu0 %v8198_v25  ;;  %v7537_v8 = vld [vmem:[#allocation7 + $0x158] sm:$0xff]  ;;  %v7536_v7 = vld [vmem:[#allocation7 + $0x150] sm:$0xff]  ;;  %v7493_v37 = vld [vmem:[%s13524_s5] sm:$0x1] }
 0xb9e   :  { %7489 = vst [vmem:[#allocation7 + $0x180] sm:$0x3] %v7481_v33  ;;  %7896 = vmatprep.subr.msk.mxu0 %vm13522_vm5, %v7543_v62 }
 0xba0   :  { %v7480_v11 = vpop.permute.xlu0 %7479 }
 0xba1   :  { %v7484_v45 = vsel %vm13523_vm3, %v12368_v22, %v7480_v11  ;;  %v7541_v43 = vld [vmem:[#allocation7 + $0x178] sm:$0xff]  ;;  %v7540_v51 = vld [vmem:[#allocation7 + $0x170] sm:$0xff] }
 0xba2   :  { %7492 = vst [vmem:[#allocation7 + $0x198] sm:$0x3] %v7484_v45  ;;  %v8220_v32 = vpack.c.bf16 %v7541_v43, %v7537_v8  ;;  %v8222_v38 = vpack.c.bf16 %v7540_v51, %v7536_v7  ;;  %v7544_v22 = vld [vmem:[#allocation7 + $0x190] sm:$0x3] }
 0xba4   :  { %8221 = vmatprep.subr.bf16.mxu1 %v8220_v32 }
 0xba5   :  { %8223 = vmatpush1.bf16.msra.mxu1 %v8222_v38  ;;  %v7542_v56 = vld [vmem:[#allocation7 + $0x180] sm:$0x3] }
 0xba6   :  { %7897 = vmatpush1.msk.msra.mxu0 %vm13525_vm1, %v7542_v56 }
 0xba7   :  { %7898 = vmatmul.mubr.msk.f32.vlgmr.msra.gmra.mrb[12].mxu0 %vm13526_vm11, %v7493_v37 }
 0xba9   :  { %v7545_v42 = vld [vmem:[#allocation7 + $0x198] sm:$0x3] }
 0xbaa   :  { %7899 = vmatprep.subr.msk.mxu1 %vm13527_vm0, %v7545_v42 }
 0xbab   :  { %7900 = vmatpush1.msk.msra.mxu1 %vm13528_vm15, %v7544_v22 }
 0xbac   :  { %7901 = vmatmul.mubr.msk.f32.vlgmr.msra.gmra.mrb[14].mxu1 %vm13529_vm14, %v7493_v37 }
 0xc7a   :  { %v7627_v2 = vpop.f32.mrb[12].mxu0 }
 0xc7b   :  { %v7703_v58 = vmul.f32 0.5, %v7627_v2  ;;  %v7629_v39 = vpop.f32.mrb[13].mxu0 }
 0xc7c   :  { %v7704_v35 = vmul.f32 0.5, %v7629_v39 }
 0xc7d   :  { %8360 = vtanh.f32 %v7703_v58 }
 0xc7e   :  { %8362 = vtanh.f32 %v7704_v35 }
 0xc7f   :  { %v7698_v17 = vpop.f32.mrb[14].mxu1 }
 0xc80   :  { %v7705_v15 = vmul.f32 0.5, %v7698_v17  ;;  %v7700_v21 = vpop.f32.mrb[15].mxu1 }
 0xc81   :  { %v7706_v52 = vmul.f32 0.5, %v7700_v21 }
 0xc82   :  { %8364 = vtanh.f32 %v7705_v15 }
 0xc83   :  { %8366 = vtanh.f32 %v7706_v52 }
 0xc87   :  { %v8361_v49 = vpop.eup %8360 }
 0xc88   :  { %v8363_v61 = vpop.eup %8362  ;;  %v7711_v50 = vadd.f32 1.0, %v8361_v49 }
 0xc89   :  { %v7712_v13 = vadd.f32 1.0, %v8363_v61 }
 0xc8a   :  { %v7715_v18 = vmul.f32 0.5, %v7711_v50 }
 0xc8b   :  { %v7716_v36 = vmul.f32 0.5, %v7712_v13 }
 0xc8c   :  { %v8365_v48 = vpop.eup %8364  ;;  %v7722_v27 = vrot.slane %v7715_v18, %v13530_v10 }
 0xc8d   :  { %v8367_v44 = vpop.eup %8366  ;;  %v7726_v54 = vrot.slane %v7716_v36, %v13530_v10  ;;  %v7713_v1 = vadd.f32 1.0, %v8365_v48 }
 0xc8e   :  { %v7735_v26 = vmul.f32 %v7722_v27, %v13531_v12  ;;  %v7714_v29 = vadd.f32 1.0, %v8367_v44 }
 0xc8f   :  { %v7736_v34 = vmul.f32 %v7726_v54, %v13532_v31  ;;  %v7717_v20 = vmul.f32 0.5, %v7713_v1 }
 0xc90   :  { %v7718_v0 = vmul.f32 0.5, %v7714_v29  ;;  %v7747_v30 = vmul.f32 %v7735_v26, %v7735_v26 }
 0xc91   :  { %v7730_v5 = vrot.slane %v7717_v20, %v13530_v10  ;;  %v7748_v57 = vmul.f32 %v7736_v34, %v7736_v34  ;;  %v7741_v41 = vadd.f32 %v7736_v34, %v7735_v26 }
 0xc92   :  { %v7734_v40 = vrot.slane %v7718_v0, %v13530_v10 }
 0xc93   :  { %v7737_v47 = vmul.f32 %v7730_v5, %v13533_v53  ;;  %v7751_v23 = vadd.f32 %v7748_v57, %v7747_v30 }
 0xc94   :  { %v7738_v59 = vmul.f32 %v7734_v40, %v13534_v9 }
 0xc95   :  { %v7742_v3 = vadd.f32 %v7741_v41, %v7737_v47  ;;  %v7749_v24 = vmul.f32 %v7737_v47, %v7737_v47 }
 0xc96   :  { %v7750_v28 = vmul.f32 %v7738_v59, %v7738_v59 }
 0xc97   :  { %v7743_v63 = vadd.f32 %v7742_v3, %v7738_v59  ;;  %v7752_v6 = vadd.f32 %v7751_v23, %v7749_v24 }
 0xc99   :  { %7744 = vadd.xlane.f32.xlu1 %v7743_v63  ;;  %v7753_v14 = vadd.f32 %v7752_v6, %v7750_v28 }
 0xc9b   :  { %7754 = vadd.xlane.f32.xlu0 %v7753_v14 }
 0xcaa   :  { %7781 = vperm.xlu1 %8350, %v7740_v55  }
 0xcb1   :  { %7772 = vperm.xlu0 %8349, %v7739_v46  }
 0xd26   :  { %v7745_v19 = vpop.xlane.xlu1 %7744 }
 0xd27   :  { %v7746_v16 = vmul.f32 0.001953125, %v7745_v19 }
 0xd28   :  { %v7755_v4 = vpop.xlane.xlu0 %7754 }
 0xd29   :  { %v7756_v25 = vmul.f32 0.001953125, %v7755_v4  ;;  %v7757_v60 = vmul.f32 %v7746_v16, %v7746_v16  ;;  %v7760_v8 = vsub.f32 %v7735_v26, %v7746_v16  ;;  %v7761_v45 = vsub.f32 %v7736_v34, %v7746_v16 }
 0xd2a   :  { %v7762_v43 = vsub.f32 %v7737_v47, %v7746_v16  ;;  %v7763_v7 = vsub.f32 %v7738_v59, %v7746_v16  ;;  %v7782_v35 = vpop.permute.xlu1 %7781 }
 0xd2b   :  { %v7758_v33 = vsub.f32 %v7756_v25, %v7757_v60 }
 0xd2d   :  { %v7759_v62 = vmax.f32 %v7758_v33, 0.0 }
 0xd2f   :  { %v7764_v11 = vadd.f32 1e-05, %v7759_v62 }
 0xd30   :  { %v7773_v42 = vpop.permute.xlu0 %7772 }
 0xd31   :  { %8368 = vrsqrt.f32 %v7764_v11 }
 0xd3b   :  { %v8369_v51 = vpop.eup %8368 }
 0xd3c   :  { %v7766_v32 = vmul.f32 %v8369_v51, %v7760_v8  ;;  %v7767_v38 = vmul.f32 %v8369_v51, %v7761_v45  ;;  %v7768_v37 = vmul.f32 %v8369_v51, %v7762_v43  ;;  %v7769_v56 = vmul.f32 %v8369_v51, %v7763_v7 }
 0xd3e   :  { %v7775_v22 = vmul.f32 %v7773_v42, %v7766_v32  ;;  %v7776_v2 = vmul.f32 %v7773_v42, %v7767_v38  ;;  %v7777_v58 = vmul.f32 %v7773_v42, %v7768_v37  ;;  %v7778_v39 = vmul.f32 %v7773_v42, %v7769_v56 }
 0xd40   :  { %v7784_v17 = vadd.f32 %v7782_v35, %v7775_v22  ;;  %v7785_v15 = vadd.f32 %v7782_v35, %v7776_v2  ;;  %v7786_v21 = vadd.f32 %v7782_v35, %v7777_v58  ;;  %v7787_v52 = vadd.f32 %v7782_v35, %v7778_v39 }
 0xd42   :  { %vm7788_vm9 = vcmp.gt.f32.partialorder %v7784_v17, 0.0  ;;  %vm7789_vm7 = vcmp.gt.f32.partialorder %v7785_v15, 0.0  ;;  %vm7790_vm12 = vcmp.gt.f32.partialorder %v7786_v21, 0.0  ;;  %vm7791_vm2 = vcmp.gt.f32.partialorder %v7787_v52, 0.0 }
 0xd43   :  { %v7792_v49 = vmul.f32 0.2, %v7784_v17  ;;  %v7793_v61 = vmul.f32 0.2, %v7785_v15  ;;  %v7794_v50 = vmul.f32 0.2, %v7786_v21 }
 0xd44   :  { %v7795_v13 = vmul.f32 0.2, %v7787_v52 }
 0xd45   :  { %v7796_v18 = vsel %vm7788_vm9, %v7784_v17, %v7792_v49  ;;  %v7797_v36 = vsel %vm7789_vm7, %v7785_v15, %v7793_v61  ;;  %v7798_v48 = vsel %vm7790_vm12, %v7786_v21, %v7794_v50 }
 0xd46   :  { %v7799_v10 = vsel %vm7791_vm2, %v7787_v52, %v7795_v13  ;;  %7800 = vst [vmem:[%s13537_s25] sm:$0xff] %v7796_v18  ;;  %7801 = vst [vmem:[%s13537_s25 + $0x8] sm:$0xff] %v7797_v36 }
 0xd47   :  { %7802 = vst [vmem:[%s13537_s25 + $0x10] sm:$0xff] %v7798_v48  ;;  %7803 = vst [vmem:[%s13537_s25 + $0x18] sm:$0xff] %v7799_v10 }

</bundles_post_ra>
